<compile_context>
chip_gen: v7x
topology: tpu7x:2x2x1
jax: 0.10.0
libtpu: 0.0.40
codegen_flags: <defaults>
</compile_context>

<pallas_src>
import math
import functools

import jax
import jax.numpy as jnp
from jax.experimental import pallas as pl
from jax.experimental.pallas import tpu as pltpu


# ----------------------------- in-kernel helpers -----------------------------

def _layer_norm(x, g, b, eps=1e-5):
    mu = jnp.mean(x, axis=-1, keepdims=True)
    var = jnp.mean(jnp.square(x - mu), axis=-1, keepdims=True)
    return (x - mu) * jax.lax.rsqrt(var + eps) * g + b


# ----------------------------- Pallas kernel ---------------------------------

def _decoder_layer_kernel(
    # per-step input blocks
    tgt_ref, qpos_ref, mem_ref, pos_ref,
    # self-attention (fused q/k projection; 1/sqrt(hd) already folded into the q half)
    sa_wqk, sa_bqk, sa_wv, sa_bv, sa_wo, sa_bo,
    # cross-attention (1/sqrt(hd) already folded into wq/bq)
    ca_wq, ca_bq, ca_wk, ca_bk, ca_wv, ca_bv, ca_wo, ca_bo,
    # feed-forward
    w1, b1, w2, b2,
    # layer norms
    n1_g, n1_b, n2_g, n2_b, n3_g, n3_b,
    # output block
    out_ref,
    *, nhead, approx_recip):
    f32 = jnp.float32
    bb, T, D = tgt_ref.shape
    S = mem_ref.shape[1]
    hd = D // nhead
    mdt = sa_wqk.dtype                       # MXU operand dtype (bf16 on the fast path)

    ldf = lambda r: r[...].astype(f32)       # load + promote (elementwise math in f32)

    tgt = ldf(tgt_ref).reshape(bb * T, D)
    qpos = ldf(qpos_ref).reshape(bb * T, D)
    mem = ldf(mem_ref).reshape(bb * S, D)
    pos = ldf(pos_ref).reshape(bb * S, D)

    def mm(x, w_ref, b_ref):
        # MXU matmul: operands in mdt, accumulate / bias add in f32.
        y = jnp.dot(x.astype(mdt), w_ref[...], preferred_element_type=f32)
        return y + ldf(b_ref)

    def split_heads(rows, L):
        # (bb*L, D) -> (bb*nhead, L, hd): head-major single leading batch dim.
        r = rows.reshape(bb, L, nhead, hd)
        return jnp.transpose(r, (0, 2, 1, 3)).reshape(bb * nhead, L, hd).astype(mdt)

    def attention(q_rows, k_rows, v_rows, Lk, wo_ref, bo_ref):
        qh = split_heads(q_rows, T)
        kh = split_heads(k_rows, Lk)
        vh = split_heads(v_rows, Lk)
        # One batched dot over merged (batch*heads); softmax scale already in q.
        s = jnp.einsum("bqd,bkd->bqk", qh, kh, preferred_element_type=f32)
        s = s - jnp.max(s, axis=-1, keepdims=True)
        p = jnp.exp(s)
        p = p * pl.reciprocal(jnp.sum(p, axis=-1, keepdims=True), approx=approx_recip)
        o = jnp.einsum("bqk,bkd->bqd", p.astype(mdt), vh, preferred_element_type=f32)
        # Merge heads back to a lane-dense (rows, D) slab, then plain 2-D out projection.
        o = jnp.transpose(o.reshape(bb, nhead, T, hd), (0, 2, 1, 3)).reshape(bb * T, D)
        return mm(o, wo_ref, bo_ref)

    # ---------------- self-attention (q = k = tgt + query_pos, value = tgt) ----------------
    qk = mm(tgt + qpos, sa_wqk, sa_bqk)                 # fused (D, 2D) projection
    q, k = qk[:, :D], qk[:, D:]
    v = mm(tgt, sa_wv, sa_bv)
    a = attention(q, k, v, T, sa_wo, sa_bo)
    x = _layer_norm(tgt + a, ldf(n1_g), ldf(n1_b))      # dropout1 = identity (eval)

    # ---------------- cross-attention (q = x + query_pos, k = mem + pos, v = mem) ----------
    q = mm(x + qpos, ca_wq, ca_bq)
    k = mm(mem + pos, ca_wk, ca_bk)
    v = mm(mem, ca_wv, ca_bv)
    a = attention(q, k, v, S, ca_wo, ca_bo)
    x = _layer_norm(x + a, ldf(n2_g), ldf(n2_b))        # dropout2 = identity

    # ---------------- feed-forward (relu) ----------------
    h = jnp.maximum(mm(x, w1, b1), 0.0)
    y = mm(h, w2, b2)
    x = _layer_norm(x + y, ldf(n3_g), ldf(n3_b))        # dropout3 = identity

    out_ref[...] = x.reshape(bb, T, D).astype(out_ref.dtype)


# ----------------------------- wrapper ----------------------------------------

def _hw_info():
    """(vmem_capacity_bytes, mxu_row_target) with safe fallbacks."""
    vmem_cap = 128 << 20
    try:
        vmem_cap = int(getattr(pltpu.get_tpu_info(), "vmem_capacity_bytes", vmem_cap))
    except Exception:
        pass
    target_rows = 256                         # v6e / v7x: 256-deep MXU
    try:
        kind = jax.devices()[0].device_kind.lower()
        if any(g in kind for g in ("v2", "v3", "v4", "v5")):
            target_rows = 128                 # 128x128 MXU generations
    except Exception:
        pass
    return vmem_cap, target_rows


def _pick_block_b(B, T, target_rows):
    """Prefer >=2 grid steps (megacore sharding + DMA overlap), then the smallest batch
    block whose row slab fills the MXU M dimension."""
    divisors = [d for d in range(1, B + 1) if B % d == 0]
    multi = [d for d in divisors if B // d >= 2]
    cand = multi if multi else divisors
    for d in cand:
        if d * T >= target_rows:
            return d
    return cand[-1]


def transformer_decoder_layer(tgt, memory, query_pos, pos, params, nhead,
                              *, compute_dtype=None, mxu_dtype=None, block_b=None):
    """tgt:(B,T,D) memory:(B,S,D) query_pos:(B,T,D) pos:(B,S,D) -> (B,T,D).

    compute_dtype: storage dtype of the activations at the pallas_call boundary.
    mxu_dtype:     dtype of matmul operands / weights inside the kernel (defaults to the
                   activation dtype). Softmax / LayerNorm math is always f32.
    """
    B, T, D = tgt.shape
    S = memory.shape[1]
    assert D % nhead == 0, "d_model must be divisible by nhead"
    hd = D // nhead
    scale = 1.0 / math.sqrt(hd)
    f32 = jnp.float32

    if compute_dtype is not None:
        tgt, memory, query_pos, pos = (a.astype(compute_dtype)
                                       for a in (tgt, memory, query_pos, pos))
    mxu_dtype = jnp.dtype(tgt.dtype if mxu_dtype is None else mxu_dtype)

    # ---- static weight prep: fuse self Q/K, fold softmax scale into Q; matmul weights in
    #      mxu_dtype, biases / LayerNorm params in f32. ----
    mx = lambda w: w.astype(mxu_dtype)
    fp = lambda w: w.astype(f32)
    sa_wqk = mx(jnp.concatenate([params["sa_wq"] * scale, params["sa_wk"]], axis=1))
    sa_bqk = fp(jnp.concatenate([params["sa_bq"] * scale, params["sa_bk"]], axis=1))
    weights = [
        sa_wqk, sa_bqk, mx(params["sa_wv"]), fp(params["sa_bv"]),
        mx(params["sa_wo"]), fp(params["sa_bo"]),
        mx(params["ca_wq"] * scale), fp(params["ca_bq"] * scale),
        mx(params["ca_wk"]), fp(params["ca_bk"]), mx(params["ca_wv"]), fp(params["ca_bv"]),
        mx(params["ca_wo"]), fp(params["ca_bo"]),
        mx(params["w1"]), fp(params["b1"]), mx(params["w2"]), fp(params["b2"]),
        fp(params["n1_g"]), fp(params["n1_b"]), fp(params["n2_g"]), fp(params["n2_b"]),
        fp(params["n3_g"]), fp(params["n3_b"]),
    ]

    vmem_cap, target_rows = _hw_info()
    bb = block_b if block_b is not None else _pick_block_b(B, T, target_rows)
    assert B % bb == 0
    grid = (B // bb,)

    F = params["w1"].shape[1]
    in_itemsize = jnp.dtype(tgt.dtype).itemsize
    weight_bytes = sum(int(w.size) * w.dtype.itemsize for w in weights)

    # ---- cost estimate (hint for XLA scheduling around the custom call) ----
    flops = 2 * B * (
        T * D * (2 * D)        # fused self q/k projection
        + T * D * D            # self v projection
        + 2 * T * T * D        # self attention scores + weighted values (all heads)
        + T * D * D            # self out projection
        + T * D * D            # cross q projection
        + 2 * S * D * D        # cross k/v projections
        + 2 * T * S * D        # cross attention
        + T * D * D            # cross out projection
        + 2 * T * D * F        # FFN
    )
    transcendentals = B * nhead * (T * T + T * S)
    bytes_accessed = int((tgt.size + query_pos.size + memory.size + pos.size
                          + B * T * D) * in_itemsize + weight_bytes)
    cost = pl.CostEstimate(flops=int(flops), transcendentals=int(transcendentals),
                           bytes_accessed=int(bytes_accessed))

    # f32 temporaries (promoted inputs, q/k/v, scores + probs, FFN hidden) - rough bound.
    tmp_bytes = 4 * (bb * (2 * T + 2 * S) * D + bb * (3 * T + 2 * S) * D
                     + 2 * bb * nhead * T * max(T, S) + bb * T * F)
    io_bytes = 2 * bb * (2 * T + 2 * S + T) * D * in_itemsize   # double-buffered in/out

    kernel = functools.partial(_decoder_layer_kernel, nhead=nhead,
                               approx_recip=(mxu_dtype != f32))

    def build(single_buffer_weights):
        def wspec(arr):
            n = arr.ndim
            idx = lambda b, _n=n: (0,) * _n
            if single_buffer_weights:
                # Constant block index across the grid -> no need to double-buffer.
                return pl.BlockSpec(arr.shape, idx, pipeline_mode=pl.Buffered(1))
            return pl.BlockSpec(arr.shape, idx)

        in_specs = [
            pl.BlockSpec((bb, T, D), lambda b: (b, 0, 0)),   # tgt
            pl.BlockSpec((bb, T, D), lambda b: (b, 0, 0)),   # query_pos
            pl.BlockSpec((bb, S, D), lambda b: (b, 0, 0)),   # memory
            pl.BlockSpec((bb, S, D), lambda b: (b, 0, 0)),   # pos
        ] + [wspec(w) for w in weights]

        wbuf = (1 if single_buffer_weights else 2) * weight_bytes
        vmem_limit = io_bytes + wbuf + tmp_bytes + (8 << 20)
        vmem_limit = int(min(max(vmem_limit, 16 << 20),
                             max(vmem_cap - (8 << 20), 16 << 20)))

        return pl.pallas_call(
            kernel,
            out_shape=jax.ShapeDtypeStruct((B, T, D), tgt.dtype),
            grid=grid,
            in_specs=in_specs,
            out_specs=pl.BlockSpec((bb, T, D), lambda b: (b, 0, 0)),
            compiler_params=pltpu.CompilerParams(
                dimension_semantics=("parallel",),
                vmem_limit_bytes=vmem_limit),
            cost_estimate=cost,
        )

    args = (tgt, query_pos, memory, pos, *weights)   # NOTE: order matches in_specs/kernel
    try:
        return build(True)(*args)
    except Exception:
        # Fallback if this jax version rejects pipeline_mode=pl.Buffered(1) on weights.
        return build(False)(*args)


# ----------------------------- pure-JAX reference (correctness check) ---------

def _reference(tgt, memory, query_pos, pos, p, nhead):
    def ln(x, g, b):
        mu = x.mean(-1, keepdims=True)
        var = ((x - mu) ** 2).mean(-1, keepdims=True)
        return (x - mu) / jnp.sqrt(var + 1e-5) * g + b

    def mha(q_in, k_in, v_in, wq, bq, wk, bk, wv, bv, wo, bo):
        B, Lq, D = q_in.shape
        Lk = k_in.shape[1]
        hd = D // nhead
        q = (q_in @ wq + bq).reshape(B, Lq, nhead, hd) * (1.0 / math.sqrt(hd))
        k = (k_in @ wk + bk).reshape(B, Lk, nhead, hd)
        v = (v_in @ wv + bv).reshape(B, Lk, nhead, hd)
        s = jnp.einsum("bqhd,bkhd->bhqk", q, k)
        a = jax.nn.softmax(s, axis=-1)
        o = jnp.einsum("bhqk,bkhd->bqhd", a, v).reshape(B, Lq, D)
        return o @ wo + bo

    x = tgt
    qk = x + query_pos
    t2 = mha(qk, qk, x, p["sa_wq"], p["sa_bq"], p["sa_wk"], p["sa_bk"],
             p["sa_wv"], p["sa_bv"], p["sa_wo"], p["sa_bo"])
    x = ln(x + t2, p["n1_g"], p["n1_b"])
    t2 = mha(x + query_pos, memory + pos, memory,
             p["ca_wq"], p["ca_bq"], p["ca_wk"], p["ca_bk"],
             p["ca_wv"], p["ca_bv"], p["ca_wo"], p["ca_bo"])
    x = ln(x + t2, p["n2_g"], p["n2_b"])
    t2 = jnp.maximum(x @ p["w1"] + p["b1"], 0.0) @ p["w2"] + p["b2"]
    x = ln(x + t2, p["n3_g"], p["n3_b"])
    return x


# ----------------------------- parameter construction -------------------------

def _make_params(key, d_model, nhead, dim_ff):
    ks = jax.random.split(key, 20)
    s = 0.1

    def rnd(k, shape):
        return jax.random.normal(k, shape, dtype=jnp.float32) * s

    # nn.MultiheadAttention: in_proj_weight (3d, d), y = x @ W^T -> store transposed.
    sa_in_w = rnd(ks[0], (3 * d_model, d_model))
    sa_in_b = rnd(ks[1], (3 * d_model,))
    ca_in_w = rnd(ks[2], (3 * d_model, d_model))
    ca_in_b = rnd(ks[3], (3 * d_model,))

    def split_qkv(w, b):
        wq, wk, wv = (w[i * d_model:(i + 1) * d_model].T for i in range(3))
        bq, bk, bv = (b[i * d_model:(i + 1) * d_model].reshape(1, d_model) for i in range(3))
        return wq, wk, wv, bq, bk, bv

    sa_wq, sa_wk, sa_wv, sa_bq, sa_bk, sa_bv = split_qkv(sa_in_w, sa_in_b)
    ca_wq, ca_wk, ca_wv, ca_bq, ca_bk, ca_bv = split_qkv(ca_in_w, ca_in_b)

    return {
        "sa_wq": sa_wq, "sa_wk": sa_wk, "sa_wv": sa_wv,
        "sa_bq": sa_bq, "sa_bk": sa_bk, "sa_bv": sa_bv,
        "sa_wo": rnd(ks[4], (d_model, d_model)).T,
        "sa_bo": rnd(ks[5], (d_model,)).reshape(1, d_model),
        "ca_wq": ca_wq, "ca_wk": ca_wk, "ca_wv": ca_wv,
        "ca_bq": ca_bq, "ca_bk": ca_bk, "ca_bv": ca_bv,
        "ca_wo": rnd(ks[6], (d_model, d_model)).T,
        "ca_bo": rnd(ks[7], (d_model,)).reshape(1, d_model),
        "w1": rnd(ks[8], (dim_ff, d_model)).T,                 # linear1: d_model -> dim_ff
        "b1": rnd(ks[9], (dim_ff,)).reshape(1, dim_ff),
        "w2": rnd(ks[10], (d_model, dim_ff)).T,                # linear2: dim_ff -> d_model
        "b2": rnd(ks[11], (d_model,)).reshape(1, d_model),
        "n1_g": 1.0 + rnd(ks[12], (1, d_model)), "n1_b": rnd(ks[13], (1, d_model)),
        "n2_g": 1.0 + rnd(ks[14], (1, d_model)), "n2_b": rnd(ks[15], (1, d_model)),
        "n3_g": 1.0 + rnd(ks[16], (1, d_model)), "n3_b": rnd(ks[17], (1, d_model)),
    }


# ----------------------------- main --------------------------------------------

if __name__ == "__main__":
    B, T, S = 2, 8, 16                      # batch, target queries, memory length
    d_model, nhead, dim_ff = 128, 8, 256    # lane-aligned small config

    key = jax.random.PRNGKey(0)
    k_t, k_m, k_qp, k_p, k_w = jax.random.split(key, 5)

    tgt = jax.random.normal(k_t, (B, T, d_model), dtype=jnp.float32)
    memory = jax.random.normal(k_m, (B, S, d_model), dtype=jnp.float32)
    query_pos = jax.random.normal(k_qp, (B, T, d_model), dtype=jnp.float32)
    pos = jax.random.normal(k_p, (B, S, d_model), dtype=jnp.float32)

    params = _make_params(k_w, d_model, nhead, dim_ff)

    ref = _reference(tgt, memory, query_pos, pos, params, nhead)

    # f32 path (f32 MXU operands, exact reciprocal) - tight check vs pure-JAX reference.
    out = transformer_decoder_layer(tgt, memory, query_pos, pos, params, nhead)
    out = jax.block_until_ready(out)
    assert out.shape == (B, T, d_model)
    err = float(jnp.max(jnp.abs(out - ref)))
    assert err < 2e-4, f"f32 mismatch vs pure-JAX reference: {err}"

    # bf16 storage + bf16 MXU operands (f32 softmax/LN math inside), default block picking.
    out_bf16 = transformer_decoder_layer(tgt, memory, query_pos, pos, params, nhead,
                                         compute_dtype=jnp.bfloat16)
    out_bf16 = jax.block_until_ready(out_bf16).astype(jnp.float32)
    err_bf16 = float(jnp.max(jnp.abs(out_bf16 - ref)))
    assert err_bf16 < 0.4, f"bf16 mismatch vs pure-JAX reference: {err_bf16}"

    # bf16 with multiple batch elements per grid step (exercises the bb > 1 batched path).
    out_bb = transformer_decoder_layer(tgt, memory, query_pos, pos, params, nhead,
                                       compute_dtype=jnp.bfloat16, block_b=B)
    out_bb = jax.block_until_ready(out_bb).astype(jnp.float32)
    err_bb = float(jnp.max(jnp.abs(out_bb - ref)))
    assert err_bb < 0.4, f"bf16 block_b={B} mismatch vs pure-JAX reference: {err_bb}"

    print("KERNEL_OK")
</pallas_src>

<mosaic_0001>
module attributes {stable_mosaic.version = 11 : i64} {
  func.func @_decoder_layer_kernel(%arg0: i32, %arg1: memref<1x8x128xf32, #tpu.memory_space<vmem>>, %arg2: memref<1x8x128xf32, #tpu.memory_space<vmem>>, %arg3: memref<1x16x128xf32, #tpu.memory_space<vmem>>, %arg4: memref<1x16x128xf32, #tpu.memory_space<vmem>>, %arg5: memref<128x256xf32, #tpu.memory_space<vmem>>, %arg6: memref<1x256xf32, #tpu.memory_space<vmem>>, %arg7: memref<128x128xf32, #tpu.memory_space<vmem>>, %arg8: memref<1x128xf32, #tpu.memory_space<vmem>>, %arg9: memref<128x128xf32, #tpu.memory_space<vmem>>, %arg10: memref<1x128xf32, #tpu.memory_space<vmem>>, %arg11: memref<128x128xf32, #tpu.memory_space<vmem>>, %arg12: memref<1x128xf32, #tpu.memory_space<vmem>>, %arg13: memref<128x128xf32, #tpu.memory_space<vmem>>, %arg14: memref<1x128xf32, #tpu.memory_space<vmem>>, %arg15: memref<128x128xf32, #tpu.memory_space<vmem>>, %arg16: memref<1x128xf32, #tpu.memory_space<vmem>>, %arg17: memref<128x128xf32, #tpu.memory_space<vmem>>, %arg18: memref<1x128xf32, #tpu.memory_space<vmem>>, %arg19: memref<128x256xf32, #tpu.memory_space<vmem>>, %arg20: memref<1x256xf32, #tpu.memory_space<vmem>>, %arg21: memref<256x128xf32, #tpu.memory_space<vmem>>, %arg22: memref<1x128xf32, #tpu.memory_space<vmem>>, %arg23: memref<1x128xf32, #tpu.memory_space<vmem>>, %arg24: memref<1x128xf32, #tpu.memory_space<vmem>>, %arg25: memref<1x128xf32, #tpu.memory_space<vmem>>, %arg26: memref<1x128xf32, #tpu.memory_space<vmem>>, %arg27: memref<1x128xf32, #tpu.memory_space<vmem>>, %arg28: memref<1x128xf32, #tpu.memory_space<vmem>>, %arg29: memref<1x8x128xf32, #tpu.memory_space<vmem>>) attributes {dimension_semantics = [#tpu.dimension_semantics<parallel>], iteration_bounds = array<i64: 2>, scalar_prefetch = 0 : i64, scratch_operands = 0 : i64, tpu.core_type = #tpu.core_type<tc>, window_params = [{transform_indices = @transform_0, window_bounds = array<i64: 1, 8, 128>}, {transform_indices = @transform_1, window_bounds = array<i64: 1, 8, 128>}, {transform_indices = @transform_2, window_bounds = array<i64: 1, 16, 128>}, {transform_indices = @transform_3, window_bounds = array<i64: 1, 16, 128>}, {pipeline_mode = #tpu.pipeline_mode<synchronous>, transform_indices = @transform_4, window_bounds = array<i64: 128, 256>}, {pipeline_mode = #tpu.pipeline_mode<synchronous>, transform_indices = @transform_5, window_bounds = array<i64: 1, 256>}, {pipeline_mode = #tpu.pipeline_mode<synchronous>, transform_indices = @transform_6, window_bounds = array<i64: 128, 128>}, {pipeline_mode = #tpu.pipeline_mode<synchronous>, transform_indices = @transform_7, window_bounds = array<i64: 1, 128>}, {pipeline_mode = #tpu.pipeline_mode<synchronous>, transform_indices = @transform_8, window_bounds = array<i64: 128, 128>}, {pipeline_mode = #tpu.pipeline_mode<synchronous>, transform_indices = @transform_9, window_bounds = array<i64: 1, 128>}, {pipeline_mode = #tpu.pipeline_mode<synchronous>, transform_indices = @transform_10, window_bounds = array<i64: 128, 128>}, {pipeline_mode = #tpu.pipeline_mode<synchronous>, transform_indices = @transform_11, window_bounds = array<i64: 1, 128>}, {pipeline_mode = #tpu.pipeline_mode<synchronous>, transform_indices = @transform_12, window_bounds = array<i64: 128, 128>}, {pipeline_mode = #tpu.pipeline_mode<synchronous>, transform_indices = @transform_13, window_bounds = array<i64: 1, 128>}, {pipeline_mode = #tpu.pipeline_mode<synchronous>, transform_indices = @transform_14, window_bounds = array<i64: 128, 128>}, {pipeline_mode = #tpu.pipeline_mode<synchronous>, transform_indices = @transform_15, window_bounds = array<i64: 1, 128>}, {pipeline_mode = #tpu.pipeline_mode<synchronous>, transform_indices = @transform_16, window_bounds = array<i64: 128, 128>}, {pipeline_mode = #tpu.pipeline_mode<synchronous>, transform_indices = @transform_17, window_bounds = array<i64: 1, 128>}, {pipeline_mode = #tpu.pipeline_mode<synchronous>, transform_indices = @transform_18, window_bounds = array<i64: 128, 256>}, {pipeline_mode = #tpu.pipeline_mode<synchronous>, transform_indices = @transform_19, window_bounds = array<i64: 1, 256>}, {pipeline_mode = #tpu.pipeline_mode<synchronous>, transform_indices = @transform_20, window_bounds = array<i64: 256, 128>}, {pipeline_mode = #tpu.pipeline_mode<synchronous>, transform_indices = @transform_21, window_bounds = array<i64: 1, 128>}, {pipeline_mode = #tpu.pipeline_mode<synchronous>, transform_indices = @transform_22, window_bounds = array<i64: 1, 128>}, {pipeline_mode = #tpu.pipeline_mode<synchronous>, transform_indices = @transform_23, window_bounds = array<i64: 1, 128>}, {pipeline_mode = #tpu.pipeline_mode<synchronous>, transform_indices = @transform_24, window_bounds = array<i64: 1, 128>}, {pipeline_mode = #tpu.pipeline_mode<synchronous>, transform_indices = @transform_25, window_bounds = array<i64: 1, 128>}, {pipeline_mode = #tpu.pipeline_mode<synchronous>, transform_indices = @transform_26, window_bounds = array<i64: 1, 128>}, {pipeline_mode = #tpu.pipeline_mode<synchronous>, transform_indices = @transform_27, window_bounds = array<i64: 1, 128>}, {transform_indices = @transform_28, window_bounds = array<i64: 1, 8, 128>}]} {
    %c0 = arith.constant 0 : index
    %c0_0 = arith.constant 0 : index
    %c0_1 = arith.constant 0 : index
    %0 = vector.load %arg1[%c0, %c0_0, %c0_1] : memref<1x8x128xf32, #tpu.memory_space<vmem>>, vector<1x8x128xf32>
    %1 = vector.shape_cast %0 : vector<1x8x128xf32> to vector<8x128xf32>
    %c0_2 = arith.constant 0 : index
    %c0_3 = arith.constant 0 : index
    %c0_4 = arith.constant 0 : index
    %2 = vector.load %arg2[%c0_2, %c0_3, %c0_4] : memref<1x8x128xf32, #tpu.memory_space<vmem>>, vector<1x8x128xf32>
    %3 = vector.shape_cast %2 : vector<1x8x128xf32> to vector<8x128xf32>
    %c0_5 = arith.constant 0 : index
    %c0_6 = arith.constant 0 : index
    %c0_7 = arith.constant 0 : index
    %4 = vector.load %arg3[%c0_5, %c0_6, %c0_7] : memref<1x16x128xf32, #tpu.memory_space<vmem>>, vector<1x16x128xf32>
    %5 = vector.shape_cast %4 : vector<1x16x128xf32> to vector<16x128xf32>
    %c0_8 = arith.constant 0 : index
    %c0_9 = arith.constant 0 : index
    %c0_10 = arith.constant 0 : index
    %6 = vector.load %arg4[%c0_8, %c0_9, %c0_10] : memref<1x16x128xf32, #tpu.memory_space<vmem>>, vector<1x16x128xf32>
    %7 = vector.shape_cast %6 : vector<1x16x128xf32> to vector<16x128xf32>
    %8 = arith.addf %1, %3 : vector<8x128xf32>
    %c0_11 = arith.constant 0 : index
    %c0_12 = arith.constant 0 : index
    %9 = vector.load %arg5[%c0_11, %c0_12] : memref<128x256xf32, #tpu.memory_space<vmem>>, vector<128x256xf32>
    %cst = arith.constant dense<0.000000e+00> : vector<8x256xf32>
    %10 = tpu.matmul %8, %9, %cst {dimension_numbers = #tpu.dot_dimension_numbers<[1], [0], [0], [1], [0, 0, 1, 1], [], []>} : vector<8x128xf32>, vector<128x256xf32>, vector<8x256xf32> -> vector<8x256xf32>
    %c0_13 = arith.constant 0 : index
    %c0_14 = arith.constant 0 : index
    %11 = vector.load %arg6[%c0_13, %c0_14] : memref<1x256xf32, #tpu.memory_space<vmem>>, vector<1x256xf32>
    %12 = vector.broadcast %11 : vector<1x256xf32> to vector<8x256xf32>
    %13 = arith.addf %10, %12 : vector<8x256xf32>
    %14 = vector.extract_strided_slice %13 {offsets = [0, 0], sizes = [8, 128], strides = [1, 1]} : vector<8x256xf32> to vector<8x128xf32>
    %15 = vector.extract_strided_slice %13 {offsets = [0, 128], sizes = [8, 128], strides = [1, 1]} : vector<8x256xf32> to vector<8x128xf32>
    %c0_15 = arith.constant 0 : index
    %c0_16 = arith.constant 0 : index
    %16 = vector.load %arg7[%c0_15, %c0_16] : memref<128x128xf32, #tpu.memory_space<vmem>>, vector<128x128xf32>
    %cst_17 = arith.constant dense<0.000000e+00> : vector<8x128xf32>
    %17 = tpu.matmul %1, %16, %cst_17 {dimension_numbers = #tpu.dot_dimension_numbers<[1], [0], [0], [1], [0, 0, 1, 1], [], []>} : vector<8x128xf32>, vector<128x128xf32>, vector<8x128xf32> -> vector<8x128xf32>
    %c0_18 = arith.constant 0 : index
    %c0_19 = arith.constant 0 : index
    %18 = vector.load %arg8[%c0_18, %c0_19] : memref<1x128xf32, #tpu.memory_space<vmem>>, vector<1x128xf32>
    %19 = vector.broadcast %18 : vector<1x128xf32> to vector<8x128xf32>
    %20 = arith.addf %17, %19 : vector<8x128xf32>
    %21 = vector.shape_cast %14 : vector<8x128xf32> to vector<1x8x8x16xf32>
    %22 = tpu.transpose %21, [0, 2, 1, 3] : vector<1x8x8x16xf32> -> vector<1x8x8x16xf32>
    %23 = vector.shape_cast %22 : vector<1x8x8x16xf32> to vector<8x8x16xf32>
    %24 = vector.shape_cast %15 : vector<8x128xf32> to vector<1x8x8x16xf32>
    %25 = tpu.transpose %24, [0, 2, 1, 3] : vector<1x8x8x16xf32> -> vector<1x8x8x16xf32>
    %26 = vector.shape_cast %25 : vector<1x8x8x16xf32> to vector<8x8x16xf32>
    %27 = vector.shape_cast %20 : vector<8x128xf32> to vector<1x8x8x16xf32>
    %28 = tpu.transpose %27, [0, 2, 1, 3] : vector<1x8x8x16xf32> -> vector<1x8x8x16xf32>
    %29 = vector.shape_cast %28 : vector<1x8x8x16xf32> to vector<8x8x16xf32>
    "tpu.trace_start"() <{level = 10 : i32, message = "bqd,bkd->bqk"}> : () -> ()
    %cst_20 = arith.constant dense<0.000000e+00> : vector<8x8x8xf32>
    %30 = tpu.matmul %23, %26, %cst_20 {dimension_numbers = #tpu.dot_dimension_numbers<[2], [2], [1], [1], [0, 0, 0, 1, 1, 1], [0], [0]>} : vector<8x8x16xf32>, vector<8x8x16xf32>, vector<8x8x8xf32> -> vector<8x8x8xf32>
    "tpu.trace_stop"() : () -> ()
    %cst_21 = arith.constant dense<0xFF800000> : vector<8x8xf32>
    %31 = vector.multi_reduction <maximumf>, %30, %cst_21 [2] : vector<8x8x8xf32> to vector<8x8xf32>
    %32 = vector.shape_cast %31 : vector<8x8xf32> to vector<8x8x1xf32>
    %33 = vector.broadcast %32 : vector<8x8x1xf32> to vector<8x8x8xf32>
    %34 = arith.subf %30, %33 : vector<8x8x8xf32>
    %35 = math.exp %34 : vector<8x8x8xf32>
    %cst_22 = arith.constant dense<0.000000e+00> : vector<8x8xf32>
    %36 = vector.multi_reduction <add>, %35, %cst_22 [2] : vector<8x8x8xf32> to vector<8x8xf32>
    %37 = vector.shape_cast %36 : vector<8x8xf32> to vector<8x8x1xf32>
    %38 = tpu.reciprocal %37 : vector<8x8x1xf32> -> vector<8x8x1xf32>
    %39 = vector.broadcast %38 : vector<8x8x1xf32> to vector<8x8x8xf32>
    %40 = arith.mulf %35, %39 : vector<8x8x8xf32>
    "tpu.trace_start"() <{level = 10 : i32, message = "bqk,bkd->bqd"}> : () -> ()
    %cst_23 = arith.constant dense<0.000000e+00> : vector<8x8x16xf32>
    %41 = tpu.matmul %40, %29, %cst_23 {dimension_numbers = #tpu.dot_dimension_numbers<[2], [1], [1], [2], [0, 0, 0, 1, 1, 2], [0], [0]>} : vector<8x8x8xf32>, vector<8x8x16xf32>, vector<8x8x16xf32> -> vector<8x8x16xf32>
    "tpu.trace_stop"() : () -> ()
    %42 = vector.shape_cast %41 : vector<8x8x16xf32> to vector<1x8x8x16xf32>
    %43 = tpu.transpose %42, [0, 2, 1, 3] : vector<1x8x8x16xf32> -> vector<1x8x8x16xf32>
    %44 = vector.shape_cast %43 : vector<1x8x8x16xf32> to vector<8x128xf32>
    %c0_24 = arith.constant 0 : index
    %c0_25 = arith.constant 0 : index
    %45 = vector.load %arg9[%c0_24, %c0_25] : memref<128x128xf32, #tpu.memory_space<vmem>>, vector<128x128xf32>
    %cst_26 = arith.constant dense<0.000000e+00> : vector<8x128xf32>
    %46 = tpu.matmul %44, %45, %cst_26 {dimension_numbers = #tpu.dot_dimension_numbers<[1], [0], [0], [1], [0, 0, 1, 1], [], []>} : vector<8x128xf32>, vector<128x128xf32>, vector<8x128xf32> -> vector<8x128xf32>
    %c0_27 = arith.constant 0 : index
    %c0_28 = arith.constant 0 : index
    %47 = vector.load %arg10[%c0_27, %c0_28] : memref<1x128xf32, #tpu.memory_space<vmem>>, vector<1x128xf32>
    %48 = vector.broadcast %47 : vector<1x128xf32> to vector<8x128xf32>
    %49 = arith.addf %46, %48 : vector<8x128xf32>
    %50 = arith.addf %1, %49 : vector<8x128xf32>
    %c0_29 = arith.constant 0 : index
    %c0_30 = arith.constant 0 : index
    %51 = vector.load %arg23[%c0_29, %c0_30] : memref<1x128xf32, #tpu.memory_space<vmem>>, vector<1x128xf32>
    %c0_31 = arith.constant 0 : index
    %c0_32 = arith.constant 0 : index
    %52 = vector.load %arg24[%c0_31, %c0_32] : memref<1x128xf32, #tpu.memory_space<vmem>>, vector<1x128xf32>
    %cst_33 = arith.constant dense<0.000000e+00> : vector<8xf32>
    %53 = vector.multi_reduction <add>, %50, %cst_33 [1] : vector<8x128xf32> to vector<8xf32>
    %54 = vector.shape_cast %53 : vector<8xf32> to vector<8x1xf32>
    %cst_34 = arith.constant 1.280000e+02 : f32
    %55 = vector.broadcast %cst_34 : f32 to vector<8x1xf32>
    %56 = arith.divf %54, %55 : vector<8x1xf32>
    %57 = vector.broadcast %56 : vector<8x1xf32> to vector<8x128xf32>
    %58 = arith.subf %50, %57 : vector<8x128xf32>
    %59 = arith.mulf %58, %58 : vector<8x128xf32>
    %cst_35 = arith.constant dense<0.000000e+00> : vector<8xf32>
    %60 = vector.multi_reduction <add>, %59, %cst_35 [1] : vector<8x128xf32> to vector<8xf32>
    %61 = vector.shape_cast %60 : vector<8xf32> to vector<8x1xf32>
    %cst_36 = arith.constant 1.280000e+02 : f32
    %62 = vector.broadcast %cst_36 : f32 to vector<8x1xf32>
    %63 = arith.divf %61, %62 : vector<8x1xf32>
    %64 = vector.broadcast %56 : vector<8x1xf32> to vector<8x128xf32>
    %65 = arith.subf %50, %64 : vector<8x128xf32>
    %cst_37 = arith.constant 9.99999974E-6 : f32
    %66 = vector.broadcast %cst_37 : f32 to vector<8x1xf32>
    %67 = arith.addf %63, %66 : vector<8x1xf32>
    %68 = math.rsqrt %67 : vector<8x1xf32>
    %69 = vector.broadcast %68 : vector<8x1xf32> to vector<8x128xf32>
    %70 = arith.mulf %65, %69 : vector<8x128xf32>
    %71 = vector.broadcast %51 : vector<1x128xf32> to vector<8x128xf32>
    %72 = arith.mulf %70, %71 : vector<8x128xf32>
    %73 = vector.broadcast %52 : vector<1x128xf32> to vector<8x128xf32>
    %74 = arith.addf %72, %73 : vector<8x128xf32>
    %75 = arith.addf %74, %3 : vector<8x128xf32>
    %c0_38 = arith.constant 0 : index
    %c0_39 = arith.constant 0 : index
    %76 = vector.load %arg11[%c0_38, %c0_39] : memref<128x128xf32, #tpu.memory_space<vmem>>, vector<128x128xf32>
    %cst_40 = arith.constant dense<0.000000e+00> : vector<8x128xf32>
    %77 = tpu.matmul %75, %76, %cst_40 {dimension_numbers = #tpu.dot_dimension_numbers<[1], [0], [0], [1], [0, 0, 1, 1], [], []>} : vector<8x128xf32>, vector<128x128xf32>, vector<8x128xf32> -> vector<8x128xf32>
    %c0_41 = arith.constant 0 : index
    %c0_42 = arith.constant 0 : index
    %78 = vector.load %arg12[%c0_41, %c0_42] : memref<1x128xf32, #tpu.memory_space<vmem>>, vector<1x128xf32>
    %79 = vector.broadcast %78 : vector<1x128xf32> to vector<8x128xf32>
    %80 = arith.addf %77, %79 : vector<8x128xf32>
    %81 = arith.addf %5, %7 : vector<16x128xf32>
    %c0_43 = arith.constant 0 : index
    %c0_44 = arith.constant 0 : index
    %82 = vector.load %arg13[%c0_43, %c0_44] : memref<128x128xf32, #tpu.memory_space<vmem>>, vector<128x128xf32>
    %cst_45 = arith.constant dense<0.000000e+00> : vector<16x128xf32>
    %83 = tpu.matmul %81, %82, %cst_45 {dimension_numbers = #tpu.dot_dimension_numbers<[1], [0], [0], [1], [0, 0, 1, 1], [], []>} : vector<16x128xf32>, vector<128x128xf32>, vector<16x128xf32> -> vector<16x128xf32>
    %c0_46 = arith.constant 0 : index
    %c0_47 = arith.constant 0 : index
    %84 = vector.load %arg14[%c0_46, %c0_47] : memref<1x128xf32, #tpu.memory_space<vmem>>, vector<1x128xf32>
    %85 = vector.broadcast %84 : vector<1x128xf32> to vector<16x128xf32>
    %86 = arith.addf %83, %85 : vector<16x128xf32>
    %c0_48 = arith.constant 0 : index
    %c0_49 = arith.constant 0 : index
    %87 = vector.load %arg15[%c0_48, %c0_49] : memref<128x128xf32, #tpu.memory_space<vmem>>, vector<128x128xf32>
    %cst_50 = arith.constant dense<0.000000e+00> : vector<16x128xf32>
    %88 = tpu.matmul %5, %87, %cst_50 {dimension_numbers = #tpu.dot_dimension_numbers<[1], [0], [0], [1], [0, 0, 1, 1], [], []>} : vector<16x128xf32>, vector<128x128xf32>, vector<16x128xf32> -> vector<16x128xf32>
    %c0_51 = arith.constant 0 : index
    %c0_52 = arith.constant 0 : index
    %89 = vector.load %arg16[%c0_51, %c0_52] : memref<1x128xf32, #tpu.memory_space<vmem>>, vector<1x128xf32>
    %90 = vector.broadcast %89 : vector<1x128xf32> to vector<16x128xf32>
    %91 = arith.addf %88, %90 : vector<16x128xf32>
    %92 = vector.shape_cast %80 : vector<8x128xf32> to vector<1x8x8x16xf32>
    %93 = tpu.transpose %92, [0, 2, 1, 3] : vector<1x8x8x16xf32> -> vector<1x8x8x16xf32>
    %94 = vector.shape_cast %93 : vector<1x8x8x16xf32> to vector<8x8x16xf32>
    %95 = vector.shape_cast %86 : vector<16x128xf32> to vector<1x16x8x16xf32>
    %96 = tpu.transpose %95, [0, 2, 1, 3] : vector<1x16x8x16xf32> -> vector<1x8x16x16xf32>
    %97 = vector.shape_cast %96 : vector<1x8x16x16xf32> to vector<8x16x16xf32>
    %98 = vector.shape_cast %91 : vector<16x128xf32> to vector<1x16x8x16xf32>
    %99 = tpu.transpose %98, [0, 2, 1, 3] : vector<1x16x8x16xf32> -> vector<1x8x16x16xf32>
    %100 = vector.shape_cast %99 : vector<1x8x16x16xf32> to vector<8x16x16xf32>
    "tpu.trace_start"() <{level = 10 : i32, message = "bqd,bkd->bqk"}> : () -> ()
    %cst_53 = arith.constant dense<0.000000e+00> : vector<8x8x16xf32>
    %101 = tpu.matmul %94, %97, %cst_53 {dimension_numbers = #tpu.dot_dimension_numbers<[2], [2], [1], [1], [0, 0, 0, 1, 1, 1], [0], [0]>} : vector<8x8x16xf32>, vector<8x16x16xf32>, vector<8x8x16xf32> -> vector<8x8x16xf32>
    "tpu.trace_stop"() : () -> ()
    %cst_54 = arith.constant dense<0xFF800000> : vector<8x8xf32>
    %102 = vector.multi_reduction <maximumf>, %101, %cst_54 [2] : vector<8x8x16xf32> to vector<8x8xf32>
    %103 = vector.shape_cast %102 : vector<8x8xf32> to vector<8x8x1xf32>
    %104 = vector.broadcast %103 : vector<8x8x1xf32> to vector<8x8x16xf32>
    %105 = arith.subf %101, %104 : vector<8x8x16xf32>
    %106 = math.exp %105 : vector<8x8x16xf32>
    %cst_55 = arith.constant dense<0.000000e+00> : vector<8x8xf32>
    %107 = vector.multi_reduction <add>, %106, %cst_55 [2] : vector<8x8x16xf32> to vector<8x8xf32>
    %108 = vector.shape_cast %107 : vector<8x8xf32> to vector<8x8x1xf32>
    %109 = tpu.reciprocal %108 : vector<8x8x1xf32> -> vector<8x8x1xf32>
    %110 = vector.broadcast %109 : vector<8x8x1xf32> to vector<8x8x16xf32>
    %111 = arith.mulf %106, %110 : vector<8x8x16xf32>
    "tpu.trace_start"() <{level = 10 : i32, message = "bqk,bkd->bqd"}> : () -> ()
    %cst_56 = arith.constant dense<0.000000e+00> : vector<8x8x16xf32>
    %112 = tpu.matmul %111, %100, %cst_56 {dimension_numbers = #tpu.dot_dimension_numbers<[2], [1], [1], [2], [0, 0, 0, 1, 1, 2], [0], [0]>} : vector<8x8x16xf32>, vector<8x16x16xf32>, vector<8x8x16xf32> -> vector<8x8x16xf32>
    "tpu.trace_stop"() : () -> ()
    %113 = vector.shape_cast %112 : vector<8x8x16xf32> to vector<1x8x8x16xf32>
    %114 = tpu.transpose %113, [0, 2, 1, 3] : vector<1x8x8x16xf32> -> vector<1x8x8x16xf32>
    %115 = vector.shape_cast %114 : vector<1x8x8x16xf32> to vector<8x128xf32>
    %c0_57 = arith.constant 0 : index
    %c0_58 = arith.constant 0 : index
    %116 = vector.load %arg17[%c0_57, %c0_58] : memref<128x128xf32, #tpu.memory_space<vmem>>, vector<128x128xf32>
    %cst_59 = arith.constant dense<0.000000e+00> : vector<8x128xf32>
    %117 = tpu.matmul %115, %116, %cst_59 {dimension_numbers = #tpu.dot_dimension_numbers<[1], [0], [0], [1], [0, 0, 1, 1], [], []>} : vector<8x128xf32>, vector<128x128xf32>, vector<8x128xf32> -> vector<8x128xf32>
    %c0_60 = arith.constant 0 : index
    %c0_61 = arith.constant 0 : index
    %118 = vector.load %arg18[%c0_60, %c0_61] : memref<1x128xf32, #tpu.memory_space<vmem>>, vector<1x128xf32>
    %119 = vector.broadcast %118 : vector<1x128xf32> to vector<8x128xf32>
    %120 = arith.addf %117, %119 : vector<8x128xf32>
    %121 = arith.addf %74, %120 : vector<8x128xf32>
    %c0_62 = arith.constant 0 : index
    %c0_63 = arith.constant 0 : index
    %122 = vector.load %arg25[%c0_62, %c0_63] : memref<1x128xf32, #tpu.memory_space<vmem>>, vector<1x128xf32>
    %c0_64 = arith.constant 0 : index
    %c0_65 = arith.constant 0 : index
    %123 = vector.load %arg26[%c0_64, %c0_65] : memref<1x128xf32, #tpu.memory_space<vmem>>, vector<1x128xf32>
    %cst_66 = arith.constant dense<0.000000e+00> : vector<8xf32>
    %124 = vector.multi_reduction <add>, %121, %cst_66 [1] : vector<8x128xf32> to vector<8xf32>
    %125 = vector.shape_cast %124 : vector<8xf32> to vector<8x1xf32>
    %cst_67 = arith.constant 1.280000e+02 : f32
    %126 = vector.broadcast %cst_67 : f32 to vector<8x1xf32>
    %127 = arith.divf %125, %126 : vector<8x1xf32>
    %128 = vector.broadcast %127 : vector<8x1xf32> to vector<8x128xf32>
    %129 = arith.subf %121, %128 : vector<8x128xf32>
    %130 = arith.mulf %129, %129 : vector<8x128xf32>
    %cst_68 = arith.constant dense<0.000000e+00> : vector<8xf32>
    %131 = vector.multi_reduction <add>, %130, %cst_68 [1] : vector<8x128xf32> to vector<8xf32>
    %132 = vector.shape_cast %131 : vector<8xf32> to vector<8x1xf32>
    %cst_69 = arith.constant 1.280000e+02 : f32
    %133 = vector.broadcast %cst_69 : f32 to vector<8x1xf32>
    %134 = arith.divf %132, %133 : vector<8x1xf32>
    %135 = vector.broadcast %127 : vector<8x1xf32> to vector<8x128xf32>
    %136 = arith.subf %121, %135 : vector<8x128xf32>
    %cst_70 = arith.constant 9.99999974E-6 : f32
    %137 = vector.broadcast %cst_70 : f32 to vector<8x1xf32>
    %138 = arith.addf %134, %137 : vector<8x1xf32>
    %139 = math.rsqrt %138 : vector<8x1xf32>
    %140 = vector.broadcast %139 : vector<8x1xf32> to vector<8x128xf32>
    %141 = arith.mulf %136, %140 : vector<8x128xf32>
    %142 = vector.broadcast %122 : vector<1x128xf32> to vector<8x128xf32>
    %143 = arith.mulf %141, %142 : vector<8x128xf32>
    %144 = vector.broadcast %123 : vector<1x128xf32> to vector<8x128xf32>
    %145 = arith.addf %143, %144 : vector<8x128xf32>
    %c0_71 = arith.constant 0 : index
    %c0_72 = arith.constant 0 : index
    %146 = vector.load %arg19[%c0_71, %c0_72] : memref<128x256xf32, #tpu.memory_space<vmem>>, vector<128x256xf32>
    %cst_73 = arith.constant dense<0.000000e+00> : vector<8x256xf32>
    %147 = tpu.matmul %145, %146, %cst_73 {dimension_numbers = #tpu.dot_dimension_numbers<[1], [0], [0], [1], [0, 0, 1, 1], [], []>} : vector<8x128xf32>, vector<128x256xf32>, vector<8x256xf32> -> vector<8x256xf32>
    %c0_74 = arith.constant 0 : index
    %c0_75 = arith.constant 0 : index
    %148 = vector.load %arg20[%c0_74, %c0_75] : memref<1x256xf32, #tpu.memory_space<vmem>>, vector<1x256xf32>
    %149 = vector.broadcast %148 : vector<1x256xf32> to vector<8x256xf32>
    %150 = arith.addf %147, %149 : vector<8x256xf32>
    %cst_76 = arith.constant 0.000000e+00 : f32
    %151 = vector.broadcast %cst_76 : f32 to vector<8x256xf32>
    %152 = arith.maximumf %150, %151 : vector<8x256xf32>
    %c0_77 = arith.constant 0 : index
    %c0_78 = arith.constant 0 : index
    %153 = vector.load %arg21[%c0_77, %c0_78] : memref<256x128xf32, #tpu.memory_space<vmem>>, vector<256x128xf32>
    %cst_79 = arith.constant dense<0.000000e+00> : vector<8x128xf32>
    %154 = tpu.matmul %152, %153, %cst_79 {dimension_numbers = #tpu.dot_dimension_numbers<[1], [0], [0], [1], [0, 0, 1, 1], [], []>} : vector<8x256xf32>, vector<256x128xf32>, vector<8x128xf32> -> vector<8x128xf32>
    %c0_80 = arith.constant 0 : index
    %c0_81 = arith.constant 0 : index
    %155 = vector.load %arg22[%c0_80, %c0_81] : memref<1x128xf32, #tpu.memory_space<vmem>>, vector<1x128xf32>
    %156 = vector.broadcast %155 : vector<1x128xf32> to vector<8x128xf32>
    %157 = arith.addf %154, %156 : vector<8x128xf32>
    %158 = arith.addf %145, %157 : vector<8x128xf32>
    %c0_82 = arith.constant 0 : index
    %c0_83 = arith.constant 0 : index
    %159 = vector.load %arg27[%c0_82, %c0_83] : memref<1x128xf32, #tpu.memory_space<vmem>>, vector<1x128xf32>
    %c0_84 = arith.constant 0 : index
    %c0_85 = arith.constant 0 : index
    %160 = vector.load %arg28[%c0_84, %c0_85] : memref<1x128xf32, #tpu.memory_space<vmem>>, vector<1x128xf32>
    %cst_86 = arith.constant dense<0.000000e+00> : vector<8xf32>
    %161 = vector.multi_reduction <add>, %158, %cst_86 [1] : vector<8x128xf32> to vector<8xf32>
    %162 = vector.shape_cast %161 : vector<8xf32> to vector<8x1xf32>
    %cst_87 = arith.constant 1.280000e+02 : f32
    %163 = vector.broadcast %cst_87 : f32 to vector<8x1xf32>
    %164 = arith.divf %162, %163 : vector<8x1xf32>
    %165 = vector.broadcast %164 : vector<8x1xf32> to vector<8x128xf32>
    %166 = arith.subf %158, %165 : vector<8x128xf32>
    %167 = arith.mulf %166, %166 : vector<8x128xf32>
    %cst_88 = arith.constant dense<0.000000e+00> : vector<8xf32>
    %168 = vector.multi_reduction <add>, %167, %cst_88 [1] : vector<8x128xf32> to vector<8xf32>
    %169 = vector.shape_cast %168 : vector<8xf32> to vector<8x1xf32>
    %cst_89 = arith.constant 1.280000e+02 : f32
    %170 = vector.broadcast %cst_89 : f32 to vector<8x1xf32>
    %171 = arith.divf %169, %170 : vector<8x1xf32>
    %172 = vector.broadcast %164 : vector<8x1xf32> to vector<8x128xf32>
    %173 = arith.subf %158, %172 : vector<8x128xf32>
    %cst_90 = arith.constant 9.99999974E-6 : f32
    %174 = vector.broadcast %cst_90 : f32 to vector<8x1xf32>
    %175 = arith.addf %171, %174 : vector<8x1xf32>
    %176 = math.rsqrt %175 : vector<8x1xf32>
    %177 = vector.broadcast %176 : vector<8x1xf32> to vector<8x128xf32>
    %178 = arith.mulf %173, %177 : vector<8x128xf32>
    %179 = vector.broadcast %159 : vector<1x128xf32> to vector<8x128xf32>
    %180 = arith.mulf %178, %179 : vector<8x128xf32>
    %181 = vector.broadcast %160 : vector<1x128xf32> to vector<8x128xf32>
    %182 = arith.addf %180, %181 : vector<8x128xf32>
    %183 = vector.shape_cast %182 : vector<8x128xf32> to vector<1x8x128xf32>
    %c0_91 = arith.constant 0 : index
    %c0_92 = arith.constant 0 : index
    %c0_93 = arith.constant 0 : index
    %184 = vector.load %arg29[%c0_91, %c0_92, %c0_93] : memref<1x8x128xf32, #tpu.memory_space<vmem>>, vector<1x8x128xf32>
    tpu.vector_store %arg29[%c0_91, %c0_92, %c0_93], %183 {strides = array<i32>} : memref<1x8x128xf32, #tpu.memory_space<vmem>>, vector<1x8x128xf32>,
    return
  }
  func.func @transform_0(%arg0: i32) -> (i32, i32, i32) {
    %c0_i32 = arith.constant 0 : i32
    %c0_i32_0 = arith.constant 0 : i32
    %c0_i32_1 = arith.constant 0 : i32
    return %arg0, %c0_i32, %c0_i32_0 : i32, i32, i32
  }
  func.func @transform_1(%arg0: i32) -> (i32, i32, i32) {
    %c0_i32 = arith.constant 0 : i32
    %c0_i32_0 = arith.constant 0 : i32
    %c0_i32_1 = arith.constant 0 : i32
    return %arg0, %c0_i32, %c0_i32_0 : i32, i32, i32
  }
  func.func @transform_2(%arg0: i32) -> (i32, i32, i32) {
    %c0_i32 = arith.constant 0 : i32
    %c0_i32_0 = arith.constant 0 : i32
    %c0_i32_1 = arith.constant 0 : i32
    return %arg0, %c0_i32, %c0_i32_0 : i32, i32, i32
  }
  func.func @transform_3(%arg0: i32) -> (i32, i32, i32) {
    %c0_i32 = arith.constant 0 : i32
    %c0_i32_0 = arith.constant 0 : i32
    %c0_i32_1 = arith.constant 0 : i32
    return %arg0, %c0_i32, %c0_i32_0 : i32, i32, i32
  }
  func.func @transform_4(%arg0: i32) -> (i32, i32) {
    %c0_i32 = arith.constant 0 : i32
    %c0_i32_0 = arith.constant 0 : i32
    %c0_i32_1 = arith.constant 0 : i32
    return %c0_i32, %c0_i32_0 : i32, i32
  }
  func.func @transform_5(%arg0: i32) -> (i32, i32) {
    %c0_i32 = arith.constant 0 : i32
    %c0_i32_0 = arith.constant 0 : i32
    %c0_i32_1 = arith.constant 0 : i32
    return %c0_i32, %c0_i32_0 : i32, i32
  }
  func.func @transform_6(%arg0: i32) -> (i32, i32) {
    %c0_i32 = arith.constant 0 : i32
    %c0_i32_0 = arith.constant 0 : i32
    %c0_i32_1 = arith.constant 0 : i32
    return %c0_i32, %c0_i32_0 : i32, i32
  }
  func.func @transform_7(%arg0: i32) -> (i32, i32) {
    %c0_i32 = arith.constant 0 : i32
    %c0_i32_0 = arith.constant 0 : i32
    %c0_i32_1 = arith.constant 0 : i32
    return %c0_i32, %c0_i32_0 : i32, i32
  }
  func.func @transform_8(%arg0: i32) -> (i32, i32) {
    %c0_i32 = arith.constant 0 : i32
    %c0_i32_0 = arith.constant 0 : i32
    %c0_i32_1 = arith.constant 0 : i32
    return %c0_i32, %c0_i32_0 : i32, i32
  }
  func.func @transform_9(%arg0: i32) -> (i32, i32) {
    %c0_i32 = arith.constant 0 : i32
    %c0_i32_0 = arith.constant 0 : i32
    %c0_i32_1 = arith.constant 0 : i32
    return %c0_i32, %c0_i32_0 : i32, i32
  }
  func.func @transform_10(%arg0: i32) -> (i32, i32) {
    %c0_i32 = arith.constant 0 : i32
    %c0_i32_0 = arith.constant 0 : i32
    %c0_i32_1 = arith.constant 0 : i32
    return %c0_i32, %c0_i32_0 : i32, i32
  }
  func.func @transform_11(%arg0: i32) -> (i32, i32) {
    %c0_i32 = arith.constant 0 : i32
    %c0_i32_0 = arith.constant 0 : i32
    %c0_i32_1 = arith.constant 0 : i32
    return %c0_i32, %c0_i32_0 : i32, i32
  }
  func.func @transform_12(%arg0: i32) -> (i32, i32) {
    %c0_i32 = arith.constant 0 : i32
    %c0_i32_0 = arith.constant 0 : i32
    %c0_i32_1 = arith.constant 0 : i32
    return %c0_i32, %c0_i32_0 : i32, i32
  }
  func.func @transform_13(%arg0: i32) -> (i32, i32) {
    %c0_i32 = arith.constant 0 : i32
    %c0_i32_0 = arith.constant 0 : i32
    %c0_i32_1 = arith.constant 0 : i32
    return %c0_i32, %c0_i32_0 : i32, i32
  }
  func.func @transform_14(%arg0: i32) -> (i32, i32) {
    %c0_i32 = arith.constant 0 : i32
    %c0_i32_0 = arith.constant 0 : i32
    %c0_i32_1 = arith.constant 0 : i32
    return %c0_i32, %c0_i32_0 : i32, i32
  }
  func.func @transform_15(%arg0: i32) -> (i32, i32) {
    %c0_i32 = arith.constant 0 : i32
    %c0_i32_0 = arith.constant 0 : i32
    %c0_i32_1 = arith.constant 0 : i32
    return %c0_i32, %c0_i32_0 : i32, i32
  }
  func.func @transform_16(%arg0: i32) -> (i32, i32) {
    %c0_i32 = arith.constant 0 : i32
    %c0_i32_0 = arith.constant 0 : i32
    %c0_i32_1 = arith.constant 0 : i32
    return %c0_i32, %c0_i32_0 : i32, i32
  }
  func.func @transform_17(%arg0: i32) -> (i32, i32) {
    %c0_i32 = arith.constant 0 : i32
    %c0_i32_0 = arith.constant 0 : i32
    %c0_i32_1 = arith.constant 0 : i32
    return %c0_i32, %c0_i32_0 : i32, i32
  }
  func.func @transform_18(%arg0: i32) -> (i32, i32) {
    %c0_i32 = arith.constant 0 : i32
    %c0_i32_0 = arith.constant 0 : i32
    %c0_i32_1 = arith.constant 0 : i32
    return %c0_i32, %c0_i32_0 : i32, i32
  }
  func.func @transform_19(%arg0: i32) -> (i32, i32) {
    %c0_i32 = arith.constant 0 : i32
    %c0_i32_0 = arith.constant 0 : i32
    %c0_i32_1 = arith.constant 0 : i32
    return %c0_i32, %c0_i32_0 : i32, i32
  }
  func.func @transform_20(%arg0: i32) -> (i32, i32) {
    %c0_i32 = arith.constant 0 : i32
    %c0_i32_0 = arith.constant 0 : i32
    %c0_i32_1 = arith.constant 0 : i32
    return %c0_i32, %c0_i32_0 : i32, i32
  }
  func.func @transform_21(%arg0: i32) -> (i32, i32) {
    %c0_i32 = arith.constant 0 : i32
    %c0_i32_0 = arith.constant 0 : i32
    %c0_i32_1 = arith.constant 0 : i32
    return %c0_i32, %c0_i32_0 : i32, i32
  }
  func.func @transform_22(%arg0: i32) -> (i32, i32) {
    %c0_i32 = arith.constant 0 : i32
    %c0_i32_0 = arith.constant 0 : i32
    %c0_i32_1 = arith.constant 0 : i32
    return %c0_i32, %c0_i32_0 : i32, i32
  }
  func.func @transform_23(%arg0: i32) -> (i32, i32) {
    %c0_i32 = arith.constant 0 : i32
    %c0_i32_0 = arith.constant 0 : i32
    %c0_i32_1 = arith.constant 0 : i32
    return %c0_i32, %c0_i32_0 : i32, i32
  }
  func.func @transform_24(%arg0: i32) -> (i32, i32) {
    %c0_i32 = arith.constant 0 : i32
    %c0_i32_0 = arith.constant 0 : i32
    %c0_i32_1 = arith.constant 0 : i32
    return %c0_i32, %c0_i32_0 : i32, i32
  }
  func.func @transform_25(%arg0: i32) -> (i32, i32) {
    %c0_i32 = arith.constant 0 : i32
    %c0_i32_0 = arith.constant 0 : i32
    %c0_i32_1 = arith.constant 0 : i32
    return %c0_i32, %c0_i32_0 : i32, i32
  }
  func.func @transform_26(%arg0: i32) -> (i32, i32) {
    %c0_i32 = arith.constant 0 : i32
    %c0_i32_0 = arith.constant 0 : i32
    %c0_i32_1 = arith.constant 0 : i32
    return %c0_i32, %c0_i32_0 : i32, i32
  }
  func.func @transform_27(%arg0: i32) -> (i32, i32) {
    %c0_i32 = arith.constant 0 : i32
    %c0_i32_0 = arith.constant 0 : i32
    %c0_i32_1 = arith.constant 0 : i32
    return %c0_i32, %c0_i32_0 : i32, i32
  }
  func.func @transform_28(%arg0: i32) -> (i32, i32, i32) {
    %c0_i32 = arith.constant 0 : i32
    %c0_i32_0 = arith.constant 0 : i32
    %c0_i32_1 = arith.constant 0 : i32
    return %arg0, %c0_i32, %c0_i32_0 : i32, i32, i32
  }
}

module attributes {stable_mosaic.version = 11 : i64} {
  func.func @_decoder_layer_kernel(%arg0: i32, %arg1: memref<1x8x128xf32, #tpu.memory_space<vmem>>, %arg2: memref<1x8x128xf32, #tpu.memory_space<vmem>>, %arg3: memref<1x16x128xf32, #tpu.memory_space<vmem>>, %arg4: memref<1x16x128xf32, #tpu.memory_space<vmem>>, %arg5: memref<128x256xf32, #tpu.memory_space<vmem>>, %arg6: memref<1x256xf32, #tpu.memory_space<vmem>>, %arg7: memref<128x128xf32, #tpu.memory_space<vmem>>, %arg8: memref<1x128xf32, #tpu.memory_space<vmem>>, %arg9: memref<128x128xf32, #tpu.memory_space<vmem>>, %arg10: memref<1x128xf32, #tpu.memory_space<vmem>>, %arg11: memref<128x128xf32, #tpu.memory_space<vmem>>, %arg12: memref<1x128xf32, #tpu.memory_space<vmem>>, %arg13: memref<128x128xf32, #tpu.memory_space<vmem>>, %arg14: memref<1x128xf32, #tpu.memory_space<vmem>>, %arg15: memref<128x128xf32, #tpu.memory_space<vmem>>, %arg16: memref<1x128xf32, #tpu.memory_space<vmem>>, %arg17: memref<128x128xf32, #tpu.memory_space<vmem>>, %arg18: memref<1x128xf32, #tpu.memory_space<vmem>>, %arg19: memref<128x256xf32, #tpu.memory_space<vmem>>, %arg20: memref<1x256xf32, #tpu.memory_space<vmem>>, %arg21: memref<256x128xf32, #tpu.memory_space<vmem>>, %arg22: memref<1x128xf32, #tpu.memory_space<vmem>>, %arg23: memref<1x128xf32, #tpu.memory_space<vmem>>, %arg24: memref<1x128xf32, #tpu.memory_space<vmem>>, %arg25: memref<1x128xf32, #tpu.memory_space<vmem>>, %arg26: memref<1x128xf32, #tpu.memory_space<vmem>>, %arg27: memref<1x128xf32, #tpu.memory_space<vmem>>, %arg28: memref<1x128xf32, #tpu.memory_space<vmem>>, %arg29: memref<1x8x128xf32, #tpu.memory_space<vmem>>) attributes {dimension_semantics = [#tpu.dimension_semantics<parallel>], iteration_bounds = array<i64: 2>, scalar_prefetch = 0 : i64, scratch_operands = 0 : i64, tpu.core_type = #tpu.core_type<tc>, window_params = [{transform_indices = @transform_0, window_bounds = array<i64: 1, 8, 128>}, {transform_indices = @transform_1, window_bounds = array<i64: 1, 8, 128>}, {transform_indices = @transform_2, window_bounds = array<i64: 1, 16, 128>}, {transform_indices = @transform_3, window_bounds = array<i64: 1, 16, 128>}, {pipeline_mode = #tpu.pipeline_mode<synchronous>, transform_indices = @transform_4, window_bounds = array<i64: 128, 256>}, {pipeline_mode = #tpu.pipeline_mode<synchronous>, transform_indices = @transform_5, window_bounds = array<i64: 1, 256>}, {pipeline_mode = #tpu.pipeline_mode<synchronous>, transform_indices = @transform_6, window_bounds = array<i64: 128, 128>}, {pipeline_mode = #tpu.pipeline_mode<synchronous>, transform_indices = @transform_7, window_bounds = array<i64: 1, 128>}, {pipeline_mode = #tpu.pipeline_mode<synchronous>, transform_indices = @transform_8, window_bounds = array<i64: 128, 128>}, {pipeline_mode = #tpu.pipeline_mode<synchronous>, transform_indices = @transform_9, window_bounds = array<i64: 1, 128>}, {pipeline_mode = #tpu.pipeline_mode<synchronous>, transform_indices = @transform_10, window_bounds = array<i64: 128, 128>}, {pipeline_mode = #tpu.pipeline_mode<synchronous>, transform_indices = @transform_11, window_bounds = array<i64: 1, 128>}, {pipeline_mode = #tpu.pipeline_mode<synchronous>, transform_indices = @transform_12, window_bounds = array<i64: 128, 128>}, {pipeline_mode = #tpu.pipeline_mode<synchronous>, transform_indices = @transform_13, window_bounds = array<i64: 1, 128>}, {pipeline_mode = #tpu.pipeline_mode<synchronous>, transform_indices = @transform_14, window_bounds = array<i64: 128, 128>}, {pipeline_mode = #tpu.pipeline_mode<synchronous>, transform_indices = @transform_15, window_bounds = array<i64: 1, 128>}, {pipeline_mode = #tpu.pipeline_mode<synchronous>, transform_indices = @transform_16, window_bounds = array<i64: 128, 128>}, {pipeline_mode = #tpu.pipeline_mode<synchronous>, transform_indices = @transform_17, window_bounds = array<i64: 1, 128>}, {pipeline_mode = #tpu.pipeline_mode<synchronous>, transform_indices = @transform_18, window_bounds = array<i64: 128, 256>}, {pipeline_mode = #tpu.pipeline_mode<synchronous>, transform_indices = @transform_19, window_bounds = array<i64: 1, 256>}, {pipeline_mode = #tpu.pipeline_mode<synchronous>, transform_indices = @transform_20, window_bounds = array<i64: 256, 128>}, {pipeline_mode = #tpu.pipeline_mode<synchronous>, transform_indices = @transform_21, window_bounds = array<i64: 1, 128>}, {pipeline_mode = #tpu.pipeline_mode<synchronous>, transform_indices = @transform_22, window_bounds = array<i64: 1, 128>}, {pipeline_mode = #tpu.pipeline_mode<synchronous>, transform_indices = @transform_23, window_bounds = array<i64: 1, 128>}, {pipeline_mode = #tpu.pipeline_mode<synchronous>, transform_indices = @transform_24, window_bounds = array<i64: 1, 128>}, {pipeline_mode = #tpu.pipeline_mode<synchronous>, transform_indices = @transform_25, window_bounds = array<i64: 1, 128>}, {pipeline_mode = #tpu.pipeline_mode<synchronous>, transform_indices = @transform_26, window_bounds = array<i64: 1, 128>}, {pipeline_mode = #tpu.pipeline_mode<synchronous>, transform_indices = @transform_27, window_bounds = array<i64: 1, 128>}, {transform_indices = @transform_28, window_bounds = array<i64: 1, 8, 128>}]} {
    %c0 = arith.constant 0 : index
    %c0_0 = arith.constant 0 : index
    %c0_1 = arith.constant 0 : index
    %0 = vector.load %arg1[%c0, %c0_0, %c0_1] : memref<1x8x128xf32, #tpu.memory_space<vmem>>, vector<1x8x128xf32>
    %1 = vector.shape_cast %0 : vector<1x8x128xf32> to vector<8x128xf32>
    %c0_2 = arith.constant 0 : index
    %c0_3 = arith.constant 0 : index
    %c0_4 = arith.constant 0 : index
    %2 = vector.load %arg2[%c0_2, %c0_3, %c0_4] : memref<1x8x128xf32, #tpu.memory_space<vmem>>, vector<1x8x128xf32>
    %3 = vector.shape_cast %2 : vector<1x8x128xf32> to vector<8x128xf32>
    %c0_5 = arith.constant 0 : index
    %c0_6 = arith.constant 0 : index
    %c0_7 = arith.constant 0 : index
    %4 = vector.load %arg3[%c0_5, %c0_6, %c0_7] : memref<1x16x128xf32, #tpu.memory_space<vmem>>, vector<1x16x128xf32>
    %5 = vector.shape_cast %4 : vector<1x16x128xf32> to vector<16x128xf32>
    %c0_8 = arith.constant 0 : index
    %c0_9 = arith.constant 0 : index
    %c0_10 = arith.constant 0 : index
    %6 = vector.load %arg4[%c0_8, %c0_9, %c0_10] : memref<1x16x128xf32, #tpu.memory_space<vmem>>, vector<1x16x128xf32>
    %7 = vector.shape_cast %6 : vector<1x16x128xf32> to vector<16x128xf32>
    %8 = arith.addf %1, %3 : vector<8x128xf32>
    %c0_11 = arith.constant 0 : index
    %c0_12 = arith.constant 0 : index
    %9 = vector.load %arg5[%c0_11, %c0_12] : memref<128x256xf32, #tpu.memory_space<vmem>>, vector<128x256xf32>
    %cst = arith.constant dense<0.000000e+00> : vector<8x256xf32>
    %10 = tpu.matmul %8, %9, %cst {dimension_numbers = #tpu.dot_dimension_numbers<[1], [0], [0], [1], [0, 0, 1, 1], [], []>} : vector<8x128xf32>, vector<128x256xf32>, vector<8x256xf32> -> vector<8x256xf32>
    %c0_13 = arith.constant 0 : index
    %c0_14 = arith.constant 0 : index
    %11 = vector.load %arg6[%c0_13, %c0_14] : memref<1x256xf32, #tpu.memory_space<vmem>>, vector<1x256xf32>
    %12 = vector.broadcast %11 : vector<1x256xf32> to vector<8x256xf32>
    %13 = arith.addf %10, %12 : vector<8x256xf32>
    %14 = vector.extract_strided_slice %13 {offsets = [0, 0], sizes = [8, 128], strides = [1, 1]} : vector<8x256xf32> to vector<8x128xf32>
    %15 = vector.extract_strided_slice %13 {offsets = [0, 128], sizes = [8, 128], strides = [1, 1]} : vector<8x256xf32> to vector<8x128xf32>
    %c0_15 = arith.constant 0 : index
    %c0_16 = arith.constant 0 : index
    %16 = vector.load %arg7[%c0_15, %c0_16] : memref<128x128xf32, #tpu.memory_space<vmem>>, vector<128x128xf32>
    %cst_17 = arith.constant dense<0.000000e+00> : vector<8x128xf32>
    %17 = tpu.matmul %1, %16, %cst_17 {dimension_numbers = #tpu.dot_dimension_numbers<[1], [0], [0], [1], [0, 0, 1, 1], [], []>} : vector<8x128xf32>, vector<128x128xf32>, vector<8x128xf32> -> vector<8x128xf32>
    %c0_18 = arith.constant 0 : index
    %c0_19 = arith.constant 0 : index
    %18 = vector.load %arg8[%c0_18, %c0_19] : memref<1x128xf32, #tpu.memory_space<vmem>>, vector<1x128xf32>
    %19 = vector.broadcast %18 : vector<1x128xf32> to vector<8x128xf32>
    %20 = arith.addf %17, %19 : vector<8x128xf32>
    %21 = vector.shape_cast %14 : vector<8x128xf32> to vector<1x8x8x16xf32>
    %22 = tpu.transpose %21, [0, 2, 1, 3] : vector<1x8x8x16xf32> -> vector<1x8x8x16xf32>
    %23 = vector.shape_cast %22 : vector<1x8x8x16xf32> to vector<8x8x16xf32>
    %24 = vector.shape_cast %15 : vector<8x128xf32> to vector<1x8x8x16xf32>
    %25 = tpu.transpose %24, [0, 2, 1, 3] : vector<1x8x8x16xf32> -> vector<1x8x8x16xf32>
    %26 = vector.shape_cast %25 : vector<1x8x8x16xf32> to vector<8x8x16xf32>
    %27 = vector.shape_cast %20 : vector<8x128xf32> to vector<1x8x8x16xf32>
    %28 = tpu.transpose %27, [0, 2, 1, 3] : vector<1x8x8x16xf32> -> vector<1x8x8x16xf32>
    %29 = vector.shape_cast %28 : vector<1x8x8x16xf32> to vector<8x8x16xf32>
    "tpu.trace_start"() <{level = 10 : i32, message = "bqd,bkd->bqk"}> : () -> ()
    %cst_20 = arith.constant dense<0.000000e+00> : vector<8x8x8xf32>
    %30 = tpu.matmul %23, %26, %cst_20 {dimension_numbers = #tpu.dot_dimension_numbers<[2], [2], [1], [1], [0, 0, 0, 1, 1, 1], [0], [0]>} : vector<8x8x16xf32>, vector<8x8x16xf32>, vector<8x8x8xf32> -> vector<8x8x8xf32>
    "tpu.trace_stop"() : () -> ()
    %cst_21 = arith.constant dense<0xFF800000> : vector<8x8xf32>
    %31 = vector.multi_reduction <maximumf>, %30, %cst_21 [2] : vector<8x8x8xf32> to vector<8x8xf32>
    %32 = vector.shape_cast %31 : vector<8x8xf32> to vector<8x8x1xf32>
    %33 = vector.broadcast %32 : vector<8x8x1xf32> to vector<8x8x8xf32>
    %34 = arith.subf %30, %33 : vector<8x8x8xf32>
    %35 = math.exp %34 : vector<8x8x8xf32>
    %cst_22 = arith.constant dense<0.000000e+00> : vector<8x8xf32>
    %36 = vector.multi_reduction <add>, %35, %cst_22 [2] : vector<8x8x8xf32> to vector<8x8xf32>
    %37 = vector.shape_cast %36 : vector<8x8xf32> to vector<8x8x1xf32>
    %38 = tpu.reciprocal %37 : vector<8x8x1xf32> -> vector<8x8x1xf32>
    %39 = vector.broadcast %38 : vector<8x8x1xf32> to vector<8x8x8xf32>
    %40 = arith.mulf %35, %39 : vector<8x8x8xf32>
    "tpu.trace_start"() <{level = 10 : i32, message = "bqk,bkd->bqd"}> : () -> ()
    %cst_23 = arith.constant dense<0.000000e+00> : vector<8x8x16xf32>
    %41 = tpu.matmul %40, %29, %cst_23 {dimension_numbers = #tpu.dot_dimension_numbers<[2], [1], [1], [2], [0, 0, 0, 1, 1, 2], [0], [0]>} : vector<8x8x8xf32>, vector<8x8x16xf32>, vector<8x8x16xf32> -> vector<8x8x16xf32>
    "tpu.trace_stop"() : () -> ()
    %42 = vector.shape_cast %41 : vector<8x8x16xf32> to vector<1x8x8x16xf32>
    %43 = tpu.transpose %42, [0, 2, 1, 3] : vector<1x8x8x16xf32> -> vector<1x8x8x16xf32>
    %44 = vector.shape_cast %43 : vector<1x8x8x16xf32> to vector<8x128xf32>
    %c0_24 = arith.constant 0 : index
    %c0_25 = arith.constant 0 : index
    %45 = vector.load %arg9[%c0_24, %c0_25] : memref<128x128xf32, #tpu.memory_space<vmem>>, vector<128x128xf32>
    %cst_26 = arith.constant dense<0.000000e+00> : vector<8x128xf32>
    %46 = tpu.matmul %44, %45, %cst_26 {dimension_numbers = #tpu.dot_dimension_numbers<[1], [0], [0], [1], [0, 0, 1, 1], [], []>} : vector<8x128xf32>, vector<128x128xf32>, vector<8x128xf32> -> vector<8x128xf32>
    %c0_27 = arith.constant 0 : index
    %c0_28 = arith.constant 0 : index
    %47 = vector.load %arg10[%c0_27, %c0_28] : memref<1x128xf32, #tpu.memory_space<vmem>>, vector<1x128xf32>
    %48 = vector.broadcast %47 : vector<1x128xf32> to vector<8x128xf32>
    %49 = arith.addf %46, %48 : vector<8x128xf32>
    %50 = arith.addf %1, %49 : vector<8x128xf32>
    %c0_29 = arith.constant 0 : index
    %c0_30 = arith.constant 0 : index
    %51 = vector.load %arg23[%c0_29, %c0_30] : memref<1x128xf32, #tpu.memory_space<vmem>>, vector<1x128xf32>
    %c0_31 = arith.constant 0 : index
    %c0_32 = arith.constant 0 : index
    %52 = vector.load %arg24[%c0_31, %c0_32] : memref<1x128xf32, #tpu.memory_space<vmem>>, vector<1x128xf32>
    %cst_33 = arith.constant dense<0.000000e+00> : vector<8xf32>
    %53 = vector.multi_reduction <add>, %50, %cst_33 [1] : vector<8x128xf32> to vector<8xf32>
    %54 = vector.shape_cast %53 : vector<8xf32> to vector<8x1xf32>
    %cst_34 = arith.constant 1.280000e+02 : f32
    %55 = vector.broadcast %cst_34 : f32 to vector<8x1xf32>
    %56 = arith.divf %54, %55 : vector<8x1xf32>
    %57 = vector.broadcast %56 : vector<8x1xf32> to vector<8x128xf32>
    %58 = arith.subf %50, %57 : vector<8x128xf32>
    %59 = arith.mulf %58, %58 : vector<8x128xf32>
    %cst_35 = arith.constant dense<0.000000e+00> : vector<8xf32>
    %60 = vector.multi_reduction <add>, %59, %cst_35 [1] : vector<8x128xf32> to vector<8xf32>
    %61 = vector.shape_cast %60 : vector<8xf32> to vector<8x1xf32>
    %cst_36 = arith.constant 1.280000e+02 : f32
    %62 = vector.broadcast %cst_36 : f32 to vector<8x1xf32>
    %63 = arith.divf %61, %62 : vector<8x1xf32>
    %64 = vector.broadcast %56 : vector<8x1xf32> to vector<8x128xf32>
    %65 = arith.subf %50, %64 : vector<8x128xf32>
    %cst_37 = arith.constant 9.99999974E-6 : f32
    %66 = vector.broadcast %cst_37 : f32 to vector<8x1xf32>
    %67 = arith.addf %63, %66 : vector<8x1xf32>
    %68 = math.rsqrt %67 : vector<8x1xf32>
    %69 = vector.broadcast %68 : vector<8x1xf32> to vector<8x128xf32>
    %70 = arith.mulf %65, %69 : vector<8x128xf32>
    %71 = vector.broadcast %51 : vector<1x128xf32> to vector<8x128xf32>
    %72 = arith.mulf %70, %71 : vector<8x128xf32>
    %73 = vector.broadcast %52 : vector<1x128xf32> to vector<8x128xf32>
    %74 = arith.addf %72, %73 : vector<8x128xf32>
    %75 = arith.addf %74, %3 : vector<8x128xf32>
    %c0_38 = arith.constant 0 : index
    %c0_39 = arith.constant 0 : index
    %76 = vector.load %arg11[%c0_38, %c0_39] : memref<128x128xf32, #tpu.memory_space<vmem>>, vector<128x128xf32>
    %cst_40 = arith.constant dense<0.000000e+00> : vector<8x128xf32>
    %77 = tpu.matmul %75, %76, %cst_40 {dimension_numbers = #tpu.dot_dimension_numbers<[1], [0], [0], [1], [0, 0, 1, 1], [], []>} : vector<8x128xf32>, vector<128x128xf32>, vector<8x128xf32> -> vector<8x128xf32>
    %c0_41 = arith.constant 0 : index
    %c0_42 = arith.constant 0 : index
    %78 = vector.load %arg12[%c0_41, %c0_42] : memref<1x128xf32, #tpu.memory_space<vmem>>, vector<1x128xf32>
    %79 = vector.broadcast %78 : vector<1x128xf32> to vector<8x128xf32>
    %80 = arith.addf %77, %79 : vector<8x128xf32>
    %81 = arith.addf %5, %7 : vector<16x128xf32>
    %c0_43 = arith.constant 0 : index
    %c0_44 = arith.constant 0 : index
    %82 = vector.load %arg13[%c0_43, %c0_44] : memref<128x128xf32, #tpu.memory_space<vmem>>, vector<128x128xf32>
    %cst_45 = arith.constant dense<0.000000e+00> : vector<16x128xf32>
    %83 = tpu.matmul %81, %82, %cst_45 {dimension_numbers = #tpu.dot_dimension_numbers<[1], [0], [0], [1], [0, 0, 1, 1], [], []>} : vector<16x128xf32>, vector<128x128xf32>, vector<16x128xf32> -> vector<16x128xf32>
    %c0_46 = arith.constant 0 : index
    %c0_47 = arith.constant 0 : index
    %84 = vector.load %arg14[%c0_46, %c0_47] : memref<1x128xf32, #tpu.memory_space<vmem>>, vector<1x128xf32>
    %85 = vector.broadcast %84 : vector<1x128xf32> to vector<16x128xf32>
    %86 = arith.addf %83, %85 : vector<16x128xf32>
    %c0_48 = arith.constant 0 : index
    %c0_49 = arith.constant 0 : index
    %87 = vector.load %arg15[%c0_48, %c0_49] : memref<128x128xf32, #tpu.memory_space<vmem>>, vector<128x128xf32>
    %cst_50 = arith.constant dense<0.000000e+00> : vector<16x128xf32>
    %88 = tpu.matmul %5, %87, %cst_50 {dimension_numbers = #tpu.dot_dimension_numbers<[1], [0], [0], [1], [0, 0, 1, 1], [], []>} : vector<16x128xf32>, vector<128x128xf32>, vector<16x128xf32> -> vector<16x128xf32>
    %c0_51 = arith.constant 0 : index
    %c0_52 = arith.constant 0 : index
    %89 = vector.load %arg16[%c0_51, %c0_52] : memref<1x128xf32, #tpu.memory_space<vmem>>, vector<1x128xf32>
    %90 = vector.broadcast %89 : vector<1x128xf32> to vector<16x128xf32>
    %91 = arith.addf %88, %90 : vector<16x128xf32>
    %92 = vector.shape_cast %80 : vector<8x128xf32> to vector<1x8x8x16xf32>
    %93 = tpu.transpose %92, [0, 2, 1, 3] : vector<1x8x8x16xf32> -> vector<1x8x8x16xf32>
    %94 = vector.shape_cast %93 : vector<1x8x8x16xf32> to vector<8x8x16xf32>
    %95 = vector.shape_cast %86 : vector<16x128xf32> to vector<1x16x8x16xf32>
    %96 = tpu.transpose %95, [0, 2, 1, 3] : vector<1x16x8x16xf32> -> vector<1x8x16x16xf32>
    %97 = vector.shape_cast %96 : vector<1x8x16x16xf32> to vector<8x16x16xf32>
    %98 = vector.shape_cast %91 : vector<16x128xf32> to vector<1x16x8x16xf32>
    %99 = tpu.transpose %98, [0, 2, 1, 3] : vector<1x16x8x16xf32> -> vector<1x8x16x16xf32>
    %100 = vector.shape_cast %99 : vector<1x8x16x16xf32> to vector<8x16x16xf32>
    "tpu.trace_start"() <{level = 10 : i32, message = "bqd,bkd->bqk"}> : () -> ()
    %cst_53 = arith.constant dense<0.000000e+00> : vector<8x8x16xf32>
    %101 = tpu.matmul %94, %97, %cst_53 {dimension_numbers = #tpu.dot_dimension_numbers<[2], [2], [1], [1], [0, 0, 0, 1, 1, 1], [0], [0]>} : vector<8x8x16xf32>, vector<8x16x16xf32>, vector<8x8x16xf32> -> vector<8x8x16xf32>
    "tpu.trace_stop"() : () -> ()
    %cst_54 = arith.constant dense<0xFF800000> : vector<8x8xf32>
    %102 = vector.multi_reduction <maximumf>, %101, %cst_54 [2] : vector<8x8x16xf32> to vector<8x8xf32>
    %103 = vector.shape_cast %102 : vector<8x8xf32> to vector<8x8x1xf32>
    %104 = vector.broadcast %103 : vector<8x8x1xf32> to vector<8x8x16xf32>
    %105 = arith.subf %101, %104 : vector<8x8x16xf32>
    %106 = math.exp %105 : vector<8x8x16xf32>
    %cst_55 = arith.constant dense<0.000000e+00> : vector<8x8xf32>
    %107 = vector.multi_reduction <add>, %106, %cst_55 [2] : vector<8x8x16xf32> to vector<8x8xf32>
    %108 = vector.shape_cast %107 : vector<8x8xf32> to vector<8x8x1xf32>
    %109 = tpu.reciprocal %108 : vector<8x8x1xf32> -> vector<8x8x1xf32>
    %110 = vector.broadcast %109 : vector<8x8x1xf32> to vector<8x8x16xf32>
    %111 = arith.mulf %106, %110 : vector<8x8x16xf32>
    "tpu.trace_start"() <{level = 10 : i32, message = "bqk,bkd->bqd"}> : () -> ()
    %cst_56 = arith.constant dense<0.000000e+00> : vector<8x8x16xf32>
    %112 = tpu.matmul %111, %100, %cst_56 {dimension_numbers = #tpu.dot_dimension_numbers<[2], [1], [1], [2], [0, 0, 0, 1, 1, 2], [0], [0]>} : vector<8x8x16xf32>, vector<8x16x16xf32>, vector<8x8x16xf32> -> vector<8x8x16xf32>
    "tpu.trace_stop"() : () -> ()
    %113 = vector.shape_cast %112 : vector<8x8x16xf32> to vector<1x8x8x16xf32>
    %114 = tpu.transpose %113, [0, 2, 1, 3] : vector<1x8x8x16xf32> -> vector<1x8x8x16xf32>
    %115 = vector.shape_cast %114 : vector<1x8x8x16xf32> to vector<8x128xf32>
    %c0_57 = arith.constant 0 : index
    %c0_58 = arith.constant 0 : index
    %116 = vector.load %arg17[%c0_57, %c0_58] : memref<128x128xf32, #tpu.memory_space<vmem>>, vector<128x128xf32>
    %cst_59 = arith.constant dense<0.000000e+00> : vector<8x128xf32>
    %117 = tpu.matmul %115, %116, %cst_59 {dimension_numbers = #tpu.dot_dimension_numbers<[1], [0], [0], [1], [0, 0, 1, 1], [], []>} : vector<8x128xf32>, vector<128x128xf32>, vector<8x128xf32> -> vector<8x128xf32>
    %c0_60 = arith.constant 0 : index
    %c0_61 = arith.constant 0 : index
    %118 = vector.load %arg18[%c0_60, %c0_61] : memref<1x128xf32, #tpu.memory_space<vmem>>, vector<1x128xf32>
    %119 = vector.broadcast %118 : vector<1x128xf32> to vector<8x128xf32>
    %120 = arith.addf %117, %119 : vector<8x128xf32>
    %121 = arith.addf %74, %120 : vector<8x128xf32>
    %c0_62 = arith.constant 0 : index
    %c0_63 = arith.constant 0 : index
    %122 = vector.load %arg25[%c0_62, %c0_63] : memref<1x128xf32, #tpu.memory_space<vmem>>, vector<1x128xf32>
    %c0_64 = arith.constant 0 : index
    %c0_65 = arith.constant 0 : index
    %123 = vector.load %arg26[%c0_64, %c0_65] : memref<1x128xf32, #tpu.memory_space<vmem>>, vector<1x128xf32>
    %cst_66 = arith.constant dense<0.000000e+00> : vector<8xf32>
    %124 = vector.multi_reduction <add>, %121, %cst_66 [1] : vector<8x128xf32> to vector<8xf32>
    %125 = vector.shape_cast %124 : vector<8xf32> to vector<8x1xf32>
    %cst_67 = arith.constant 1.280000e+02 : f32
    %126 = vector.broadcast %cst_67 : f32 to vector<8x1xf32>
    %127 = arith.divf %125, %126 : vector<8x1xf32>
    %128 = vector.broadcast %127 : vector<8x1xf32> to vector<8x128xf32>
    %129 = arith.subf %121, %128 : vector<8x128xf32>
    %130 = arith.mulf %129, %129 : vector<8x128xf32>
    %cst_68 = arith.constant dense<0.000000e+00> : vector<8xf32>
    %131 = vector.multi_reduction <add>, %130, %cst_68 [1] : vector<8x128xf32> to vector<8xf32>
    %132 = vector.shape_cast %131 : vector<8xf32> to vector<8x1xf32>
    %cst_69 = arith.constant 1.280000e+02 : f32
    %133 = vector.broadcast %cst_69 : f32 to vector<8x1xf32>
    %134 = arith.divf %132, %133 : vector<8x1xf32>
    %135 = vector.broadcast %127 : vector<8x1xf32> to vector<8x128xf32>
    %136 = arith.subf %121, %135 : vector<8x128xf32>
    %cst_70 = arith.constant 9.99999974E-6 : f32
    %137 = vector.broadcast %cst_70 : f32 to vector<8x1xf32>
    %138 = arith.addf %134, %137 : vector<8x1xf32>
    %139 = math.rsqrt %138 : vector<8x1xf32>
    %140 = vector.broadcast %139 : vector<8x1xf32> to vector<8x128xf32>
    %141 = arith.mulf %136, %140 : vector<8x128xf32>
    %142 = vector.broadcast %122 : vector<1x128xf32> to vector<8x128xf32>
    %143 = arith.mulf %141, %142 : vector<8x128xf32>
    %144 = vector.broadcast %123 : vector<1x128xf32> to vector<8x128xf32>
    %145 = arith.addf %143, %144 : vector<8x128xf32>
    %c0_71 = arith.constant 0 : index
    %c0_72 = arith.constant 0 : index
    %146 = vector.load %arg19[%c0_71, %c0_72] : memref<128x256xf32, #tpu.memory_space<vmem>>, vector<128x256xf32>
    %cst_73 = arith.constant dense<0.000000e+00> : vector<8x256xf32>
    %147 = tpu.matmul %145, %146, %cst_73 {dimension_numbers = #tpu.dot_dimension_numbers<[1], [0], [0], [1], [0, 0, 1, 1], [], []>} : vector<8x128xf32>, vector<128x256xf32>, vector<8x256xf32> -> vector<8x256xf32>
    %c0_74 = arith.constant 0 : index
    %c0_75 = arith.constant 0 : index
    %148 = vector.load %arg20[%c0_74, %c0_75] : memref<1x256xf32, #tpu.memory_space<vmem>>, vector<1x256xf32>
    %149 = vector.broadcast %148 : vector<1x256xf32> to vector<8x256xf32>
    %150 = arith.addf %147, %149 : vector<8x256xf32>
    %cst_76 = arith.constant 0.000000e+00 : f32
    %151 = vector.broadcast %cst_76 : f32 to vector<8x256xf32>
    %152 = arith.maximumf %150, %151 : vector<8x256xf32>
    %c0_77 = arith.constant 0 : index
    %c0_78 = arith.constant 0 : index
    %153 = vector.load %arg21[%c0_77, %c0_78] : memref<256x128xf32, #tpu.memory_space<vmem>>, vector<256x128xf32>
    %cst_79 = arith.constant dense<0.000000e+00> : vector<8x128xf32>
    %154 = tpu.matmul %152, %153, %cst_79 {dimension_numbers = #tpu.dot_dimension_numbers<[1], [0], [0], [1], [0, 0, 1, 1], [], []>} : vector<8x256xf32>, vector<256x128xf32>, vector<8x128xf32> -> vector<8x128xf32>
    %c0_80 = arith.constant 0 : index
    %c0_81 = arith.constant 0 : index
    %155 = vector.load %arg22[%c0_80, %c0_81] : memref<1x128xf32, #tpu.memory_space<vmem>>, vector<1x128xf32>
    %156 = vector.broadcast %155 : vector<1x128xf32> to vector<8x128xf32>
    %157 = arith.addf %154, %156 : vector<8x128xf32>
    %158 = arith.addf %145, %157 : vector<8x128xf32>
    %c0_82 = arith.constant 0 : index
    %c0_83 = arith.constant 0 : index
    %159 = vector.load %arg27[%c0_82, %c0_83] : memref<1x128xf32, #tpu.memory_space<vmem>>, vector<1x128xf32>
    %c0_84 = arith.constant 0 : index
    %c0_85 = arith.constant 0 : index
    %160 = vector.load %arg28[%c0_84, %c0_85] : memref<1x128xf32, #tpu.memory_space<vmem>>, vector<1x128xf32>
    %cst_86 = arith.constant dense<0.000000e+00> : vector<8xf32>
    %161 = vector.multi_reduction <add>, %158, %cst_86 [1] : vector<8x128xf32> to vector<8xf32>
    %162 = vector.shape_cast %161 : vector<8xf32> to vector<8x1xf32>
    %cst_87 = arith.constant 1.280000e+02 : f32
    %163 = vector.broadcast %cst_87 : f32 to vector<8x1xf32>
    %164 = arith.divf %162, %163 : vector<8x1xf32>
    %165 = vector.broadcast %164 : vector<8x1xf32> to vector<8x128xf32>
    %166 = arith.subf %158, %165 : vector<8x128xf32>
    %167 = arith.mulf %166, %166 : vector<8x128xf32>
    %cst_88 = arith.constant dense<0.000000e+00> : vector<8xf32>
    %168 = vector.multi_reduction <add>, %167, %cst_88 [1] : vector<8x128xf32> to vector<8xf32>
    %169 = vector.shape_cast %168 : vector<8xf32> to vector<8x1xf32>
    %cst_89 = arith.constant 1.280000e+02 : f32
    %170 = vector.broadcast %cst_89 : f32 to vector<8x1xf32>
    %171 = arith.divf %169, %170 : vector<8x1xf32>
    %172 = vector.broadcast %164 : vector<8x1xf32> to vector<8x128xf32>
    %173 = arith.subf %158, %172 : vector<8x128xf32>
    %cst_90 = arith.constant 9.99999974E-6 : f32
    %174 = vector.broadcast %cst_90 : f32 to vector<8x1xf32>
    %175 = arith.addf %171, %174 : vector<8x1xf32>
    %176 = math.rsqrt %175 : vector<8x1xf32>
    %177 = vector.broadcast %176 : vector<8x1xf32> to vector<8x128xf32>
    %178 = arith.mulf %173, %177 : vector<8x128xf32>
    %179 = vector.broadcast %159 : vector<1x128xf32> to vector<8x128xf32>
    %180 = arith.mulf %178, %179 : vector<8x128xf32>
    %181 = vector.broadcast %160 : vector<1x128xf32> to vector<8x128xf32>
    %182 = arith.addf %180, %181 : vector<8x128xf32>
    %183 = vector.shape_cast %182 : vector<8x128xf32> to vector<1x8x128xf32>
    %c0_91 = arith.constant 0 : index
    %c0_92 = arith.constant 0 : index
    %c0_93 = arith.constant 0 : index
    %184 = vector.load %arg29[%c0_91, %c0_92, %c0_93] : memref<1x8x128xf32, #tpu.memory_space<vmem>>, vector<1x8x128xf32>
    tpu.vector_store %arg29[%c0_91, %c0_92, %c0_93], %183 {strides = array<i32>} : memref<1x8x128xf32, #tpu.memory_space<vmem>>, vector<1x8x128xf32>,
    return
  }
  func.func @transform_0(%arg0: i32) -> (i32, i32, i32) {
    %c0_i32 = arith.constant 0 : i32
    %c0_i32_0 = arith.constant 0 : i32
    %c0_i32_1 = arith.constant 0 : i32
    return %arg0, %c0_i32, %c0_i32_0 : i32, i32, i32
  }
  func.func @transform_1(%arg0: i32) -> (i32, i32, i32) {
    %c0_i32 = arith.constant 0 : i32
    %c0_i32_0 = arith.constant 0 : i32
    %c0_i32_1 = arith.constant 0 : i32
    return %arg0, %c0_i32, %c0_i32_0 : i32, i32, i32
  }
  func.func @transform_2(%arg0: i32) -> (i32, i32, i32) {
    %c0_i32 = arith.constant 0 : i32
    %c0_i32_0 = arith.constant 0 : i32
    %c0_i32_1 = arith.constant 0 : i32
    return %arg0, %c0_i32, %c0_i32_0 : i32, i32, i32
  }
  func.func @transform_3(%arg0: i32) -> (i32, i32, i32) {
    %c0_i32 = arith.constant 0 : i32
    %c0_i32_0 = arith.constant 0 : i32
    %c0_i32_1 = arith.constant 0 : i32
    return %arg0, %c0_i32, %c0_i32_0 : i32, i32, i32
  }
  func.func @transform_4(%arg0: i32) -> (i32, i32) {
    %c0_i32 = arith.constant 0 : i32
    %c0_i32_0 = arith.constant 0 : i32
    %c0_i32_1 = arith.constant 0 : i32
    return %c0_i32, %c0_i32_0 : i32, i32
  }
  func.func @transform_5(%arg0: i32) -> (i32, i32) {
    %c0_i32 = arith.constant 0 : i32
    %c0_i32_0 = arith.constant 0 : i32
    %c0_i32_1 = arith.constant 0 : i32
    return %c0_i32, %c0_i32_0 : i32, i32
  }
  func.func @transform_6(%arg0: i32) -> (i32, i32) {
    %c0_i32 = arith.constant 0 : i32
    %c0_i32_0 = arith.constant 0 : i32
    %c0_i32_1 = arith.constant 0 : i32
    return %c0_i32, %c0_i32_0 : i32, i32
  }
  func.func @transform_7(%arg0: i32) -> (i32, i32) {
    %c0_i32 = arith.constant 0 : i32
    %c0_i32_0 = arith.constant 0 : i32
    %c0_i32_1 = arith.constant 0 : i32
    return %c0_i32, %c0_i32_0 : i32, i32
  }
  func.func @transform_8(%arg0: i32) -> (i32, i32) {
    %c0_i32 = arith.constant 0 : i32
    %c0_i32_0 = arith.constant 0 : i32
    %c0_i32_1 = arith.constant 0 : i32
    return %c0_i32, %c0_i32_0 : i32, i32
  }
  func.func @transform_9(%arg0: i32) -> (i32, i32) {
    %c0_i32 = arith.constant 0 : i32
    %c0_i32_0 = arith.constant 0 : i32
    %c0_i32_1 = arith.constant 0 : i32
    return %c0_i32, %c0_i32_0 : i32, i32
  }
  func.func @transform_10(%arg0: i32) -> (i32, i32) {
    %c0_i32 = arith.constant 0 : i32
    %c0_i32_0 = arith.constant 0 : i32
    %c0_i32_1 = arith.constant 0 : i32
    return %c0_i32, %c0_i32_0 : i32, i32
  }
  func.func @transform_11(%arg0: i32) -> (i32, i32) {
    %c0_i32 = arith.constant 0 : i32
    %c0_i32_0 = arith.constant 0 : i32
    %c0_i32_1 = arith.constant 0 : i32
    return %c0_i32, %c0_i32_0 : i32, i32
  }
  func.func @transform_12(%arg0: i32) -> (i32, i32) {
    %c0_i32 = arith.constant 0 : i32
    %c0_i32_0 = arith.constant 0 : i32
    %c0_i32_1 = arith.constant 0 : i32
    return %c0_i32, %c0_i32_0 : i32, i32
  }
  func.func @transform_13(%arg0: i32) -> (i32, i32) {
    %c0_i32 = arith.constant 0 : i32
    %c0_i32_0 = arith.constant 0 : i32
    %c0_i32_1 = arith.constant 0 : i32
    return %c0_i32, %c0_i32_0 : i32, i32
  }
  func.func @transform_14(%arg0: i32) -> (i32, i32) {
    %c0_i32 = arith.constant 0 : i32
    %c0_i32_0 = arith.constant 0 : i32
    %c0_i32_1 = arith.constant 0 : i32
    return %c0_i32, %c0_i32_0 : i32, i32
  }
  func.func @transform_15(%arg0: i32) -> (i32, i32) {
    %c0_i32 = arith.constant 0 : i32
    %c0_i32_0 = arith.constant 0 : i32
    %c0_i32_1 = arith.constant 0 : i32
    return %c0_i32, %c0_i32_0 : i32, i32
  }
  func.func @transform_16(%arg0: i32) -> (i32, i32) {
    %c0_i32 = arith.constant 0 : i32
    %c0_i32_0 = arith.constant 0 : i32
    %c0_i32_1 = arith.constant 0 : i32
    return %c0_i32, %c0_i32_0 : i32, i32
  }
  func.func @transform_17(%arg0: i32) -> (i32, i32) {
    %c0_i32 = arith.constant 0 : i32
    %c0_i32_0 = arith.constant 0 : i32
    %c0_i32_1 = arith.constant 0 : i32
    return %c0_i32, %c0_i32_0 : i32, i32
  }
  func.func @transform_18(%arg0: i32) -> (i32, i32) {
    %c0_i32 = arith.constant 0 : i32
    %c0_i32_0 = arith.constant 0 : i32
    %c0_i32_1 = arith.constant 0 : i32
    return %c0_i32, %c0_i32_0 : i32, i32
  }
  func.func @transform_19(%arg0: i32) -> (i32, i32) {
    %c0_i32 = arith.constant 0 : i32
    %c0_i32_0 = arith.constant 0 : i32
    %c0_i32_1 = arith.constant 0 : i32
    return %c0_i32, %c0_i32_0 : i32, i32
  }
  func.func @transform_20(%arg0: i32) -> (i32, i32) {
    %c0_i32 = arith.constant 0 : i32
    %c0_i32_0 = arith.constant 0 : i32
    %c0_i32_1 = arith.constant 0 : i32
    return %c0_i32, %c0_i32_0 : i32, i32
  }
  func.func @transform_21(%arg0: i32) -> (i32, i32) {
    %c0_i32 = arith.constant 0 : i32
    %c0_i32_0 = arith.constant 0 : i32
    %c0_i32_1 = arith.constant 0 : i32
    return %c0_i32, %c0_i32_0 : i32, i32
  }
  func.func @transform_22(%arg0: i32) -> (i32, i32) {
    %c0_i32 = arith.constant 0 : i32
    %c0_i32_0 = arith.constant 0 : i32
    %c0_i32_1 = arith.constant 0 : i32
    return %c0_i32, %c0_i32_0 : i32, i32
  }
  func.func @transform_23(%arg0: i32) -> (i32, i32) {
    %c0_i32 = arith.constant 0 : i32
    %c0_i32_0 = arith.constant 0 : i32
    %c0_i32_1 = arith.constant 0 : i32
    return %c0_i32, %c0_i32_0 : i32, i32
  }
  func.func @transform_24(%arg0: i32) -> (i32, i32) {
    %c0_i32 = arith.constant 0 : i32
    %c0_i32_0 = arith.constant 0 : i32
    %c0_i32_1 = arith.constant 0 : i32
    return %c0_i32, %c0_i32_0 : i32, i32
  }
  func.func @transform_25(%arg0: i32) -> (i32, i32) {
    %c0_i32 = arith.constant 0 : i32
    %c0_i32_0 = arith.constant 0 : i32
    %c0_i32_1 = arith.constant 0 : i32
    return %c0_i32, %c0_i32_0 : i32, i32
  }
  func.func @transform_26(%arg0: i32) -> (i32, i32) {
    %c0_i32 = arith.constant 0 : i32
    %c0_i32_0 = arith.constant 0 : i32
    %c0_i32_1 = arith.constant 0 : i32
    return %c0_i32, %c0_i32_0 : i32, i32
  }
  func.func @transform_27(%arg0: i32) -> (i32, i32) {
    %c0_i32 = arith.constant 0 : i32
    %c0_i32_0 = arith.constant 0 : i32
    %c0_i32_1 = arith.constant 0 : i32
    return %c0_i32, %c0_i32_0 : i32, i32
  }
  func.func @transform_28(%arg0: i32) -> (i32, i32, i32) {
    %c0_i32 = arith.constant 0 : i32
    %c0_i32_0 = arith.constant 0 : i32
    %c0_i32_1 = arith.constant 0 : i32
    return %arg0, %c0_i32, %c0_i32_0 : i32, i32, i32
  }
}

</mosaic_0001>

<bundles_post_ra>
// kernel: tpu_custom_call.1
= control target key start
LH: loop header
LB: loop body
LE: loop exit
PB: predicated region body
PF: predicated region fallthrough
CT: control target
= control target key end

     0   :  { %s11448_s0 = inlined_call_operand.hbm [shape: f32[2,8,128], index: 0, kind: input, shape index: {}]   ;;  %s11449_s1 = inlined_call_operand.hbm [shape: f32[2,8,128], index: 1, kind: input, shape index: {}]   ;;  %s11450_s2 = inlined_call_operand.hbm [shape: f32[2,16,128], index: 2, kind: input, shape index: {}]   ;;  %s11451_s3 = inlined_call_operand.hbm [shape: f32[2,16,128], index: 3, kind: input, shape index: {}]   ;;  %s11452_s4 = inlined_call_operand.hbm [shape: f32[128,256], index: 4, kind: input, shape index: {}]   ;;  %s11453_s5 = inlined_call_operand.vmem [shape: f32[1,256], index: 5, kind: input, shape index: {}]   ;;  %s11454_s6 = inlined_call_operand.hbm [shape: f32[128,128], index: 6, kind: input, shape index: {}]   ;;  %s11455_s7 = inlined_call_operand.vmem [shape: f32[1,128], index: 7, kind: input, shape index: {}]   ;;  %s11456_s8 = inlined_call_operand.hbm [shape: f32[128,128], index: 8, kind: input, shape index: {}]   ;;  %s11457_s9 = inlined_call_operand.vmem [shape: f32[1,128], index: 9, kind: input, shape index: {}]   ;;  %s11458_s10 = inlined_call_operand.hbm [shape: f32[128,128], index: 10, kind: input, shape index: {}]   ;;  %s11459_s11 = inlined_call_operand.vmem [shape: f32[1,128], index: 11, kind: input, shape index: {}]   ;;  %s11460_s12 = inlined_call_operand.hbm [shape: f32[128,128], index: 12, kind: input, shape index: {}]   ;;  %s11461_s13 = inlined_call_operand.vmem [shape: f32[1,128], index: 13, kind: input, shape index: {}]   ;;  %s11462_s14 = inlined_call_operand.hbm [shape: f32[128,128], index: 14, kind: input, shape index: {}]   ;;  %s11463_s15 = inlined_call_operand.vmem [shape: f32[1,128], index: 15, kind: input, shape index: {}]   ;;  %s11464_s16 = inlined_call_operand.hbm [shape: f32[128,128], index: 16, kind: input, shape index: {}]   ;;  %s11465_s17 = inlined_call_operand.vmem [shape: f32[1,128], index: 17, kind: input, shape index: {}]   ;;  %s11466_s18 = inlined_call_operand.hbm [shape: f32[128,256], index: 18, kind: input, shape index: {}]   ;;  %s11467_s19 = inlined_call_operand.vmem [shape: f32[1,256], index: 19, kind: input, shape index: {}]   ;;  %s11468_s20 = inlined_call_operand.hbm [shape: f32[256,128], index: 20, kind: input, shape index: {}]   ;;  %s11469_s21 = inlined_call_operand.vmem [shape: f32[1,128], index: 21, kind: input, shape index: {}]   ;;  %s11470_s22 = inlined_call_operand.vmem [shape: f32[1,128], index: 22, kind: input, shape index: {}]   ;;  %s11471_s23 = inlined_call_operand.vmem [shape: f32[1,128], index: 23, kind: input, shape index: {}]   ;;  %s11472_s24 = inlined_call_operand.vmem [shape: f32[1,128], index: 24, kind: input, shape index: {}]   ;;  %s11473_s25 = inlined_call_operand.vmem [shape: f32[1,128], index: 25, kind: input, shape index: {}]   ;;  %s11474_s26 = inlined_call_operand.vmem [shape: f32[1,128], index: 26, kind: input, shape index: {}]   ;;  %s11475_s27 = inlined_call_operand.vmem [shape: f32[1,128], index: 27, kind: input, shape index: {}]   ;;  %s11476_s28 = inlined_call_operand.hbm [shape: f32[2,8,128], index: 28, kind: output, shape index: {}]  }
   0x1   :  { %11520 = sst [smem:[#allocation39_spill]] %s11448_s0 }
   0x2   :  { %11521 = sst [smem:[#allocation40_spill]] %s11449_s1 }
   0x3   :  { %11522 = sst [smem:[#allocation41_spill]] %s11450_s2 }
   0x4   :  { %11523 = sst [smem:[#allocation42_spill]] %s11451_s3 }
   0x5   :  { %11524 = sst [smem:[#allocation43_spill]] %s11452_s4 }
   0x6   :  { %11525 = sst [smem:[#allocation44_spill]] %s11453_s5 }
   0x7   :  { %11526 = sst [smem:[#allocation45_spill]] %s11454_s6 }
   0x8   :  { %11527 = sst [smem:[#allocation46_spill]] %s11455_s7 }
   0x9   :  { %11528 = sst [smem:[#allocation47_spill]] %s11456_s8 }
   0xa   :  { %11529 = sst [smem:[#allocation48_spill]] %s11457_s9 }
   0xb   :  { %11530 = sst [smem:[#allocation49_spill]] %s11458_s10 }
   0xc   :  { %11531 = sst [smem:[#allocation50_spill]] %s11459_s11 }
   0xd   :  { %11532 = sst [smem:[#allocation51_spill]] %s11460_s12 }
   0xe   :  { %11533 = sst [smem:[#allocation52_spill]] %s11461_s13 }
   0xf   :  { %11534 = sst [smem:[#allocation53_spill]] %s11462_s14 }
  0x10   :  { %11535 = sst [smem:[#allocation54_spill]] %s11463_s15 }
  0x11   :  { %11536 = sst [smem:[#allocation55_spill]] %s11465_s17 }
  0x12   :  { %11537 = sst [smem:[#allocation56_spill]] %s11466_s18 }
  0x13   :  { %11538 = sst [smem:[#allocation57_spill]] %s11467_s19 }
  0x14   :  { %11539 = sst [smem:[#allocation58_spill]] %s11469_s21 }
  0x15   :  { %11540 = sst [smem:[#allocation59_spill]] %s11470_s22 }
  0x16   :  { %11541 = sst [smem:[#allocation60_spill]] %s11471_s23 }
  0x17   :  { %11542 = sst [smem:[#allocation61_spill]] %s11472_s24 }
  0x18   :  { %11543 = sst [smem:[#allocation62_spill]] %s11473_s25 }
  0x19   :  { %11544 = sst [smem:[#allocation63_spill]] %s11474_s26 }
  0x1a   :  { %11545 = sst [smem:[#allocation64_spill]] %s11475_s27 }
  0x1b   :  { %11546 = sst [smem:[#allocation65_spill]] %s11476_s28 }
  0x1c   :  { %33 = vsyncpa [#allocation3], 0 }
  0x1d   :  { %35 = vsyncpa [#allocation3 + $0x1], 0 }
  0x1e   :  { %36 = vsyncpa [#allocation6], 0 }
  0x1f   :  { %38 = vsyncpa [#allocation6 + $0x1], 0 }
  0x20   :  { %39 = vsyncpa [#allocation9], 0 }
  0x21   :  { %41 = vsyncpa [#allocation9 + $0x1], 0 }
  0x22   :  { %42 = vsyncpa [#allocation12], 0 }
  0x23   :  { %43 = vsyncpa [#allocation15], 0 }
  0x24   :  { %44 = vsyncpa [#allocation18], 0 }
  0x25   :  { %45 = vsyncpa [#allocation21], 0 }
  0x26   :  { %46 = vsyncpa [#allocation4], 0 }
  0x27   :  { %48 = vsyncpa [#allocation4 + $0x1], 0  ;;  %s9911_s8 = smov 0   ;;  %s9913_s5 = smov 0  }
  0x28   :  { %s9915_s9 = smov 0   ;;  %s9917_s30 = smov 0  }
  0x29 LB: > { %11547 = sst [smem:[#allocation33_spill]] %s9722_s8  ;;  %s9736_s3 = smov [#allocation10]   ;;  %s9734_s30 = sphi %s9917_s30, %s11622_s30   ;;  %s9730_s9 = sphi %s9915_s9, %s11624_s9   ;;  %s9726_s5 = sphi %s9913_s5, %s11626_s5   ;;  %s9722_s8 = sphi %s9911_s8, %s11625_s8  }
  0x2a   : > { %11548 = sst [smem:[#allocation34_spill]] %s9730_s9  ;;  %s705_s6 = sshll.u32 %s9736_s3, 4  ;;  %s9937_s6 = int_to_ptr.vmem [resolvable:$true] %s705_s6 }
  0x2b   : > { %s9932_s10 = sadd.s32 4294967295, %s9734_s30   ;;  %p7904_p0 = scmp.ge.s32.totalorder %s9734_s30, 1 }
  0x2c   : > { %p11489_p1 = scmp.eq.s32.totalorder %s9932_s10, 0  ;;  %p693_p2 = scmp.lt.s32.totalorder %s9734_s30, 3 }
  0x2d   : > { %s9737_s11 = smov [#allocation11]   ;;  %s9738_s7 = smov [#allocation14]  }
  0x2e   : > { %p9939_p3 = pnand %p7904_p0, %p693_p2  ;;  %s721_s29 = sshll.u32 %s9737_s11, 4  ;;  %s9952_s29 = int_to_ptr.vmem [resolvable:$true] %s721_s29 }
  0x2f   : > { %s9954_s12 = sshll.u32 %s9738_s7, 4  ;;  %s11551_s3 = sld [smem:[#allocation43_spill]]  ;;  %s754_s12 = int_to_ptr.vmem [resolvable:$true] %s9954_s12 }
  0x30   : > { %s11549_s0 = scalar_select %p9939_p3, 1, 0 }
  0x31   : > { %p9074_p5 = pneg %p9939_p3 }
  0x33   : > { %p9948_p6 = pnand %p9074_p5, %p11489_p1 }
  0x35   : > { %s11550_s2 = scalar_select %p9948_p6, 1, 0 }
  0x36   : > { %s9268_s28 = scalar_lea.hbm %s11551_s3, 4096  ;;  %p9964_p8 = pneg %p9948_p6 }
  0x37   : > { %p9269_p7 = scmp.ne.s32.totalorder %s11551_s3, %s9268_s28  ;;  %p9275_p11 = scmp.lt.u32.totalorder %s9268_s28, %s11551_s3 }
  0x38   : > { %s11552_s11 = scalar_select %p9964_p8, 1, 0 }
  0x39   : > { %p9271_p9 = pnand %p9964_p8, %p9269_p7 }
  0x3b   : > { %p9272_p10 = pneg %p9271_p9 }
  0x3d   : > { %p9277_p12 = pnand %p9275_p11, %p9272_p10 }
  0x3f   : > { %9280 = shalt.err (!%p9277_p12)
}
  0x40   : > { %s9281_s26 = scalar_lea.vmem %s9937_s6, 4096  ;;  %p9289_p5 = scmp.lt.s32.totalorder %s9937_s6, %s9937_s6 }
  0x41   : > { %p9282_p13 = scmp.ne.s32.totalorder %s9937_s6, %s9281_s26  ;;  %p9290_p4 = scmp.lt.s32.totalorder %s9281_s26, %s9281_s26 }
  0x43   : > { %p9284_p0 = pnand %p9282_p13, %p9964_p8  ;;  %p9291_p7 = por %p9290_p4, %p9289_p5 }
  0x45   : > { %p9285_p2 = pneg %p9284_p0 }
  0x47   : > { %p9292_p9 = pnand %p9291_p7, %p9285_p2 }
  0x49   : > { %9295 = shalt.err (!%p9292_p9)
}
  0x4a   : > { %s11487_s27 = smov 256   ;;  %s11488_s21 = smov 16  }
  0x4b   : > { %9077 = dma.hbm_to_vmem [thread:$0]  (!%p9948_p6), %s11551_s3, 4096, %s9937_s6, [#allocation9], %s11487_s27, %s11487_s27, %s11488_s21  }
  0x4c   : > { %s11553_s19 = sld [smem:[#allocation45_spill]] }
  0x52   : > { %s9296_s26 = scalar_lea.hbm %s11553_s19, 2048 }
  0x53   : > { %p9297_p4 = scmp.ne.s32.totalorder %s11553_s19, %s9296_s26  ;;  %p9303_p12 = scmp.lt.u32.totalorder %s9296_s26, %s11553_s19 }
  0x55   : > { %p9299_p10 = pnand %p9297_p4, %p9964_p8 }
  0x57   : > { %p9300_p11 = pneg %p9299_p10 }
  0x59   : > { %p9305_p13 = pnand %p9303_p12, %p9300_p11 }
  0x5b   : > { %9308 = shalt.err (!%p9305_p13)
}
  0x5c   : > { %s9309_s6 = scalar_lea.vmem %s9952_s29, 2048  ;;  %p9317_p7 = scmp.lt.s32.totalorder %s9952_s29, %s9952_s29 }
  0x5d   : > { %p9310_p0 = scmp.ne.s32.totalorder %s9952_s29, %s9309_s6  ;;  %p9318_p9 = scmp.lt.s32.totalorder %s9309_s6, %s9309_s6 }
  0x5f   : > { %p9312_p2 = pnand %p9310_p0, %p9964_p8  ;;  %p9319_p4 = por %p9318_p9, %p9317_p7 }
  0x61   : > { %p9313_p5 = pneg %p9312_p2 }
  0x63   : > { %p9320_p10 = pnand %p9319_p4, %p9313_p5 }
  0x65   : > { %9323 = shalt.err (!%p9320_p10)
}
  0x66   : > { %s11493_s24 = smov 128   ;;  %s11495_s15 = smov 8  }
  0x67   : > { %9080 = dma.hbm_to_vmem [thread:$0]  (!%p9948_p6), %s11553_s19, 2048, %s9952_s29, [#allocation12], %s11493_s24, %s11493_s24, %s11495_s15  }
  0x68   : > { %s11554_s4 = sld [smem:[#allocation49_spill]] }
  0x6e   : > { %s9324_s7 = scalar_lea.hbm %s11554_s4, 2048 }
  0x6f   : > { %p9325_p11 = scmp.ne.s32.totalorder %s11554_s4, %s9324_s7  ;;  %p9331_p0 = scmp.lt.u32.totalorder %s9324_s7, %s11554_s4 }
  0x71   : > { %p9327_p12 = pnand %p9325_p11, %p9964_p8 }
  0x73   : > { %p9328_p13 = pneg %p9327_p12 }
  0x75   : > { %p9333_p2 = pnand %p9331_p0, %p9328_p13 }
  0x77   : > { %9336 = shalt.err (!%p9333_p2)
}
  0x78   : > { %s9337_s17 = scalar_lea.vmem %s754_s12, 2048  ;;  %p9345_p4 = scmp.lt.s32.totalorder %s754_s12, %s754_s12 }
  0x79   : > { %p9338_p5 = scmp.ne.s32.totalorder %s754_s12, %s9337_s17  ;;  %p9346_p10 = scmp.lt.s32.totalorder %s9337_s17, %s9337_s17 }
  0x7b   : > { %p9340_p7 = pnand %p9338_p5, %p9964_p8  ;;  %p9347_p1 = por %p9346_p10, %p9345_p4 }
  0x7d   : > { %p9341_p9 = pneg %p9340_p7 }
  0x7f   : > { %p9348_p3 = pnand %p9347_p1, %p9341_p9 }
  0x81   : > { %9351 = shalt.err (!%p9348_p3)
}
  0x82   : > { %9086 = dma.hbm_to_vmem [thread:$0]  (!%p9948_p6), %s11554_s4, 2048, %s754_s12, [#allocation15], %s11493_s24, %s11493_s24, %s11495_s15  }
  0x83   : > { %s9743_s21 = smov [#allocation17]   ;;  %s9744_s28 = smov [#allocation20]  }
  0x84   : > { %s785_s25 = sshll.u32 %s9743_s21, 4  ;;  %s817_s1 = sshll.u32 %s9744_s28, 4  ;;  %s786_s25 = int_to_ptr.vmem [resolvable:$true] %s785_s25  ;;  %s818_s1 = int_to_ptr.vmem [resolvable:$true] %s817_s1 }
  0x85   : > { %s11555_s14 = sld [smem:[#allocation53_spill]] }
  0x8b   : > { %s9352_s6 = scalar_lea.hbm %s11555_s14, 2048 }
  0x8c   : > { %p9353_p1 = scmp.ne.s32.totalorder %s11555_s14, %s9352_s6  ;;  %p9359_p12 = scmp.lt.u32.totalorder %s9352_s6, %s11555_s14 }
  0x8e   : > { %p9355_p3 = pnand %p9353_p1, %p9964_p8 }
  0x90   : > { %p9356_p11 = pneg %p9355_p3 }
  0x92   : > { %p9361_p13 = pnand %p9359_p12, %p9356_p11 }
  0x94   : > { %9364 = shalt.err (!%p9361_p13)
}
  0x95   : > { %s9365_s12 = scalar_lea.vmem %s786_s25, 2048  ;;  %p9373_p7 = scmp.lt.s32.totalorder %s786_s25, %s786_s25 }
  0x96   : > { %p9366_p0 = scmp.ne.s32.totalorder %s786_s25, %s9365_s12  ;;  %p9374_p9 = scmp.lt.s32.totalorder %s9365_s12, %s9365_s12 }
  0x98   : > { %p9368_p2 = pnand %p9366_p0, %p9964_p8  ;;  %p9375_p4 = por %p9374_p9, %p9373_p7 }
  0x9a   : > { %p9369_p5 = pneg %p9368_p2 }
  0x9c   : > { %p9376_p10 = pnand %p9375_p4, %p9369_p5 }
  0x9e   : > { %9379 = shalt.err (!%p9376_p10)
}
  0x9f   : > { %9092 = dma.hbm_to_vmem [thread:$0]  (!%p9948_p6), %s11555_s14, 2048, %s786_s25, [#allocation18], %s11493_s24, %s11493_s24, %s11495_s15  }
  0xa0   : > { %s11556_s18 = sld [smem:[#allocation56_spill]] }
  0xa6   : > { %s9380_s28 = scalar_lea.hbm %s11556_s18, 4096 }
  0xa7   : > { %p9381_p1 = scmp.ne.s32.totalorder %s11556_s18, %s9380_s28  ;;  %p9387_p12 = scmp.lt.u32.totalorder %s9380_s28, %s11556_s18 }
  0xa9   : > { %p9383_p3 = pnand %p9381_p1, %p9964_p8 }
  0xab   : > { %p9384_p11 = pneg %p9383_p3 }
  0xad   : > { %p9389_p13 = pnand %p9387_p12, %p9384_p11 }
  0xaf   : > { %9392 = shalt.err (!%p9389_p13)
}
  0xb0   : > { %s9393_s29 = scalar_lea.vmem %s818_s1, 4096  ;;  %p9401_p7 = scmp.lt.s32.totalorder %s818_s1, %s818_s1 }
  0xb1   : > { %p9394_p0 = scmp.ne.s32.totalorder %s818_s1, %s9393_s29  ;;  %p9402_p9 = scmp.lt.s32.totalorder %s9393_s29, %s9393_s29 }
  0xb3   : > { %p9396_p2 = pnand %p9394_p0, %p9964_p8  ;;  %p9403_p4 = por %p9402_p9, %p9401_p7 }
  0xb5   : > { %p9397_p5 = pneg %p9396_p2 }
  0xb7   : > { %p9404_p10 = pnand %p9403_p4, %p9397_p5 }
  0xb9   : > { %9407 = shalt.err (!%p9404_p10)
}
  0xba   : > { %s11557_s25 = smov 16   ;;  %s11558_s12 = smov 256  }
  0xbb   : > { %9098 = dma.hbm_to_vmem [thread:$0]  (!%p9948_p6), %s11556_s18, 4096, %s818_s1, [#allocation21], %s11558_s12, %s11558_s12, %s11557_s25  }
  0xbc   : > { %s7903_s27 = sadd.s32 4294967294, %s9734_s30   ;;  %s10080_s21 = sadd.s32 1, %s9734_s30  }
  0xbd   : > { %11559 = sst [smem:[#allocation35_spill]] %s10080_s21  ;;  %s61_s28 = sadd.s32 1, %s9730_s9 }
  0xbe   : > { %s58_s7 = ssub.s32 %s9734_s30, %s10080_s21  ;;  %p68_p1 = scmp.ne.s32.totalorder %s9730_s9, %s9726_s5 }
  0xbf   : > { %p59_p3 = scmp.eq.s32.totalorder %s58_s7, 0  ;;  %p69_p11 = scmp.eq.s32.totalorder %s9734_s30, 0 }
  0xc0   : > { %p74_p12 = scmp.ne.s32.totalorder %s9726_s5, %s9722_s8  ;;  %p680_p13 = scmp.eq.s32.totalorder %s9932_s10, 1 }
  0xc1   : > { %s10092_s26 = scalar_select %p59_p3, %s9730_s9, %s61_s28  }
  0xc2   : > { %p70_p0 = por %p69_p11, %p68_p1  ;;  %p11561_p2 = scmp.eq.s32.totalorder %s9932_s10, 0 }
  0xc3   : > { %11560 = sst [smem:[#allocation36_spill]] %s10092_s26  ;;  %p10100_p7 = por %p680_p13, %p68_p1 }
  0xc4   : > { %p10096_p5 = por %p11561_p2, %p74_p12  ;;  %p686_p9 = scmp.eq.s32.totalorder %s7903_s27, 1 }
  0xc5   : > { %s11563_s6 = scalar_select %p10100_p7, 1, 0 }
  0xc6   : > { %s11562_s1 = scalar_select %p10096_p5, 1, 0 }
  0xc7   : > { %11564 = sst [smem:[#allocation37_spill]] %s11563_s6  ;;  %p9128_p4 = scmp.lt.s32.totalorder %s9734_s30, 2 }
  0xc8   : > { %s10106_s17 = sand.u32 1, %s9730_s9   ;;  %p10108_p10 = por %p686_p9, %p74_p12 }
  0xc9   : > { %s11498_s25 = sshll.u32 %s10106_s17, 3  ;;  %s11499_s12 = sshll.u32 %s9734_s30, 7 }
  0xca   : > { %s11565_s29 = scalar_select %p10108_p10, 1, 0 }
  0xcb   : > { %p10114_p3 = pnand %p9128_p4, %p70_p0  ;;  %s11501_s3 = sand.u32 1, %s9734_s30  }
  0xcc   : > { %11566 = sst [smem:[#allocation38_spill]] %s11565_s29  ;;  %s11568_s7 = sld [smem:[#allocation40_spill]] }
  0xcd   : > { %s11567_s19 = scalar_select %p10114_p3, 1, 0 }
  0xce   : > { %s890_s15 = scalar_lea.vmem [#allocation5], %s11498_s25  ;;  %s10133_s18 = scalar_lea.sflag [#allocation6], %s11501_s3 }
  0xcf   : > { %s897_s4 = sshll.u32 %s890_s15, 4  ;;  %p10139_p11 = pneg %p10114_p3  ;;  %s10128_s4 = int_to_ptr.vmem [resolvable:$true] %s897_s4 }
  0xd1   : > { %s11569_s27 = scalar_select %p10139_p11, 1, 0 }
  0xd2   : > { %s10124_s24 = scalar_lea.hbm %s11568_s7, %s11499_s12  ;;  %s9413_s15 = scalar_lea.hbm %s11568_s7, 256 }
  0xd3   : > { %s9408_s26 = scalar_lea.hbm %s10124_s24, 128  ;;  %p9414_p0 = scmp.lt.u32.totalorder %s10124_s24, %s11568_s7 }
  0xd4   : > { %p9409_p1 = scmp.ne.s32.totalorder %s10124_s24, %s9408_s26  ;;  %p9415_p2 = scmp.lt.u32.totalorder %s9413_s15, %s9408_s26 }
  0xd5   : > { %p9417_p4 = scmp.lt.u32.totalorder %s9408_s26, %s10124_s24 }
  0xd6   : > { %p9411_p12 = pnand %p10139_p11, %p9409_p1  ;;  %p9416_p9 = por %p9415_p2, %p9414_p0 }
  0xd8   : > { %p9412_p13 = pneg %p9411_p12  ;;  %p9418_p10 = por %p9417_p4, %p9416_p9 }
  0xda   : > { %p9419_p7 = pnand %p9418_p10, %p9412_p13 }
  0xdc   : > { %9422 = shalt.err (!%p9419_p7)
}
  0xdd   : > { %s9423_s3 = scalar_lea.vmem %s10128_s4, 128  ;;  %s9745_s25 = smov [#allocation5]  }
  0xde   : > { %p9424_p1 = scmp.ne.s32.totalorder %s10128_s4, %s9423_s3  ;;  %s9428_s28 = sshll.u32 %s9745_s25, 4  ;;  %s9429_s28 = int_to_ptr.vmem [resolvable:$false] %s9428_s28 }
  0xdf   : > { %s9430_s14 = scalar_lea.vmem %s9429_s28, 256  ;;  %p9431_p6 = scmp.lt.s32.totalorder %s10128_s4, %s9429_s28 }
  0xe0   : > { %p9426_p12 = pnand %p9424_p1, %p10139_p11  ;;  %p9432_p8 = scmp.lt.s32.totalorder %s9430_s14, %s9423_s3 }
  0xe2   : > { %p9427_p5 = pneg %p9426_p12  ;;  %p9433_p0 = por %p9432_p8, %p9431_p6 }
  0xe4   : > { %p9434_p2 = pnand %p9433_p0, %p9427_p5 }
  0xe6   : > { %9437 = shalt.err (!%p9434_p2)
}
  0xe7   : > { %9108 = dma.hbm_to_vmem [thread:$0]  (!%p10114_p3), %s10124_s24, 128, %s10128_s4, %s10133_s18  }
  0xe8   : > { %s11570_s26 = sshll.u32 %s10106_s17, 4  ;;  %s9746_s14 = smov [#allocation13]  }
  0xe9   : > { %s908_s12 = scalar_lea.vmem [#allocation7], %s11570_s26  ;;  %s11571_s25 = smov %s11570_s26 }
  0xea   : > { %s915_s15 = sshll.u32 %s908_s12, 4  ;;  %s929_s28 = scalar_lea.vmem [#allocation8], %s11571_s25  ;;  %s10165_s15 = int_to_ptr.vmem [resolvable:$true] %s915_s15 }
  0xeb   : > { %s936_s3 = sshll.u32 %s929_s28, 4  ;;  %s737_s7 = sshll.u32 %s9746_s14, 4  ;;  %s10169_s3 = int_to_ptr.vmem [resolvable:$true] %s936_s3  ;;  %s738_s7 = int_to_ptr.vmem [resolvable:$true] %s737_s7 }
  0xec   : > { %s9747_s9 = smov [#allocation16]   ;;  %s11572_s6 = sld [smem:[#allocation47_spill]] }
  0xed   : > { %s769_s21 = sshll.u32 %s9747_s9, 4  ;;  %p11573_p8 = scmp.ne.s32.totalorder %s11552_s11, 0  ;;  %s770_s21 = int_to_ptr.vmem [resolvable:$true] %s769_s21 }
  0xf2   : > { %s9438_s23 = scalar_lea.hbm %s11572_s6, 2048 }
  0xf3   : > { %p9439_p6 = scmp.ne.s32.totalorder %s11572_s6, %s9438_s23  ;;  %p9445_p10 = scmp.lt.u32.totalorder %s9438_s23, %s11572_s6 }
  0xf5   : > { %p9441_p5 = pnand %p9439_p6, %p11573_p8 }
  0xf7   : > { %p9442_p7 = pneg %p9441_p5 }
  0xf9   : > { %p9447_p13 = pnand %p9445_p10, %p9442_p7 }
  0xfb   : > { %9450 = shalt.err (!%p9447_p13)
}
  0xfc   : > { %s9451_s25 = scalar_lea.vmem %s738_s7, 2048  ;;  %p9459_p12 = scmp.lt.s32.totalorder %s738_s7, %s738_s7 }
  0xfd   : > { %p9452_p9 = scmp.ne.s32.totalorder %s738_s7, %s9451_s25  ;;  %p9460_p0 = scmp.lt.s32.totalorder %s9451_s25, %s9451_s25 }
  0xff   : > { %p9454_p4 = pnand %p9452_p9, %p11573_p8  ;;  %p9461_p2 = por %p9460_p0, %p9459_p12 }
 0x101   : > { %p9455_p1 = pneg %p9454_p4 }
 0x103   : > { %p9462_p3 = pnand %p9461_p2, %p9455_p1 }
 0x105   : > { %9465 = shalt.err (!%p9462_p3)
}
 0x106   : > { %p11574_p6 = scmp.ne.s32.totalorder %s11550_s2, 0  ;;  %s11575_s8 = smov 8  }
 0x107   : > { %s11576_s9 = smov 128   ;;  %s11577_s24 = sld [smem:[#allocation51_spill]] }
 0x108   : > { %9083 = dma.hbm_to_vmem [thread:$0]  (!%p11574_p6), %s11572_s6, 2048, %s738_s7, [#allocation12], %s11576_s9, %s11576_s9, %s11575_s8  }
 0x10d   : > { %s9466_s4 = scalar_lea.hbm %s11577_s24, 2048 }
 0x10e   : > { %p9467_p5 = scmp.ne.s32.totalorder %s11577_s24, %s9466_s4  ;;  %p9473_p10 = scmp.lt.u32.totalorder %s9466_s4, %s11577_s24 }
 0x110   : > { %p9469_p3 = pnand %p9467_p5, %p11573_p8 }
 0x112   : > { %p9470_p7 = pneg %p9469_p3 }
 0x114   : > { %p9475_p13 = pnand %p9473_p10, %p9470_p7 }
 0x116   : > { %9478 = shalt.err (!%p9475_p13)
}
 0x117   : > { %s9479_s29 = scalar_lea.vmem %s770_s21, 2048  ;;  %p9487_p12 = scmp.lt.s32.totalorder %s770_s21, %s770_s21 }
 0x118   : > { %p9480_p9 = scmp.ne.s32.totalorder %s770_s21, %s9479_s29  ;;  %p9488_p0 = scmp.lt.s32.totalorder %s9479_s29, %s9479_s29 }
 0x11a   : > { %p9482_p4 = pnand %p9480_p9, %p11573_p8  ;;  %p9489_p2 = por %p9488_p0, %p9487_p12 }
 0x11c   : > { %p9483_p1 = pneg %p9482_p4 }
 0x11e   : > { %p9490_p11 = pnand %p9489_p2, %p9483_p1 }
 0x120   : > { %9493 = shalt.err (!%p9490_p11)
}
 0x121   : > { %9089 = dma.hbm_to_vmem [thread:$0]  (!%p11574_p6), %s11577_s24, 2048, %s770_s21, [#allocation15], %s11576_s9, %s11576_s9, %s11575_s8  }
 0x122   : > { %s9748_s23 = smov [#allocation19]   ;;  %s9749_s14 = smov [#allocation22]  }
 0x123   : > { %s801_s28 = sshll.u32 %s9748_s23, 4  ;;  %s833_s4 = sshll.u32 %s9749_s14, 4  ;;  %s802_s28 = int_to_ptr.vmem [resolvable:$true] %s801_s28  ;;  %s834_s4 = int_to_ptr.vmem [resolvable:$true] %s833_s4 }
 0x124   : > { %s9494_s25 = scalar_lea.hbm %s11464_s16, 2048 }
 0x125   : > { %p9495_p11 = scmp.ne.s32.totalorder %s11464_s16, %s9494_s25  ;;  %p9501_p7 = scmp.lt.u32.totalorder %s9494_s25, %s11464_s16 }
 0x127   : > { %p9497_p5 = pnand %p9495_p11, %p11573_p8 }
 0x129   : > { %p9498_p3 = pneg %p9497_p5 }
 0x12b   : > { %p9503_p10 = pnand %p9501_p7, %p9498_p3 }
 0x12d   : > { %9506 = shalt.err (!%p9503_p10)
}
 0x12e   : > { %s9507_s21 = scalar_lea.vmem %s802_s28, 2048  ;;  %p9515_p1 = scmp.lt.s32.totalorder %s802_s28, %s802_s28 }
 0x12f   : > { %p9508_p13 = scmp.ne.s32.totalorder %s802_s28, %s9507_s21  ;;  %p9516_p12 = scmp.lt.s32.totalorder %s9507_s21, %s9507_s21 }
 0x131   : > { %p9510_p9 = pnand %p9508_p13, %p11573_p8  ;;  %p9517_p0 = por %p9516_p12, %p9515_p1 }
 0x133   : > { %p9511_p4 = pneg %p9510_p9 }
 0x135   : > { %p9518_p2 = pnand %p9517_p0, %p9511_p4 }
 0x137   : > { %9521 = shalt.err (!%p9518_p2)
}
 0x138   : > { %9095 = dma.hbm_to_vmem [thread:$0]  (!%p11574_p6), %s11464_s16, 2048, %s802_s28, [#allocation18], %s11576_s9, %s11576_s9, %s11575_s8  }
 0x139   : > { %s9522_s14 = scalar_lea.hbm %s11468_s20, 4096 }
 0x13a   : > { %p9523_p11 = scmp.ne.s32.totalorder %s11468_s20, %s9522_s14  ;;  %p9529_p7 = scmp.lt.u32.totalorder %s9522_s14, %s11468_s20 }
 0x13c   : > { %p9525_p5 = pnand %p9523_p11, %p11573_p8 }
 0x13e   : > { %p9526_p3 = pneg %p9525_p5 }
 0x140   : > { %p9531_p10 = pnand %p9529_p7, %p9526_p3 }
 0x142   : > { %9534 = shalt.err (!%p9531_p10)
}
 0x143   : > { %s9535_s22 = scalar_lea.vmem %s834_s4, 4096  ;;  %p9543_p1 = scmp.lt.s32.totalorder %s834_s4, %s834_s4 }
 0x144   : > { %p9536_p13 = scmp.ne.s32.totalorder %s834_s4, %s9535_s22  ;;  %p9544_p12 = scmp.lt.s32.totalorder %s9535_s22, %s9535_s22 }
 0x146   : > { %p9538_p9 = pnand %p9536_p13, %p11573_p8  ;;  %p9545_p0 = por %p9544_p12, %p9543_p1 }
 0x148   : > { %p9539_p4 = pneg %p9538_p9 }
 0x14a   : > { %p9546_p2 = pnand %p9545_p0, %p9539_p4 }
 0x14c   : > { %9549 = shalt.err (!%p9546_p2)
}
 0x14d   : > { %9101 = dma.hbm_to_vmem [thread:$0]  (!%p11574_p6), %s11468_s20, 4096, %s834_s4, [#allocation21], %s11576_s9, %s11576_s9, %s11575_s8  }
 0x14e   : > { %s11578_s11 = sshll.u32 %s9734_s30, 7  ;;  %s11579_s7 = sld [smem:[#allocation39_spill]] }
 0x14f   : > { %s11580_s2 = sshll.u32 %s10106_s17, 3  ;;  %s8093_s12 = sshll.u32 %s9734_s30, 8 }
 0x150   : > { %s872_s14 = scalar_lea.vmem [#allocation2], %s11580_s2  ;;  %s11581_s4 = sld [smem:[#allocation41_spill]] }
 0x151   : > { %s879_s26 = sshll.u32 %s872_s14, 4  ;;  %s869_s28 = scalar_lea.sflag [#allocation3], %s10106_s17  ;;  %s10265_s26 = int_to_ptr.vmem [resolvable:$true] %s879_s26 }
 0x152   : > { %p11582_p6 = scmp.ne.s32.totalorder %s11569_s27, 0 }
 0x154   : > { %s10260_s23 = scalar_lea.hbm %s11579_s7, %s11578_s11  ;;  %s9555_s6 = scalar_lea.hbm %s11579_s7, 256 }
 0x155   : > { %s9550_s21 = scalar_lea.hbm %s10260_s23, 128  ;;  %p9556_p3 = scmp.lt.u32.totalorder %s10260_s23, %s11579_s7 }
 0x156   : > { %s10272_s22 = scalar_lea.hbm %s11581_s4, %s8093_s12  ;;  %p9551_p8 = scmp.ne.s32.totalorder %s10260_s23, %s9550_s21 }
 0x157   : > { %p9557_p7 = scmp.lt.u32.totalorder %s9555_s6, %s9550_s21  ;;  %p9559_p13 = scmp.lt.u32.totalorder %s9550_s21, %s10260_s23 }
 0x158   : > { %p9553_p11 = pnand %p9551_p8, %p11582_p6 }
 0x159   : > { %p9558_p10 = por %p9557_p7, %p9556_p3 }
 0x15a   : > { %p9554_p5 = pneg %p9553_p11 }
 0x15b   : > { %p9560_p9 = por %p9559_p13, %p9558_p10 }
 0x15d   : > { %p9561_p4 = pnand %p9560_p9, %p9554_p5 }
 0x15f   : > { %9564 = shalt.err (!%p9561_p4)
}
 0x160   : > { %s9565_s17 = scalar_lea.vmem %s10265_s26, 128  ;;  %s9750_s25 = smov [#allocation2]  }
 0x161   : > { %p9566_p1 = scmp.ne.s32.totalorder %s10265_s26, %s9565_s17  ;;  %s9570_s29 = sshll.u32 %s9750_s25, 4  ;;  %s9571_s29 = int_to_ptr.vmem [resolvable:$false] %s9570_s29 }
 0x162   : > { %s9572_s11 = scalar_lea.vmem %s9571_s29, 256  ;;  %p9573_p2 = scmp.lt.s32.totalorder %s10265_s26, %s9571_s29 }
 0x163   : > { %p9568_p12 = pnand %p9566_p1, %p11582_p6  ;;  %p9574_p8 = scmp.lt.s32.totalorder %s9572_s11, %s9565_s17 }
 0x165   : > { %p9569_p0 = pneg %p9568_p12  ;;  %p9575_p11 = por %p9574_p8, %p9573_p2 }
 0x167   : > { %p9576_p3 = pnand %p9575_p11, %p9569_p0 }
 0x169   : > { %9579 = shalt.err (!%p9576_p3)
}
 0x16a   : > { %p11583_p5 = scmp.ne.s32.totalorder %s11567_s19, 0  ;;  %s9580_s21 = scalar_lea.hbm %s10272_s22, 256 }
 0x16b   : > { %p9581_p7 = scmp.ne.s32.totalorder %s10272_s22, %s9580_s21  ;;  %s9585_s2 = scalar_lea.hbm %s11581_s4, 512 }
 0x16c   : > { %9105 = dma.hbm_to_vmem [thread:$0]  (!%p11583_p5), %s10260_s23, 128, %s10265_s26, %s869_s28  }
 0x16d   : > { %p9583_p10 = pnand %p9581_p7, %p11582_p6  ;;  %p9586_p9 = scmp.lt.u32.totalorder %s10272_s22, %s11581_s4 }
 0x16e   : > { %p9587_p4 = scmp.lt.u32.totalorder %s9585_s2, %s9580_s21  ;;  %p9589_p12 = scmp.lt.u32.totalorder %s9580_s21, %s10272_s22 }
 0x16f   : > { %p9584_p13 = pneg %p9583_p10 }
 0x170   : > { %p9588_p1 = por %p9587_p4, %p9586_p9 }
 0x172   : > { %p9590_p0 = por %p9589_p12, %p9588_p1 }
 0x174   : > { %p9591_p2 = pnand %p9590_p0, %p9584_p13 }
 0x176   : > { %9594 = shalt.err (!%p9591_p2)
}
 0x177   : > { %s9595_s23 = scalar_lea.vmem %s10165_s15, 256  ;;  %s9751_s26 = smov [#allocation7]  }
 0x178   : > { %p9596_p8 = scmp.ne.s32.totalorder %s10165_s15, %s9595_s23  ;;  %s9600_s28 = sshll.u32 %s9751_s26, 4  ;;  %s9601_s28 = int_to_ptr.vmem [resolvable:$false] %s9600_s28 }
 0x179   : > { %s9602_s25 = scalar_lea.vmem %s9601_s28, 512  ;;  %p9603_p7 = scmp.lt.s32.totalorder %s10165_s15, %s9601_s28 }
 0x17a   : > { %p9598_p11 = pnand %p9596_p8, %p11582_p6  ;;  %p9604_p10 = scmp.lt.s32.totalorder %s9602_s25, %s9595_s23 }
 0x17c   : > { %p9599_p3 = pneg %p9598_p11  ;;  %p9605_p9 = por %p9604_p10, %p9603_p7 }
 0x17e   : > { %p9606_p4 = pnand %p9605_p9, %p9599_p3 }
 0x180   : > { %9609 = shalt.err (!%p9606_p4)
}
 0x181   : > { %9111 = dma.hbm_to_vmem [thread:$0]  (!%p11583_p5), %s10272_s22, 256, %s10165_s15, %s10133_s18, %s11576_s9, %s11576_s9, %s11575_s8  }
 0x182   : > { %s11584_s21 = sld [smem:[#allocation42_spill]]  ;;  %s11585_s6 = sand.u32 1, %s9734_s30  }
 0x183   : > { %s10330_s2 = scalar_lea.sflag [#allocation9], %s11585_s6 }
 0x188   : > { %s10326_s13 = scalar_lea.hbm %s11584_s21, %s8093_s12  ;;  %s9615_s15 = scalar_lea.hbm %s11584_s21, 512 }
 0x189   : > { %s9610_s14 = scalar_lea.hbm %s10326_s13, 256  ;;  %p9616_p0 = scmp.lt.u32.totalorder %s10326_s13, %s11584_s21 }
 0x18a   : > { %p9611_p13 = scmp.ne.s32.totalorder %s10326_s13, %s9610_s14  ;;  %p9617_p2 = scmp.lt.u32.totalorder %s9615_s15, %s9610_s14 }
 0x18b   : > { %p9619_p11 = scmp.lt.u32.totalorder %s9610_s14, %s10326_s13 }
 0x18c   : > { %p9613_p1 = pnand %p9611_p13, %p11582_p6  ;;  %p9618_p8 = por %p9617_p2, %p9616_p0 }
 0x18e   : > { %p9614_p12 = pneg %p9613_p1  ;;  %p9620_p3 = por %p9619_p11, %p9618_p8 }
 0x190   : > { %p9621_p7 = pnand %p9620_p3, %p9614_p12 }
 0x192   : > { %9624 = shalt.err (!%p9621_p7)
}
 0x193   : > { %s9625_s12 = scalar_lea.vmem %s10169_s3, 256  ;;  %s9752_s26 = smov [#allocation8]  }
 0x194   : > { %p9626_p10 = scmp.ne.s32.totalorder %s10169_s3, %s9625_s12  ;;  %s9630_s28 = sshll.u32 %s9752_s26, 4  ;;  %s9631_s28 = int_to_ptr.vmem [resolvable:$false] %s9630_s28 }
 0x195   : > { %s9632_s25 = scalar_lea.vmem %s9631_s28, 512  ;;  %p9633_p13 = scmp.lt.s32.totalorder %s10169_s3, %s9631_s28 }
 0x196   : > { %p9628_p9 = pnand %p9626_p10, %p11582_p6  ;;  %p9634_p1 = scmp.lt.s32.totalorder %s9632_s25, %s9625_s12 }
 0x198   : > { %p9629_p4 = pneg %p9628_p9  ;;  %p9635_p0 = por %p9634_p1, %p9633_p13 }
 0x19a   : > { %p9636_p2 = pnand %p9635_p0, %p9629_p4 }
 0x19c   : > { %9639 = shalt.err (!%p9636_p2)
}
 0x19d   : > { %9114 = dma.hbm_to_vmem [thread:$0]  (!%p11583_p5), %s10326_s13, 256, %s10169_s3, %s10330_s2, %s11576_s9, %s11576_s9, %s11575_s8  }
 0x19e   : > { %p11586_p6 = scmp.ne.s32.totalorder %s11549_s0, 0 }
 0x19f   : > { %s10360_s27 = sand.u32 (!%p11586_p6), 1, %s9726_s5   ;;  %p11587_p12 = scmp.ne.s32.totalorder (!%p11586_p6), %s11562_s1, 0 }
 0x1a0   : > { %948 = sbr.rel (%p11586_p6) target bundleno = 4891 (0x131b), region = 132  ;;  %s10363_s29 = sshll.u32 (!%p11586_p6), %s10360_s27, 3 }
 0x1a1   : > { %s951_s19 = scalar_lea.sflag (!%p11586_p6), [#allocation3], %s10360_s27  ;;  %s954_s11 = scalar_lea.vmem (!%p11586_p6), [#allocation2], %s10363_s29 }
 0x1a7   : > { %9685 = dma.done.wait (%p11587_p12), %s951_s19, 128  }
 0x1a8   : > { %9687 = vsyncadd (%p11587_p12), %s951_s19, 4294967168  ;;  %s959_s0 = sand.u32 1, %s9932_s10   ;;  %s963_s8 = scalar_lea.vmem [#allocation5], %s10363_s29 }
 0x1a9   : > { %s960_s3 = scalar_lea.sflag [#allocation6], %s959_s0 }
 0x1aa   : > { %9689 = dma.done.wait (%p11587_p12), %s960_s3, 384  }
 0x1ab   : > { %9691 = vsyncadd (%p11587_p12), %s960_s3, 4294966912  ;;  %s7928_s9 = sshll.u32 %s10360_s27, 4  ;;  %s978_s6 = scalar_lea.sflag [#allocation9], %s959_s0 }
 0x1ac   : > { %s10378_s13 = scalar_lea.vmem [#allocation7], %s7928_s9  ;;  %s10380_s2 = scalar_lea.vmem [#allocation8], %s7928_s9 }
 0x1ad   : > { %9693 = dma.done.wait (%p11587_p12), %s978_s6, 256  }
 0x1ae   : > { %9695 = vsyncadd (%p11587_p12), %s978_s6, 4294967040  ;;  %p11588_p5 = scmp.eq.s32.totalorder %s9932_s10, 0 }
 0x1b0   : > { %9697 = dma.done.wait (%p11588_p5), [#allocation9], 4096   ;;  %p11589_p8 = pmov %p11588_p5 }
 0x1b1   : > { %p11590_p11 = pmov %p11588_p5 }
 0x1b2   : > { %9699 = vsyncadd (%p11589_p8), [#allocation9], 4294963200 }
 0x1b3   : > { %9701 = dma.done.wait (%p11590_p11), [#allocation12], 4096   ;;  %p11591_p3 = pmov %p11588_p5 }
 0x1b5   : > { %9703 = vsyncadd (%p11591_p3), [#allocation12], 4294963200  ;;  %p11592_p7 = pmov %p11591_p3 }
 0x1b6   : > { %p11593_p10 = pmov %p11591_p3 }
 0x1b7   : > { %9705 = dma.done.wait (%p11592_p7), [#allocation15], 4096  }
 0x1b8   : > { %9707 = vsyncadd (%p11593_p10), [#allocation15], 4294963200  ;;  %p11594_p9 = pmov %p11591_p3 }
 0x1b9   : > { %p11595_p4 = pmov %p11591_p3 }
 0x1ba   : > { %9709 = dma.done.wait (%p11594_p9), [#allocation18], 4096  }
 0x1bb   : > { %9711 = vsyncadd (%p11595_p4), [#allocation18], 4294963200  ;;  %p11596_p13 = pmov %p11591_p3 }
 0x1bc   : > { %p11597_p1 = pmov %p11591_p3 }
 0x1bd   : > { %9713 = dma.done.wait (%p11596_p13), [#allocation21], 8192  }
 0x1be   : > { %9715 = vsyncadd (%p11597_p1), [#allocation21], 4294959104  ;;  %v9753_v0 = vmov 0.0   ;;  %v9754_v1 = vmov 0.0|0.0   ;;  %vm9755_vm0 = vmmov 0   ;;  %v1113_v2 = vld [vmem:[#allocation10 + $0x8] sm:$0xff] }
 0x1bf   : > { %1220 = vmatprep.mubr.f32.mxu0 %v9753_v0  ;;  %8748 = vmatprep.subr.bf16.mxu1 %v9754_v1  ;;  %v1115_v3 = vld [vmem:[#allocation10 + $0x18] sm:$0xff]  ;;  %v1112_v4 = vld [vmem:[#allocation10] sm:$0xff]  ;;  %v1114_v6 = vld [vmem:[#allocation10 + $0x10] sm:$0xff]  ;;  %s11598_s17 = sld [smem:[#allocation44_spill]]  ;;  %s9756_s18 = smov 96   ;;  %vm2202_vm1 = vcmask 130048  }
 0x1c0   : > { %8346 = vmatprep.mubr.msk.f32.mxu1 %vm9755_vm0, %v9753_v0  ;;  %v8716_v5 = vpack.c.bf16 %v1115_v3, %v1113_v2  ;;  %v1117_v7 = vld [vmem:[#allocation10 + $0x28] sm:$0xff]  ;;  %v1119_v8 = vld [vmem:[#allocation10 + $0x38] sm:$0xff]  ;;  %v8718_v9 = vpack.c.bf16 %v1114_v6, %v1112_v4  ;;  %v1116_v11 = vld [vmem:[#allocation10 + $0x20] sm:$0xff]  ;;  %s9757_s15 = smov 112   ;;  %s9758_s22 = smov 64   ;;  %vm2811_vm2 = vcmask 64512  }
 0x1c1   : > { %v8720_v10 = vpack.c.bf16 %v1119_v8, %v1117_v7  ;;  %v1118_v12 = vld [vmem:[#allocation10 + $0x30] sm:$0xff]  ;;  %v1121_v13 = vld [vmem:[#allocation10 + $0x48] sm:$0xff]  ;;  %v1123_v14 = vld [vmem:[#allocation10 + $0x58] sm:$0xff]  ;;  %s9759_s23 = smov 80   ;;  %s9760_s12 = smov 48   ;;  %vm3785_vm3 = vcmask 261120  }
 0x1c2   : > { %8717 = vmatprep.subr.bf16.mxu0 %v8716_v5  ;;  %v8722_v15 = vpack.c.bf16 %v1118_v12, %v1116_v11  ;;  %v8724_v16 = vpack.c.bf16 %v1123_v14, %v1121_v13  ;;  %v1120_v17 = vld [vmem:[#allocation10 + $0x40] sm:$0xff]  ;;  %v1122_v18 = vld [vmem:[#allocation10 + $0x50] sm:$0xff]  ;;  %v1125_v19 = vld [vmem:[#allocation10 + $0x68] sm:$0xff]  ;;  %s9761_s26 = smov 32   ;;  %s9762_s28 = smov 16   ;;  %vm3787_vm4 = vcmask 392192  }
 0x1c3   : > { %8719 = vmatpush1.bf16.msra.mxu0 %v8718_v9  ;;  %v1127_v20 = vld [vmem:[#allocation10 + $0x78] sm:$0xff]  ;;  %v8726_v21 = vpack.c.bf16 %v1122_v18, %v1120_v17  ;;  %v1124_v23 = vld [vmem:[#allocation10 + $0x60] sm:$0xff]  ;;  %v1126_v24 = vld [vmem:[#allocation10 + $0x70] sm:$0xff]  ;;  %s11599_s0 = sld [smem:[#allocation46_spill]]  ;;  %vm3789_vm5 = vcmask 523264   ;;  %vm3791_vm6 = vcmask 654336  }
 0x1c4   : > { %8721 = vmatprep.subr.bf16.mxu0 %v8720_v10  ;;  %v8728_v22 = vpack.c.bf16 %v1127_v20, %v1125_v19  ;;  %v1129_v25 = vld [vmem:[#allocation10 + $0x88] sm:$0xff]  ;;  %v1131_v26 = vld [vmem:[#allocation10 + $0x98] sm:$0xff]  ;;  %v1227_v27 = vld [vmem:[#allocation11] sm:$0xff]  ;;  %v8730_v29 = vpack.c.bf16 %v1126_v24, %v1124_v23  ;;  %vm3793_vm7 = vcmask 785408   ;;  %vm3795_vm8 = vcmask 916480   ;;  %s11600_s6 = sld [smem:[#allocation48_spill]] }
 0x1c5   : > { %v1228_v28 = vld [vmem:[#allocation11 + $0x8] sm:$0xff]  ;;  %v1229_v31 = vld [vmem:[#allocation11 + $0x10] sm:$0xff]  ;;  %v1230_v32 = vld [vmem:[#allocation11 + $0x18] sm:$0xff]  ;;  %v8732_v33 = vpack.c.bf16 %v1131_v26, %v1129_v25  ;;  %s11606_s9 = sld [smem:[#allocation50_spill]]  ;;  %s11610_s1 = sld [smem:[#allocation62_spill]] }
 0x1c6   : > { %v8749_v30 = vpack.c.bf16 %v1228_v28, %v1227_v27  ;;  %v1128_v34 = vld [vmem:[#allocation10 + $0x80] sm:$0xff]  ;;  %v1130_v35 = vld [vmem:[#allocation10 + $0x90] sm:$0xff]  ;;  %v1133_v36 = vld [vmem:[#allocation10 + $0xa8] sm:$0xff]  ;;  %v8752_v38 = vpack.c.bf16 %v1230_v32, %v1229_v31  ;;  %v9764_v32 = vmov 1934713408   ;;  %s11611_s25 = sld [smem:[#allocation57_spill]] }
 0x1c7   : > { %8723 = vmatpush1.bf16.msra.mxu0 %v8722_v15  ;;  %v1135_v37 = vld [vmem:[#allocation10 + $0xb8] sm:$0xff]  ;;  %v1231_v39 = vld [vmem:[#allocation11 + $0x20] sm:$0xff]  ;;  %v1232_v40 = vld [vmem:[#allocation11 + $0x28] sm:$0xff]  ;;  %v8734_v41 = vpack.c.bf16 %v1130_v35, %v1128_v34  ;;  %v1146_v15 = vlaneseq  ;;  %s11613_s3 = sld [smem:[#allocation37_spill]]  ;;  %s7669_s14 = scalar_lea.sflag [#allocation4], %s10360_s27 }
 0x1c8   : > { %8725 = vmatprep.subr.bf16.mxu0 %v8724_v16  ;;  %8750 = vmatpush3.bf16.msra.mxu1 %v8749_v30  ;;  %v8736_v42 = vpack.c.bf16 %v1135_v37, %v1133_v36  ;;  %v1132_v43 = vld [vmem:[#allocation10 + $0xa0] sm:$0xff]  ;;  %v1134_v44 = vld [vmem:[#allocation10 + $0xb0] sm:$0xff]  ;;  %v1137_v45 = vld [vmem:[#allocation10 + $0xc8] sm:$0xff]  ;;  %v8755_v47 = vpack.c.bf16 %v1232_v40, %v1231_v39  ;;  %v9763_v30 = vmov 1983009808  }
 0x1c9   : > { %8751 = vmatprep.subr.bf16.mxu1 %v9754_v1  ;;  %v1139_v46 = vld [vmem:[#allocation10 + $0xd8] sm:$0xff]  ;;  %v1233_v48 = vld [vmem:[#allocation11 + $0x30] sm:$0xff]  ;;  %v8738_v50 = vpack.c.bf16 %v1134_v44, %v1132_v43  ;;  %v1136_v52 = vld [vmem:[#allocation10 + $0xc0] sm:$0xff]  ;;  %v10427_v16 = vshrl.u32 %v1146_v15, 7  ;;  %v1345_v31 = vunpack.c.l.s4 %v9763_v30 }
 0x1ca   : > { %v1234_v49 = vld [vmem:[#allocation11 + $0x38] sm:$0xff]  ;;  %v8740_v51 = vpack.c.bf16 %v1139_v46, %v1137_v45  ;;  %v1138_v53 = vld [vmem:[#allocation10 + $0xd0] sm:$0xff]  ;;  %v1141_v54 = vld [vmem:[#allocation10 + $0xe8] sm:$0xff] }
 0x1cb   : > { %8727 = vmatpush1.bf16.msra.mxu0 %v8726_v21  ;;  %v1143_v55 = vld [vmem:[#allocation10 + $0xf8] sm:$0xff]  ;;  %v8758_v56 = vpack.c.bf16 %v1234_v49, %v1233_v48  ;;  %v1235_v57 = vld [vmem:[#allocation11 + $0x40] sm:$0xff]  ;;  %v1236_v58 = vld [vmem:[#allocation11 + $0x48] sm:$0xff]  ;;  %v8742_v59 = vpack.c.bf16 %v1138_v53, %v1136_v52  ;;  %v1148_v17 = vsub.s32 0, %v10427_v16  ;;  %v1346_v34 = vunpack.c.0.s8 %v1345_v31 }
 0x1cc   : > { %8729 = vmatprep.subr.bf16.mxu0 %v8728_v22  ;;  %8753 = vmatpush3.bf16.msra.mxu1 %v8752_v38  ;;  %v8744_v60 = vpack.c.bf16 %v1143_v55, %v1141_v54  ;;  %v1140_v61 = vld [vmem:[#allocation10 + $0xe0] sm:$0xff]  ;;  %v1142_v62 = vld [vmem:[#allocation10 + $0xf0] sm:$0xff]  ;;  %v8761_v63 = vpack.c.bf16 %v1236_v58, %v1235_v57  ;;  %v1238_v3 = vld [vmem:[#allocation11 + $0x58] sm:$0xff]  ;;  %v1152_v22 = vsub.s32 1, %v10427_v16 }
 0x1cd   : > { %8754 = vmatprep.subr.bf16.mxu1 %v9754_v1  ;;  %v1237_v2 = vld [vmem:[#allocation11 + $0x50] sm:$0xff]  ;;  %v8746_v4 = vpack.c.bf16 %v1142_v62, %v1140_v61  ;;  %v1105_v5 = vld [vmem:[%s954_s11] sm:$0xff]  ;;  %v1242_v13 = vld [vmem:[#allocation11 + $0x78] sm:$0xff]  ;;  %v10473_v38 = vsub.s32 %v1346_v34, %v10427_v16  ;;  %p11617_p2 = scmp.ne.s32.totalorder %s11613_s3, 0 }
 0x1ce   : > { %v1106_v6 = vld [vmem:[%s963_s8] sm:$0xff]  ;;  %v8764_v7 = vpack.c.bf16 %v1238_v3, %v1237_v2  ;;  %v1239_v9 = vld [vmem:[#allocation11 + $0x60] sm:$0xff]  ;;  %v1240_v10 = vld [vmem:[#allocation11 + $0x68] sm:$0xff] }
 0x1cf   : > { %8731 = vmatpush1.bf16.msra.mxu0 %v8730_v29  ;;  %v1111_v8 = vadd.f32 %v1106_v6, %v1105_v5  ;;  %v8767_v11 = vpack.c.bf16 %v1240_v10, %v1239_v9  ;;  %v1241_v12 = vld [vmem:[#allocation11 + $0x70] sm:$0xff]  ;;  %v1144_v18 = vld [vmem:[%s11598_s17] sm:$0x3]  ;;  %s11602_s17 = sld [smem:[#allocation59_spill]]  ;;  %vm10914_vm9 = vmpackc.low %vm2202_vm1, %vm2202_vm1 }
 0x1d0   : > { %8733 = vmatprep.subr.bf16.mxu0 %v8732_v33  ;;  %8756 = vmatpush3.bf16.msra.mxu1 %v8755_v47  ;;  %v8770_v14 = vpack.c.bf16 %v1242_v13, %v1241_v12  ;;  %v1149_v19 = vrot.slane %v1144_v18, %v1148_v17  ;;  %v1153_v24 = vrot.slane %v1144_v18, %v1152_v22  ;;  %v7940_v26 = vld [vmem:[%s11599_s0] ss:$0 sm:$0xff]  ;;  %v1409_v33 = vunpack.c.l.s4 %v9764_v32  ;;  %s11603_s0 = sld [smem:[#allocation60_spill]] }
 0x1d1   : > { %8757 = vmatprep.subr.bf16.mxu1 %v9754_v1 }
 0x1d2   : > { %v1410_v37 = vunpack.c.0.s8 %v1409_v33 }
 0x1d3   : > { %8735 = vmatpush1.bf16.msra.mxu0 %v8734_v41 }
 0x1d4   : > { %8737 = vmatprep.subr.bf16.mxu0 %v8736_v42  ;;  %8759 = vmatpush3.bf16.msra.mxu1 %v8758_v56  ;;  %v10478_v45 = vsub.s32 %v1410_v37, %v10427_v16 }
 0x1d5   : > { %8760 = vmatprep.subr.bf16.mxu1 %v9754_v1 }
 0x1d7   : > { %8739 = vmatpush1.bf16.msra.mxu0 %v8738_v50 }
 0x1d8   : > { %8741 = vmatprep.subr.bf16.mxu0 %v8740_v51  ;;  %8762 = vmatpush3.bf16.msra.mxu1 %v8761_v63 }
 0x1d9   : > { %8763 = vmatprep.subr.bf16.mxu1 %v9754_v1 }
 0x1db   : > { %8743 = vmatpush1.bf16.msra.mxu0 %v8742_v59 }
 0x1dc   : > { %8745 = vmatprep.subr.bf16.mxu0 %v8744_v60  ;;  %8765 = vmatpush3.bf16.msra.mxu1 %v8764_v7 }
 0x1dd   : > { %8766 = vmatprep.subr.bf16.mxu1 %v9754_v1 }
 0x1df   : > { %8747 = vmatpush1.bf16.msra.mxu0 %v8746_v4 }
 0x1e0   : > { %8349 = vmatprep.subr.mxu0 %v9753_v0  ;;  %8768 = vmatpush3.bf16.msra.mxu1 %v8767_v11 }
 0x1e1   : > { %8769 = vmatprep.subr.bf16.mxu1 %v9754_v1 }
 0x1e2   : > { %1221 = vmatmul.mubr.f32.vlgmr.msra.gmra.mrb[0].mxu0 %v1111_v8 }
 0x1e3   : > { %8351 = vmatprep.mubr.msk.f32.mxu0 %vm9755_vm0, %v9753_v0 }
 0x1e4   : > { %8771 = vmatpush3.bf16.msra.mxu1 %v8770_v14 }
 0x1e5   : > { %8354 = vmatprep.subr.mxu1 %v9753_v0 }
 0x1e7   : > { %8347 = vmatmul.mubr.f32.vlgmr.msra.gmra.mrb[0].mxu1 %v1105_v5 }
 0x1e8   : > { %8356 = vmatprep.mubr.msk.f32.mxu1 %vm9755_vm0, %v9753_v0 }
 0x2b5   : > { %v1222_v20 = vpop.f32.mrb[0].mxu0 }
 0x2b6   : > { %v1223_v21 = vadd.f32 %v1222_v20, %v1149_v19  ;;  %v1224_v23 = vpop.f32.mrb[1].mxu0 }
 0x2b7   : > { %v10442_v25 = vadd.f32 %v1224_v23, %v1153_v24 }
 0x2b8   : > { %1324 = vrot.lane.b32.xlu0 %v1223_v21, %s9756_s18  ;;  %1321 = vrot.lane.b32.xlu1 %v1223_v21, %s9757_s15 }
 0x2ba   : > { %v1316_v27 = vpop.f32.mrb[0].mxu1 }
 0x2bb   : > { %v10464_v28 = vadd.f32 %v7940_v26, %v1316_v27  ;;  %v8348_v29 = vpop.f32.mrb[1].mxu1 }
 0x2bc   : > { %1330 = vrot.lane.b32.xlu0 %v1223_v21, %s9758_s22  ;;  %1327 = vrot.lane.b32.xlu1 %v1223_v21, %s9759_s23 }
 0x2c0   : > { %1615 = vrot.lane.b32.xlu0 %v10442_v25, %s9757_s15  ;;  %1333 = vrot.lane.b32.xlu1 %v1223_v21, %s9760_s12 }
 0x2c4   : > { %1618 = vrot.lane.b32.xlu0 %v10442_v25, %s9756_s18  ;;  %1621 = vrot.lane.b32.xlu1 %v10442_v25, %s9759_s23 }
 0x2c8   : > { %1624 = vrot.lane.b32.xlu0 %v10442_v25, %s9758_s22  ;;  %1627 = vrot.lane.b32.xlu1 %v10442_v25, %s9760_s12 }
 0x2cc   : > { %1630 = vrot.lane.b32.xlu0 %v10442_v25, %s9761_s26  ;;  %1633 = vrot.lane.b32.xlu1 %v10442_v25, %s9762_s28 }
 0x2d0   : > { %1336 = vrot.lane.b32.xlu0 %v1223_v21, %s9761_s26  ;;  %1339 = vrot.lane.b32.xlu1 %v1223_v21, %s9762_s28 }
 0x2d4   : > { %1909 = vrot.lane.b32.xlu1 %v10464_v28, %s9757_s15  ;;  %1912 = vrot.lane.b32.xlu0 %v10464_v28, %s9756_s18 }
 0x2d8   : > { %1915 = vrot.lane.b32.xlu1 %v10464_v28, %s9759_s23 }
 0x32a   : > { %v1325_v35 = vpop.permute.xlu0 %1324  ;;  %v1322_v36 = vpop.permute.xlu1 %1321 }
 0x32b   : > { %v1342_v39 = vcombine.low %v1223_v21, %v1325_v35  ;;  %v1343_v40 = vcombine.high %v1223_v21, %v1325_v35 }
 0x32d   : > { %v1350_v46 = vrot.slane %v1342_v39, %v10473_v38  ;;  %v1357_v47 = vrot.slane %v1343_v40, %v10473_v38 }
 0x32e   : > { %v10475_v41 = vpop.permute.xlu0 %1330  ;;  %v1328_v42 = vpop.permute.xlu1 %1327 }
 0x32f   : > { %v1358_v43 = vcombine.low %v1322_v36, %v1328_v42  ;;  %v1359_v44 = vcombine.high %v1322_v36, %v1328_v42 }
 0x331   : > { %v1366_v48 = vrot.slane %v1358_v43, %v10473_v38  ;;  %v1373_v49 = vrot.slane %v1359_v44, %v10473_v38 }
 0x332   : > { %v1616_v50 = vpop.permute.xlu0 %1615  ;;  %v10484_v51 = vpop.permute.xlu1 %1333 }
 0x333   : > { %v1406_v52 = vcombine.low %v1350_v46, %v1366_v48  ;;  %v1407_v53 = vcombine.high %v1350_v46, %v1366_v48  ;;  %v1422_v54 = vcombine.low %v1357_v47, %v1373_v49  ;;  %v1423_v55 = vcombine.high %v1357_v47, %v1373_v49 }
 0x335   : > { %v1414_v56 = vrot.slane %v1406_v52, %v10478_v45  ;;  %v1421_v57 = vrot.slane %v1407_v53, %v10478_v45  ;;  %v1430_v58 = vrot.slane %v1422_v54, %v10478_v45  ;;  %v1437_v59 = vrot.slane %v1423_v55, %v10478_v45 }
 0x336   : > { %v1619_v60 = vpop.permute.xlu0 %1618  ;;  %v1622_v61 = vpop.permute.xlu1 %1621 }
 0x337   : > { %v7941_v62 = vcombine.low %v1414_v56, %v1421_v57  ;;  %v7943_v63 = vcombine.high %v1414_v56, %v1421_v57  ;;  %v7945_v2 = vcombine.low %v1430_v58, %v1437_v59  ;;  %v7947_v3 = vcombine.high %v1430_v58, %v1437_v59 }
 0x338   : > { %v1636_v4 = vcombine.low %v10442_v25, %v1619_v60  ;;  %v1637_v5 = vcombine.high %v10442_v25, %v1619_v60  ;;  %v1652_v6 = vcombine.low %v1616_v50, %v1622_v61  ;;  %v1653_v7 = vcombine.high %v1616_v50, %v1622_v61 }
 0x339   : > { %v10493_v8 = vrot.slane %v7941_v62, %v10473_v38  ;;  %v10496_v9 = vrot.slane %v7943_v63, %v10473_v38  ;;  %v10499_v10 = vrot.slane %v7945_v2, %v10473_v38  ;;  %v10502_v11 = vrot.slane %v7947_v3, %v10473_v38 }
 0x33a   : > { %v1644_v12 = vrot.slane %v1636_v4, %v10473_v38  ;;  %v1651_v13 = vrot.slane %v1637_v5, %v10473_v38  ;;  %v1660_v14 = vrot.slane %v1652_v6, %v10473_v38  ;;  %v1667_v15 = vrot.slane %v1653_v7, %v10473_v38  ;;  %v1625_v18 = vpop.permute.xlu0 %1624  ;;  %v1628_v19 = vpop.permute.xlu1 %1627 }
 0x33b   : > { %v1542_v25 = vcombine.low %v10493_v8, %v10496_v9  ;;  %v1543_v26 = vcombine.high %v10493_v8, %v10496_v9  ;;  %v1574_v27 = vcombine.low %v10499_v10, %v10502_v11  ;;  %v1575_v61 = vcombine.high %v10499_v10, %v10502_v11 }
 0x33c   : > { %v1700_v20 = vcombine.low %v1644_v12, %v1660_v14  ;;  %v1701_v21 = vcombine.high %v1644_v12, %v1660_v14  ;;  %v1716_v23 = vcombine.low %v1651_v13, %v1667_v15  ;;  %v1717_v24 = vcombine.high %v1651_v13, %v1667_v15 }
 0x33d   : > { %v10529_v2 = vrot.slane %v1542_v25, %v10478_v45 }
 0x33e   : > { %v1708_v29 = vrot.slane %v1700_v20, %v10478_v45  ;;  %v1715_v30 = vrot.slane %v1701_v21, %v10478_v45  ;;  %v1724_v31 = vrot.slane %v1716_v23, %v10478_v45  ;;  %v1731_v32 = vrot.slane %v1717_v24, %v10478_v45  ;;  %v1631_v33 = vpop.permute.xlu0 %1630  ;;  %v1634_v34 = vpop.permute.xlu1 %1633 }
 0x33f   : > { %v1668_v35 = vcombine.low %v1625_v18, %v1631_v33  ;;  %v1669_v36 = vcombine.high %v1625_v18, %v1631_v33  ;;  %v1684_v37 = vcombine.low %v1628_v19, %v1634_v34  ;;  %v1685_v39 = vcombine.high %v1628_v19, %v1634_v34 }
 0x340   : > { %v7949_v40 = vcombine.low %v1708_v29, %v1715_v30  ;;  %v7951_v42 = vcombine.high %v1708_v29, %v1715_v30  ;;  %v7953_v43 = vcombine.low %v1724_v31, %v1731_v32  ;;  %v7955_v44 = vcombine.high %v1724_v31, %v1731_v32 }
 0x341   : > { %v1676_v46 = vrot.slane %v1668_v35, %v10473_v38  ;;  %v1683_v47 = vrot.slane %v1669_v36, %v10473_v38  ;;  %v1692_v48 = vrot.slane %v1684_v37, %v10473_v38  ;;  %v1699_v49 = vrot.slane %v1685_v39, %v10473_v38 }
 0x342   : > { %v1780_v50 = vrot.slane %v7949_v40, %v10473_v38  ;;  %v1796_v52 = vrot.slane %v7951_v42, %v10473_v38  ;;  %v1812_v53 = vrot.slane %v7953_v43, %v10473_v38  ;;  %v1828_v54 = vrot.slane %v7955_v44, %v10473_v38  ;;  %v1337_v59 = vpop.permute.xlu0 %1336  ;;  %v1340_v60 = vpop.permute.xlu1 %1339 }
 0x343   : > { %v1732_v55 = vcombine.low %v1676_v46, %v1692_v48  ;;  %v1733_v56 = vcombine.high %v1676_v46, %v1692_v48  ;;  %v1748_v57 = vcombine.low %v1683_v47, %v1699_v49  ;;  %v1749_v58 = vcombine.high %v1683_v47, %v1699_v49 }
 0x344   : > { %v1836_v62 = vcombine.low %v1780_v50, %v1796_v52  ;;  %v1868_v63 = vcombine.low %v1812_v53, %v1828_v54  ;;  %v1374_v7 = vcombine.low %v10475_v41, %v1337_v59  ;;  %v1375_v8 = vcombine.high %v10475_v41, %v1337_v59 }
 0x345   : > { %v1740_v3 = vrot.slane %v1732_v55, %v10478_v45  ;;  %v1747_v4 = vrot.slane %v1733_v56, %v10478_v45  ;;  %v1756_v5 = vrot.slane %v1748_v57, %v10478_v45  ;;  %v1763_v6 = vrot.slane %v1749_v58, %v10478_v45 }
 0x346   : > { %v1390_v9 = vcombine.low %v10484_v51, %v1340_v60  ;;  %v1391_v10 = vcombine.high %v10484_v51, %v1340_v60  ;;  %v1382_v15 = vrot.slane %v1374_v7, %v10473_v38  ;;  %v1389_v18 = vrot.slane %v1375_v8, %v10473_v38 }
 0x347   : > { %v7950_v11 = vcombine.low %v1740_v3, %v1747_v4  ;;  %v7952_v12 = vcombine.high %v1740_v3, %v1747_v4  ;;  %v7954_v13 = vcombine.low %v1756_v5, %v1763_v6  ;;  %v7956_v14 = vcombine.high %v1756_v5, %v1763_v6 }
 0x348   : > { %v1398_v19 = vrot.slane %v1390_v9, %v10473_v38  ;;  %v1405_v20 = vrot.slane %v1391_v10, %v10473_v38  ;;  %v1837_v31 = vcombine.high %v1780_v50, %v1796_v52  ;;  %v1869_v32 = vcombine.high %v1812_v53, %v1828_v54 }
 0x349   : > { %v10544_v21 = vrot.slane %v7950_v11, %v10473_v38  ;;  %v10547_v41 = vrot.slane %v7952_v12, %v10473_v38  ;;  %v10550_v51 = vrot.slane %v7954_v13, %v10473_v38  ;;  %v10553_v23 = vrot.slane %v7956_v14, %v10473_v38  ;;  %v1910_v12 = vpop.permute.xlu1 %1909  ;;  %v1913_v13 = vpop.permute.xlu0 %1912 }
 0x34a   : > { %v1438_v24 = vcombine.low %v1382_v15, %v1398_v19  ;;  %v1439_v25 = vcombine.high %v1382_v15, %v1398_v19  ;;  %v1454_v29 = vcombine.low %v1389_v18, %v1405_v20  ;;  %v1455_v30 = vcombine.high %v1389_v18, %v1405_v20 }
 0x34b   : > { %v1582_v33 = vrot.slane %v1574_v27, %v10478_v45  ;;  %v1557_v34 = vrot.slane %v1543_v26, %v10478_v45  ;;  %v1852_v40 = vcombine.low %v10544_v21, %v10547_v41  ;;  %v1884_v42 = vcombine.low %v10550_v51, %v10553_v23 }
 0x34c   : > { %v1446_v35 = vrot.slane %v1438_v24, %v10478_v45  ;;  %v1453_v36 = vrot.slane %v1439_v25, %v10478_v45  ;;  %v1462_v37 = vrot.slane %v1454_v29, %v10478_v45  ;;  %v1469_v39 = vrot.slane %v1455_v30, %v10478_v45 }
 0x34d   : > { %v1844_v43 = vrot.slane %v1836_v62, %v10478_v45  ;;  %v1876_v27 = vrot.slane %v1868_v63, %v10478_v45  ;;  %v1851_v50 = vrot.slane %v1837_v31, %v10478_v45  ;;  %v1883_v52 = vrot.slane %v1869_v32, %v10478_v45  ;;  %v1916_v29 = vpop.permute.xlu1 %1915 }
 0x34e   : > { %v7942_v44 = vcombine.low %v1446_v35, %v1453_v36  ;;  %v7944_v26 = vcombine.high %v1446_v35, %v1453_v36  ;;  %v7946_v46 = vcombine.low %v1462_v37, %v1469_v39  ;;  %v7948_v47 = vcombine.high %v1462_v37, %v1469_v39 }
 0x34f   : > { %v1900_v48 = vcombine.low %v1844_v43, %v1876_v27  ;;  %v1901_v49 = vcombine.high %v1844_v43, %v1876_v27  ;;  %v1853_v57 = vcombine.high %v10544_v21, %v10547_v41  ;;  %v1885_v58 = vcombine.high %v10550_v51, %v10553_v23 }
 0x350   : > { %v1493_v53 = vrot.slane %v7942_v44, %v10473_v38  ;;  %v1509_v54 = vrot.slane %v7944_v26, %v10473_v38  ;;  %v1525_v55 = vrot.slane %v7946_v46, %v10473_v38  ;;  %v1541_v56 = vrot.slane %v7948_v47, %v10473_v38 }
 0x351   : > { %8350 = vmatpush3.xpose.msk.msra.mxu0 %vm2202_vm1, %v1900_v48  ;;  %8355 = vmatpush3.xpose.msk.msra.mxu1 %vm2202_vm1, %v1901_v49  ;;  %v1589_v59 = vrot.slane %v1575_v61, %v10478_v45  ;;  %v1606_v63 = vcombine.low %v10529_v2, %v1582_v33  ;;  %v1607_v3 = vcombine.high %v10529_v2, %v1582_v33 }
 0x352   : > { %v1558_v60 = vcombine.low %v1493_v53, %v1509_v54  ;;  %v1590_v62 = vcombine.low %v1525_v55, %v1541_v56  ;;  %8359 = vmatprep.subr.mxu0 %v9753_v0  ;;  %8364 = vmatprep.subr.mxu1 %v9753_v0  ;;  %v1902_v4 = vcombine.low %v1851_v50, %v1883_v52 }
 0x353   : > { %v1903_v5 = vcombine.high %v1851_v50, %v1883_v52  ;;  %v1860_v6 = vrot.slane %v1852_v40, %v10478_v45  ;;  %v1892_v7 = vrot.slane %v1884_v42, %v10478_v45  ;;  %v1559_v8 = vcombine.high %v1493_v53, %v1509_v54 }
 0x354   : > { %8352 = vmatmul.mubr.msk.f32.vlgmr.msra.gmra.mrb[2].mxu0 %vm2202_vm1, %v1606_v63  ;;  %8357 = vmatmul.mubr.msk.f32.vlgmr.msra.gmra.mrb[2].mxu1 %vm2202_vm1, %v1607_v3  ;;  %v1566_v61 = vrot.slane %v1558_v60, %v10478_v45  ;;  %v1598_v9 = vrot.slane %v1590_v62, %v10478_v45  ;;  %v1591_v2 = vcombine.high %v1525_v55, %v1541_v56 }
 0x355   : > { %8360 = vmatpush3.xpose.msk.msra.mxu0 %vm2202_vm1, %v1902_v4  ;;  %8365 = vmatpush3.xpose.msk.msra.mxu1 %vm2202_vm1, %v1903_v5  ;;  %v1904_v10 = vcombine.low %v1860_v6, %v1892_v7  ;;  %v1905_v11 = vcombine.high %v1860_v6, %v1892_v7  ;;  %v1608_v14 = vcombine.low %v1557_v34, %v1589_v59 }
 0x356   : > { %8361 = vmatprep.mubr.msk.f32.mxu0 %vm9755_vm0, %v9753_v0  ;;  %8366 = vmatprep.mubr.msk.f32.mxu1 %vm9755_vm0, %v9753_v0  ;;  %v1609_v15 = vcombine.high %v1557_v34, %v1589_v59  ;;  %v1867_v18 = vrot.slane %v1853_v57, %v10478_v45  ;;  %v1899_v19 = vrot.slane %v1885_v58, %v10478_v45 }
 0x357   : > { %8369 = vmatprep.subr.mxu0 %v9753_v0  ;;  %8374 = vmatprep.subr.mxu1 %v9753_v0  ;;  %v1930_v20 = vcombine.low %v10464_v28, %v1913_v13  ;;  %v1610_v21 = vcombine.low %v1566_v61, %v1598_v9  ;;  %v1611_v41 = vcombine.high %v1566_v61, %v1598_v9 }
 0x358   : > { %8362 = vmatmul.mubr.msk.f32.vlgmr.msra.gmra.mrb[4].mxu0 %vm2202_vm1, %v1608_v14  ;;  %8367 = vmatmul.mubr.msk.f32.vlgmr.msra.gmra.mrb[4].mxu1 %vm2202_vm1, %v1609_v15  ;;  %v1931_v51 = vcombine.high %v10464_v28, %v1913_v13  ;;  %v1573_v23 = vrot.slane %v1559_v8, %v10478_v45  ;;  %v1605_v24 = vrot.slane %v1591_v2, %v10478_v45 }
 0x359   : > { %8370 = vmatpush3.xpose.msk.msra.mxu0 %vm2202_vm1, %v1904_v10  ;;  %8375 = vmatpush3.xpose.msk.msra.mxu1 %vm2202_vm1, %v1905_v11  ;;  %v1938_v25 = vrot.slane %v1930_v20, %v10473_v38  ;;  %v1946_v31 = vcombine.low %v1910_v12, %v1916_v29  ;;  %v1947_v32 = vcombine.high %v1910_v12, %v1916_v29 }
 0x35a   : > { %8371 = vmatprep.mubr.msk.f32.mxu0 %vm9755_vm0, %v9753_v0  ;;  %8376 = vmatprep.mubr.msk.f32.mxu1 %vm9755_vm0, %v9753_v0  ;;  %v1945_v30 = vrot.slane %v1931_v51, %v10473_v38  ;;  %v1906_v33 = vcombine.low %v1867_v18, %v1899_v19  ;;  %v1907_v34 = vcombine.high %v1867_v18, %v1899_v19 }
 0x35b   : > { %8379 = vmatprep.subr.mxu0 %v9753_v0  ;;  %8384 = vmatprep.subr.mxu1 %v9753_v0  ;;  %v1954_v35 = vrot.slane %v1946_v31, %v10473_v38  ;;  %v1961_v36 = vrot.slane %v1947_v32, %v10473_v38  ;;  %v1612_v37 = vcombine.low %v1573_v23, %v1605_v24 }
 0x35c   : > { %8372 = vmatmul.mubr.msk.f32.vlgmr.msra.gmra.mrb[6].mxu0 %vm2202_vm1, %v1610_v21  ;;  %8377 = vmatmul.mubr.msk.f32.vlgmr.msra.gmra.mrb[6].mxu1 %vm2202_vm1, %v1611_v41  ;;  %v1613_v39 = vcombine.high %v1573_v23, %v1605_v24 }
 0x35d   : > { %8380 = vmatpush3.xpose.msk.msra.mxu0 %vm2202_vm1, %v1906_v33  ;;  %8385 = vmatpush3.xpose.msk.msra.mxu1 %vm2202_vm1, %v1907_v34  ;;  %v1994_v40 = vcombine.low %v1938_v25, %v1954_v35  ;;  %v1995_v42 = vcombine.high %v1938_v25, %v1954_v35  ;;  %v2010_v43 = vcombine.low %v1945_v30, %v1961_v36 }
 0x35e   : > { %8381 = vmatprep.mubr.msk.f32.mxu0 %vm9755_vm0, %v9753_v0  ;;  %8386 = vmatprep.mubr.msk.f32.mxu1 %vm9755_vm0, %v9753_v0  ;;  %v2011_v27 = vcombine.high %v1945_v30, %v1961_v36 }
 0x35f   : > { %8389 = vmatprep.subr.mxu0 %v9753_v0  ;;  %8394 = vmatprep.subr.mxu1 %v9753_v0  ;;  %v2002_v44 = vrot.slane %v1994_v40, %v10478_v45  ;;  %v2009_v26 = vrot.slane %v1995_v42, %v10478_v45  ;;  %v2018_v46 = vrot.slane %v2010_v43, %v10478_v45 }
 0x360   : > { %8382 = vmatmul.mubr.msk.f32.vlgmr.msra.gmra.mrb[8].mxu0 %vm2202_vm1, %v1612_v37  ;;  %8387 = vmatmul.mubr.msk.f32.vlgmr.msra.gmra.mrb[8].mxu1 %vm2202_vm1, %v1613_v39  ;;  %v2025_v47 = vrot.slane %v2011_v27, %v10478_v45 }
 0x361   : > { %8391 = vmatprep.mubr.msk.f32.mxu0 %vm9755_vm0, %v9753_v0  ;;  %8396 = vmatprep.mubr.msk.f32.mxu1 %vm9755_vm0, %v9753_v0  ;;  %v7957_v48 = vcombine.low %v2002_v44, %v2009_v26  ;;  %v7959_v49 = vcombine.high %v2002_v44, %v2009_v26 }
 0x362   : > { %v7961_v50 = vcombine.low %v2018_v46, %v2025_v47  ;;  %v7963_v52 = vcombine.high %v2018_v46, %v2025_v47 }
 0x363   : > { %v2074_v53 = vrot.slane %v7957_v48, %v10473_v38  ;;  %v2090_v54 = vrot.slane %v7959_v49, %v10473_v38 }
 0x364   : > { %v2106_v55 = vrot.slane %v7961_v50, %v10473_v38  ;;  %v2122_v56 = vrot.slane %v7963_v52, %v10473_v38 }
 0x365   : > { %v2130_v57 = vcombine.low %v2074_v53, %v2090_v54  ;;  %v2131_v3 = vcombine.high %v2074_v53, %v2090_v54 }
 0x366   : > { %v2162_v58 = vcombine.low %v2106_v55, %v2122_v56  ;;  %v2163_v4 = vcombine.high %v2106_v55, %v2122_v56 }
 0x367   : > { %v2138_v59 = vrot.slane %v2130_v57, %v10478_v45  ;;  %v10647_v5 = vrot.slane %v2131_v3, %v10478_v45 }
 0x368   : > { %v2170_v60 = vrot.slane %v2162_v58, %v10478_v45  ;;  %v10650_v6 = vrot.slane %v2163_v4, %v10478_v45 }
 0x36a   : > { %v2194_v62 = vcombine.low %v2138_v59, %v2170_v60  ;;  %v2195_v63 = vcombine.high %v2138_v59, %v2170_v60  ;;  %v2196_v7 = vcombine.low %v10647_v5, %v10650_v6  ;;  %v2197_v8 = vcombine.high %v10647_v5, %v10650_v6 }
 0x36c   : > { %8390 = vmatpush3.msra.mxu0 %v2194_v62  ;;  %8395 = vmatpush3.msra.mxu1 %v2195_v63 }
 0x36d   : > { %8399 = vmatprep.subr.mxu0 %v9753_v0  ;;  %8404 = vmatprep.subr.mxu1 %v9753_v0 }
 0x427   : > { %v2275_v61 = vpop.f32.mrb[2].mxu0  ;;  %v2351_v9 = vpop.f32.mrb[2].mxu1 }
 0x428   : > { %v8353_v2 = vpop.f32.mrb[3].mxu0  ;;  %v8358_v10 = vpop.f32.mrb[3].mxu1  ;;  %v2815_v11 = vsel %vm2811_vm2, %v2351_v9, -inf  ;;  %v2812_v12 = vsel %vm2811_vm2, %v2275_v61, -inf }
 0x429   : > { %2816 = vmax.xlane.f32.xlu1 %v2815_v11  ;;  %2813 = vmax.xlane.f32.xlu0 %v2812_v12 }
 0x42b   : > { %v2427_v13 = vpop.f32.mrb[4].mxu0  ;;  %v2503_v14 = vpop.f32.mrb[4].mxu1 }
 0x42c   : > { %v8363_v15 = vpop.f32.mrb[5].mxu0  ;;  %v8368_v18 = vpop.f32.mrb[5].mxu1  ;;  %v2818_v19 = vsel %vm2811_vm2, %v2427_v13, -inf  ;;  %v2821_v41 = vsel %vm2811_vm2, %v2503_v14, -inf }
 0x42d   : > { %2819 = vmax.xlane.f32.xlu0 %v2818_v19 }
 0x42f   : > { %v2579_v20 = vpop.f32.mrb[6].mxu0  ;;  %v2655_v21 = vpop.f32.mrb[6].mxu1 }
 0x430   : > { %v8373_v51 = vpop.f32.mrb[7].mxu0  ;;  %v8378_v23 = vpop.f32.mrb[7].mxu1  ;;  %v2824_v24 = vsel %vm2811_vm2, %v2579_v20, -inf  ;;  %v2827_v30 = vsel %vm2811_vm2, %v2655_v21, -inf }
 0x431   : > { %2822 = vmax.xlane.f32.xlu0 %v2821_v41  ;;  %2825 = vmax.xlane.f32.xlu1 %v2824_v24 }
 0x433   : > { %v2731_v25 = vpop.f32.mrb[8].mxu0  ;;  %v2807_v29 = vpop.f32.mrb[8].mxu1 }
 0x434   : > { %v8383_v31 = vpop.f32.mrb[9].mxu0  ;;  %v8388_v32 = vpop.f32.mrb[9].mxu1  ;;  %v2830_v33 = vsel %vm2811_vm2, %v2731_v25, -inf  ;;  %v2833_v34 = vsel %vm2811_vm2, %v2807_v29, -inf }
 0x435   : > { %2828 = vmax.xlane.f32.xlu0 %v2827_v30  ;;  %2831 = vmax.xlane.f32.xlu1 %v2830_v33 }
 0x439   : > { %2834 = vmax.xlane.f32.xlu0 %v2833_v34 }
 0x446   : > { %1921 = vrot.lane.b32.xlu1 %v10464_v28, %s9760_s12 }
 0x44f   : > { %1918 = vrot.lane.b32.xlu0 %v10464_v28, %s9758_s22 }
 0x4b6   : > { %v2814_v35 = vpop.xlane.xlu0 %2813  ;;  %v2817_v36 = vpop.xlane.xlu1 %2816 }
 0x4b7   : > { %v2836_v37 = vsub.f32 %v2275_v61, %v2814_v35  ;;  %v2837_v39 = vsub.f32 %v2351_v9, %v2817_v36 }
 0x4b9   : > { %v2844_v40 = vmul.f32 1.442695, %v2836_v37  ;;  %v2846_v42 = vmul.f32 1.442695, %v2837_v39 }
 0x4ba   : > { %v2820_v43 = vpop.xlane.xlu0 %2819 }
 0x4bb   : > { %9196 = vpow2.f32 %v2844_v40  ;;  %v2838_v27 = vsub.f32 %v2427_v13, %v2820_v43 }
 0x4bc   : > { %9198 = vpow2.f32 %v2846_v42 }
 0x4bd   : > { %v2848_v44 = vmul.f32 1.442695, %v2838_v27 }
 0x4be   : > { %v2823_v26 = vpop.xlane.xlu0 %2822  ;;  %v2826_v46 = vpop.xlane.xlu1 %2825 }
 0x4bf   : > { %9200 = vpow2.f32 %v2848_v44  ;;  %v2839_v47 = vsub.f32 %v2503_v14, %v2823_v26  ;;  %v2840_v48 = vsub.f32 %v2579_v20, %v2826_v46 }
 0x4c1   : > { %v2850_v49 = vmul.f32 1.442695, %v2839_v47  ;;  %v2852_v50 = vmul.f32 1.442695, %v2840_v48 }
 0x4c2   : > { %v2829_v52 = vpop.xlane.xlu0 %2828  ;;  %v2832_v53 = vpop.xlane.xlu1 %2831 }
 0x4c3   : > { %9202 = vpow2.f32 %v2850_v49  ;;  %v2841_v54 = vsub.f32 %v2655_v21, %v2829_v52  ;;  %v2842_v55 = vsub.f32 %v2731_v25, %v2832_v53 }
 0x4c4   : > { %9204 = vpow2.f32 %v2852_v50 }
 0x4c5   : > { %v9197_v56 = vpop.eup %9196  ;;  %v2854_v57 = vmul.f32 1.442695, %v2841_v54  ;;  %v2856_v58 = vmul.f32 1.442695, %v2842_v55 }
 0x4c6   : > { %v9199_v59 = vpop.eup %9198  ;;  %v2835_v60 = vpop.xlane.xlu0 %2834  ;;  %v2860_v62 = vsel %vm2811_vm2, %v9197_v56, 0.0 }
 0x4c7   : > { %9206 = vpow2.f32 %v2854_v57  ;;  %v2843_v63 = vsub.f32 %v2807_v29, %v2835_v60  ;;  %2861 = vadd.xlane.f32.xlu1 %v2860_v62  ;;  %v2863_v3 = vsel %vm2811_vm2, %v9199_v59, 0.0  ;;  %v1922_v21 = vpop.permute.xlu1 %1921 }
 0x4c8   : > { %2864 = vadd.xlane.f32.xlu0 %v2863_v3  ;;  %9208 = vpow2.f32 %v2856_v58 }
 0x4c9   : > { %v9201_v4 = vpop.eup %9200  ;;  %v2858_v61 = vmul.f32 1.442695, %v2843_v63 }
 0x4ca   : > { %v2866_v9 = vsel %vm2811_vm2, %v9201_v4, 0.0  ;;  %v1919_v41 = vpop.permute.xlu0 %1918 }
 0x4cb   : > { %9210 = vpow2.f32 %v2858_v61  ;;  %2867 = vadd.xlane.f32.xlu1 %v2866_v9 }
 0x4cd   : > { %v9203_v2 = vpop.eup %9202 }
 0x4ce   : > { %v10671_v10 = vpop.eup %9204  ;;  %v2869_v11 = vsel %vm2811_vm2, %v9203_v2, 0.0 }
 0x4cf   : > { %2870 = vadd.xlane.f32.xlu0 %v2869_v11  ;;  %v2872_v12 = vsel %vm2811_vm2, %v10671_v10, 0.0 }
 0x4d0   : > { %2873 = vadd.xlane.f32.xlu1 %v2872_v12 }
 0x4d1   : > { %v10676_v13 = vpop.eup %9206 }
 0x4d2   : > { %v2875_v14 = vsel %vm2811_vm2, %v10676_v13, 0.0  ;;  %v10680_v15 = vpop.eup %9208 }
 0x4d3   : > { %2876 = vadd.xlane.f32.xlu0 %v2875_v14  ;;  %v2878_v20 = vsel %vm2811_vm2, %v10680_v15, 0.0 }
 0x4d5   : > { %v10682_v18 = vpop.eup %9210 }
 0x4d6   : > { %v2881_v19 = vsel %vm2811_vm2, %v10682_v18, 0.0 }
 0x4d7   : > { %2882 = vadd.xlane.f32.xlu1 %v2881_v19  ;;  %2879 = vadd.xlane.f32.xlu0 %v2878_v20 }
 0x4e8   : > { %1924 = vrot.lane.b32.xlu1 %v10464_v28, %s9761_s26 }
 0x4ed   : > { %1927 = vrot.lane.b32.xlu0 %v10464_v28, %s9762_s28 }
 0x554   : > { %v2862_v51 = vpop.xlane.xlu1 %2861 }
 0x555   : > { %v2865_v23 = vpop.xlane.xlu0 %2864  ;;  %9212 = vrcp.f32 %v2862_v51 }
 0x556   : > { %9214 = vrcp.f32 %v2865_v23 }
 0x558   : > { %v2868_v24 = vpop.xlane.xlu1 %2867 }
 0x559   : > { %9216 = vrcp.f32 %v2868_v24 }
 0x55c   : > { %v2871_v25 = vpop.xlane.xlu0 %2870 }
 0x55d   : > { %9218 = vrcp.f32 %v2871_v25  ;;  %v2874_v32 = vpop.xlane.xlu1 %2873 }
 0x55e   : > { %9220 = vrcp.f32 %v2874_v32 }
 0x55f   : > { %v9213_v29 = vpop.eup %9212 }
 0x560   : > { %v9215_v30 = vpop.eup %9214  ;;  %v2892_v31 = vmul.f32 %v9213_v29, %v9197_v56  ;;  %v2877_v33 = vpop.xlane.xlu0 %2876 }
 0x561   : > { %v2893_v34 = vmul.f32 %v9215_v30, %v9199_v59  ;;  %9222 = vrcp.f32 %v2877_v33 }
 0x562   : > { %8392 = vmatmul.mubr.msk.f32.vlgmr.msra.gmra.mrb[10].mxu0 %vm2811_vm2, %v2892_v31 }
 0x563   : > { %v9217_v35 = vpop.eup %9216  ;;  %8397 = vmatmul.mubr.msk.f32.vlgmr.msra.gmra.mrb[10].mxu1 %vm2811_vm2, %v2893_v34  ;;  %8400 = vmatpush3.msra.mxu0 %v2196_v7 }
 0x564   : > { %v2894_v28 = vmul.f32 %v9217_v35, %v9201_v4  ;;  %8405 = vmatpush3.msra.mxu1 %v2197_v8  ;;  %v2880_v36 = vpop.xlane.xlu0 %2879  ;;  %v2883_v37 = vpop.xlane.xlu1 %2882  ;;  %8401 = vmatprep.mubr.msk.f32.mxu0 %vm9755_vm0, %v9753_v0 }
 0x565   : > { %8406 = vmatprep.mubr.msk.f32.mxu1 %vm9755_vm0, %v9753_v0  ;;  %8409 = vmatprep.subr.mxu0 %v9753_v0  ;;  %9224 = vrcp.f32 %v2880_v36 }
 0x566   : > { %8402 = vmatmul.mubr.msk.f32.vlgmr.msra.gmra.mrb[12].mxu0 %vm2811_vm2, %v2894_v28  ;;  %8414 = vmatprep.subr.mxu1 %v9753_v0  ;;  %9226 = vrcp.f32 %v2883_v37 }
 0x567   : > { %v9219_v7 = vpop.eup %9218  ;;  %8411 = vmatprep.mubr.msk.f32.mxu0 %vm9755_vm0, %v9753_v0 }
 0x568   : > { %v2895_v5 = vmul.f32 %v9219_v7, %v9203_v2  ;;  %v1928_v6 = vpop.permute.xlu0 %1927  ;;  %v1925_v8 = vpop.permute.xlu1 %1924 }
 0x569   : > { %v1978_v39 = vcombine.low %v1922_v21, %v1928_v6  ;;  %v1979_v40 = vcombine.high %v1922_v21, %v1928_v6  ;;  %v1962_v42 = vcombine.low %v1919_v41, %v1925_v8  ;;  %v1963_v43 = vcombine.high %v1919_v41, %v1925_v8  ;;  %v9221_v11 = vpop.eup %9220 }
 0x56a   : > { %8407 = vmatmul.mubr.msk.f32.vlgmr.msra.gmra.mrb[12].mxu1 %vm2811_vm2, %v2895_v5  ;;  %v2896_v24 = vmul.f32 %v9221_v11, %v10671_v10  ;;  %v3797_v10 = vld [vmem:[#allocation13] sm:$0xff]  ;;  %v3804_v11 = vld [vmem:[#allocation13 + $0x38] sm:$0xff] }
 0x56b   : > { %v1986_v27 = vrot.slane %v1978_v39, %v10473_v38  ;;  %v1993_v44 = vrot.slane %v1979_v40, %v10473_v38  ;;  %v1970_v26 = vrot.slane %v1962_v42, %v10473_v38  ;;  %8416 = vmatprep.mubr.msk.f32.mxu1 %vm9755_vm0, %v9753_v0  ;;  %v1977_v46 = vrot.slane %v1963_v43, %v10473_v38  ;;  %v9223_v14 = vpop.eup %9222 }
 0x56c   : > { %v2897_v25 = vmul.f32 %v9223_v14, %v10676_v13  ;;  %v3798_v13 = vld [vmem:[#allocation13 + $0x8] sm:$0xff] }
 0x56d   : > { %v2026_v47 = vcombine.low %v1970_v26, %v1986_v27  ;;  %v2027_v48 = vcombine.high %v1970_v26, %v1986_v27  ;;  %v2042_v49 = vcombine.low %v1977_v46, %v1993_v44  ;;  %v2043_v50 = vcombine.high %v1977_v46, %v1993_v44 }
 0x56f   : > { %v2034_v52 = vrot.slane %v2026_v47, %v10478_v45  ;;  %v2041_v53 = vrot.slane %v2027_v48, %v10478_v45  ;;  %v2050_v54 = vrot.slane %v2042_v49, %v10478_v45  ;;  %v2057_v55 = vrot.slane %v2043_v50, %v10478_v45  ;;  %v9225_v23 = vpop.eup %9224  ;;  %v3799_v49 = vld [vmem:[#allocation13 + $0x10] sm:$0xff]  ;;  %v3800_v50 = vld [vmem:[#allocation13 + $0x18] sm:$0xff] }
 0x570   : > { %v9227_v29 = vpop.eup %9226  ;;  %v2898_v32 = vmul.f32 %v9225_v23, %v10680_v15  ;;  %v8773_v15 = vpack.c.bf16 %v3798_v13, %v3797_v10 }
 0x571   : > { %v7958_v56 = vcombine.low %v2034_v52, %v2041_v53  ;;  %v7960_v57 = vcombine.high %v2034_v52, %v2041_v53  ;;  %v7962_v58 = vcombine.low %v2050_v54, %v2057_v55  ;;  %v7964_v59 = vcombine.high %v2050_v54, %v2057_v55 }
 0x572   : > { %v2899_v33 = vmul.f32 %v9227_v29, %v10682_v18  ;;  %v3805_v29 = vld [vmem:[#allocation13 + $0x40] sm:$0xff] }
 0x573   : > { %v2081_v60 = vrot.slane %v7958_v56, %v10473_v38  ;;  %v2097_v62 = vrot.slane %v7960_v57, %v10473_v38  ;;  %v2113_v63 = vrot.slane %v7962_v58, %v10473_v38  ;;  %v2129_v3 = vrot.slane %v7964_v59, %v10473_v38 }
 0x574   : > { %v8776_v56 = vpack.c.bf16 %v3800_v50, %v3799_v49 }
 0x575   : > { %v2146_v4 = vcombine.low %v2081_v60, %v2097_v62  ;;  %v2147_v61 = vcombine.high %v2081_v60, %v2097_v62  ;;  %v2178_v9 = vcombine.low %v2113_v63, %v2129_v3  ;;  %v2179_v2 = vcombine.high %v2113_v63, %v2129_v3  ;;  %v3801_v62 = vld [vmem:[#allocation13 + $0x20] sm:$0xff]  ;;  %v3802_v63 = vld [vmem:[#allocation13 + $0x28] sm:$0xff] }
 0x577   : > { %v2154_v12 = vrot.slane %v2146_v4, %v10478_v45  ;;  %v2186_v19 = vrot.slane %v2178_v9, %v10478_v45  ;;  %v2161_v20 = vrot.slane %v2147_v61, %v10478_v45  ;;  %v2193_v21 = vrot.slane %v2179_v2, %v10478_v45  ;;  %v3803_v2 = vld [vmem:[#allocation13 + $0x30] sm:$0xff] }
 0x579   : > { %v2198_v41 = vcombine.low %v2154_v12, %v2186_v19  ;;  %v2199_v51 = vcombine.high %v2154_v12, %v2186_v19  ;;  %v2200_v30 = vcombine.low %v2161_v20, %v2193_v21  ;;  %v2201_v31 = vcombine.high %v2161_v20, %v2193_v21 }
 0x57a   : > { %v8779_v12 = vpack.c.bf16 %v3802_v63, %v3801_v62 }
 0x57b   : > { %8410 = vmatpush3.msra.mxu0 %v2198_v41  ;;  %8415 = vmatpush3.msra.mxu1 %v2199_v51  ;;  %v8782_v41 = vpack.c.bf16 %v3804_v11, %v3803_v2 }
 0x57c   : > { %8412 = vmatmul.mubr.msk.f32.vlgmr.msra.gmra.mrb[14].mxu0 %vm2811_vm2, %v2896_v24  ;;  %8417 = vmatmul.mubr.msk.f32.vlgmr.msra.gmra.mrb[14].mxu1 %vm2811_vm2, %v2897_v25 }
 0x57d   : > { %8419 = vmatprep.subr.mxu0 %v9753_v0  ;;  %8424 = vmatprep.subr.mxu1 %v9753_v0 }
 0x57e   : > { %8420 = vmatpush3.msra.mxu0 %v2200_v30  ;;  %8425 = vmatpush3.msra.mxu1 %v2201_v31  ;;  %v3806_v30 = vld [vmem:[#allocation13 + $0x48] sm:$0xff] }
 0x57f   : > { %8421 = vmatprep.mubr.msk.f32.mxu0 %vm9755_vm0, %v9753_v0  ;;  %8426 = vmatprep.mubr.msk.f32.mxu1 %vm9755_vm0, %v9753_v0  ;;  %v8785_v13 = vpack.c.bf16 %v3806_v30, %v3805_v29 }
 0x580   : > { %8422 = vmatmul.mubr.msk.f32.vlgmr.msra.gmra.mrb[16].mxu0 %vm2811_vm2, %v2898_v32  ;;  %8427 = vmatmul.mubr.msk.f32.vlgmr.msra.gmra.mrb[16].mxu1 %vm2811_vm2, %v2899_v33 }
 0x581   : > { %8772 = vmatprep.subr.bf16.mxu0 %v9754_v1  ;;  %8461 = vmatprep.mubr.msk.f32.mxu0 %vm9755_vm0, %v9753_v0 }
 0x582   : > { %8796 = vmatprep.subr.bf16.mxu1 %v9754_v1  ;;  %8496 = vmatprep.mubr.msk.f32.mxu1 %vm9755_vm0, %v9753_v0 }
 0x583   : > { %8774 = vmatpush3.bf16.msra.mxu0 %v8773_v15 }
 0x584   : > { %8775 = vmatprep.subr.bf16.mxu0 %v9754_v1 }
 0x587   : > { %8777 = vmatpush3.bf16.msra.mxu0 %v8776_v56 }
 0x588   : > { %8778 = vmatprep.subr.bf16.mxu0 %v9754_v1 }
 0x58b   : > { %8780 = vmatpush3.bf16.msra.mxu0 %v8779_v12 }
 0x58c   : > { %8781 = vmatprep.subr.bf16.mxu0 %v9754_v1 }
 0x58f   : > { %8783 = vmatpush3.bf16.msra.mxu0 %v8782_v41 }
 0x590   : > { %8784 = vmatprep.subr.bf16.mxu0 %v9754_v1 }
 0x593   : > { %8786 = vmatpush3.bf16.msra.mxu0 %v8785_v13 }
 0x594   : > { %8787 = vmatprep.subr.bf16.mxu0 %v9754_v1 }
 0x635   : > { %v2969_v18 = vpop.f32.mrb[10].mxu0 }
 0x636   : > { %v3042_v34 = vpop.f32.mrb[10].mxu1  ;;  %v8393_v35 = vpop.f32.mrb[11].mxu0 }
 0x637   : > { %v8398_v28 = vpop.f32.mrb[11].mxu1  ;;  %v3808_v35 = vld [vmem:[#allocation13 + $0x58] sm:$0xff] }
 0x639   : > { %v3115_v36 = vpop.f32.mrb[12].mxu0 }
 0x63a   : > { %v3484_v37 = vcombine.low %v2969_v18, %v3115_v36  ;;  %v3485_v7 = vcombine.high %v2969_v18, %v3115_v36  ;;  %v8403_v5 = vpop.f32.mrb[13].mxu0 }
 0x63b   : > { %v3810_v5 = vld [vmem:[#allocation13 + $0x68] sm:$0xff] }
 0x63c   : > { %v3492_v42 = vrot.slane %v3484_v37, %v10473_v38  ;;  %v3499_v43 = vrot.slane %v3485_v7, %v10473_v38  ;;  %v3809_v7 = vld [vmem:[#allocation13 + $0x60] sm:$0xff] }
 0x63d   : > { %v3188_v6 = vpop.f32.mrb[12].mxu1 }
 0x63e   : > { %v3500_v8 = vcombine.low %v3042_v34, %v3188_v6  ;;  %v3501_v39 = vcombine.high %v3042_v34, %v3188_v6  ;;  %v8408_v40 = vpop.f32.mrb[13].mxu1  ;;  %v3807_v34 = vld [vmem:[#allocation13 + $0x50] sm:$0xff] }
 0x63f   : > { %v8788_v37 = vpack.c.bf16 %v3808_v35, %v3807_v34 }
 0x640   : > { %v3508_v27 = vrot.slane %v3500_v8, %v10473_v38  ;;  %v3515_v44 = vrot.slane %v3501_v39, %v10473_v38 }
 0x641   : > { %8789 = vmatpush3.bf16.msra.mxu0 %v8788_v37 }
 0x642   : > { %v3548_v26 = vcombine.low %v3492_v42, %v3508_v27  ;;  %v3549_v46 = vcombine.high %v3492_v42, %v3508_v27  ;;  %v3564_v47 = vcombine.low %v3499_v43, %v3515_v44  ;;  %v3565_v48 = vcombine.high %v3499_v43, %v3515_v44  ;;  %8790 = vmatprep.subr.bf16.mxu0 %v9754_v1 }
 0x644   : > { %v3556_v52 = vrot.slane %v3548_v26, %v10478_v45  ;;  %v3563_v53 = vrot.slane %v3549_v46, %v10478_v45  ;;  %v3572_v54 = vrot.slane %v3564_v47, %v10478_v45  ;;  %v3579_v55 = vrot.slane %v3565_v48, %v10478_v45 }
 0x645   : > { %v8791_v26 = vpack.c.bf16 %v3810_v5, %v3809_v7 }
 0x646   : > { %v7989_v57 = vcombine.low %v3556_v52, %v3563_v53  ;;  %v7991_v58 = vcombine.high %v3556_v52, %v3563_v53  ;;  %v7993_v59 = vcombine.low %v3572_v54, %v3579_v55  ;;  %v7995_v60 = vcombine.high %v3572_v54, %v3579_v55 }
 0x647   : > { %8792 = vmatpush3.bf16.msra.mxu0 %v8791_v26  ;;  %v4016_v26 = vld [vmem:[#allocation16 + $0x8] sm:$0xff] }
 0x648   : > { %v3628_v3 = vrot.slane %v7989_v57, %v10473_v38  ;;  %v3644_v4 = vrot.slane %v7991_v58, %v10473_v38  ;;  %v3660_v61 = vrot.slane %v7993_v59, %v10473_v38  ;;  %v3676_v9 = vrot.slane %v7995_v60, %v10473_v38  ;;  %v3811_v59 = vld [vmem:[#allocation13 + $0x70] sm:$0xff]  ;;  %v3812_v60 = vld [vmem:[#allocation13 + $0x78] sm:$0xff]  ;;  %8793 = vmatprep.subr.bf16.mxu0 %v9754_v1 }
 0x649   : > { %v8794_v62 = vpack.c.bf16 %v3812_v60, %v3811_v59  ;;  %v4024_v59 = vld [vmem:[#allocation16 + $0x48] sm:$0xff]  ;;  %v1109_v60 = vld [vmem:[%s10380_s2] sm:$0xff] }
 0x64a   : > { %v3685_v14 = vcombine.high %v3628_v3, %v3644_v4  ;;  %v3717_v19 = vcombine.high %v3660_v61, %v3676_v9  ;;  %v3684_v20 = vcombine.low %v3628_v3, %v3644_v4  ;;  %v3716_v21 = vcombine.low %v3660_v61, %v3676_v9 }
 0x64b   : > { %8795 = vmatpush3.bf16.msra.mxu0 %v8794_v62 }
 0x64c   : > { %v3699_v51 = vrot.slane %v3685_v14, %v10478_v45  ;;  %v3731_v23 = vrot.slane %v3717_v19, %v10478_v45  ;;  %v10765_v24 = vrot.slane %v3684_v20, %v10478_v45  ;;  %v10768_v25 = vrot.slane %v3716_v21, %v10478_v45 }
 0x64e   : > { %v3750_v31 = vcombine.low %v3699_v51, %v3731_v23  ;;  %v3749_v32 = vcombine.high %v10765_v24, %v10768_v25  ;;  %v3751_v33 = vcombine.high %v3699_v51, %v3731_v23  ;;  %v3748_v10 = vcombine.low %v10765_v24, %v10768_v25 }
 0x64f   : > { %v3261_v15 = vpop.f32.mrb[14].mxu0  ;;  %v3334_v18 = vpop.f32.mrb[14].mxu1 }
 0x650   : > { %3761 = vrot.lane.b32.xlu0 %v3750_v31, %s9761_s26  ;;  %3757 = vrot.lane.b32.xlu1 %v3749_v32, %s9762_s28  ;;  %v8413_v28 = vpop.f32.mrb[15].mxu0  ;;  %v8418_v36 = vpop.f32.mrb[15].mxu1 }
 0x653   : > { %v3407_v6 = vpop.f32.mrb[16].mxu0  ;;  %v3480_v8 = vpop.f32.mrb[16].mxu1 }
 0x654   : > { %3765 = vrot.lane.b32.xlu1 %v3751_v33, %s9760_s12  ;;  %v3516_v39 = vcombine.low %v3261_v15, %v3407_v6  ;;  %v3517_v40 = vcombine.high %v3261_v15, %v3407_v6  ;;  %v3532_v42 = vcombine.low %v3334_v18, %v3480_v8  ;;  %v3533_v43 = vcombine.high %v3334_v18, %v3480_v8  ;;  %v8423_v27 = vpop.f32.mrb[17].mxu0  ;;  %v8428_v44 = vpop.f32.mrb[17].mxu1  ;;  %v7997_v8 = vld [vmem:[%s11600_s6] ss:$0 sm:$0xff] }
 0x655   : > { %v4015_v44 = vld [vmem:[#allocation16] sm:$0xff] }
 0x656   : > { %v3524_v46 = vrot.slane %v3516_v39, %v10473_v38  ;;  %v3531_v47 = vrot.slane %v3517_v40, %v10473_v38  ;;  %v3540_v48 = vrot.slane %v3532_v42, %v10473_v38  ;;  %v3547_v49 = vrot.slane %v3533_v43, %v10473_v38  ;;  %v9266_v43 = vld [vmem:[%s954_s11] sm:$0xff]  ;;  %s11614_s11 = sld [smem:[#allocation63_spill]] }
 0x658   : > { %v3580_v50 = vcombine.low %v3524_v46, %v3540_v48  ;;  %v3581_v52 = vcombine.high %v3524_v46, %v3540_v48  ;;  %v3596_v53 = vcombine.low %v3531_v47, %v3547_v49  ;;  %v3597_v54 = vcombine.high %v3531_v47, %v3547_v49  ;;  %v4017_v47 = vld [vmem:[#allocation16 + $0x10] sm:$0xff]  ;;  %v4018_v48 = vld [vmem:[#allocation16 + $0x18] sm:$0xff]  ;;  %v4019_v49 = vld [vmem:[#allocation16 + $0x20] sm:$0xff] }
 0x659   : > { %v8820_v46 = vpack.c.bf16 %v4016_v26, %v4015_v44  ;;  %v4113_v44 = vld [vmem:[#allocation17] sm:$0xff]  ;;  %v4114_v26 = vld [vmem:[#allocation17 + $0x8] sm:$0xff] }
 0x65a   : > { %v3588_v55 = vrot.slane %v3580_v50, %v10478_v45  ;;  %v3595_v56 = vrot.slane %v3581_v52, %v10478_v45  ;;  %v3604_v57 = vrot.slane %v3596_v53, %v10478_v45  ;;  %v3611_v58 = vrot.slane %v3597_v54, %v10478_v45  ;;  %v4020_v52 = vld [vmem:[#allocation16 + $0x28] sm:$0xff]  ;;  %v4021_v54 = vld [vmem:[#allocation16 + $0x30] sm:$0xff] }
 0x65b   : > { %8821 = vmatprep.subr.bf16.mxu0 %v8820_v46  ;;  %v8824_v50 = vpack.c.bf16 %v4018_v48, %v4017_v47  ;;  %v8828_v53 = vpack.c.bf16 %v4020_v52, %v4019_v49  ;;  %v8852_v47 = vpack.c.bf16 %v4114_v26, %v4113_v44 }
 0x65c   : > { %v7990_v63 = vcombine.low %v3588_v55, %v3595_v56  ;;  %v7992_v3 = vcombine.high %v3588_v55, %v3595_v56  ;;  %v7994_v4 = vcombine.low %v3604_v57, %v3611_v58  ;;  %v7996_v61 = vcombine.high %v3604_v57, %v3611_v58  ;;  %v4022_v55 = vld [vmem:[#allocation16 + $0x38] sm:$0xff]  ;;  %v10821_v56 = vld [vmem:[%s10378_s13] sm:$0xff] }
 0x65d   : > { %v8832_v57 = vpack.c.bf16 %v4022_v55, %v4021_v54  ;;  %v4023_v58 = vld [vmem:[#allocation16 + $0x40] sm:$0xff]  ;;  %v4013_v62 = vadd.f32 %v1109_v60, %v10821_v56 }
 0x65e   : > { %v3635_v9 = vrot.slane %v7990_v63, %v10473_v38  ;;  %v3651_v2 = vrot.slane %v7992_v3, %v10473_v38  ;;  %v3667_v11 = vrot.slane %v7994_v4, %v10473_v38  ;;  %v3683_v12 = vrot.slane %v7996_v61, %v10473_v38  ;;  %v3920_v63 = vld [vmem:[#allocation14] sm:$0xff]  ;;  %v3921_v3 = vld [vmem:[#allocation14 + $0x8] sm:$0xff]  ;;  %v3922_v4 = vld [vmem:[#allocation14 + $0x10] sm:$0xff] }
 0x65f   : > { %v8797_v61 = vpack.c.bf16 %v3921_v3, %v3920_v63  ;;  %v4115_v3 = vld [vmem:[#allocation17 + $0x10] sm:$0xff] }
 0x660   : > { %v3700_v14 = vcombine.low %v3635_v9, %v3651_v2  ;;  %v3732_v19 = vcombine.low %v3667_v11, %v3683_v12  ;;  %v3701_v20 = vcombine.high %v3635_v9, %v3651_v2  ;;  %v3733_v21 = vcombine.high %v3667_v11, %v3683_v12  ;;  %v3923_v9 = vld [vmem:[#allocation14 + $0x18] sm:$0xff]  ;;  %v4025_v12 = vld [vmem:[#allocation16 + $0x50] sm:$0xff] }
 0x661   : > { %v8836_v2 = vpack.c.bf16 %v4024_v59, %v4023_v58  ;;  %8798 = vmatpush3.bf16.msra.mxu1 %v8797_v61  ;;  %v8800_v11 = vpack.c.bf16 %v3923_v9, %v3922_v4  ;;  %v7998_v59 = vld [vmem:[%s11602_s17] ss:$0 sm:$0xff]  ;;  %v4116_v4 = vld [vmem:[#allocation17 + $0x18] sm:$0xff] }
 0x662   : > { %v3708_v41 = vrot.slane %v3700_v14, %v10478_v45  ;;  %v3740_v51 = vrot.slane %v3732_v19, %v10478_v45  ;;  %v3715_v23 = vrot.slane %v3701_v20, %v10478_v45  ;;  %v3747_v29 = vrot.slane %v3733_v21, %v10478_v45  ;;  %v4026_v14 = vld [vmem:[#allocation16 + $0x58] sm:$0xff]  ;;  %8799 = vmatprep.subr.bf16.mxu1 %v9754_v1  ;;  %v4027_v20 = vld [vmem:[#allocation16 + $0x60] sm:$0xff]  ;;  %v4028_v21 = vld [vmem:[#allocation16 + $0x68] sm:$0xff] }
 0x663   : > { %v8840_v19 = vpack.c.bf16 %v4026_v14, %v4025_v12  ;;  %v9267_v9 = vld [vmem:[%s963_s8] sm:$0xff]  ;;  %v4117_v12 = vld [vmem:[#allocation17 + $0x20] sm:$0xff]  ;;  %v4118_v14 = vld [vmem:[#allocation17 + $0x28] sm:$0xff]  ;;  %s11612_s8 = sld [smem:[#allocation58_spill]] }
 0x664   : > { %v3753_v30 = vcombine.high %v3708_v41, %v3740_v51  ;;  %v3752_v31 = vcombine.low %v3708_v41, %v3740_v51  ;;  %v3755_v32 = vcombine.high %v3715_v23, %v3747_v29  ;;  %v3754_v33 = vcombine.low %v3715_v23, %v3747_v29  ;;  %v4029_v51 = vld [vmem:[#allocation16 + $0x70] sm:$0xff]  ;;  %v4030_v23 = vld [vmem:[#allocation16 + $0x78] sm:$0xff] }
 0x665   : > { %8801 = vmatpush3.bf16.msra.mxu1 %v8800_v11  ;;  %v8844_v41 = vpack.c.bf16 %v4028_v21, %v4027_v20  ;;  %v8848_v29 = vpack.c.bf16 %v4030_v23, %v4029_v51  ;;  %v8856_v11 = vpack.c.bf16 %v4116_v4, %v4115_v3  ;;  %v4119_v20 = vld [vmem:[#allocation17 + $0x30] sm:$0xff]  ;;  %v4120_v21 = vld [vmem:[#allocation17 + $0x38] sm:$0xff]  ;;  %v4121_v51 = vld [vmem:[#allocation17 + $0x40] sm:$0xff] }
 0x666   : > { %3773 = vrot.lane.b32.xlu1 %v3753_v30, %s9759_s23  ;;  %3769 = vrot.lane.b32.xlu0 %v3752_v31, %s9758_s22  ;;  %v10828_v30 = vld [vmem:[%s10378_s13 + $0x8] sm:$0xff]  ;;  %s11607_s13 = sld [smem:[#allocation54_spill]] }
 0x667   : > { %8802 = vmatprep.subr.bf16.mxu1 %v9754_v1  ;;  %v1110_v31 = vld [vmem:[%s10380_s2 + $0x8] sm:$0xff]  ;;  %s11601_s2 = sld [smem:[#allocation52_spill]] }
 0x668   : > { %v4122_v23 = vld [vmem:[#allocation17 + $0x48] sm:$0xff] }
 0x66a   : > { %3781 = vrot.lane.b32.xlu1 %v3755_v32, %s9757_s15  ;;  %3777 = vrot.lane.b32.xlu0 %v3754_v33, %s9756_s18  ;;  %v4014_v32 = vadd.f32 %v1110_v31, %v10828_v30  ;;  %v4123_v31 = vld [vmem:[#allocation17 + $0x50] sm:$0xff] }
 0x66d   : > { %v8001_v48 = vld [vmem:[%s11601_s2] ss:$0 sm:$0xff]  ;;  %s11616_s2 = sld [smem:[#allocation65_spill]] }
 0x6c2   : > { %v3758_v13 = vpop.permute.xlu1 %3757  ;;  %v3762_v15 = vpop.permute.xlu0 %3761 }
 0x6c3   : > { %v3784_v18 = vsel %vm2202_vm1, %v3748_v10, %v3758_v13 }
 0x6c4   : > { %v3786_v35 = vsel %vm3785_vm3, %v3784_v18, %v3762_v15 }
 0x6c6   : > { %v3766_v34 = vpop.permute.xlu1 %3765 }
 0x6c7   : > { %v3788_v28 = vsel %vm3787_vm4, %v3786_v35, %v3766_v34  ;;  %v3924_v34 = vld [vmem:[#allocation14 + $0x20] sm:$0xff]  ;;  %v3925_v35 = vld [vmem:[#allocation14 + $0x28] sm:$0xff] }
 0x6d8   : > { %v3770_v36 = vpop.permute.xlu0 %3769  ;;  %v3774_v37 = vpop.permute.xlu1 %3773 }
 0x6d9   : > { %v3790_v7 = vsel %vm3789_vm5, %v3788_v28, %v3770_v36  ;;  %v8803_v28 = vpack.c.bf16 %v3925_v35, %v3924_v34  ;;  %v3926_v36 = vld [vmem:[#allocation14 + $0x30] sm:$0xff] }
 0x6da   : > { %v3792_v24 = vsel %vm3791_vm6, %v3790_v7, %v3774_v37  ;;  %v3927_v37 = vld [vmem:[#allocation14 + $0x38] sm:$0xff] }
 0x6db   : > { %8804 = vmatpush3.bf16.msra.mxu1 %v8803_v28  ;;  %v8806_v7 = vpack.c.bf16 %v3927_v37, %v3926_v36 }
 0x6dc   : > { %v3778_v25 = vpop.permute.xlu0 %3777  ;;  %v3782_v10 = vpop.permute.xlu1 %3781  ;;  %8805 = vmatprep.subr.bf16.mxu1 %v9754_v1 }
 0x6dd   : > { %v3794_v5 = vsel %vm3793_vm7, %v3792_v24, %v3778_v25  ;;  %v3928_v24 = vld [vmem:[#allocation14 + $0x40] sm:$0xff]  ;;  %v3929_v25 = vld [vmem:[#allocation14 + $0x48] sm:$0xff] }
 0x6de   : > { %v3796_v6 = vsel %vm3795_vm8, %v3794_v5, %v3782_v10  ;;  %v8809_v10 = vpack.c.bf16 %v3929_v25, %v3928_v24  ;;  %v3930_v5 = vld [vmem:[#allocation14 + $0x50] sm:$0xff] }
 0x6df   : > { %8462 = vmatmul.mubr.f32.vlgmr.msra.gmra.mrb[18].mxu0 %v3796_v6  ;;  %8807 = vmatpush3.bf16.msra.mxu1 %v8806_v7  ;;  %v3931_v6 = vld [vmem:[#allocation14 + $0x58] sm:$0xff] }
 0x6e0   : > { %8823 = vmatpush3.bf16.msra.mxu0 %v8820_v46  ;;  %8531 = vmatprep.mubr.f32.mxu0 %v4013_v62  ;;  %v7999_v62 = vld [vmem:[%s11603_s0] ss:$0 sm:$0xff] }
 0x6e1   : > { %8825 = vmatprep.subr.bf16.mxu0 %v8824_v50  ;;  %8808 = vmatprep.subr.bf16.mxu1 %v9754_v1 }
 0x6e3   : > { %8810 = vmatpush3.bf16.msra.mxu1 %v8809_v10 }
 0x6e4   : > { %8827 = vmatpush3.bf16.msra.mxu0 %v8824_v50  ;;  %8811 = vmatprep.subr.bf16.mxu1 %v9754_v1 }
 0x6e5   : > { %8829 = vmatprep.subr.bf16.mxu0 %v8828_v53 }
 0x6e8   : > { %8831 = vmatpush3.bf16.msra.mxu0 %v8828_v53 }
 0x6e9   : > { %8833 = vmatprep.subr.bf16.mxu0 %v8832_v57 }
 0x6ec   : > { %8835 = vmatpush3.bf16.msra.mxu0 %v8832_v57 }
 0x6ed   : > { %8837 = vmatprep.subr.bf16.mxu0 %v8836_v2 }
 0x6f0   : > { %8839 = vmatpush3.bf16.msra.mxu0 %v8836_v2 }
 0x6f1   : > { %8841 = vmatprep.subr.bf16.mxu0 %v8840_v19 }
 0x6f4   : > { %8843 = vmatpush3.bf16.msra.mxu0 %v8840_v19  ;;  %v8860_v19 = vpack.c.bf16 %v4118_v14, %v4117_v12 }
 0x6f5   : > { %8845 = vmatprep.subr.bf16.mxu0 %v8844_v41 }
 0x6f8   : > { %8847 = vmatpush3.bf16.msra.mxu0 %v8844_v41  ;;  %v8864_v41 = vpack.c.bf16 %v4120_v21, %v4119_v20 }
 0x6f9   : > { %8849 = vmatprep.subr.bf16.mxu0 %v8848_v29 }
 0x6fc   : > { %8851 = vmatpush3.bf16.msra.mxu0 %v8848_v29  ;;  %v8868_v29 = vpack.c.bf16 %v4122_v23, %v4121_v51 }
 0x6fd   : > { %8900 = vmatprep.subr.bf16.mxu0 %v9754_v1 }
 0x6ff   : > { %8532 = vmatmul.mubr.f32.vlgmr.msra.gmra.mrb[20].mxu0 %v4014_v32  ;;  %v4124_v32 = vld [vmem:[#allocation17 + $0x58] sm:$0xff] }
 0x700   : > { %8601 = vmatprep.mubr.msk.f32.mxu0 %vm9755_vm0, %v9753_v0 }
 0x7b2   : > { %v3886_v39 = vpop.f32.mrb[18].mxu0 }
 0x7b3   : > { %v3887_v40 = vadd.f32 %v7997_v8, %v3886_v39  ;;  %v8463_v42 = vpop.f32.mrb[19].mxu0  ;;  %v8812_v8 = vpack.c.bf16 %v3931_v6, %v3930_v5  ;;  %v3932_v39 = vld [vmem:[#allocation14 + $0x60] sm:$0xff] }
 0x7b5   : > { %v10817_v27 = vadd.f32 %v9266_v43, %v3887_v40  ;;  %v3933_v40 = vld [vmem:[#allocation14 + $0x68] sm:$0xff]  ;;  %8813 = vmatpush3.bf16.msra.mxu1 %v8812_v8  ;;  %v3934_v43 = vld [vmem:[#allocation14 + $0x70] sm:$0xff] }
 0x7b6   : > { %v8815_v42 = vpack.c.bf16 %v3933_v40, %v3932_v39  ;;  %8814 = vmatprep.subr.bf16.mxu1 %v9754_v1 }
 0x7b7   : > { %3893 = vadd.xlane.f32.xlu0 %v10817_v27 }
 0x7b9   : > { %8816 = vmatpush3.bf16.msra.mxu1 %v8815_v42 }
 0x7ba   : > { %8817 = vmatprep.subr.bf16.mxu1 %v9754_v1 }
 0x7d2   : > { %v8533_v49 = vpop.f32.mrb[20].mxu0 }
 0x7d3   : > { %v10844_v50 = vadd.f32 %v8533_v49, %v8001_v48  ;;  %v4104_v52 = vpop.f32.mrb[21].mxu0 }
 0x7d4   : > { %v10846_v53 = vadd.f32 %v8001_v48, %v4104_v52 }
 0x7d6   : > { %4507 = vrot.lane.b32.xlu0 %v10846_v53, %s9757_s15 }
 0x7da   : > { %4513 = vrot.lane.b32.xlu0 %v10846_v53, %s9756_s18 }
 0x7de   : > { %4519 = vrot.lane.b32.xlu0 %v10846_v53, %s9759_s23 }
 0x844   : > { %v3894_v33 = vpop.xlane.xlu0 %3893 }
 0x845   : > { %v3896_v13 = vmul.f32 0.0078125, %v3894_v33  ;;  %v8872_v33 = vpack.c.bf16 %v4124_v32, %v4123_v31 }
 0x847   : > { %v3897_v15 = vsub.f32 %v10817_v27, %v3896_v13  ;;  %v3935_v27 = vld [vmem:[#allocation14 + $0x78] sm:$0xff]  ;;  %v4125_v13 = vld [vmem:[#allocation17 + $0x60] sm:$0xff] }
 0x848   : > { %v8818_v46 = vpack.c.bf16 %v3935_v27, %v3934_v43  ;;  %v4508_v34 = vpop.permute.xlu0 %4507 }
 0x849   : > { %v3898_v18 = vmul.f32 %v3897_v15, %v3897_v15 }
 0x84a   : > { %8819 = vmatpush3.bf16.msra.mxu1 %v8818_v46 }
 0x84b   : > { %3899 = vadd.xlane.f32.xlu1 %v3898_v18  ;;  %8853 = vmatprep.subr.bf16.mxu1 %v8852_v47 }
 0x84c   : > { %v4514_v37 = vpop.permute.xlu0 %4513 }
 0x84d   : > { %v4549_v7 = vcombine.low %v10846_v53, %v4514_v37  ;;  %v4550_v24 = vcombine.high %v10846_v53, %v4514_v37 }
 0x84f   : > { %v4557_v40 = vrot.slane %v4549_v7, %v10473_v38  ;;  %v4564_v42 = vrot.slane %v4550_v24, %v10473_v38 }
 0x850   : > { %v4520_v39 = vpop.permute.xlu0 %4519 }
 0x851   : > { %v4565_v43 = vcombine.low %v4508_v34, %v4520_v39  ;;  %v4566_v27 = vcombine.high %v4508_v34, %v4520_v39 }
 0x853   : > { %v4573_v46 = vrot.slane %v4565_v43, %v10473_v38 }
 0x85c   : > { %4509 = vrot.lane.b32.xlu1 %v10844_v50, %s9757_s15 }
 0x860   : > { %4515 = vrot.lane.b32.xlu1 %v10844_v50, %s9756_s18 }
 0x864   : > { %4521 = vrot.lane.b32.xlu1 %v10844_v50, %s9759_s23 }
 0x8d8   : > { %v3900_v54 = vpop.xlane.xlu1 %3899 }
 0x8d9   : > { %v3901_v55 = vmul.f32 0.0078125, %v3900_v54 }
 0x8db   : > { %v3902_v57 = vadd.f32 1e-05, %v3901_v55  ;;  %v4613_v55 = vcombine.low %v4557_v40, %v4573_v46 }
 0x8dc   : > { %v4510_v18 = vpop.permute.xlu1 %4509 }
 0x8dd   : > { %9228 = vrsqrt.f32 %v3902_v57  ;;  %v4614_v57 = vcombine.high %v4557_v40, %v4573_v46  ;;  %v4621_v4 = vrot.slane %v4613_v55, %v10478_v45 }
 0x8e0   : > { %v4516_v35 = vpop.permute.xlu1 %4515 }
 0x8e1   : > { %v4685_v28 = vcombine.low %v10844_v50, %v4516_v35  ;;  %v4686_v36 = vcombine.high %v10844_v50, %v4516_v35 }
 0x8e3   : > { %v4693_v10 = vrot.slane %v4685_v28, %v10473_v38  ;;  %v4700_v5 = vrot.slane %v4686_v36, %v10473_v38 }
 0x8e4   : > { %v4522_v25 = vpop.permute.xlu1 %4521 }
 0x8e5   : > { %v4701_v6 = vcombine.low %v4510_v18, %v4522_v25  ;;  %v4702_v8 = vcombine.high %v4510_v18, %v4522_v25 }
 0x8e7   : > { %v9229_v58 = vpop.eup %9228  ;;  %v4709_v44 = vrot.slane %v4701_v6, %v10473_v38  ;;  %v4716_v26 = vrot.slane %v4702_v8, %v10473_v38 }
 0x8e8   : > { %v3904_v60 = vmul.f32 %v9229_v58, %v3897_v15  ;;  %v4126_v15 = vld [vmem:[#allocation17 + $0x68] sm:$0xff] }
 0x8e9   : > { %v4749_v48 = vcombine.low %v4693_v10, %v4709_v44  ;;  %v4750_v49 = vcombine.high %v4693_v10, %v4709_v44  ;;  %v4765_v52 = vcombine.low %v4700_v5, %v4716_v26  ;;  %v4766_v54 = vcombine.high %v4700_v5, %v4716_v26  ;;  %v4127_v10 = vld [vmem:[#allocation17 + $0x70] sm:$0xff]  ;;  %v4128_v5 = vld [vmem:[#allocation17 + $0x78] sm:$0xff] }
 0x8ea   : > { %v3911_v63 = vmul.f32 %v7998_v59, %v3904_v60 }
 0x8eb   : > { %v4757_v60 = vrot.slane %v4749_v48, %v10478_v45  ;;  %v4780_v3 = vrot.slane %v4766_v54, %v10478_v45 }
 0x8ec   : > { %v10866_v61 = vadd.f32 %v7999_v62, %v3911_v63  ;;  %v4764_v62 = vrot.slane %v4750_v49, %v10478_v45  ;;  %v4773_v63 = vrot.slane %v4765_v52, %v10478_v45 }
 0x8ee   : > { %v3919_v2 = vadd.f32 %v9267_v9, %v10866_v61  ;;  %v4628_v9 = vrot.slane %v4614_v57, %v10478_v45  ;;  %v8019_v12 = vcombine.low %v4757_v60, %v4764_v62  ;;  %v8021_v14 = vcombine.high %v4757_v60, %v4764_v62 }
 0x8ef   : > { %v8025_v20 = vcombine.high %v4773_v63, %v4780_v3 }
 0x8f0   : > { %8497 = vmatmul.mubr.f32.vlgmr.msra.gmra.mrb[18].mxu1 %v3919_v2  ;;  %v8011_v21 = vcombine.low %v4621_v4, %v4628_v9  ;;  %v4981_v31 = vrot.slane %v8021_v14, %v10473_v38 }
 0x8f1   : > { %8855 = vmatpush3.bf16.msra.mxu1 %v8852_v47  ;;  %8566 = vmatprep.mubr.f32.mxu1 %v10821_v56  ;;  %v8876_v56 = vpack.c.bf16 %v4126_v15, %v4125_v13  ;;  %v4580_v47 = vrot.slane %v4566_v27, %v10473_v38 }
 0x8f2   : > { %8857 = vmatprep.subr.bf16.mxu1 %v8856_v11  ;;  %v4829_v13 = vrot.slane %v8011_v21, %v10473_v38 }
 0x8f3   : > { %v4629_v58 = vcombine.low %v4564_v42, %v4580_v47  ;;  %v4630_v59 = vcombine.high %v4564_v42, %v4580_v47  ;;  %v8880_v42 = vpack.c.bf16 %v4128_v5, %v4127_v10 }
 0x8f5   : > { %8859 = vmatpush3.bf16.msra.mxu1 %v8856_v11  ;;  %v4637_v2 = vrot.slane %v4629_v58, %v10478_v45  ;;  %v4644_v11 = vrot.slane %v4630_v59, %v10478_v45 }
 0x8f6   : > { %8861 = vmatprep.subr.bf16.mxu1 %v8860_v19 }
 0x8f7   : > { %v8015_v51 = vcombine.low %v4637_v2, %v4644_v11  ;;  %v8017_v23 = vcombine.high %v4637_v2, %v4644_v11  ;;  %v8002_v2 = vld [vmem:[%s11607_s13] ss:$0 sm:$0xff] }
 0x8f9   : > { %8863 = vmatpush3.bf16.msra.mxu1 %v8860_v19  ;;  %v8023_v19 = vcombine.low %v4773_v63, %v4780_v3  ;;  %v4877_v18 = vrot.slane %v8017_v23, %v10473_v38  ;;  %v8000_v63 = vld [vmem:[%s11606_s9] ss:$0 sm:$0xff] }
 0x8fa   : > { %8865 = vmatprep.subr.bf16.mxu1 %v8864_v41 }
 0x8fb   : > { %v4997_v32 = vrot.slane %v8023_v19, %v10473_v38 }
 0x8fd   : > { %8867 = vmatpush3.bf16.msra.mxu1 %v8864_v41  ;;  %v8013_v41 = vcombine.high %v4621_v4, %v4628_v9 }
 0x8fe   : > { %8869 = vmatprep.subr.bf16.mxu1 %v8868_v29 }
 0x8ff   : > { %v4845_v15 = vrot.slane %v8013_v41, %v10473_v38 }
 0x901   : > { %8871 = vmatpush3.bf16.msra.mxu1 %v8868_v29  ;;  %v4965_v29 = vrot.slane %v8019_v12, %v10473_v38  ;;  %v4885_v37 = vcombine.low %v4829_v13, %v4845_v15  ;;  %v4886_v7 = vcombine.high %v4829_v13, %v4845_v15 }
 0x902   : > { %8873 = vmatprep.subr.bf16.mxu1 %v8872_v33 }
 0x903   : > { %v5021_v34 = vcombine.low %v4965_v29, %v4981_v31  ;;  %v5022_v35 = vcombine.high %v4965_v29, %v4981_v31  ;;  %v4893_v39 = vrot.slane %v4885_v37, %v10478_v45  ;;  %v4900_v46 = vrot.slane %v4886_v7, %v10478_v45 }
 0x905   : > { %8875 = vmatpush3.bf16.msra.mxu1 %v8872_v33  ;;  %v5013_v33 = vrot.slane %v8025_v20, %v10473_v38  ;;  %v5029_v6 = vrot.slane %v5021_v34, %v10478_v45  ;;  %v5036_v44 = vrot.slane %v5022_v35, %v10478_v45 }
 0x906   : > { %8877 = vmatprep.subr.bf16.mxu1 %v8876_v56 }
 0x907   : > { %v5053_v28 = vcombine.low %v4997_v32, %v5013_v33  ;;  %v5054_v36 = vcombine.high %v4997_v32, %v5013_v33 }
 0x909   : > { %8879 = vmatpush3.bf16.msra.mxu1 %v8876_v56  ;;  %v4861_v56 = vrot.slane %v8015_v51, %v10473_v38  ;;  %v5061_v8 = vrot.slane %v5053_v28, %v10478_v45  ;;  %v5068_v26 = vrot.slane %v5054_v36, %v10478_v45 }
 0x90a   : > { %8881 = vmatprep.subr.bf16.mxu1 %v8880_v42 }
 0x90b   : > { %v4917_v24 = vcombine.low %v4861_v56, %v4877_v18  ;;  %v4918_v25 = vcombine.high %v4861_v56, %v4877_v18  ;;  %v5085_v27 = vcombine.low %v5029_v6, %v5061_v8  ;;  %v5086_v54 = vcombine.high %v5029_v6, %v5061_v8 }
 0x90c   : > { %v5087_v57 = vcombine.low %v5036_v44, %v5068_v26  ;;  %v5088_v59 = vcombine.high %v5036_v44, %v5068_v26 }
 0x90d   : > { %v4925_v40 = vrot.slane %v4917_v24, %v10478_v45  ;;  %8883 = vmatpush3.bf16.msra.mxu1 %v8880_v42  ;;  %v4932_v47 = vrot.slane %v4918_v25, %v10478_v45 }
 0x90e   : > { %8884 = vmatprep.subr.bf16.mxu1 %v9754_v1 }
 0x90f   : > { %v4949_v43 = vcombine.low %v4893_v39, %v4925_v40  ;;  %v4950_v52 = vcombine.high %v4893_v39, %v4925_v40  ;;  %v4951_v55 = vcombine.low %v4900_v46, %v4932_v47  ;;  %v4952_v58 = vcombine.high %v4900_v46, %v4932_v47 }
 0x910   : > { %8567 = vmatmul.mubr.f32.vlgmr.msra.gmra.mrb[20].mxu1 %v10828_v30 }
 0x911   : > { %8573 = vmatprep.mubr.msk.f32.mxu1 %vm9755_vm0, %v9753_v0  ;;  %v8885_v48 = vpack.c.bf16 %v5085_v27, %v4949_v43  ;;  %v10918_v60 = vpack.c.bf16 %v5086_v54, %v4950_v52  ;;  %v10920_v62 = vpack.c.bf16 %v5087_v57, %v4951_v55  ;;  %v10924_v30 = vpack.c.bf16 %v5088_v59, %v4952_v58 }
 0x916   : > { %8887 = vmatpush3.bf16.xpose.msk.msra.mxu1 %vm10914_vm9, %v8885_v48 }
 0x917   : > { %8888 = vmatprep.subr.bf16.mxu1 %v9754_v1 }
 0x9c3   : > { %v4009_v3 = vpop.f32.mrb[18].mxu1 }
 0x9c4   : > { %v4010_v4 = vadd.f32 %v8000_v63, %v4009_v3  ;;  %v8498_v9 = vpop.f32.mrb[19].mxu1 }
 0x9c6   : > { %4215 = vrot.lane.b32.xlu1 %v4010_v4, %s9756_s18  ;;  %4212 = vrot.lane.b32.xlu0 %v4010_v4, %s9757_s15 }
 0x9ca   : > { %4525 = vrot.lane.b32.xlu1 %v10846_v53, %s9758_s22  ;;  %4218 = vrot.lane.b32.xlu0 %v4010_v4, %s9759_s23 }
 0x9ce   : > { %4531 = vrot.lane.b32.xlu1 %v10846_v53, %s9760_s12  ;;  %4527 = vrot.lane.b32.xlu0 %v10844_v50, %s9758_s22 }
 0x9d2   : > { %4537 = vrot.lane.b32.xlu1 %v10846_v53, %s9761_s26  ;;  %4533 = vrot.lane.b32.xlu0 %v10844_v50, %s9760_s12 }
 0x9d6   : > { %4543 = vrot.lane.b32.xlu1 %v10846_v53, %s9762_s28  ;;  %4539 = vrot.lane.b32.xlu0 %v10844_v50, %s9761_s26 }
 0x9da   : > { %4221 = vrot.lane.b32.xlu1 %v4010_v4, %s9758_s22  ;;  %4545 = vrot.lane.b32.xlu0 %v10844_v50, %s9762_s28 }
 0x9de   : > { %4227 = vrot.lane.b32.xlu1 %v4010_v4, %s9761_s26  ;;  %4224 = vrot.lane.b32.xlu0 %v4010_v4, %s9760_s12 }
 0x9e2   : > { %4230 = vrot.lane.b32.xlu0 %v4010_v4, %s9762_s28 }
 0x9e3   : > { %v8568_v11 = vpop.f32.mrb[20].mxu1 }
 0x9e4   : > { %v10956_v53 = vadd.f32 %v8568_v11, %v8002_v2  ;;  %v4202_v12 = vpop.f32.mrb[21].mxu1 }
 0x9e5   : > { %v10958_v14 = vadd.f32 %v8002_v2, %v4202_v12 }
 0x9e7   : > { %5095 = vrot.lane.b32.xlu0 %v10958_v14, %s9757_s15 }
 0xa38   : > { %v4216_v50 = vpop.permute.xlu1 %4215  ;;  %v4213_v19 = vpop.permute.xlu0 %4212 }
 0xa39   : > { %v4233_v20 = vcombine.low %v4010_v4, %v4216_v50  ;;  %v4234_v21 = vcombine.high %v4010_v4, %v4216_v50 }
 0xa3b   : > { %v4241_v31 = vrot.slane %v4233_v20, %v10473_v38  ;;  %v4248_v32 = vrot.slane %v4234_v21, %v10473_v38 }
 0xa3c   : > { %v4526_v41 = vpop.permute.xlu1 %4525  ;;  %v4219_v51 = vpop.permute.xlu0 %4218 }
 0xa3d   : > { %v4249_v23 = vcombine.low %v4213_v19, %v4219_v51  ;;  %v4250_v29 = vcombine.high %v4213_v19, %v4219_v51 }
 0xa3f   : > { %v4257_v33 = vrot.slane %v4249_v23, %v10473_v38  ;;  %v4264_v13 = vrot.slane %v4250_v29, %v10473_v38 }
 0xa40   : > { %v4532_v15 = vpop.permute.xlu1 %4531  ;;  %v4528_v56 = vpop.permute.xlu0 %4527 }
 0xa41   : > { %v4297_v18 = vcombine.low %v4241_v31, %v4257_v33  ;;  %v4298_v34 = vcombine.high %v4241_v31, %v4257_v33  ;;  %v4313_v35 = vcombine.low %v4248_v32, %v4264_v13  ;;  %v4314_v28 = vcombine.high %v4248_v32, %v4264_v13 }
 0xa43   : > { %v4305_v36 = vrot.slane %v4297_v18, %v10478_v45  ;;  %v4312_v37 = vrot.slane %v4298_v34, %v10478_v45  ;;  %v4321_v7 = vrot.slane %v4313_v35, %v10478_v45  ;;  %v4328_v24 = vrot.slane %v4314_v28, %v10478_v45 }
 0xa44   : > { %v4538_v25 = vpop.permute.xlu1 %4537  ;;  %v4534_v10 = vpop.permute.xlu0 %4533 }
 0xa45   : > { %v8003_v5 = vcombine.low %v4305_v36, %v4312_v37  ;;  %v8005_v6 = vcombine.high %v4305_v36, %v4312_v37  ;;  %v8007_v8 = vcombine.low %v4321_v7, %v4328_v24  ;;  %v8009_v39 = vcombine.high %v4321_v7, %v4328_v24 }
 0xa46   : > { %v4581_v40 = vcombine.low %v4526_v41, %v4538_v25  ;;  %v4582_v42 = vcombine.high %v4526_v41, %v4538_v25 }
 0xa47   : > { %v10971_v43 = vrot.slane %v8003_v5, %v10473_v38  ;;  %v10974_v27 = vrot.slane %v8005_v6, %v10473_v38  ;;  %v10977_v44 = vrot.slane %v8007_v8, %v10473_v38  ;;  %v10980_v26 = vrot.slane %v8009_v39, %v10473_v38 }
 0xa48   : > { %v4544_v46 = vpop.permute.xlu1 %4543  ;;  %v4540_v47 = vpop.permute.xlu0 %4539  ;;  %v4589_v54 = vrot.slane %v4581_v40, %v10473_v38  ;;  %v4596_v59 = vrot.slane %v4582_v42, %v10473_v38 }
 0xa49   : > { %v4433_v48 = vcombine.low %v10971_v43, %v10974_v27  ;;  %v4465_v52 = vcombine.low %v10977_v44, %v10980_v26  ;;  %v4597_v55 = vcombine.low %v4532_v15, %v4544_v46  ;;  %v4598_v57 = vcombine.high %v4532_v15, %v4544_v46 }
 0xa4a   : > { %v4717_v58 = vcombine.low %v4528_v56, %v4540_v47  ;;  %v4718_v63 = vcombine.high %v4528_v56, %v4540_v47  ;;  %v4434_v9 = vcombine.high %v10971_v43, %v10974_v27  ;;  %v4466_v2 = vcombine.high %v10977_v44, %v10980_v26 }
 0xa4b   : > { %v4441_v3 = vrot.slane %v4433_v48, %v10478_v45  ;;  %v4473_v4 = vrot.slane %v4465_v52, %v10478_v45  ;;  %v4605_v11 = vrot.slane %v4597_v55, %v10473_v38  ;;  %v4612_v12 = vrot.slane %v4598_v57, %v10473_v38 }
 0xa4c   : > { %v4546_v50 = vpop.permute.xlu0 %4545  ;;  %v4725_v19 = vrot.slane %v4717_v58, %v10473_v38  ;;  %v4732_v32 = vrot.slane %v4718_v63, %v10473_v38  ;;  %v4222_v28 = vpop.permute.xlu1 %4221 }
 0xa4d   : > { %v4733_v20 = vcombine.low %v4534_v10, %v4546_v50  ;;  %v4734_v21 = vcombine.high %v4534_v10, %v4546_v50  ;;  %v4497_v41 = vcombine.low %v4441_v3, %v4473_v4  ;;  %v4645_v51 = vcombine.low %v4589_v54, %v4605_v11 }
 0xa4e   : > { %v4646_v23 = vcombine.high %v4589_v54, %v4605_v11  ;;  %v4661_v29 = vcombine.low %v4596_v59, %v4612_v12  ;;  %v4662_v31 = vcombine.high %v4596_v59, %v4612_v12  ;;  %v4498_v15 = vcombine.high %v4441_v3, %v4473_v4 }
 0xa4f   : > { %v4741_v33 = vrot.slane %v4733_v20, %v10473_v38  ;;  %v4748_v13 = vrot.slane %v4734_v21, %v10473_v38  ;;  %8574 = vmatmul.mubr.msk.f32.vlgmr.msra.gmra.mrb[22].mxu1 %vm2202_vm1, %v4497_v41  ;;  %v4653_v56 = vrot.slane %v4645_v51, %v10478_v45  ;;  %v4448_v11 = vrot.slane %v4434_v9, %v10478_v45 }
 0xa50   : > { %v4660_v18 = vrot.slane %v4646_v23, %v10478_v45  ;;  %v4669_v34 = vrot.slane %v4661_v29, %v10478_v45  ;;  %v4676_v35 = vrot.slane %v4662_v31, %v10478_v45  ;;  %8891 = vmatpush3.bf16.xpose.msk.msra.mxu1 %vm10914_vm9, %v10918_v60  ;;  %v4225_v25 = vpop.permute.xlu0 %4224  ;;  %8580 = vmatprep.mubr.msk.f32.mxu1 %vm9755_vm0, %v9753_v0  ;;  %v4228_v3 = vpop.permute.xlu1 %4227 }
 0xa51   : > { %v4781_v36 = vcombine.low %v4725_v19, %v4741_v33  ;;  %v4782_v37 = vcombine.high %v4725_v19, %v4741_v33  ;;  %v4797_v7 = vcombine.low %v4732_v32, %v4748_v13  ;;  %v4798_v24 = vcombine.high %v4732_v32, %v4748_v13  ;;  %8892 = vmatprep.subr.bf16.mxu1 %v9754_v1 }
 0xa52   : > { %v8012_v10 = vcombine.low %v4653_v56, %v4660_v18  ;;  %v8014_v5 = vcombine.high %v4653_v56, %v4660_v18  ;;  %v8016_v6 = vcombine.low %v4669_v34, %v4676_v35  ;;  %v8018_v8 = vcombine.high %v4669_v34, %v4676_v35 }
 0xa53   : > { %v4789_v39 = vrot.slane %v4781_v36, %v10478_v45  ;;  %v4796_v40 = vrot.slane %v4782_v37, %v10478_v45  ;;  %v4805_v60 = vrot.slane %v4797_v7, %v10478_v45  ;;  %v4812_v42 = vrot.slane %v4798_v24, %v10478_v45 }
 0xa54   : > { %v11016_v43 = vrot.slane %v8012_v10, %v10473_v38  ;;  %v11019_v27 = vrot.slane %v8014_v5, %v10473_v38  ;;  %v11022_v44 = vrot.slane %v8016_v6, %v10473_v38  ;;  %v11025_v26 = vrot.slane %v8018_v8, %v10473_v38  ;;  %v4231_v4 = vpop.permute.xlu0 %4230 }
 0xa55   : > { %v8020_v46 = vcombine.low %v4789_v39, %v4796_v40  ;;  %v8022_v47 = vcombine.high %v4789_v39, %v4796_v40  ;;  %v8024_v48 = vcombine.low %v4805_v60, %v4812_v42  ;;  %v8026_v52 = vcombine.high %v4805_v60, %v4812_v42 }
 0xa56   : > { %v4901_v54 = vcombine.low %v11016_v43, %v11019_v27  ;;  %v4933_v55 = vcombine.low %v11022_v44, %v11025_v26  ;;  %v4480_v12 = vrot.slane %v4466_v2, %v10478_v45  ;;  %v4265_v41 = vcombine.low %v4222_v28, %v4228_v3 }
 0xa57   : > { %v4972_v57 = vrot.slane %v8020_v46, %v10473_v38  ;;  %v4988_v58 = vrot.slane %v8022_v47, %v10473_v38  ;;  %v5004_v59 = vrot.slane %v8024_v48, %v10473_v38  ;;  %v5020_v63 = vrot.slane %v8026_v52, %v10473_v38  ;;  %8581 = vmatmul.mubr.msk.f32.vlgmr.msra.gmra.mrb[24].mxu1 %vm2202_vm1, %v4498_v15 }
 0xa58   : > { %8895 = vmatpush3.bf16.xpose.msk.msra.mxu1 %vm10914_vm9, %v10920_v62  ;;  %v4909_v50 = vrot.slane %v4901_v54, %v10478_v45  ;;  %v4941_v19 = vrot.slane %v4933_v55, %v10478_v45  ;;  %8587 = vmatprep.mubr.msk.f32.mxu1 %vm9755_vm0, %v9753_v0  ;;  %v4266_v51 = vcombine.high %v4222_v28, %v4228_v3 }
 0xa59   : > { %v5037_v20 = vcombine.low %v4972_v57, %v4988_v58  ;;  %v5069_v21 = vcombine.low %v5004_v59, %v5020_v63  ;;  %v4281_v23 = vcombine.low %v4225_v25, %v4231_v4  ;;  %v4282_v29 = vcombine.high %v4225_v25, %v4231_v4  ;;  %8896 = vmatprep.subr.bf16.mxu1 %v9754_v1 }
 0xa5a   : > { %v4273_v2 = vrot.slane %v4265_v41, %v10473_v38  ;;  %v4280_v31 = vrot.slane %v4266_v51, %v10473_v38  ;;  %v4499_v13 = vcombine.low %v4448_v11, %v4480_v12  ;;  %v4953_v15 = vcombine.low %v4909_v50, %v4941_v19 }
 0xa5b   : > { %v5045_v62 = vrot.slane %v5037_v20, %v10478_v45  ;;  %v5077_v9 = vrot.slane %v5069_v21, %v10478_v45  ;;  %v4289_v32 = vrot.slane %v4281_v23, %v10473_v38  ;;  %v4296_v33 = vrot.slane %v4282_v29, %v10473_v38 }
 0xa5c   : > { %v5038_v36 = vcombine.high %v4972_v57, %v4988_v58  ;;  %v5070_v37 = vcombine.high %v5004_v59, %v5020_v63  ;;  %v4902_v6 = vcombine.high %v11016_v43, %v11019_v27  ;;  %v4934_v8 = vcombine.high %v11022_v44, %v11025_v26 }
 0xa5d   : > { %v5089_v56 = vcombine.low %v5045_v62, %v5077_v9  ;;  %v4329_v18 = vcombine.low %v4273_v2, %v4289_v32  ;;  %v4330_v34 = vcombine.high %v4273_v2, %v4289_v32  ;;  %v4345_v35 = vcombine.low %v4280_v31, %v4296_v33 }
 0xa5e   : > { %v4346_v28 = vcombine.high %v4280_v31, %v4296_v33  ;;  %v5090_v39 = vcombine.high %v5045_v62, %v5077_v9  ;;  %v5084_v43 = vrot.slane %v5070_v37, %v10478_v45  ;;  %v4954_v27 = vcombine.high %v4909_v50, %v4941_v19 }
 0xa5f   : > { %8588 = vmatmul.mubr.msk.f32.vlgmr.msra.gmra.mrb[26].mxu1 %vm2202_vm1, %v4499_v13  ;;  %v8901_v7 = vpack.c.bf16 %v5089_v56, %v4953_v15  ;;  %v4337_v24 = vrot.slane %v4329_v18, %v10478_v45  ;;  %v4344_v25 = vrot.slane %v4330_v34, %v10478_v45  ;;  %v4353_v10 = vrot.slane %v4345_v35, %v10478_v45 }
 0xa60   : > { %v4360_v5 = vrot.slane %v4346_v28, %v10478_v45  ;;  %8899 = vmatpush3.bf16.xpose.msk.msra.mxu1 %vm10914_vm9, %v10924_v30  ;;  %8594 = vmatprep.mubr.msk.f32.mxu1 %vm9755_vm0, %v9753_v0  ;;  %v5052_v30 = vrot.slane %v5038_v36, %v10478_v45  ;;  %v4916_v52 = vrot.slane %v4902_v6, %v10478_v45 }
 0xa61   : > { %8903 = vmatpush3.bf16.xpose.msk.msra.mxu0 %vm10914_vm9, %v8901_v7  ;;  %v8004_v40 = vcombine.low %v4337_v24, %v4344_v25  ;;  %v8006_v60 = vcombine.high %v4337_v24, %v4344_v25  ;;  %8904 = vmatprep.subr.bf16.mxu1 %v9754_v1  ;;  %v4948_v54 = vrot.slane %v4934_v8, %v10478_v45 }
 0xa62   : > { %v8008_v42 = vcombine.low %v4353_v10, %v4360_v5  ;;  %v8010_v46 = vcombine.high %v4353_v10, %v4360_v5  ;;  %8908 = vmatprep.subr.bf16.mxu0 %v9754_v1  ;;  %v4500_v55 = vcombine.high %v4448_v11, %v4480_v12  ;;  %v8905_v59 = vpack.c.bf16 %v5090_v39, %v4954_v27 }
 0xa63   : > { %v4384_v44 = vrot.slane %v8004_v40, %v10473_v38  ;;  %v4400_v26 = vrot.slane %v8006_v60, %v10473_v38  ;;  %v5091_v63 = vcombine.low %v5052_v30, %v5084_v43  ;;  %v4955_v50 = vcombine.low %v4916_v52, %v4948_v54 }
 0xa64   : > { %v4416_v47 = vrot.slane %v8008_v42, %v10473_v38  ;;  %v4432_v48 = vrot.slane %v8010_v46, %v10473_v38  ;;  %v5092_v20 = vcombine.high %v5052_v30, %v5084_v43  ;;  %v4956_v41 = vcombine.high %v4916_v52, %v4948_v54 }
 0xa65   : > { %v4449_v57 = vcombine.low %v4384_v44, %v4400_v26  ;;  %v4450_v11 = vcombine.high %v4384_v44, %v4400_v26  ;;  %v8909_v21 = vpack.c.bf16 %v5091_v63, %v4955_v50  ;;  %v5096_v26 = vpop.permute.xlu0 %5095 }
 0xa66   : > { %v4481_v58 = vcombine.low %v4416_v47, %v4432_v48  ;;  %v4482_v12 = vcombine.high %v4416_v47, %v4432_v48  ;;  %v8913_v23 = vpack.c.bf16 %v5092_v20, %v4956_v41 }
 0xa67   : > { %8595 = vmatmul.mubr.msk.f32.vlgmr.msra.gmra.mrb[28].mxu1 %vm2202_vm1, %v4500_v55  ;;  %v4457_v3 = vrot.slane %v4449_v57, %v10478_v45  ;;  %v4464_v29 = vrot.slane %v4450_v11, %v10478_v45 }
 0xa68   : > { %8907 = vmatpush3.bf16.xpose.msk.msra.mxu1 %vm10914_vm9, %v8905_v59  ;;  %v4489_v4 = vrot.slane %v4481_v58, %v10478_v45  ;;  %8608 = vmatprep.mubr.msk.f32.mxu1 %vm9755_vm0, %v9753_v0  ;;  %v4496_v62 = vrot.slane %v4482_v12, %v10478_v45 }
 0xa69   : > { %8912 = vmatprep.subr.bf16.mxu1 %v9754_v1 }
 0xa6a   : > { %v4501_v19 = vcombine.low %v4457_v3, %v4489_v4  ;;  %v4502_v51 = vcombine.high %v4457_v3, %v4489_v4  ;;  %v4503_v9 = vcombine.low %v4464_v29, %v4496_v62  ;;  %v4504_v2 = vcombine.high %v4464_v29, %v4496_v62 }
 0xa6c   : > { %8602 = vmatmul.mubr.msk.f32.vlgmr.msra.gmra.mrb[22].mxu0 %vm2202_vm1, %v4501_v19 }
 0xa6d   : > { %8911 = vmatpush3.bf16.xpose.msk.msra.mxu0 %vm10914_vm9, %v8909_v21  ;;  %8615 = vmatprep.mubr.msk.f32.mxu0 %vm9755_vm0, %v9753_v0 }
 0xa6e   : > { %8916 = vmatprep.subr.bf16.mxu0 %v9754_v1 }
 0xa6f   : > { %8609 = vmatmul.mubr.msk.f32.vlgmr.msra.gmra.mrb[30].mxu1 %vm2202_vm1, %v4502_v51 }
 0xa70   : > { %8915 = vmatpush3.bf16.xpose.msk.msra.mxu1 %vm10914_vm9, %v8913_v23  ;;  %8622 = vmatprep.mubr.msk.f32.mxu1 %vm9755_vm0, %v9753_v0 }
 0xa71   : > { %8919 = vmatprep.subr.bf16.mxu1 %v9754_v1 }
 0xa74   : > { %8616 = vmatmul.mubr.msk.f32.vlgmr.msra.gmra.mrb[24].mxu0 %vm2202_vm1, %v4503_v9 }
 0xa75   : > { %8629 = vmatprep.mubr.msk.f32.mxu0 %vm9755_vm0, %v9753_v0 }
 0xa77   : > { %8623 = vmatmul.mubr.msk.f32.vlgmr.msra.gmra.mrb[32].mxu1 %vm2202_vm1, %v4504_v2 }
 0xa78   : > { %8636 = vmatprep.mubr.msk.f32.mxu1 %vm9755_vm0, %v9753_v0 }
 0xb22   : > { %v5756_v31 = vpop.f32.mrb[22].mxu1 }
 0xb23   : > { %v8575_v49 = vpop.f32.mrb[23].mxu1  ;;  %v6313_v32 = vsel %vm2202_vm1, %v5756_v31, -inf }
 0xb24   : > { %6314 = vmax.xlane.f32.xlu1 %v6313_v32 }
 0xb2a   : > { %v5835_v33 = vpop.f32.mrb[24].mxu1 }
 0xb2b   : > { %v8582_v13 = vpop.f32.mrb[25].mxu1  ;;  %v6316_v10 = vsel %vm2202_vm1, %v5835_v33, -inf }
 0xb32   : > { %v11107_v15 = vpop.f32.mrb[26].mxu1 }
 0xb33   : > { %v8589_v56 = vpop.f32.mrb[27].mxu1  ;;  %v6319_v42 = vsel %vm2202_vm1, %v11107_v15, -inf }
 0xb3a   : > { %v5993_v18 = vpop.f32.mrb[28].mxu1 }
 0xb3b   : > { %v8596_v34 = vpop.f32.mrb[29].mxu1  ;;  %v6322_v35 = vsel %vm2202_vm1, %v5993_v18, -inf }
 0xb3c   : > { %6323 = vmax.xlane.f32.xlu1 %v6322_v35 }
 0xb3f   : > { %v6072_v28 = vpop.f32.mrb[22].mxu0 }
 0xb40   : > { %v8603_v36 = vpop.f32.mrb[23].mxu0  ;;  %v6325_v37 = vsel %vm2202_vm1, %v6072_v28, -inf }
 0xb41   : > { %6326 = vmax.xlane.f32.xlu0 %v6325_v37 }
 0xb42   : > { %v6151_v7 = vpop.f32.mrb[30].mxu1 }
 0xb43   : > { %v8610_v24 = vpop.f32.mrb[31].mxu1  ;;  %v6328_v25 = vsel %vm2202_vm1, %v6151_v7, -inf }
 0xb44   : > { %6329 = vmax.xlane.f32.xlu1 %v6328_v25 }
 0xb45   : > { %6317 = vmax.xlane.f32.xlu0 %v6316_v10 }
 0xb47   : > { %v6230_v5 = vpop.f32.mrb[24].mxu0 }
 0xb48   : > { %v8617_v6 = vpop.f32.mrb[25].mxu0  ;;  %v6331_v8 = vsel %vm2202_vm1, %v6230_v5, -inf }
 0xb49   : > { %6332 = vmax.xlane.f32.xlu0 %v6331_v8 }
 0xb4a   : > { %v11114_v39 = vpop.f32.mrb[32].mxu1 }
 0xb4b   : > { %v8624_v40 = vpop.f32.mrb[33].mxu1  ;;  %v6334_v60 = vsel %vm2202_vm1, %v11114_v39, -inf }
 0xb4c   : > { %6335 = vmax.xlane.f32.xlu1 %v6334_v60 }
 0xb4d   : > { %6320 = vmax.xlane.f32.xlu0 %v6319_v42 }
 0xb5d   : > { %5097 = vrot.lane.b32.xlu1 %v10956_v53, %s9757_s15 }
 0xb61   : > { %5101 = vrot.lane.b32.xlu1 %v10958_v14, %s9756_s18 }
 0xb63   : > { %5103 = vrot.lane.b32.xlu0 %v10956_v53, %s9756_s18 }
 0xb65   : > { %5107 = vrot.lane.b32.xlu1 %v10958_v14, %s9759_s23 }
 0xb67   : > { %5109 = vrot.lane.b32.xlu0 %v10956_v53, %s9759_s23 }
 0xb69   : > { %5115 = vrot.lane.b32.xlu1 %v10956_v53, %s9758_s22 }
 0xb6b   : > { %5113 = vrot.lane.b32.xlu0 %v10958_v14, %s9758_s22 }
 0xb6d   : > { %5119 = vrot.lane.b32.xlu1 %v10958_v14, %s9760_s12 }
 0xb6f   : > { %5121 = vrot.lane.b32.xlu0 %v10956_v53, %s9760_s12 }
 0xb71   : > { %5125 = vrot.lane.b32.xlu1 %v10958_v14, %s9761_s26 }
 0xb73   : > { %5127 = vrot.lane.b32.xlu0 %v10956_v53, %s9761_s26 }
 0xb75   : > { %5131 = vrot.lane.b32.xlu1 %v10958_v14, %s9762_s28 }
 0xbb1   : > { %v6315_v46 = vpop.xlane.xlu1 %6314 }
 0xbb2   : > { %v6337_v30 = vsub.f32 %v5756_v31, %v6315_v46 }
 0xbb4   : > { %v6345_v43 = vmul.f32 1.442695, %v6337_v30 }
 0xbb6   : > { %9230 = vpow2.f32 %v6345_v43 }
 0xbc0   : > { %v11144_v27 = vpop.eup %9230 }
 0xbc1   : > { %v6361_v44 = vsel %vm2202_vm1, %v11144_v27, 0.0 }
 0xbc2   : > { %6362 = vadd.xlane.f32.xlu0 %v6361_v44 }
 0xbc9   : > { %v6324_v47 = vpop.xlane.xlu1 %6323 }
 0xbca   : > { %v6340_v48 = vsub.f32 %v5993_v18, %v6324_v47 }
 0xbcc   : > { %v6351_v55 = vmul.f32 1.442695, %v6340_v48 }
 0xbce   : > { %v6327_v52 = vpop.xlane.xlu0 %6326 }
 0xbcf   : > { %v6341_v54 = vsub.f32 %v6072_v28, %v6327_v52 }
 0xbd1   : > { %v6353_v57 = vmul.f32 1.442695, %v6341_v54  ;;  %v6330_v3 = vpop.xlane.xlu1 %6329 }
 0xbd2   : > { %v6318_v58 = vpop.xlane.xlu0 %6317  ;;  %v6342_v19 = vsub.f32 %v6151_v7, %v6330_v3 }
 0xbd3   : > { %9232 = vpow2.f32 %v6353_v57  ;;  %v6338_v59 = vsub.f32 %v5835_v33, %v6318_v58 }
 0xbd4   : > { %9234 = vpow2.f32 %v6351_v55  ;;  %v6355_v9 = vmul.f32 1.442695, %v6342_v19 }
 0xbd5   : > { %v6347_v63 = vmul.f32 1.442695, %v6338_v59 }
 0xbd6   : > { %v6333_v4 = vpop.xlane.xlu0 %6332 }
 0xbd7   : > { %9236 = vpow2.f32 %v6347_v63  ;;  %v6343_v41 = vsub.f32 %v6230_v5, %v6333_v4 }
 0xbd9   : > { %v11148_v50 = vpop.xlane.xlu1 %6335  ;;  %v6357_v33 = vmul.f32 1.442695, %v6343_v41 }
 0xbda   : > { %v6321_v11 = vpop.xlane.xlu0 %6320 }
 0xbdb   : > { %v6339_v12 = vsub.f32 %v11107_v15, %v6321_v11 }
 0xbdd   : > { %v11151_v20 = vpop.eup %9232  ;;  %v5098_v21 = vpop.permute.xlu1 %5097  ;;  %v6349_v51 = vmul.f32 1.442695, %v6339_v12 }
 0xbde   : > { %v5104_v23 = vpop.permute.xlu0 %5103  ;;  %v6373_v29 = vsel %vm2202_vm1, %v11151_v20, 0.0  ;;  %v11155_v62 = vpop.eup %9234 }
 0xbdf   : > { %6374 = vadd.xlane.f32.xlu0 %v6373_v29  ;;  %v5273_v31 = vcombine.low %v10956_v53, %v5104_v23  ;;  %v5274_v49 = vcombine.high %v10956_v53, %v5104_v23  ;;  %9238 = vpow2.f32 %v6349_v51  ;;  %v6370_v15 = vsel %vm2202_vm1, %v11155_v62, 0.0 }
 0xbe0   : > { %9240 = vpow2.f32 %v6355_v9 }
 0xbe1   : > { %v11157_v2 = vpop.eup %9236  ;;  %v5102_v32 = vpop.permute.xlu1 %5101  ;;  %v5281_v36 = vrot.slane %v5273_v31, %v10473_v38  ;;  %v5288_v37 = vrot.slane %v5274_v49, %v10473_v38  ;;  %9242 = vpow2.f32 %v6357_v33 }
 0xbe2   : > { %v5110_v13 = vpop.permute.xlu0 %5109  ;;  %v6364_v56 = vsel %vm2202_vm1, %v11157_v2, 0.0  ;;  %v5137_v35 = vcombine.low %v10958_v14, %v5102_v32  ;;  %v5138_v28 = vcombine.high %v10958_v14, %v5102_v32 }
 0xbe3   : > { %v5289_v18 = vcombine.low %v5098_v21, %v5110_v13  ;;  %v5290_v34 = vcombine.high %v5098_v21, %v5110_v13  ;;  %6371 = vadd.xlane.f32.xlu0 %v6370_v15  ;;  %6365 = vadd.xlane.f32.xlu1 %v6364_v56 }
 0xbe4   : > { %v5145_v42 = vrot.slane %v5137_v35, %v10473_v38  ;;  %v5152_v14 = vrot.slane %v5138_v28, %v10473_v38 }
 0xbe5   : > { %v5297_v7 = vrot.slane %v5289_v18, %v10473_v38  ;;  %v5304_v24 = vrot.slane %v5290_v34, %v10473_v38  ;;  %v5108_v25 = vpop.permute.xlu1 %5107 }
 0xbe6   : > { %v5153_v10 = vcombine.low %v5096_v26, %v5108_v25  ;;  %v5154_v5 = vcombine.high %v5096_v26, %v5108_v25 }
 0xbe7   : > { %v5337_v6 = vcombine.low %v5281_v36, %v5297_v7  ;;  %v5338_v8 = vcombine.high %v5281_v36, %v5297_v7  ;;  %v5353_v40 = vcombine.low %v5288_v37, %v5304_v24  ;;  %v5354_v60 = vcombine.high %v5288_v37, %v5304_v24 }
 0xbe8   : > { %v5161_v46 = vrot.slane %v5153_v10, %v10473_v38  ;;  %v5168_v30 = vrot.slane %v5154_v5, %v10473_v38 }
 0xbe9   : > { %v5345_v43 = vrot.slane %v5337_v6, %v10478_v45  ;;  %v5352_v44 = vrot.slane %v5338_v8, %v10478_v45  ;;  %v5361_v47 = vrot.slane %v5353_v40, %v10478_v45  ;;  %v5368_v26 = vrot.slane %v5354_v60, %v10478_v45  ;;  %v11179_v3 = vpop.eup %9238 }
 0xbea   : > { %v5201_v48 = vcombine.low %v5145_v42, %v5161_v46  ;;  %v5202_v52 = vcombine.high %v5145_v42, %v5161_v46  ;;  %v5217_v54 = vcombine.low %v5152_v14, %v5168_v30  ;;  %v5218_v55 = vcombine.high %v5152_v14, %v5168_v30  ;;  %v11189_v29 = vpop.eup %9240 }
 0xbeb   : > { %v8035_v57 = vcombine.low %v5345_v43, %v5352_v44  ;;  %v8037_v58 = vcombine.high %v5345_v43, %v5352_v44  ;;  %v8039_v59 = vcombine.low %v5361_v47, %v5368_v26  ;;  %v8041_v63 = vcombine.high %v5361_v47, %v5368_v26  ;;  %v11193_v15 = vpop.eup %9242 }
 0xbec   : > { %v5209_v4 = vrot.slane %v5201_v48, %v10478_v45  ;;  %v5216_v11 = vrot.slane %v5202_v52, %v10478_v45  ;;  %v5225_v12 = vrot.slane %v5217_v54, %v10478_v45  ;;  %v5232_v19 = vrot.slane %v5218_v55, %v10478_v45 }
 0xbed   : > { %v5553_v21 = vrot.slane %v8035_v57, %v10473_v38  ;;  %v5569_v41 = vrot.slane %v8037_v58, %v10473_v38  ;;  %v5585_v51 = vrot.slane %v8039_v59, %v10473_v38  ;;  %v5601_v23 = vrot.slane %v8041_v63, %v10473_v38 }
 0xbee   : > { %v8027_v9 = vcombine.low %v5209_v4, %v5216_v11  ;;  %v8029_v31 = vcombine.high %v5209_v4, %v5216_v11  ;;  %v8031_v49 = vcombine.low %v5225_v12, %v5232_v19  ;;  %v8033_v32 = vcombine.high %v5225_v12, %v5232_v19 }
 0xbef   : > { %v6367_v33 = vsel %vm2202_vm1, %v11179_v3, 0.0  ;;  %v5609_v13 = vcombine.low %v5553_v21, %v5569_v41  ;;  %v5641_v28 = vcombine.low %v5585_v51, %v5601_v23  ;;  %v6376_v24 = vsel %vm2202_vm1, %v11189_v29, 0.0 }
 0xbf0   : > { %v5417_v56 = vrot.slane %v8027_v9, %v10473_v38  ;;  %v5433_v18 = vrot.slane %v8029_v31, %v10473_v38  ;;  %v5449_v34 = vrot.slane %v8031_v49, %v10473_v38  ;;  %v5465_v35 = vrot.slane %v8033_v32, %v10473_v38  ;;  %6368 = vadd.xlane.f32.xlu1 %v6367_v33 }
 0xbf1   : > { %v5617_v7 = vrot.slane %v5609_v13, %v10478_v45  ;;  %v5649_v25 = vrot.slane %v5641_v28, %v10478_v45  ;;  %v6379_v40 = vsel %vm2202_vm1, %v11193_v15, 0.0  ;;  %v5610_v47 = vcombine.high %v5553_v21, %v5569_v41  ;;  %v5114_v21 = vpop.permute.xlu0 %5113 }
 0xbf2   : > { %v5473_v36 = vcombine.low %v5417_v56, %v5433_v18  ;;  %v5505_v37 = vcombine.low %v5449_v34, %v5465_v35  ;;  %v5474_v10 = vcombine.high %v5417_v56, %v5433_v18  ;;  %v5506_v5 = vcombine.high %v5449_v34, %v5465_v35 }
 0xbf3   : > { %v5673_v46 = vcombine.low %v5617_v7, %v5649_v25  ;;  %v5674_v43 = vcombine.high %v5617_v7, %v5649_v25  ;;  %v5642_v26 = vcombine.high %v5585_v51, %v5601_v23  ;;  %v5624_v55 = vrot.slane %v5610_v47, %v10478_v45  ;;  %v5116_v23 = vpop.permute.xlu1 %5115 }
 0xbf4   : > { %6377 = vadd.xlane.f32.xlu1 %v6376_v24  ;;  %v5481_v6 = vrot.slane %v5473_v36, %v10478_v45  ;;  %v5513_v8 = vrot.slane %v5505_v37, %v10478_v45  ;;  %v5488_v60 = vrot.slane %v5474_v10, %v10478_v45  ;;  %v5520_v42 = vrot.slane %v5506_v5, %v10478_v45 }
 0xbf5   : > { %v5656_v57 = vrot.slane %v5642_v26, %v10478_v45  ;;  %v6344_v11 = vsub.f32 %v11114_v39, %v11148_v50  ;;  %v5122_v41 = vpop.permute.xlu0 %5121 }
 0xbf6   : > { %v5537_v14 = vcombine.low %v5481_v6, %v5513_v8  ;;  %v5538_v30 = vcombine.high %v5481_v6, %v5513_v8  ;;  %v5539_v44 = vcombine.low %v5488_v60, %v5520_v42  ;;  %v5540_v48 = vcombine.high %v5488_v60, %v5520_v42 }
 0xbf7   : > { %v5675_v58 = vcombine.low %v5624_v55, %v5656_v57  ;;  %v5676_v59 = vcombine.high %v5624_v55, %v5656_v57  ;;  %v6359_v12 = vmul.f32 1.442695, %v6344_v11  ;;  %v5120_v31 = vpop.permute.xlu1 %5119 }
 0xbf8   : > { %6380 = vadd.xlane.f32.xlu1 %v6379_v40  ;;  %v8917_v52 = vpack.c.bf16 %v5673_v46, %v5537_v14  ;;  %v8920_v54 = vpack.c.bf16 %v5674_v43, %v5538_v30 }
 0xbf9   : > { %5133 = vrot.lane.b32.xlu0 %v10956_v53, %s9762_s28  ;;  %v8923_v63 = vpack.c.bf16 %v5675_v58, %v5539_v44  ;;  %v11215_v4 = vpack.c.bf16 %v5676_v59, %v5540_v48  ;;  %9244 = vpow2.f32 %v6359_v12  ;;  %v5128_v51 = vpop.permute.xlu0 %5127 }
 0xbfa   : > { %8918 = vmatpush3.bf16.msra.mxu0 %v8917_v52  ;;  %8921 = vmatpush3.bf16.msra.mxu1 %v8920_v54  ;;  %v5305_v42 = vcombine.low %v5116_v23, %v5128_v51  ;;  %v5306_v14 = vcombine.high %v5116_v23, %v5128_v51 }
 0xbfb   : > { %8922 = vmatprep.subr.bf16.mxu0 %v9754_v1  ;;  %8925 = vmatprep.subr.bf16.mxu1 %v9754_v1  ;;  %v5126_v32 = vpop.permute.xlu1 %5125 }
 0xbfc   : > { %v5169_v56 = vcombine.low %v5114_v21, %v5126_v32  ;;  %v5170_v18 = vcombine.high %v5114_v21, %v5126_v32  ;;  %v5313_v52 = vrot.slane %v5305_v42, %v10473_v38  ;;  %v5320_v54 = vrot.slane %v5306_v14, %v10473_v38 }
 0xbfe   : > { %v5177_v28 = vrot.slane %v5169_v56, %v10473_v38 }
 0xbff   : > { %v5132_v39 = vpop.permute.xlu1 %5131 }
 0xc00   : > { %v5185_v50 = vcombine.low %v5120_v31, %v5132_v39  ;;  %v5186_v13 = vcombine.high %v5120_v31, %v5132_v39 }
 0xc02   : > { %v5193_v34 = vrot.slane %v5185_v50, %v10473_v38  ;;  %v5200_v35 = vrot.slane %v5186_v13, %v10473_v38 }
 0xc03   : > { %v11219_v53 = vpop.eup %9244 }
 0xc04   : > { %v6382_v19 = vsel %vm2202_vm1, %v11219_v53, 0.0  ;;  %v5233_v36 = vcombine.low %v5177_v28, %v5193_v34  ;;  %v5234_v37 = vcombine.high %v5177_v28, %v5193_v34 }
 0xc06   : > { %v5241_v10 = vrot.slane %v5233_v36, %v10478_v45  ;;  %v5248_v5 = vrot.slane %v5234_v37, %v10478_v45 }
 0xc08   : > { %v8028_v46 = vcombine.low %v5241_v10, %v5248_v5  ;;  %v8030_v30 = vcombine.high %v5241_v10, %v5248_v5 }
 0xc0a   : > { %v5424_v58 = vrot.slane %v8028_v46, %v10473_v38  ;;  %v5440_v59 = vrot.slane %v8030_v30, %v10473_v38 }
 0xc18   : > { %6383 = vadd.xlane.f32.xlu0 %v6382_v19 }
 0xc4f   : > { %v6363_v9 = vpop.xlane.xlu0 %6362 }
 0xc50   : > { %9246 = vrcp.f32 %v6363_v9 }
 0xc5a   : > { %v9247_v49 = vpop.eup %9246 }
 0xc5b   : > { %v6393_v33 = vmul.f32 %v9247_v49, %v11144_v27  ;;  %v5184_v27 = vrot.slane %v5170_v18, %v10473_v38 }
 0xc5d   : > { %8630 = vmatmul.mubr.msk.f32.vlgmr.msra.gmra.mrb[26].mxu0 %vm2202_vm1, %v6393_v33  ;;  %v5249_v7 = vcombine.low %v5184_v27, %v5200_v35  ;;  %v5250_v24 = vcombine.high %v5184_v27, %v5200_v35  ;;  %v5489_v33 = vcombine.low %v5424_v58, %v5440_v59 }
 0xc5e   : > { %8924 = vmatpush3.bf16.msra.mxu0 %v8923_v63  ;;  %8643 = vmatprep.mubr.msk.f32.mxu0 %vm9755_vm0, %v9753_v0 }
 0xc5f   : > { %8928 = vmatprep.subr.bf16.mxu0 %v9754_v1  ;;  %v5257_v6 = vrot.slane %v5249_v7, %v10478_v45  ;;  %v5264_v8 = vrot.slane %v5250_v24, %v10478_v45  ;;  %v5497_v24 = vrot.slane %v5489_v33, %v10478_v45 }
 0xc61   : > { %v8032_v43 = vcombine.low %v5257_v6, %v5264_v8  ;;  %v8034_v44 = vcombine.high %v5257_v6, %v5264_v8 }
 0xc63   : > { %v5456_v63 = vrot.slane %v8032_v43, %v10473_v38  ;;  %v5472_v11 = vrot.slane %v8034_v44, %v10473_v38 }
 0xc65   : > { %v5521_v34 = vcombine.low %v5456_v63, %v5472_v11 }
 0xc67   : > { %v5529_v10 = vrot.slane %v5521_v34, %v10478_v45 }
 0xc69   : > { %v5541_v14 = vcombine.low %v5497_v24, %v5529_v10  ;;  %v5542_v46 = vcombine.high %v5497_v24, %v5529_v10 }
 0xc6c   : > { %v6375_v25 = vpop.xlane.xlu0 %6374 }
 0xc70   : > { %v6366_v40 = vpop.xlane.xlu1 %6365  ;;  %v6372_v60 = vpop.xlane.xlu0 %6371 }
 0xc71   : > { %9248 = vrcp.f32 %v6366_v40  ;;  %v5490_v40 = vcombine.high %v5424_v58, %v5440_v59 }
 0xc72   : > { %9250 = vrcp.f32 %v6372_v60  ;;  %v5522_v60 = vcombine.high %v5456_v63, %v5472_v11 }
 0xc74   : > { %v5134_v47 = vpop.permute.xlu0 %5133 }
 0xc75   : > { %v5321_v26 = vcombine.low %v5122_v41, %v5134_v47  ;;  %v5322_v48 = vcombine.high %v5122_v41, %v5134_v47 }
 0xc77   : > { %v5329_v55 = vrot.slane %v5321_v26, %v10473_v38  ;;  %v5336_v57 = vrot.slane %v5322_v48, %v10473_v38 }
 0xc79   : > { %v5369_v12 = vcombine.low %v5313_v52, %v5329_v55  ;;  %v5370_v19 = vcombine.high %v5313_v52, %v5329_v55  ;;  %v5385_v21 = vcombine.low %v5320_v54, %v5336_v57  ;;  %v5386_v41 = vcombine.high %v5320_v54, %v5336_v57 }
 0xc7a   : > { %v5504_v54 = vrot.slane %v5490_v40, %v10478_v45  ;;  %v5536_v55 = vrot.slane %v5522_v60, %v10478_v45 }
 0xc7b   : > { %v9249_v51 = vpop.eup %9248  ;;  %v5377_v23 = vrot.slane %v5369_v12, %v10478_v45  ;;  %v5384_v9 = vrot.slane %v5370_v19, %v10478_v45  ;;  %v5393_v31 = vrot.slane %v5385_v21, %v10478_v45  ;;  %v5400_v49 = vrot.slane %v5386_v41, %v10478_v45 }
 0xc7c   : > { %v6394_v32 = vmul.f32 %v9249_v51, %v11157_v2  ;;  %v9251_v39 = vpop.eup %9250  ;;  %v5543_v12 = vcombine.low %v5504_v54, %v5536_v55  ;;  %v5544_v19 = vcombine.high %v5504_v54, %v5536_v55 }
 0xc7d   : > { %v8036_v50 = vcombine.low %v5377_v23, %v5384_v9  ;;  %v8038_v13 = vcombine.high %v5377_v23, %v5384_v9  ;;  %v8040_v56 = vcombine.low %v5393_v31, %v5400_v49  ;;  %v6369_v18 = vpop.xlane.xlu1 %6368  ;;  %v8042_v35 = vcombine.high %v5393_v31, %v5400_v49 }
 0xc7e   : > { %9252 = vrcp.f32 %v6369_v18  ;;  %8637 = vmatmul.mubr.msk.f32.vlgmr.msra.gmra.mrb[34].mxu1 %vm2202_vm1, %v6394_v32  ;;  %v6396_v2 = vmul.f32 %v9251_v39, %v11155_v62 }
 0xc7f   : > { %v5560_v28 = vrot.slane %v8036_v50, %v10473_v38  ;;  %v5576_v27 = vrot.slane %v8038_v13, %v10473_v38  ;;  %v5592_v36 = vrot.slane %v8040_v56, %v10473_v38  ;;  %8927 = vmatpush3.bf16.msra.mxu1 %v11215_v4  ;;  %8650 = vmatprep.mubr.msk.f32.mxu1 %vm9755_vm0, %v9753_v0  ;;  %9254 = vrcp.f32 %v6375_v25 }
 0xc80   : > { %v5608_v37 = vrot.slane %v8042_v35, %v10473_v38  ;;  %8931 = vmatprep.subr.bf16.mxu1 %v9754_v1 }
 0xc81   : > { %v6378_v7 = vpop.xlane.xlu1 %6377  ;;  %v5625_v5 = vcombine.low %v5560_v28, %v5576_v27  ;;  %v5626_v6 = vcombine.high %v5560_v28, %v5576_v27 }
 0xc82   : > { %9256 = vrcp.f32 %v6378_v7  ;;  %8651 = vmatmul.mubr.msk.f32.vlgmr.msra.gmra.mrb[36].mxu1 %vm2202_vm1, %v6396_v2  ;;  %v5657_v4 = vcombine.low %v5592_v36, %v5608_v37  ;;  %v5658_v8 = vcombine.high %v5592_v36, %v5608_v37 }
 0xc83   : > { %v5633_v25 = vrot.slane %v5625_v5, %v10478_v45  ;;  %8664 = vmatprep.mubr.msk.f32.mxu1 %vm9755_vm0, %v9753_v0  ;;  %v5640_v30 = vrot.slane %v5626_v6, %v10478_v45 }
 0xc84   : > { %v5665_v62 = vrot.slane %v5657_v4, %v10478_v45  ;;  %v5672_v47 = vrot.slane %v5658_v8, %v10478_v45 }
 0xc85   : > { %v6381_v42 = vpop.xlane.xlu1 %6380 }
 0xc86   : > { %9258 = vrcp.f32 %v6381_v42  ;;  %v5677_v43 = vcombine.low %v5633_v25, %v5665_v62  ;;  %v5678_v44 = vcombine.high %v5633_v25, %v5665_v62  ;;  %v5679_v59 = vcombine.low %v5640_v30, %v5672_v47 }
 0xc87   : > { %v5680_v63 = vcombine.high %v5640_v30, %v5672_v47 }
 0xc88   : > { %v9253_v26 = vpop.eup %9252  ;;  %v8929_v48 = vpack.c.bf16 %v5677_v43, %v5541_v14  ;;  %v8932_v52 = vpack.c.bf16 %v5678_v44, %v5542_v46 }
 0xc89   : > { %v6395_v57 = vmul.f32 %v9253_v26, %v11179_v3  ;;  %v9255_v58 = vpop.eup %9254  ;;  %v8935_v3 = vpack.c.bf16 %v5679_v59, %v5543_v12  ;;  %v8938_v51 = vpack.c.bf16 %v5680_v63, %v5544_v19  ;;  %v7292_v26 = vld [vmem:[#allocation19] sm:$0xff]  ;;  %v7295_v59 = vld [vmem:[#allocation19 + $0x18] sm:$0xff] }
 0xc8a   : > { %8933 = vmatpush3.bf16.msra.mxu1 %v8932_v52  ;;  %v6397_v21 = vmul.f32 %v9255_v58, %v11151_v20  ;;  %v7294_v58 = vld [vmem:[#allocation19 + $0x10] sm:$0xff] }
 0xc8b   : > { %8644 = vmatmul.mubr.msk.f32.vlgmr.msra.gmra.mrb[28].mxu0 %vm2202_vm1, %v6395_v57  ;;  %8937 = vmatprep.subr.bf16.mxu1 %v9754_v1 }
 0xc8c   : > { %v9257_v11 = vpop.eup %9256  ;;  %8930 = vmatpush3.bf16.msra.mxu0 %v8929_v48  ;;  %8657 = vmatprep.mubr.msk.f32.mxu0 %vm9755_vm0, %v9753_v0  ;;  %v7293_v48 = vld [vmem:[#allocation19 + $0x8] sm:$0xff] }
 0xc8d   : > { %v6398_v41 = vmul.f32 %v9257_v11, %v11189_v29  ;;  %8934 = vmatprep.subr.bf16.mxu0 %v9754_v1  ;;  %v8941_v63 = vpack.c.bf16 %v7293_v48, %v7292_v26 }
 0xc8f   : > { %8658 = vmatmul.mubr.msk.f32.vlgmr.msra.gmra.mrb[30].mxu0 %vm2202_vm1, %v6397_v21  ;;  %8665 = vmatmul.mubr.msk.f32.vlgmr.msra.gmra.mrb[38].mxu1 %vm2202_vm1, %v6398_v41  ;;  %v8944_v41 = vpack.c.bf16 %v7295_v59, %v7294_v58 }
 0xc90   : > { %v9259_v23 = vpop.eup %9258  ;;  %8936 = vmatpush3.bf16.msra.mxu0 %v8935_v3  ;;  %8939 = vmatpush3.bf16.msra.mxu1 %v8938_v51 }
 0xc91   : > { %v6399_v9 = vmul.f32 %v9259_v23, %v11193_v15  ;;  %8671 = vmatprep.mubr.msk.f32.mxu0 %vm9755_vm0, %v9753_v0  ;;  %8678 = vmatprep.mubr.msk.f32.mxu1 %vm9755_vm0, %v9753_v0 }
 0xc92   : > { %8940 = vmatprep.subr.bf16.mxu0 %v9754_v1 }
 0xc93   : > { %8672 = vmatmul.mubr.msk.f32.vlgmr.msra.gmra.mrb[32].mxu0 %vm2202_vm1, %v6399_v9 }
 0xc94   : > { %8713 = vmatprep.mubr.msk.f32.mxu0 %vm9755_vm0, %v9753_v0  ;;  %8942 = vmatpush3.bf16.msra.mxu0 %v8941_v63 }
 0xc95   : > { %8943 = vmatprep.subr.bf16.mxu0 %v9754_v1 }
 0xc98   : > { %8945 = vmatpush3.bf16.msra.mxu0 %v8944_v41 }
 0xc99   : > { %8946 = vmatprep.subr.bf16.mxu0 %v9754_v1 }
 0xca5   : > { %v6384_v20 = vpop.xlane.xlu0 %6383 }
 0xca6   : > { %9260 = vrcp.f32 %v6384_v20  ;;  %v7296_v20 = vld [vmem:[#allocation19 + $0x20] sm:$0xff] }
 0xcb0   : > { %v9261_v29 = vpop.eup %9260 }
 0xcb1   : > { %v6400_v31 = vmul.f32 %v9261_v29, %v11219_v53  ;;  %v7297_v29 = vld [vmem:[#allocation19 + $0x28] sm:$0xff] }
 0xcb3   : > { %8679 = vmatmul.mubr.msk.f32.vlgmr.msra.gmra.mrb[40].mxu1 %vm2202_vm1, %v6400_v31 }
 0xcb4   : > { %7521 = vmatprep.mubr.f32.mxu1 %v9753_v0 }
 0xd30   : > { %v6470_v15 = vpop.f32.mrb[26].mxu0 }
 0xd31   : > { %v8631_v49 = vpop.f32.mrb[27].mxu0 }
 0xd51   : > { %v6543_v32 = vpop.f32.mrb[34].mxu1 }
 0xd52   : > { %v8638_v33 = vpop.f32.mrb[35].mxu1 }
 0xd53   : > { %v8947_v33 = vpack.c.bf16 %v7297_v29, %v7296_v20 }
 0xd55   : > { %v6689_v39 = vpop.f32.mrb[36].mxu1  ;;  %8948 = vmatpush3.bf16.msra.mxu0 %v8947_v33 }
 0xd56   : > { %v7001_v50 = vcombine.low %v6543_v32, %v6689_v39  ;;  %v7002_v13 = vcombine.high %v6543_v32, %v6689_v39  ;;  %v8652_v56 = vpop.f32.mrb[37].mxu1  ;;  %v7298_v39 = vld [vmem:[#allocation19 + $0x30] sm:$0xff]  ;;  %8949 = vmatprep.subr.bf16.mxu0 %v9754_v1 }
 0xd57   : > { %v7300_v56 = vld [vmem:[#allocation19 + $0x40] sm:$0xff] }
 0xd58   : > { %v7009_v27 = vrot.slane %v7001_v50, %v10473_v38  ;;  %v7016_v53 = vrot.slane %v7002_v13, %v10473_v38  ;;  %v7299_v50 = vld [vmem:[#allocation19 + $0x38] sm:$0xff] }
 0xd59   : > { %v8950_v13 = vpack.c.bf16 %v7299_v50, %v7298_v39 }
 0xd5b   : > { %8951 = vmatpush3.bf16.msra.mxu0 %v8950_v13 }
 0xd5c   : > { %8952 = vmatprep.subr.bf16.mxu0 %v9754_v1 }
 0xd5e   : > { %v6616_v18 = vpop.f32.mrb[28].mxu0 }
 0xd5f   : > { %v6985_v34 = vcombine.low %v6470_v15, %v6616_v18  ;;  %v6986_v35 = vcombine.high %v6470_v15, %v6616_v18  ;;  %v8645_v28 = vpop.f32.mrb[29].mxu0  ;;  %v7301_v18 = vld [vmem:[#allocation19 + $0x48] sm:$0xff] }
 0xd60   : > { %v7303_v28 = vld [vmem:[#allocation19 + $0x58] sm:$0xff] }
 0xd61   : > { %v6993_v36 = vrot.slane %v6985_v34, %v10473_v38  ;;  %v7000_v0 = vrot.slane %v6986_v35, %v10473_v38  ;;  %v8953_v34 = vpack.c.bf16 %v7301_v18, %v7300_v56  ;;  %v7302_v35 = vld [vmem:[#allocation19 + $0x50] sm:$0xff] }
 0xd62   : > { %v11296_v2 = vpop.f32.mrb[30].mxu0  ;;  %v11298_v37 = vpop.f32.mrb[38].mxu1 }
 0xd63   : > { %v7049_v7 = vcombine.low %v6993_v36, %v7009_v27  ;;  %v7050_v24 = vcombine.high %v6993_v36, %v7009_v27  ;;  %v7065_v10 = vcombine.low %v7000_v0, %v7016_v53  ;;  %v7066_v5 = vcombine.high %v7000_v0, %v7016_v53  ;;  %v8659_v6 = vpop.f32.mrb[31].mxu0  ;;  %v8666_v4 = vpop.f32.mrb[39].mxu1  ;;  %8954 = vmatpush3.bf16.msra.mxu0 %v8953_v34  ;;  %v7304_v53 = vld [vmem:[#allocation19 + $0x60] sm:$0xff]  ;;  %v7305_v36 = vld [vmem:[#allocation19 + $0x68] sm:$0xff] }
 0xd64   : > { %v8956_v27 = vpack.c.bf16 %v7303_v28, %v7302_v35  ;;  %8955 = vmatprep.subr.bf16.mxu0 %v9754_v1  ;;  %v8959_v0 = vpack.c.bf16 %v7305_v36, %v7304_v53  ;;  %v7414_v36 = vld [vmem:[#allocation20 + $0x8] sm:$0xff] }
 0xd65   : > { %v7057_v8 = vrot.slane %v7049_v7, %v10478_v45  ;;  %v7064_v25 = vrot.slane %v7050_v24, %v10478_v45  ;;  %v7073_v62 = vrot.slane %v7065_v10, %v10478_v45  ;;  %v7080_v40 = vrot.slane %v7066_v5, %v10478_v45 }
 0xd66   : > { %v11304_v60 = vpop.f32.mrb[32].mxu0 }
 0xd67   : > { %v8075_v42 = vcombine.low %v7057_v8, %v7064_v25  ;;  %v8077_v14 = vcombine.high %v7057_v8, %v7064_v25  ;;  %v8079_v46 = vcombine.low %v7073_v62, %v7080_v40  ;;  %v8081_v30 = vcombine.high %v7073_v62, %v7080_v40  ;;  %v8673_v43 = vpop.f32.mrb[33].mxu0  ;;  %8957 = vmatpush3.bf16.msra.mxu0 %v8956_v27 }
 0xd68   : > { %v7017_v44 = vcombine.low %v11296_v2, %v11304_v60  ;;  %v7018_v47 = vcombine.high %v11296_v2, %v11304_v60  ;;  %8958 = vmatprep.subr.bf16.mxu0 %v9754_v1 }
 0xd69   : > { %v7129_v52 = vrot.slane %v8075_v42, %v10473_v38  ;;  %v7145_v54 = vrot.slane %v8077_v14, %v10473_v38  ;;  %v7161_v55 = vrot.slane %v8079_v46, %v10473_v38  ;;  %v7177_v57 = vrot.slane %v8081_v30, %v10473_v38  ;;  %v7306_v42 = vld [vmem:[#allocation19 + $0x70] sm:$0xff] }
 0xd6a   : > { %v7025_v5 = vrot.slane %v7017_v44, %v10473_v38  ;;  %v7032_v6 = vrot.slane %v7018_v47, %v10473_v38 }
 0xd6b   : > { %v7186_v11 = vcombine.high %v7129_v52, %v7145_v54  ;;  %v7218_v12 = vcombine.high %v7161_v55, %v7177_v57  ;;  %v7185_v19 = vcombine.low %v7129_v52, %v7145_v54  ;;  %v7217_v21 = vcombine.low %v7161_v55, %v7177_v57  ;;  %8960 = vmatpush3.bf16.msra.mxu0 %v8959_v0  ;;  %v7416_v0 = vld [vmem:[#allocation20 + $0x18] sm:$0xff] }
 0xd6c   : > { %8961 = vmatprep.subr.bf16.mxu0 %v9754_v1  ;;  %v7307_v1 = vld [vmem:[#allocation19 + $0x78] sm:$0xff] }
 0xd6d   : > { %v7200_v3 = vrot.slane %v7186_v11, %v10478_v45  ;;  %v7232_v51 = vrot.slane %v7218_v12, %v10478_v45  ;;  %v11317_v23 = vrot.slane %v7185_v19, %v10478_v45  ;;  %v11320_v9 = vrot.slane %v7217_v21, %v10478_v45 }
 0xd6e   : > { %v8962_v43 = vpack.c.bf16 %v7307_v1, %v7306_v42  ;;  %v7423_v1 = vld [vmem:[#allocation20 + $0x50] sm:$0xff] }
 0xd6f   : > { %v7251_v31 = vcombine.low %v7200_v3, %v7232_v51  ;;  %v7250_v15 = vcombine.high %v11317_v23, %v11320_v9  ;;  %v7252_v49 = vcombine.high %v7200_v3, %v7232_v51  ;;  %v7249_v32 = vcombine.low %v11317_v23, %v11320_v9 }
 0xd70   : > { %8963 = vmatpush3.bf16.msra.mxu0 %v8962_v43 }
 0xd71   : > { %7262 = vrot.lane.b32.xlu1 %v7251_v31, %s9761_s26  ;;  %7258 = vrot.lane.b32.xlu0 %v7250_v15, %s9762_s28  ;;  %s11609_s26 = sld [smem:[#allocation61_spill]] }
 0xd75   : > { %7266 = vrot.lane.b32.xlu1 %v7252_v49, %s9760_s12 }
 0xd86   : > { %v6981_v2 = vpop.f32.mrb[40].mxu1 }
 0xd87   : > { %v7033_v7 = vcombine.low %v11298_v37, %v6981_v2  ;;  %v7034_v24 = vcombine.high %v11298_v37, %v6981_v2  ;;  %v8680_v10 = vpop.f32.mrb[41].mxu1  ;;  %v7413_v2 = vld [vmem:[#allocation20] sm:$0xff] }
 0xd88   : > { %v7418_v10 = vld [vmem:[#allocation20 + $0x28] sm:$0xff] }
 0xd89   : > { %v7041_v4 = vrot.slane %v7033_v7, %v10473_v38  ;;  %v7048_v8 = vrot.slane %v7034_v24, %v10473_v38  ;;  %v8964_v7 = vpack.c.bf16 %v7416_v0, %v7414_v36  ;;  %v7415_v24 = vld [vmem:[#allocation20 + $0x10] sm:$0xff]  ;;  %v7533_v0 = vld [vmem:[#allocation22 + $0x18] sm:$0xff] }
 0xd8a   : > { %v7532_v36 = vld [vmem:[#allocation22 + $0x10] sm:$0xff] }
 0xd8b   : > { %v7081_v25 = vcombine.low %v7025_v5, %v7041_v4  ;;  %v7082_v62 = vcombine.high %v7025_v5, %v7041_v4  ;;  %v7097_v40 = vcombine.low %v7032_v6, %v7048_v8  ;;  %v7098_v60 = vcombine.high %v7032_v6, %v7048_v8  ;;  %v7420_v5 = vld [vmem:[#allocation20 + $0x38] sm:$0xff]  ;;  %v7417_v8 = vld [vmem:[#allocation20 + $0x20] sm:$0xff]  ;;  %8965 = vmatprep.subr.bf16.mxu1 %v8964_v7  ;;  %v7551_v7 = vld [vmem:[#allocation22 + $0xa8] sm:$0xff] }
 0xd8c   : > { %v8966_v6 = vpack.c.bf16 %v7415_v24, %v7413_v2  ;;  %v8968_v4 = vpack.c.bf16 %v7420_v5, %v7418_v10  ;;  %v7550_v2 = vld [vmem:[#allocation22 + $0xa0] sm:$0xff]  ;;  %v9002_v24 = vpack.c.bf16 %v7533_v0, %v7532_v36 }
 0xd8d   : > { %v7089_v14 = vrot.slane %v7081_v25, %v10478_v45  ;;  %v7096_v46 = vrot.slane %v7082_v62, %v10478_v45  ;;  %v7105_v37 = vrot.slane %v7097_v40, %v10478_v45  ;;  %v7112_v30 = vrot.slane %v7098_v60, %v10478_v45  ;;  %v7419_v25 = vld [vmem:[#allocation20 + $0x30] sm:$0xff]  ;;  %v7422_v62 = vld [vmem:[#allocation20 + $0x48] sm:$0xff]  ;;  %v7424_v40 = vld [vmem:[#allocation20 + $0x58] sm:$0xff] }
 0xd8e   : > { %8967 = vmatpush1.bf16.msra.mxu1 %v8966_v6  ;;  %v8970_v60 = vpack.c.bf16 %v7419_v25, %v7417_v8  ;;  %v8972_v42 = vpack.c.bf16 %v7424_v40, %v7422_v62  ;;  %v9004_v10 = vpack.c.bf16 %v7551_v7, %v7550_v2  ;;  %v7534_v5 = vld [vmem:[#allocation22 + $0x20] sm:$0xff]  ;;  %v7535_v6 = vld [vmem:[#allocation22 + $0x28] sm:$0xff]  ;;  %v7553_v8 = vld [vmem:[#allocation22 + $0xb8] sm:$0xff] }
 0xd8f   : > { %v8076_v44 = vcombine.low %v7089_v14, %v7096_v46  ;;  %v8078_v47 = vcombine.high %v7089_v14, %v7096_v46  ;;  %v8080_v26 = vcombine.low %v7105_v37, %v7112_v30  ;;  %v8082_v48 = vcombine.high %v7105_v37, %v7112_v30  ;;  %8969 = vmatprep.subr.bf16.mxu1 %v8968_v4  ;;  %v7552_v4 = vld [vmem:[#allocation22 + $0xb0] sm:$0xff] }
 0xd90   : > { %v9006_v25 = vpack.c.bf16 %v7535_v6, %v7534_v5  ;;  %v9008_v62 = vpack.c.bf16 %v7553_v8, %v7552_v4  ;;  %v7536_v40 = vld [vmem:[#allocation22 + $0x30] sm:$0xff]  ;;  %v8087_v6 = vld [vmem:[%s11614_s11] ss:$0 sm:$0xff] }
 0xd91   : > { %v7136_v52 = vrot.slane %v8076_v44, %v10473_v38  ;;  %v7152_v54 = vrot.slane %v8078_v47, %v10473_v38  ;;  %v7168_v55 = vrot.slane %v8080_v26, %v10473_v38  ;;  %v7184_v57 = vrot.slane %v8082_v48, %v10473_v38  ;;  %v7426_v44 = vld [vmem:[#allocation20 + $0x68] sm:$0xff]  ;;  %v7428_v47 = vld [vmem:[#allocation20 + $0x78] sm:$0xff]  ;;  %v7425_v26 = vld [vmem:[#allocation20 + $0x60] sm:$0xff] }
 0xd92   : > { %8971 = vmatpush1.bf16.msra.mxu1 %v8970_v60  ;;  %v8976_v48 = vpack.c.bf16 %v7428_v47, %v7426_v44  ;;  %v7537_v60 = vld [vmem:[#allocation22 + $0x38] sm:$0xff] }
 0xd93   : > { %v7201_v58 = vcombine.low %v7136_v52, %v7152_v54  ;;  %v7233_v59 = vcombine.low %v7168_v55, %v7184_v57  ;;  %v7202_v63 = vcombine.high %v7136_v52, %v7152_v54  ;;  %v7234_v11 = vcombine.high %v7168_v55, %v7184_v57  ;;  %8973 = vmatprep.subr.bf16.mxu1 %v8972_v42  ;;  %v7427_v52 = vld [vmem:[#allocation20 + $0x70] sm:$0xff]  ;;  %v7430_v54 = vld [vmem:[#allocation20 + $0x88] sm:$0xff]  ;;  %v7432_v55 = vld [vmem:[#allocation20 + $0x98] sm:$0xff] }
 0xd94   : > { %v8978_v57 = vpack.c.bf16 %v7427_v52, %v7425_v26  ;;  %v7554_v42 = vld [vmem:[#allocation22 + $0xc0] sm:$0xff]  ;;  %v7557_v44 = vld [vmem:[#allocation22 + $0xd8] sm:$0xff] }
 0xd95   : > { %v7209_v12 = vrot.slane %v7201_v58, %v10478_v45  ;;  %v7241_v19 = vrot.slane %v7233_v59, %v10478_v45  ;;  %v7216_v21 = vrot.slane %v7202_v63, %v10478_v45  ;;  %v7248_v41 = vrot.slane %v7234_v11, %v10478_v45  ;;  %v7429_v59 = vld [vmem:[#allocation20 + $0x80] sm:$0xff]  ;;  %v7431_v63 = vld [vmem:[#allocation20 + $0x90] sm:$0xff]  ;;  %v7434_v11 = vld [vmem:[#allocation20 + $0xa8] sm:$0xff] }
 0xd96   : > { %v8980_v58 = vpack.c.bf16 %v7432_v55, %v7430_v54  ;;  %v7541_v52 = vld [vmem:[#allocation22 + $0x58] sm:$0xff]  ;;  %v7558_v54 = vld [vmem:[#allocation22 + $0xe0] sm:$0xff]  ;;  %v7559_v55 = vld [vmem:[#allocation22 + $0xe8] sm:$0xff] }
 0xd97   : > { %v7254_v3 = vcombine.high %v7209_v12, %v7241_v19  ;;  %v7253_v51 = vcombine.low %v7209_v12, %v7241_v19  ;;  %v7256_v20 = vcombine.high %v7216_v21, %v7248_v41  ;;  %v7255_v29 = vcombine.low %v7216_v21, %v7248_v41  ;;  %v7436_v12 = vld [vmem:[#allocation20 + $0xb8] sm:$0xff]  ;;  %v7433_v41 = vld [vmem:[#allocation20 + $0xa0] sm:$0xff] }
 0xd98   : > { %v8982_v19 = vpack.c.bf16 %v7431_v63, %v7429_v59  ;;  %v8984_v21 = vpack.c.bf16 %v7436_v12, %v7434_v11 }
 0xd99   : > { %7274 = vrot.lane.b32.xlu1 %v7254_v3, %s9759_s23  ;;  %7270 = vrot.lane.b32.xlu0 %v7253_v51, %s9758_s22  ;;  %s11608_s22 = sld [smem:[#allocation55_spill]]  ;;  %v7435_v3 = vld [vmem:[#allocation20 + $0xb0] sm:$0xff]  ;;  %v7438_v51 = vld [vmem:[#allocation20 + $0xc8] sm:$0xff]  ;;  %s1104_s23 = scalar_lea.vmem [#allocation23], %s10363_s29 }
 0xd9a   : > { %s7682_s12 = sshll.u32 %s1104_s23, 4  ;;  %s11406_s12 = int_to_ptr.vmem [resolvable:$true] %s7682_s12 }
 0xd9b   : > { %s9640_s17 = scalar_lea.vmem %s11406_s12, 128 }
 0xd9c   : > { %p9641_p0 = scmp.ne.s32.totalorder %s11406_s12, %s9640_s17 }
 0xd9d   : > { %7282 = vrot.lane.b32.xlu1 %v7256_v20, %s9757_s15  ;;  %7278 = vrot.lane.b32.xlu0 %v7255_v29, %s9756_s18  ;;  %v7440_v20 = vld [vmem:[#allocation20 + $0xd8] sm:$0xff]  ;;  %v8986_v29 = vpack.c.bf16 %v7435_v3, %v7433_v41  ;;  %v8085_v41 = vld [vmem:[%s11610_s1] ss:$0 sm:$0xff]  ;;  %s11615_s15 = sld [smem:[#allocation64_spill]] }
 0xd9e   : > { %p9642_p6 = pnand %p9641_p0, %p11617_p2 }
 0xd9f   : > { %v8083_v23 = vld [vmem:[%s11608_s22] ss:$0 sm:$0xff]  ;;  %s8090_s22 = sshll.u32 %s9932_s10, 7  ;;  %s9765_s10 = smov [#allocation23]  }
 0xda0   : > { %s11404_s1 = scalar_lea.hbm %s11616_s2, %s8090_s22  ;;  %p9643_p12 = pneg %p9642_p6 }
 0xda1   : > { %s9644_s29 = sshll.u32 %s9765_s10, 4  ;;  %s9645_s29 = int_to_ptr.vmem [resolvable:$false] %s9644_s29 }
 0xda2   : > { %p9647_p5 = scmp.lt.s32.totalorder %s11406_s12, %s9645_s29 }
 0xda3   : > { %v8088_v8 = vld [vmem:[%s11615_s15] ss:$0 sm:$0xff] }
 0xde3   : > { %v7263_v38 = vpop.permute.xlu1 %7262  ;;  %v7259_v31 = vpop.permute.xlu0 %7258 }
 0xde4   : > { %v7285_v15 = vsel %vm2202_vm1, %v7249_v32, %v7259_v31  ;;  %v7437_v31 = vld [vmem:[#allocation20 + $0xc0] sm:$0xff] }
 0xde5   : > { %v7286_v49 = vsel %vm3785_vm3, %v7285_v15, %v7263_v38  ;;  %v8988_v38 = vpack.c.bf16 %v7440_v20, %v7438_v51  ;;  %v7439_v15 = vld [vmem:[#allocation20 + $0xd0] sm:$0xff]  ;;  %v7542_v20 = vld [vmem:[#allocation22 + $0x60] sm:$0xff] }
 0xde7   : > { %v7267_v45 = vpop.permute.xlu1 %7266 }
 0xde8   : > { %v7287_v33 = vsel %vm3787_vm4, %v7286_v49, %v7267_v45  ;;  %v7442_v45 = vld [vmem:[#allocation20 + $0xe8] sm:$0xff]  ;;  %v7444_v49 = vld [vmem:[#allocation20 + $0xf8] sm:$0xff] }
 0xe0b   : > { %v7275_v39 = vpop.permute.xlu1 %7274  ;;  %v7271_v50 = vpop.permute.xlu0 %7270 }
 0xe0c   : > { %v7288_v13 = vsel %vm3789_vm5, %v7287_v33, %v7271_v50  ;;  %v8990_v33 = vpack.c.bf16 %v7439_v15, %v7437_v31  ;;  %v7441_v50 = vld [vmem:[#allocation20 + $0xe0] sm:$0xff]  ;;  %v7560_v31 = vld [vmem:[#allocation22 + $0xf0] sm:$0xff]  ;;  %v7561_v15 = vld [vmem:[#allocation22 + $0xf8] sm:$0xff] }
 0xe0d   : > { %v7289_v18 = vsel %vm3791_vm6, %v7288_v13, %v7275_v39  ;;  %v8992_v39 = vpack.c.bf16 %v7444_v49, %v7442_v45  ;;  %v7443_v13 = vld [vmem:[#allocation20 + $0xf0] sm:$0xff]  ;;  %v9024_v49 = vpack.c.bf16 %v7561_v15, %v7560_v31 }
 0xe0e   : > { %v7544_v45 = vld [vmem:[#allocation22 + $0x70] sm:$0xff] }
 0xe0f   : > { %v7283_v56 = vpop.permute.xlu1 %7282  ;;  %v7279_v34 = vpop.permute.xlu0 %7278 }
 0xe10   : > { %v7290_v35 = vsel %vm3793_vm7, %v7289_v18, %v7279_v34  ;;  %v7546_v18 = vld [vmem:[#allocation22 + $0x80] sm:$0xff]  ;;  %v7547_v34 = vld [vmem:[#allocation22 + $0x88] sm:$0xff] }
 0xe11   : > { %v7291_v28 = vsel %vm3795_vm8, %v7290_v35, %v7283_v56  ;;  %v8994_v56 = vpack.c.bf16 %v7443_v13, %v7441_v50  ;;  %v7530_v35 = vld [vmem:[#allocation22] sm:$0xff] }
 0xe12   : > { %8714 = vmatmul.mubr.f32.vlgmr.msra.gmra.mrb[34].mxu0 %v7291_v28  ;;  %v8996_v28 = vpack.c.bf16 %v7547_v34, %v7546_v18 }
 0xe14   : > { %8997 = vmatprep.subr.bf16.mxu0 %v8996_v28 }
 0xee5   : > { %v7381_v9 = vpop.f32.mrb[34].mxu0 }
 0xee6   : > { %v7382_v32 = vadd.f32 %v8083_v23, %v7381_v9  ;;  %v8715_v27 = vpop.f32.mrb[35].mxu0  ;;  %v7531_v23 = vld [vmem:[#allocation22 + $0x8] sm:$0xff]  ;;  %v7548_v9 = vld [vmem:[#allocation22 + $0x90] sm:$0xff] }
 0xee7   : > { %v8998_v27 = vpack.c.bf16 %v7531_v23, %v7530_v35 }
 0xee8   : > { %v7385_v53 = vadd.f32 %v7382_v32, %v10866_v61  ;;  %v7421_v61 = vld [vmem:[#allocation20 + $0x40] sm:$0xff]  ;;  %v7549_v32 = vld [vmem:[#allocation22 + $0x98] sm:$0xff] }
 0xee9   : > { %v8974_v14 = vpack.c.bf16 %v7423_v1, %v7421_v61  ;;  %8999 = vmatpush3.bf16.msra.mxu0 %v8998_v27  ;;  %v7555_v61 = vld [vmem:[#allocation22 + $0xc8] sm:$0xff]  ;;  %v9010_v1 = vpack.c.bf16 %v7537_v60, %v7536_v40 }
 0xeea   : > { %7388 = vadd.xlane.f32.xlu0 %v7385_v53 }
 0xeeb   : > { %8975 = vmatpush1.bf16.msra.mxu1 %v8974_v14  ;;  %v9012_v14 = vpack.c.bf16 %v7555_v61, %v7554_v42 }
 0xeec   : > { %8977 = vmatprep.subr.bf16.mxu1 %v8976_v48  ;;  %v7540_v48 = vld [vmem:[#allocation22 + $0x50] sm:$0xff] }
 0xeef   : > { %8979 = vmatpush1.bf16.msra.mxu1 %v8978_v57  ;;  %v9018_v57 = vpack.c.bf16 %v7541_v52, %v7540_v48 }
 0xef0   : > { %8981 = vmatprep.subr.bf16.mxu1 %v8980_v58  ;;  %v9020_v58 = vpack.c.bf16 %v7559_v55, %v7558_v54 }
 0xef3   : > { %8983 = vmatpush1.bf16.msra.mxu1 %v8982_v19  ;;  %v8084_v19 = vld [vmem:[%s11609_s26] ss:$0 sm:$0xff] }
 0xef4   : > { %8985 = vmatprep.subr.bf16.mxu1 %v8984_v21 }
 0xef7   : > { %8987 = vmatpush1.bf16.msra.mxu1 %v8986_v29  ;;  %v7543_v29 = vld [vmem:[#allocation22 + $0x68] sm:$0xff] }
 0xef8   : > { %8989 = vmatprep.subr.bf16.mxu1 %v8988_v38  ;;  %v9022_v38 = vpack.c.bf16 %v7543_v29, %v7542_v20 }
 0xefb   : > { %8991 = vmatpush1.bf16.msra.mxu1 %v8990_v33  ;;  %v7545_v33 = vld [vmem:[#allocation22 + $0x78] sm:$0xff] }
 0xefc   : > { %8993 = vmatprep.subr.bf16.mxu1 %v8992_v39  ;;  %v9026_v39 = vpack.c.bf16 %v7545_v33, %v7544_v45 }
 0xeff   : > { %8995 = vmatpush1.bf16.msra.mxu1 %v8994_v56 }
 0xf77   : > { %v7389_v46 = vpop.xlane.xlu0 %7388 }
 0xf78   : > { %v7390_v37 = vmul.f32 0.0078125, %v7389_v46  ;;  %v7538_v46 = vld [vmem:[#allocation22 + $0x40] sm:$0xff] }
 0xf7a   : > { %v11372_v30 = vsub.f32 %v7385_v53, %v7390_v37  ;;  %v9000_v53 = vpack.c.bf16 %v7549_v32, %v7548_v9  ;;  %v7539_v37 = vld [vmem:[#allocation22 + $0x48] sm:$0xff]  ;;  %v8086_v32 = vld [vmem:[%s11612_s8] ss:$0 sm:$0xff] }
 0xf7b   : > { %v9014_v47 = vpack.c.bf16 %v7539_v37, %v7538_v46 }
 0xf7c   : > { %v7392_v43 = vmul.f32 %v11372_v30, %v11372_v30  ;;  %9001 = vmatprep.subr.bf16.mxu0 %v9000_v53 }
 0xf7d   : > { %9003 = vmatpush3.bf16.msra.mxu0 %v9002_v24 }
 0xf7e   : > { %7393 = vadd.xlane.f32.xlu1 %v7392_v43  ;;  %9005 = vmatprep.subr.bf16.mxu0 %v9004_v10  ;;  %v7556_v43 = vld [vmem:[#allocation22 + $0xd0] sm:$0xff] }
 0xf7f   : > { %v9016_v26 = vpack.c.bf16 %v7557_v44, %v7556_v43 }
 0xf81   : > { %9007 = vmatpush3.bf16.msra.mxu0 %v9006_v25 }
 0xf82   : > { %9009 = vmatprep.subr.bf16.mxu0 %v9008_v62 }
 0xf85   : > { %9011 = vmatpush3.bf16.msra.mxu0 %v9010_v1 }
 0xf86   : > { %9013 = vmatprep.subr.bf16.mxu0 %v9012_v14 }
 0xf89   : > { %9015 = vmatpush3.bf16.msra.mxu0 %v9014_v47 }
 0xf8a   : > { %9017 = vmatprep.subr.bf16.mxu0 %v9016_v26 }
 0xf8d   : > { %9019 = vmatpush3.bf16.msra.mxu0 %v9018_v57 }
 0xf8e   : > { %9021 = vmatprep.subr.bf16.mxu0 %v9020_v58 }
 0xf91   : > { %9023 = vmatpush3.bf16.msra.mxu0 %v9022_v38 }
 0xf92   : > { %9025 = vmatprep.subr.bf16.mxu0 %v9024_v49 }
 0xf95   : > { %9027 = vmatpush3.bf16.msra.mxu0 %v9026_v39 }
0x100b   : > { %v7394_v59 = vpop.xlane.xlu1 %7393 }
0x100c   : > { %v7395_v63 = vmul.f32 0.0078125, %v7394_v59 }
0x100e   : > { %v7396_v11 = vadd.f32 1e-05, %v7395_v63 }
0x1010   : > { %9262 = vrsqrt.f32 %v7396_v11 }
0x101a   : > { %v9263_v12 = vpop.eup %9262 }
0x101b   : > { %v7398_v21 = vmul.f32 %v9263_v12, %v11372_v30  ;;  %v7445_v30 = vld [vmem:[%s11611_s25] sm:$0x3]  ;;  %s9646_s25 = scalar_lea.vmem %s9645_s29, 256 }
0x101c   : > { %v7450_v50 = vrot.slane %v7445_v30, %v1148_v17  ;;  %v7454_v13 = vrot.slane %v7445_v30, %v1152_v22  ;;  %p9648_p8 = scmp.lt.s32.totalorder %s9646_s25, %s9640_s17 }
0x101d   : > { %v7405_v3 = vmul.f32 %v8084_v19, %v7398_v21 }
0x101e   : > { %p9649_p11 = por %p9648_p8, %p9647_p5 }
0x101f   : > { %v7412_v51 = vadd.f32 %v8085_v41, %v7405_v3 }
0x1020   : > { %p9650_p3 = pnand %p9649_p11, %p9643_p12 }
0x1021   : > { %7522 = vmatmul.mubr.f32.vlgmr.msra.gmra.mrb[42].mxu1 %v7412_v51 }
0x10f4   : > { %v7523_v56 = vpop.f32.mrb[42].mxu1 }
0x10f5   : > { %v7524_v18 = vadd.f32 %v7523_v56, %v7450_v50  ;;  %v7525_v34 = vpop.f32.mrb[43].mxu1 }
0x10f6   : > { %v7526_v35 = vadd.f32 %v7525_v34, %v7454_v13 }
0x10f7   : > { %v7528_v23 = vmax.f32 %v7524_v18, 0.0 }
0x10f8   : > { %v7529_v28 = vmax.f32 %v7526_v35, 0.0 }
0x10fa   : > { %7633 = vmatprep.mubr.f32.mxu0 %v7529_v28 }
0x10fb   : > { %7634 = vmatmul.mubr.f32.vlgmr.msra.gmra.mrb[36].mxu0 %v7528_v23 }
0x11ce   : > { %v8311_v9 = vpop.f32.mrb[36].mxu0 }
0x11cf   : > { %v8312_v27 = vpop.f32.mrb[37].mxu0 }
0x11d0   : > { %v8313_v53 = vadd.f32 %v8312_v27, %v8311_v9 }
0x11d2   : > { %v7636_v36 = vadd.f32 %v8313_v53, %v8086_v32 }
0x11d4   : > { %v7639_v17 = vadd.f32 %v7636_v36, %v7412_v51 }
0x11d6   : > { %7642 = vadd.xlane.f32.xlu0 %v7639_v17 }
0x1263   : > { %v7643_v16 = vpop.xlane.xlu0 %7642 }
0x1264   : > { %v7644_v22 = vmul.f32 0.0078125, %v7643_v16 }
0x1266   : > { %v7645_v0 = vsub.f32 %v7639_v17, %v7644_v22 }
0x1268   : > { %v7646_v2 = vmul.f32 %v7645_v0, %v7645_v0 }
0x126a   : > { %7647 = vadd.xlane.f32.xlu0 %v7646_v2 }
0x12f7   : > { %v7648_v7 = vpop.xlane.xlu0 %7647 }
0x12f8   : > { %v7649_v24 = vmul.f32 0.0078125, %v7648_v7 }
0x12fa   : > { %v7650_v10 = vadd.f32 1e-05, %v7649_v24 }
0x12fc   : > { %9264 = vrsqrt.f32 %v7650_v10 }
0x1306   : > { %v9265_v5 = vpop.eup %9264 }
0x1307   : > { %v7652_v4 = vmul.f32 %v9265_v5, %v7645_v0 }
0x1309   : > { %v7659_v25 = vmul.f32 %v8087_v6, %v7652_v4 }
0x130b   : > { %v7666_v62 = vadd.f32 %v8088_v8, %v7659_v25 }
0x130d   : > { %7667 = vst [vmem:[%s1104_s23] sm:$0xff] %v7666_v62 }
0x130e   : > { %9653 = shalt.err (!%p9650_p3)
}
0x130f   : > { %s9654_s27 = scalar_lea.hbm %s11404_s1, 128  ;;  %s9658_s8 = scalar_lea.hbm %s11616_s2, 256 }
0x1310   : > { %p9655_p7 = scmp.ne.s32.totalorder %s11404_s1, %s9654_s27  ;;  %p9659_p4 = scmp.lt.u32.totalorder %s11404_s1, %s11616_s2 }
0x1311   : > { %p9660_p13 = scmp.lt.u32.totalorder %s9658_s8, %s9654_s27  ;;  %p9662_p0 = scmp.lt.u32.totalorder %s9654_s27, %s11404_s1 }
0x1312   : > { %p9656_p10 = pnand %p9655_p7, %p11617_p2 }
0x1313   : > { %p9661_p1 = por %p9660_p13, %p9659_p4 }
0x1314   : > { %p9657_p9 = pneg %p9656_p10 }
0x1315   : > { %p9663_p6 = por %p9662_p0, %p9661_p1 }
0x1317   : > { %p9664_p12 = pnand %p9663_p6, %p9657_p9 }
0x1319   : > { %9667 = shalt.err (!%p9664_p12)
}
0x131a   : > { %9072 = dma.vmem_to_hbm [thread:$0]  (%p11617_p2), %s11406_s12, 128, %s11404_s1, %s7669_s14  }
0x131b PF: > { %s11618_s11 = sld [smem:[#allocation33_spill]]  ;;  %s11619_s13 = sld [smem:[#allocation38_spill]] }
0x131c   : > { %p11621_p8 = scmp.ge.s32.totalorder %s9734_s30, 2 }
0x1321   : > { %s7694_s18 = sand.u32 1, %s11618_s11   ;;  %p11620_p5 = scmp.ne.s32.totalorder %s11619_s13, 0 }
0x1322   : > { %s7695_s15 = scalar_lea.sflag [#allocation4], %s7694_s18 }
0x1323   : > { %p9116_p11 = pnand %p11621_p8, %p11620_p5 }
0x1325   : > { %9717 = dma.done.wait (!%p9116_p11), %s7695_s15, 128  }
0x1326   : > { %9719 = vsyncadd (!%p9116_p11), %s7695_s15, 4294967168  ;;  %s11622_s30 = sld [smem:[#allocation35_spill]]  ;;  %s11623_s22 = sld [smem:[#allocation34_spill]] }
0x1327   : > { %s11624_s9 = sld [smem:[#allocation36_spill]]  ;;  %s11625_s8 = smov %s9726_s5 }
0x132c   : > { %p51_p3 = scmp.ge.s32.totalorder %s11622_s30, 4   ;;  %s11626_s5 = smov %s11623_s22 }
0x132e   :  { %53 = sbr.rel (!%p51_p3) target bundleno = 41 (0x29), region = 250 }
0x1335   :  { %7700 = vsyncpa [#allocation3], 1 }
0x1336   :  { %7702 = vsyncpa [#allocation3 + $0x1], 1 }
0x1337   :  { %7703 = vsyncpa [#allocation6], 1 }
0x1338   :  { %7705 = vsyncpa [#allocation6 + $0x1], 1 }
0x1339   :  { %7706 = vsyncpa [#allocation9], 1 }
0x133a   :  { %7708 = vsyncpa [#allocation9 + $0x1], 1 }
0x133b   :  { %7709 = vsyncpa [#allocation12], 1 }
0x133c   :  { %7710 = vsyncpa [#allocation15], 1 }
0x133d   :  { %7711 = vsyncpa [#allocation18], 1 }
0x133e   :  { %7712 = vsyncpa [#allocation21], 1 }
0x133f   :  { %7713 = vsyncpa [#allocation4], 1 }
0x1340   :  { %7715 = vsyncpa [#allocation4 + $0x1], 1 }

// kernel: tpu_custom_call.1
= control target key start
LH: loop header
LB: loop body
LE: loop exit
PB: predicated region body
PF: predicated region fallthrough
CT: control target
= control target key end

     0   :  { %s11448_s0 = inlined_call_operand.hbm [shape: f32[2,8,128], index: 0, kind: input, shape index: {}]   ;;  %s11449_s1 = inlined_call_operand.hbm [shape: f32[2,8,128], index: 1, kind: input, shape index: {}]   ;;  %s11450_s2 = inlined_call_operand.hbm [shape: f32[2,16,128], index: 2, kind: input, shape index: {}]   ;;  %s11451_s3 = inlined_call_operand.hbm [shape: f32[2,16,128], index: 3, kind: input, shape index: {}]   ;;  %s11452_s4 = inlined_call_operand.hbm [shape: f32[128,256], index: 4, kind: input, shape index: {}]   ;;  %s11453_s5 = inlined_call_operand.vmem [shape: f32[1,256], index: 5, kind: input, shape index: {}]   ;;  %s11454_s6 = inlined_call_operand.hbm [shape: f32[128,128], index: 6, kind: input, shape index: {}]   ;;  %s11455_s7 = inlined_call_operand.vmem [shape: f32[1,128], index: 7, kind: input, shape index: {}]   ;;  %s11456_s8 = inlined_call_operand.hbm [shape: f32[128,128], index: 8, kind: input, shape index: {}]   ;;  %s11457_s9 = inlined_call_operand.vmem [shape: f32[1,128], index: 9, kind: input, shape index: {}]   ;;  %s11458_s10 = inlined_call_operand.hbm [shape: f32[128,128], index: 10, kind: input, shape index: {}]   ;;  %s11459_s11 = inlined_call_operand.vmem [shape: f32[1,128], index: 11, kind: input, shape index: {}]   ;;  %s11460_s12 = inlined_call_operand.hbm [shape: f32[128,128], index: 12, kind: input, shape index: {}]   ;;  %s11461_s13 = inlined_call_operand.vmem [shape: f32[1,128], index: 13, kind: input, shape index: {}]   ;;  %s11462_s14 = inlined_call_operand.hbm [shape: f32[128,128], index: 14, kind: input, shape index: {}]   ;;  %s11463_s15 = inlined_call_operand.vmem [shape: f32[1,128], index: 15, kind: input, shape index: {}]   ;;  %s11464_s16 = inlined_call_operand.hbm [shape: f32[128,128], index: 16, kind: input, shape index: {}]   ;;  %s11465_s17 = inlined_call_operand.vmem [shape: f32[1,128], index: 17, kind: input, shape index: {}]   ;;  %s11466_s18 = inlined_call_operand.hbm [shape: f32[128,256], index: 18, kind: input, shape index: {}]   ;;  %s11467_s19 = inlined_call_operand.vmem [shape: f32[1,256], index: 19, kind: input, shape index: {}]   ;;  %s11468_s20 = inlined_call_operand.hbm [shape: f32[256,128], index: 20, kind: input, shape index: {}]   ;;  %s11469_s21 = inlined_call_operand.vmem [shape: f32[1,128], index: 21, kind: input, shape index: {}]   ;;  %s11470_s22 = inlined_call_operand.vmem [shape: f32[1,128], index: 22, kind: input, shape index: {}]   ;;  %s11471_s23 = inlined_call_operand.vmem [shape: f32[1,128], index: 23, kind: input, shape index: {}]   ;;  %s11472_s24 = inlined_call_operand.vmem [shape: f32[1,128], index: 24, kind: input, shape index: {}]   ;;  %s11473_s25 = inlined_call_operand.vmem [shape: f32[1,128], index: 25, kind: input, shape index: {}]   ;;  %s11474_s26 = inlined_call_operand.vmem [shape: f32[1,128], index: 26, kind: input, shape index: {}]   ;;  %s11475_s27 = inlined_call_operand.vmem [shape: f32[1,128], index: 27, kind: input, shape index: {}]   ;;  %s11476_s28 = inlined_call_operand.hbm [shape: f32[2,8,128], index: 28, kind: output, shape index: {}]  }
   0x1   :  { %11520 = sst [smem:[#allocation39_spill]] %s11448_s0 }
   0x2   :  { %11521 = sst [smem:[#allocation40_spill]] %s11449_s1 }
   0x3   :  { %11522 = sst [smem:[#allocation41_spill]] %s11450_s2 }
   0x4   :  { %11523 = sst [smem:[#allocation42_spill]] %s11451_s3 }
   0x5   :  { %11524 = sst [smem:[#allocation43_spill]] %s11452_s4 }
   0x6   :  { %11525 = sst [smem:[#allocation44_spill]] %s11453_s5 }
   0x7   :  { %11526 = sst [smem:[#allocation45_spill]] %s11454_s6 }
   0x8   :  { %11527 = sst [smem:[#allocation46_spill]] %s11455_s7 }
   0x9   :  { %11528 = sst [smem:[#allocation47_spill]] %s11456_s8 }
   0xa   :  { %11529 = sst [smem:[#allocation48_spill]] %s11457_s9 }
   0xb   :  { %11530 = sst [smem:[#allocation49_spill]] %s11458_s10 }
   0xc   :  { %11531 = sst [smem:[#allocation50_spill]] %s11459_s11 }
   0xd   :  { %11532 = sst [smem:[#allocation51_spill]] %s11460_s12 }
   0xe   :  { %11533 = sst [smem:[#allocation52_spill]] %s11461_s13 }
   0xf   :  { %11534 = sst [smem:[#allocation53_spill]] %s11462_s14 }
  0x10   :  { %11535 = sst [smem:[#allocation54_spill]] %s11463_s15 }
  0x11   :  { %11536 = sst [smem:[#allocation55_spill]] %s11465_s17 }
  0x12   :  { %11537 = sst [smem:[#allocation56_spill]] %s11466_s18 }
  0x13   :  { %11538 = sst [smem:[#allocation57_spill]] %s11467_s19 }
  0x14   :  { %11539 = sst [smem:[#allocation58_spill]] %s11469_s21 }
  0x15   :  { %11540 = sst [smem:[#allocation59_spill]] %s11470_s22 }
  0x16   :  { %11541 = sst [smem:[#allocation60_spill]] %s11471_s23 }
  0x17   :  { %11542 = sst [smem:[#allocation61_spill]] %s11472_s24 }
  0x18   :  { %11543 = sst [smem:[#allocation62_spill]] %s11473_s25 }
  0x19   :  { %11544 = sst [smem:[#allocation63_spill]] %s11474_s26 }
  0x1a   :  { %11545 = sst [smem:[#allocation64_spill]] %s11475_s27 }
  0x1b   :  { %11546 = sst [smem:[#allocation65_spill]] %s11476_s28 }
  0x1c   :  { %33 = vsyncpa [#allocation3], 0 }
  0x1d   :  { %35 = vsyncpa [#allocation3 + $0x1], 0 }
  0x1e   :  { %36 = vsyncpa [#allocation6], 0 }
  0x1f   :  { %38 = vsyncpa [#allocation6 + $0x1], 0 }
  0x20   :  { %39 = vsyncpa [#allocation9], 0 }
  0x21   :  { %41 = vsyncpa [#allocation9 + $0x1], 0 }
  0x22   :  { %42 = vsyncpa [#allocation12], 0 }
  0x23   :  { %43 = vsyncpa [#allocation15], 0 }
  0x24   :  { %44 = vsyncpa [#allocation18], 0 }
  0x25   :  { %45 = vsyncpa [#allocation21], 0 }
  0x26   :  { %46 = vsyncpa [#allocation4], 0 }
  0x27   :  { %48 = vsyncpa [#allocation4 + $0x1], 0  ;;  %s9911_s8 = smov 0   ;;  %s9913_s5 = smov 0  }
  0x28   :  { %s9915_s9 = smov 0   ;;  %s9917_s30 = smov 0  }
  0x29 LB: > { %11547 = sst [smem:[#allocation33_spill]] %s9722_s8  ;;  %s9736_s3 = smov [#allocation10]   ;;  %s9734_s30 = sphi %s9917_s30, %s11622_s30   ;;  %s9730_s9 = sphi %s9915_s9, %s11624_s9   ;;  %s9726_s5 = sphi %s9913_s5, %s11626_s5   ;;  %s9722_s8 = sphi %s9911_s8, %s11625_s8  }
  0x2a   : > { %11548 = sst [smem:[#allocation34_spill]] %s9730_s9  ;;  %s705_s6 = sshll.u32 %s9736_s3, 4  ;;  %s9937_s6 = int_to_ptr.vmem [resolvable:$true] %s705_s6 }
  0x2b   : > { %s9932_s10 = sadd.s32 4294967295, %s9734_s30   ;;  %p7904_p0 = scmp.ge.s32.totalorder %s9734_s30, 1 }
  0x2c   : > { %p11489_p1 = scmp.eq.s32.totalorder %s9932_s10, 0  ;;  %p693_p2 = scmp.lt.s32.totalorder %s9734_s30, 3 }
  0x2d   : > { %s9737_s11 = smov [#allocation11]   ;;  %s9738_s7 = smov [#allocation14]  }
  0x2e   : > { %p9939_p3 = pnand %p7904_p0, %p693_p2  ;;  %s721_s29 = sshll.u32 %s9737_s11, 4  ;;  %s9952_s29 = int_to_ptr.vmem [resolvable:$true] %s721_s29 }
  0x2f   : > { %s9954_s12 = sshll.u32 %s9738_s7, 4  ;;  %s11551_s3 = sld [smem:[#allocation43_spill]]  ;;  %s754_s12 = int_to_ptr.vmem [resolvable:$true] %s9954_s12 }
  0x30   : > { %s11549_s0 = scalar_select %p9939_p3, 1, 0 }
  0x31   : > { %p9074_p5 = pneg %p9939_p3 }
  0x33   : > { %p9948_p6 = pnand %p9074_p5, %p11489_p1 }
  0x35   : > { %s11550_s2 = scalar_select %p9948_p6, 1, 0 }
  0x36   : > { %s9268_s28 = scalar_lea.hbm %s11551_s3, 4096  ;;  %p9964_p8 = pneg %p9948_p6 }
  0x37   : > { %p9269_p7 = scmp.ne.s32.totalorder %s11551_s3, %s9268_s28  ;;  %p9275_p11 = scmp.lt.u32.totalorder %s9268_s28, %s11551_s3 }
  0x38   : > { %s11552_s11 = scalar_select %p9964_p8, 1, 0 }
  0x39   : > { %p9271_p9 = pnand %p9964_p8, %p9269_p7 }
  0x3b   : > { %p9272_p10 = pneg %p9271_p9 }
  0x3d   : > { %p9277_p12 = pnand %p9275_p11, %p9272_p10 }
  0x3f   : > { %9280 = shalt.err (!%p9277_p12)
}
  0x40   : > { %s9281_s26 = scalar_lea.vmem %s9937_s6, 4096  ;;  %p9289_p5 = scmp.lt.s32.totalorder %s9937_s6, %s9937_s6 }
  0x41   : > { %p9282_p13 = scmp.ne.s32.totalorder %s9937_s6, %s9281_s26  ;;  %p9290_p4 = scmp.lt.s32.totalorder %s9281_s26, %s9281_s26 }
  0x43   : > { %p9284_p0 = pnand %p9282_p13, %p9964_p8  ;;  %p9291_p7 = por %p9290_p4, %p9289_p5 }
  0x45   : > { %p9285_p2 = pneg %p9284_p0 }
  0x47   : > { %p9292_p9 = pnand %p9291_p7, %p9285_p2 }
  0x49   : > { %9295 = shalt.err (!%p9292_p9)
}
  0x4a   : > { %s11487_s27 = smov 256   ;;  %s11488_s21 = smov 16  }
  0x4b   : > { %9077 = dma.hbm_to_vmem [thread:$0]  (!%p9948_p6), %s11551_s3, 4096, %s9937_s6, [#allocation9], %s11487_s27, %s11487_s27, %s11488_s21  }
  0x4c   : > { %s11553_s19 = sld [smem:[#allocation45_spill]] }
  0x52   : > { %s9296_s26 = scalar_lea.hbm %s11553_s19, 2048 }
  0x53   : > { %p9297_p4 = scmp.ne.s32.totalorder %s11553_s19, %s9296_s26  ;;  %p9303_p12 = scmp.lt.u32.totalorder %s9296_s26, %s11553_s19 }
  0x55   : > { %p9299_p10 = pnand %p9297_p4, %p9964_p8 }
  0x57   : > { %p9300_p11 = pneg %p9299_p10 }
  0x59   : > { %p9305_p13 = pnand %p9303_p12, %p9300_p11 }
  0x5b   : > { %9308 = shalt.err (!%p9305_p13)
}
  0x5c   : > { %s9309_s6 = scalar_lea.vmem %s9952_s29, 2048  ;;  %p9317_p7 = scmp.lt.s32.totalorder %s9952_s29, %s9952_s29 }
  0x5d   : > { %p9310_p0 = scmp.ne.s32.totalorder %s9952_s29, %s9309_s6  ;;  %p9318_p9 = scmp.lt.s32.totalorder %s9309_s6, %s9309_s6 }
  0x5f   : > { %p9312_p2 = pnand %p9310_p0, %p9964_p8  ;;  %p9319_p4 = por %p9318_p9, %p9317_p7 }
  0x61   : > { %p9313_p5 = pneg %p9312_p2 }
  0x63   : > { %p9320_p10 = pnand %p9319_p4, %p9313_p5 }
  0x65   : > { %9323 = shalt.err (!%p9320_p10)
}
  0x66   : > { %s11493_s24 = smov 128   ;;  %s11495_s15 = smov 8  }
  0x67   : > { %9080 = dma.hbm_to_vmem [thread:$0]  (!%p9948_p6), %s11553_s19, 2048, %s9952_s29, [#allocation12], %s11493_s24, %s11493_s24, %s11495_s15  }
  0x68   : > { %s11554_s4 = sld [smem:[#allocation49_spill]] }
  0x6e   : > { %s9324_s7 = scalar_lea.hbm %s11554_s4, 2048 }
  0x6f   : > { %p9325_p11 = scmp.ne.s32.totalorder %s11554_s4, %s9324_s7  ;;  %p9331_p0 = scmp.lt.u32.totalorder %s9324_s7, %s11554_s4 }
  0x71   : > { %p9327_p12 = pnand %p9325_p11, %p9964_p8 }
  0x73   : > { %p9328_p13 = pneg %p9327_p12 }
  0x75   : > { %p9333_p2 = pnand %p9331_p0, %p9328_p13 }
  0x77   : > { %9336 = shalt.err (!%p9333_p2)
}
  0x78   : > { %s9337_s17 = scalar_lea.vmem %s754_s12, 2048  ;;  %p9345_p4 = scmp.lt.s32.totalorder %s754_s12, %s754_s12 }
  0x79   : > { %p9338_p5 = scmp.ne.s32.totalorder %s754_s12, %s9337_s17  ;;  %p9346_p10 = scmp.lt.s32.totalorder %s9337_s17, %s9337_s17 }
  0x7b   : > { %p9340_p7 = pnand %p9338_p5, %p9964_p8  ;;  %p9347_p1 = por %p9346_p10, %p9345_p4 }
  0x7d   : > { %p9341_p9 = pneg %p9340_p7 }
  0x7f   : > { %p9348_p3 = pnand %p9347_p1, %p9341_p9 }
  0x81   : > { %9351 = shalt.err (!%p9348_p3)
}
  0x82   : > { %9086 = dma.hbm_to_vmem [thread:$0]  (!%p9948_p6), %s11554_s4, 2048, %s754_s12, [#allocation15], %s11493_s24, %s11493_s24, %s11495_s15  }
  0x83   : > { %s9743_s21 = smov [#allocation17]   ;;  %s9744_s28 = smov [#allocation20]  }
  0x84   : > { %s785_s25 = sshll.u32 %s9743_s21, 4  ;;  %s817_s1 = sshll.u32 %s9744_s28, 4  ;;  %s786_s25 = int_to_ptr.vmem [resolvable:$true] %s785_s25  ;;  %s818_s1 = int_to_ptr.vmem [resolvable:$true] %s817_s1 }
  0x85   : > { %s11555_s14 = sld [smem:[#allocation53_spill]] }
  0x8b   : > { %s9352_s6 = scalar_lea.hbm %s11555_s14, 2048 }
  0x8c   : > { %p9353_p1 = scmp.ne.s32.totalorder %s11555_s14, %s9352_s6  ;;  %p9359_p12 = scmp.lt.u32.totalorder %s9352_s6, %s11555_s14 }
  0x8e   : > { %p9355_p3 = pnand %p9353_p1, %p9964_p8 }
  0x90   : > { %p9356_p11 = pneg %p9355_p3 }
  0x92   : > { %p9361_p13 = pnand %p9359_p12, %p9356_p11 }
  0x94   : > { %9364 = shalt.err (!%p9361_p13)
}
  0x95   : > { %s9365_s12 = scalar_lea.vmem %s786_s25, 2048  ;;  %p9373_p7 = scmp.lt.s32.totalorder %s786_s25, %s786_s25 }
  0x96   : > { %p9366_p0 = scmp.ne.s32.totalorder %s786_s25, %s9365_s12  ;;  %p9374_p9 = scmp.lt.s32.totalorder %s9365_s12, %s9365_s12 }
  0x98   : > { %p9368_p2 = pnand %p9366_p0, %p9964_p8  ;;  %p9375_p4 = por %p9374_p9, %p9373_p7 }
  0x9a   : > { %p9369_p5 = pneg %p9368_p2 }
  0x9c   : > { %p9376_p10 = pnand %p9375_p4, %p9369_p5 }
  0x9e   : > { %9379 = shalt.err (!%p9376_p10)
}
  0x9f   : > { %9092 = dma.hbm_to_vmem [thread:$0]  (!%p9948_p6), %s11555_s14, 2048, %s786_s25, [#allocation18], %s11493_s24, %s11493_s24, %s11495_s15  }
  0xa0   : > { %s11556_s18 = sld [smem:[#allocation56_spill]] }
  0xa6   : > { %s9380_s28 = scalar_lea.hbm %s11556_s18, 4096 }
  0xa7   : > { %p9381_p1 = scmp.ne.s32.totalorder %s11556_s18, %s9380_s28  ;;  %p9387_p12 = scmp.lt.u32.totalorder %s9380_s28, %s11556_s18 }
  0xa9   : > { %p9383_p3 = pnand %p9381_p1, %p9964_p8 }
  0xab   : > { %p9384_p11 = pneg %p9383_p3 }
  0xad   : > { %p9389_p13 = pnand %p9387_p12, %p9384_p11 }
  0xaf   : > { %9392 = shalt.err (!%p9389_p13)
}
  0xb0   : > { %s9393_s29 = scalar_lea.vmem %s818_s1, 4096  ;;  %p9401_p7 = scmp.lt.s32.totalorder %s818_s1, %s818_s1 }
  0xb1   : > { %p9394_p0 = scmp.ne.s32.totalorder %s818_s1, %s9393_s29  ;;  %p9402_p9 = scmp.lt.s32.totalorder %s9393_s29, %s9393_s29 }
  0xb3   : > { %p9396_p2 = pnand %p9394_p0, %p9964_p8  ;;  %p9403_p4 = por %p9402_p9, %p9401_p7 }
  0xb5   : > { %p9397_p5 = pneg %p9396_p2 }
  0xb7   : > { %p9404_p10 = pnand %p9403_p4, %p9397_p5 }
  0xb9   : > { %9407 = shalt.err (!%p9404_p10)
}
  0xba   : > { %s11557_s25 = smov 16   ;;  %s11558_s12 = smov 256  }
  0xbb   : > { %9098 = dma.hbm_to_vmem [thread:$0]  (!%p9948_p6), %s11556_s18, 4096, %s818_s1, [#allocation21], %s11558_s12, %s11558_s12, %s11557_s25  }
  0xbc   : > { %s7903_s27 = sadd.s32 4294967294, %s9734_s30   ;;  %s10080_s21 = sadd.s32 1, %s9734_s30  }
  0xbd   : > { %11559 = sst [smem:[#allocation35_spill]] %s10080_s21  ;;  %s61_s28 = sadd.s32 1, %s9730_s9 }
  0xbe   : > { %s58_s7 = ssub.s32 %s9734_s30, %s10080_s21  ;;  %p68_p1 = scmp.ne.s32.totalorder %s9730_s9, %s9726_s5 }
  0xbf   : > { %p59_p3 = scmp.eq.s32.totalorder %s58_s7, 0  ;;  %p69_p11 = scmp.eq.s32.totalorder %s9734_s30, 0 }
  0xc0   : > { %p74_p12 = scmp.ne.s32.totalorder %s9726_s5, %s9722_s8  ;;  %p680_p13 = scmp.eq.s32.totalorder %s9932_s10, 1 }
  0xc1   : > { %s10092_s26 = scalar_select %p59_p3, %s9730_s9, %s61_s28  }
  0xc2   : > { %p70_p0 = por %p69_p11, %p68_p1  ;;  %p11561_p2 = scmp.eq.s32.totalorder %s9932_s10, 0 }
  0xc3   : > { %11560 = sst [smem:[#allocation36_spill]] %s10092_s26  ;;  %p10100_p7 = por %p680_p13, %p68_p1 }
  0xc4   : > { %p10096_p5 = por %p11561_p2, %p74_p12  ;;  %p686_p9 = scmp.eq.s32.totalorder %s7903_s27, 1 }
  0xc5   : > { %s11563_s6 = scalar_select %p10100_p7, 1, 0 }
  0xc6   : > { %s11562_s1 = scalar_select %p10096_p5, 1, 0 }
  0xc7   : > { %11564 = sst [smem:[#allocation37_spill]] %s11563_s6  ;;  %p9128_p4 = scmp.lt.s32.totalorder %s9734_s30, 2 }
  0xc8   : > { %s10106_s17 = sand.u32 1, %s9730_s9   ;;  %p10108_p10 = por %p686_p9, %p74_p12 }
  0xc9   : > { %s11498_s25 = sshll.u32 %s10106_s17, 3  ;;  %s11499_s12 = sshll.u32 %s9734_s30, 7 }
  0xca   : > { %s11565_s29 = scalar_select %p10108_p10, 1, 0 }
  0xcb   : > { %p10114_p3 = pnand %p9128_p4, %p70_p0  ;;  %s11501_s3 = sand.u32 1, %s9734_s30  }
  0xcc   : > { %11566 = sst [smem:[#allocation38_spill]] %s11565_s29  ;;  %s11568_s7 = sld [smem:[#allocation40_spill]] }
  0xcd   : > { %s11567_s19 = scalar_select %p10114_p3, 1, 0 }
  0xce   : > { %s890_s15 = scalar_lea.vmem [#allocation5], %s11498_s25  ;;  %s10133_s18 = scalar_lea.sflag [#allocation6], %s11501_s3 }
  0xcf   : > { %s897_s4 = sshll.u32 %s890_s15, 4  ;;  %p10139_p11 = pneg %p10114_p3  ;;  %s10128_s4 = int_to_ptr.vmem [resolvable:$true] %s897_s4 }
  0xd1   : > { %s11569_s27 = scalar_select %p10139_p11, 1, 0 }
  0xd2   : > { %s10124_s24 = scalar_lea.hbm %s11568_s7, %s11499_s12  ;;  %s9413_s15 = scalar_lea.hbm %s11568_s7, 256 }
  0xd3   : > { %s9408_s26 = scalar_lea.hbm %s10124_s24, 128  ;;  %p9414_p0 = scmp.lt.u32.totalorder %s10124_s24, %s11568_s7 }
  0xd4   : > { %p9409_p1 = scmp.ne.s32.totalorder %s10124_s24, %s9408_s26  ;;  %p9415_p2 = scmp.lt.u32.totalorder %s9413_s15, %s9408_s26 }
  0xd5   : > { %p9417_p4 = scmp.lt.u32.totalorder %s9408_s26, %s10124_s24 }
  0xd6   : > { %p9411_p12 = pnand %p10139_p11, %p9409_p1  ;;  %p9416_p9 = por %p9415_p2, %p9414_p0 }
  0xd8   : > { %p9412_p13 = pneg %p9411_p12  ;;  %p9418_p10 = por %p9417_p4, %p9416_p9 }
  0xda   : > { %p9419_p7 = pnand %p9418_p10, %p9412_p13 }
  0xdc   : > { %9422 = shalt.err (!%p9419_p7)
}
  0xdd   : > { %s9423_s3 = scalar_lea.vmem %s10128_s4, 128  ;;  %s9745_s25 = smov [#allocation5]  }
  0xde   : > { %p9424_p1 = scmp.ne.s32.totalorder %s10128_s4, %s9423_s3  ;;  %s9428_s28 = sshll.u32 %s9745_s25, 4  ;;  %s9429_s28 = int_to_ptr.vmem [resolvable:$false] %s9428_s28 }
  0xdf   : > { %s9430_s14 = scalar_lea.vmem %s9429_s28, 256  ;;  %p9431_p6 = scmp.lt.s32.totalorder %s10128_s4, %s9429_s28 }
  0xe0   : > { %p9426_p12 = pnand %p9424_p1, %p10139_p11  ;;  %p9432_p8 = scmp.lt.s32.totalorder %s9430_s14, %s9423_s3 }
  0xe2   : > { %p9427_p5 = pneg %p9426_p12  ;;  %p9433_p0 = por %p9432_p8, %p9431_p6 }
  0xe4   : > { %p9434_p2 = pnand %p9433_p0, %p9427_p5 }
  0xe6   : > { %9437 = shalt.err (!%p9434_p2)
}
  0xe7   : > { %9108 = dma.hbm_to_vmem [thread:$0]  (!%p10114_p3), %s10124_s24, 128, %s10128_s4, %s10133_s18  }
  0xe8   : > { %s11570_s26 = sshll.u32 %s10106_s17, 4  ;;  %s9746_s14 = smov [#allocation13]  }
  0xe9   : > { %s908_s12 = scalar_lea.vmem [#allocation7], %s11570_s26  ;;  %s11571_s25 = smov %s11570_s26 }
  0xea   : > { %s915_s15 = sshll.u32 %s908_s12, 4  ;;  %s929_s28 = scalar_lea.vmem [#allocation8], %s11571_s25  ;;  %s10165_s15 = int_to_ptr.vmem [resolvable:$true] %s915_s15 }
  0xeb   : > { %s936_s3 = sshll.u32 %s929_s28, 4  ;;  %s737_s7 = sshll.u32 %s9746_s14, 4  ;;  %s10169_s3 = int_to_ptr.vmem [resolvable:$true] %s936_s3  ;;  %s738_s7 = int_to_ptr.vmem [resolvable:$true] %s737_s7 }
  0xec   : > { %s9747_s9 = smov [#allocation16]   ;;  %s11572_s6 = sld [smem:[#allocation47_spill]] }
  0xed   : > { %s769_s21 = sshll.u32 %s9747_s9, 4  ;;  %p11573_p8 = scmp.ne.s32.totalorder %s11552_s11, 0  ;;  %s770_s21 = int_to_ptr.vmem [resolvable:$true] %s769_s21 }
  0xf2   : > { %s9438_s23 = scalar_lea.hbm %s11572_s6, 2048 }
  0xf3   : > { %p9439_p6 = scmp.ne.s32.totalorder %s11572_s6, %s9438_s23  ;;  %p9445_p10 = scmp.lt.u32.totalorder %s9438_s23, %s11572_s6 }
  0xf5   : > { %p9441_p5 = pnand %p9439_p6, %p11573_p8 }
  0xf7   : > { %p9442_p7 = pneg %p9441_p5 }
  0xf9   : > { %p9447_p13 = pnand %p9445_p10, %p9442_p7 }
  0xfb   : > { %9450 = shalt.err (!%p9447_p13)
}
  0xfc   : > { %s9451_s25 = scalar_lea.vmem %s738_s7, 2048  ;;  %p9459_p12 = scmp.lt.s32.totalorder %s738_s7, %s738_s7 }
  0xfd   : > { %p9452_p9 = scmp.ne.s32.totalorder %s738_s7, %s9451_s25  ;;  %p9460_p0 = scmp.lt.s32.totalorder %s9451_s25, %s9451_s25 }
  0xff   : > { %p9454_p4 = pnand %p9452_p9, %p11573_p8  ;;  %p9461_p2 = por %p9460_p0, %p9459_p12 }
 0x101   : > { %p9455_p1 = pneg %p9454_p4 }
 0x103   : > { %p9462_p3 = pnand %p9461_p2, %p9455_p1 }
 0x105   : > { %9465 = shalt.err (!%p9462_p3)
}
 0x106   : > { %p11574_p6 = scmp.ne.s32.totalorder %s11550_s2, 0  ;;  %s11575_s8 = smov 8  }
 0x107   : > { %s11576_s9 = smov 128   ;;  %s11577_s24 = sld [smem:[#allocation51_spill]] }
 0x108   : > { %9083 = dma.hbm_to_vmem [thread:$0]  (!%p11574_p6), %s11572_s6, 2048, %s738_s7, [#allocation12], %s11576_s9, %s11576_s9, %s11575_s8  }
 0x10d   : > { %s9466_s4 = scalar_lea.hbm %s11577_s24, 2048 }
 0x10e   : > { %p9467_p5 = scmp.ne.s32.totalorder %s11577_s24, %s9466_s4  ;;  %p9473_p10 = scmp.lt.u32.totalorder %s9466_s4, %s11577_s24 }
 0x110   : > { %p9469_p3 = pnand %p9467_p5, %p11573_p8 }
 0x112   : > { %p9470_p7 = pneg %p9469_p3 }
 0x114   : > { %p9475_p13 = pnand %p9473_p10, %p9470_p7 }
 0x116   : > { %9478 = shalt.err (!%p9475_p13)
}
 0x117   : > { %s9479_s29 = scalar_lea.vmem %s770_s21, 2048  ;;  %p9487_p12 = scmp.lt.s32.totalorder %s770_s21, %s770_s21 }
 0x118   : > { %p9480_p9 = scmp.ne.s32.totalorder %s770_s21, %s9479_s29  ;;  %p9488_p0 = scmp.lt.s32.totalorder %s9479_s29, %s9479_s29 }
 0x11a   : > { %p9482_p4 = pnand %p9480_p9, %p11573_p8  ;;  %p9489_p2 = por %p9488_p0, %p9487_p12 }
 0x11c   : > { %p9483_p1 = pneg %p9482_p4 }
 0x11e   : > { %p9490_p11 = pnand %p9489_p2, %p9483_p1 }
 0x120   : > { %9493 = shalt.err (!%p9490_p11)
}
 0x121   : > { %9089 = dma.hbm_to_vmem [thread:$0]  (!%p11574_p6), %s11577_s24, 2048, %s770_s21, [#allocation15], %s11576_s9, %s11576_s9, %s11575_s8  }
 0x122   : > { %s9748_s23 = smov [#allocation19]   ;;  %s9749_s14 = smov [#allocation22]  }
 0x123   : > { %s801_s28 = sshll.u32 %s9748_s23, 4  ;;  %s833_s4 = sshll.u32 %s9749_s14, 4  ;;  %s802_s28 = int_to_ptr.vmem [resolvable:$true] %s801_s28  ;;  %s834_s4 = int_to_ptr.vmem [resolvable:$true] %s833_s4 }
 0x124   : > { %s9494_s25 = scalar_lea.hbm %s11464_s16, 2048 }
 0x125   : > { %p9495_p11 = scmp.ne.s32.totalorder %s11464_s16, %s9494_s25  ;;  %p9501_p7 = scmp.lt.u32.totalorder %s9494_s25, %s11464_s16 }
 0x127   : > { %p9497_p5 = pnand %p9495_p11, %p11573_p8 }
 0x129   : > { %p9498_p3 = pneg %p9497_p5 }
 0x12b   : > { %p9503_p10 = pnand %p9501_p7, %p9498_p3 }
 0x12d   : > { %9506 = shalt.err (!%p9503_p10)
}
 0x12e   : > { %s9507_s21 = scalar_lea.vmem %s802_s28, 2048  ;;  %p9515_p1 = scmp.lt.s32.totalorder %s802_s28, %s802_s28 }
 0x12f   : > { %p9508_p13 = scmp.ne.s32.totalorder %s802_s28, %s9507_s21  ;;  %p9516_p12 = scmp.lt.s32.totalorder %s9507_s21, %s9507_s21 }
 0x131   : > { %p9510_p9 = pnand %p9508_p13, %p11573_p8  ;;  %p9517_p0 = por %p9516_p12, %p9515_p1 }
 0x133   : > { %p9511_p4 = pneg %p9510_p9 }
 0x135   : > { %p9518_p2 = pnand %p9517_p0, %p9511_p4 }
 0x137   : > { %9521 = shalt.err (!%p9518_p2)
}
 0x138   : > { %9095 = dma.hbm_to_vmem [thread:$0]  (!%p11574_p6), %s11464_s16, 2048, %s802_s28, [#allocation18], %s11576_s9, %s11576_s9, %s11575_s8  }
 0x139   : > { %s9522_s14 = scalar_lea.hbm %s11468_s20, 4096 }
 0x13a   : > { %p9523_p11 = scmp.ne.s32.totalorder %s11468_s20, %s9522_s14  ;;  %p9529_p7 = scmp.lt.u32.totalorder %s9522_s14, %s11468_s20 }
 0x13c   : > { %p9525_p5 = pnand %p9523_p11, %p11573_p8 }
 0x13e   : > { %p9526_p3 = pneg %p9525_p5 }
 0x140   : > { %p9531_p10 = pnand %p9529_p7, %p9526_p3 }
 0x142   : > { %9534 = shalt.err (!%p9531_p10)
}
 0x143   : > { %s9535_s22 = scalar_lea.vmem %s834_s4, 4096  ;;  %p9543_p1 = scmp.lt.s32.totalorder %s834_s4, %s834_s4 }
 0x144   : > { %p9536_p13 = scmp.ne.s32.totalorder %s834_s4, %s9535_s22  ;;  %p9544_p12 = scmp.lt.s32.totalorder %s9535_s22, %s9535_s22 }
 0x146   : > { %p9538_p9 = pnand %p9536_p13, %p11573_p8  ;;  %p9545_p0 = por %p9544_p12, %p9543_p1 }
 0x148   : > { %p9539_p4 = pneg %p9538_p9 }
 0x14a   : > { %p9546_p2 = pnand %p9545_p0, %p9539_p4 }
 0x14c   : > { %9549 = shalt.err (!%p9546_p2)
}
 0x14d   : > { %9101 = dma.hbm_to_vmem [thread:$0]  (!%p11574_p6), %s11468_s20, 4096, %s834_s4, [#allocation21], %s11576_s9, %s11576_s9, %s11575_s8  }
 0x14e   : > { %s11578_s11 = sshll.u32 %s9734_s30, 7  ;;  %s11579_s7 = sld [smem:[#allocation39_spill]] }
 0x14f   : > { %s11580_s2 = sshll.u32 %s10106_s17, 3  ;;  %s8093_s12 = sshll.u32 %s9734_s30, 8 }
 0x150   : > { %s872_s14 = scalar_lea.vmem [#allocation2], %s11580_s2  ;;  %s11581_s4 = sld [smem:[#allocation41_spill]] }
 0x151   : > { %s879_s26 = sshll.u32 %s872_s14, 4  ;;  %s869_s28 = scalar_lea.sflag [#allocation3], %s10106_s17  ;;  %s10265_s26 = int_to_ptr.vmem [resolvable:$true] %s879_s26 }
 0x152   : > { %p11582_p6 = scmp.ne.s32.totalorder %s11569_s27, 0 }
 0x154   : > { %s10260_s23 = scalar_lea.hbm %s11579_s7, %s11578_s11  ;;  %s9555_s6 = scalar_lea.hbm %s11579_s7, 256 }
 0x155   : > { %s9550_s21 = scalar_lea.hbm %s10260_s23, 128  ;;  %p9556_p3 = scmp.lt.u32.totalorder %s10260_s23, %s11579_s7 }
 0x156   : > { %s10272_s22 = scalar_lea.hbm %s11581_s4, %s8093_s12  ;;  %p9551_p8 = scmp.ne.s32.totalorder %s10260_s23, %s9550_s21 }
 0x157   : > { %p9557_p7 = scmp.lt.u32.totalorder %s9555_s6, %s9550_s21  ;;  %p9559_p13 = scmp.lt.u32.totalorder %s9550_s21, %s10260_s23 }
 0x158   : > { %p9553_p11 = pnand %p9551_p8, %p11582_p6 }
 0x159   : > { %p9558_p10 = por %p9557_p7, %p9556_p3 }
 0x15a   : > { %p9554_p5 = pneg %p9553_p11 }
 0x15b   : > { %p9560_p9 = por %p9559_p13, %p9558_p10 }
 0x15d   : > { %p9561_p4 = pnand %p9560_p9, %p9554_p5 }
 0x15f   : > { %9564 = shalt.err (!%p9561_p4)
}
 0x160   : > { %s9565_s17 = scalar_lea.vmem %s10265_s26, 128  ;;  %s9750_s25 = smov [#allocation2]  }
 0x161   : > { %p9566_p1 = scmp.ne.s32.totalorder %s10265_s26, %s9565_s17  ;;  %s9570_s29 = sshll.u32 %s9750_s25, 4  ;;  %s9571_s29 = int_to_ptr.vmem [resolvable:$false] %s9570_s29 }
 0x162   : > { %s9572_s11 = scalar_lea.vmem %s9571_s29, 256  ;;  %p9573_p2 = scmp.lt.s32.totalorder %s10265_s26, %s9571_s29 }
 0x163   : > { %p9568_p12 = pnand %p9566_p1, %p11582_p6  ;;  %p9574_p8 = scmp.lt.s32.totalorder %s9572_s11, %s9565_s17 }
 0x165   : > { %p9569_p0 = pneg %p9568_p12  ;;  %p9575_p11 = por %p9574_p8, %p9573_p2 }
 0x167   : > { %p9576_p3 = pnand %p9575_p11, %p9569_p0 }
 0x169   : > { %9579 = shalt.err (!%p9576_p3)
}
 0x16a   : > { %p11583_p5 = scmp.ne.s32.totalorder %s11567_s19, 0  ;;  %s9580_s21 = scalar_lea.hbm %s10272_s22, 256 }
 0x16b   : > { %p9581_p7 = scmp.ne.s32.totalorder %s10272_s22, %s9580_s21  ;;  %s9585_s2 = scalar_lea.hbm %s11581_s4, 512 }
 0x16c   : > { %9105 = dma.hbm_to_vmem [thread:$0]  (!%p11583_p5), %s10260_s23, 128, %s10265_s26, %s869_s28  }
 0x16d   : > { %p9583_p10 = pnand %p9581_p7, %p11582_p6  ;;  %p9586_p9 = scmp.lt.u32.totalorder %s10272_s22, %s11581_s4 }
 0x16e   : > { %p9587_p4 = scmp.lt.u32.totalorder %s9585_s2, %s9580_s21  ;;  %p9589_p12 = scmp.lt.u32.totalorder %s9580_s21, %s10272_s22 }
 0x16f   : > { %p9584_p13 = pneg %p9583_p10 }
 0x170   : > { %p9588_p1 = por %p9587_p4, %p9586_p9 }
 0x172   : > { %p9590_p0 = por %p9589_p12, %p9588_p1 }
 0x174   : > { %p9591_p2 = pnand %p9590_p0, %p9584_p13 }
 0x176   : > { %9594 = shalt.err (!%p9591_p2)
}
 0x177   : > { %s9595_s23 = scalar_lea.vmem %s10165_s15, 256  ;;  %s9751_s26 = smov [#allocation7]  }
 0x178   : > { %p9596_p8 = scmp.ne.s32.totalorder %s10165_s15, %s9595_s23  ;;  %s9600_s28 = sshll.u32 %s9751_s26, 4  ;;  %s9601_s28 = int_to_ptr.vmem [resolvable:$false] %s9600_s28 }
 0x179   : > { %s9602_s25 = scalar_lea.vmem %s9601_s28, 512  ;;  %p9603_p7 = scmp.lt.s32.totalorder %s10165_s15, %s9601_s28 }
 0x17a   : > { %p9598_p11 = pnand %p9596_p8, %p11582_p6  ;;  %p9604_p10 = scmp.lt.s32.totalorder %s9602_s25, %s9595_s23 }
 0x17c   : > { %p9599_p3 = pneg %p9598_p11  ;;  %p9605_p9 = por %p9604_p10, %p9603_p7 }
 0x17e   : > { %p9606_p4 = pnand %p9605_p9, %p9599_p3 }
 0x180   : > { %9609 = shalt.err (!%p9606_p4)
}
 0x181   : > { %9111 = dma.hbm_to_vmem [thread:$0]  (!%p11583_p5), %s10272_s22, 256, %s10165_s15, %s10133_s18, %s11576_s9, %s11576_s9, %s11575_s8  }
 0x182   : > { %s11584_s21 = sld [smem:[#allocation42_spill]]  ;;  %s11585_s6 = sand.u32 1, %s9734_s30  }
 0x183   : > { %s10330_s2 = scalar_lea.sflag [#allocation9], %s11585_s6 }
 0x188   : > { %s10326_s13 = scalar_lea.hbm %s11584_s21, %s8093_s12  ;;  %s9615_s15 = scalar_lea.hbm %s11584_s21, 512 }
 0x189   : > { %s9610_s14 = scalar_lea.hbm %s10326_s13, 256  ;;  %p9616_p0 = scmp.lt.u32.totalorder %s10326_s13, %s11584_s21 }
 0x18a   : > { %p9611_p13 = scmp.ne.s32.totalorder %s10326_s13, %s9610_s14  ;;  %p9617_p2 = scmp.lt.u32.totalorder %s9615_s15, %s9610_s14 }
 0x18b   : > { %p9619_p11 = scmp.lt.u32.totalorder %s9610_s14, %s10326_s13 }
 0x18c   : > { %p9613_p1 = pnand %p9611_p13, %p11582_p6  ;;  %p9618_p8 = por %p9617_p2, %p9616_p0 }
 0x18e   : > { %p9614_p12 = pneg %p9613_p1  ;;  %p9620_p3 = por %p9619_p11, %p9618_p8 }
 0x190   : > { %p9621_p7 = pnand %p9620_p3, %p9614_p12 }
 0x192   : > { %9624 = shalt.err (!%p9621_p7)
}
 0x193   : > { %s9625_s12 = scalar_lea.vmem %s10169_s3, 256  ;;  %s9752_s26 = smov [#allocation8]  }
 0x194   : > { %p9626_p10 = scmp.ne.s32.totalorder %s10169_s3, %s9625_s12  ;;  %s9630_s28 = sshll.u32 %s9752_s26, 4  ;;  %s9631_s28 = int_to_ptr.vmem [resolvable:$false] %s9630_s28 }
 0x195   : > { %s9632_s25 = scalar_lea.vmem %s9631_s28, 512  ;;  %p9633_p13 = scmp.lt.s32.totalorder %s10169_s3, %s9631_s28 }
 0x196   : > { %p9628_p9 = pnand %p9626_p10, %p11582_p6  ;;  %p9634_p1 = scmp.lt.s32.totalorder %s9632_s25, %s9625_s12 }
 0x198   : > { %p9629_p4 = pneg %p9628_p9  ;;  %p9635_p0 = por %p9634_p1, %p9633_p13 }
 0x19a   : > { %p9636_p2 = pnand %p9635_p0, %p9629_p4 }
 0x19c   : > { %9639 = shalt.err (!%p9636_p2)
}
 0x19d   : > { %9114 = dma.hbm_to_vmem [thread:$0]  (!%p11583_p5), %s10326_s13, 256, %s10169_s3, %s10330_s2, %s11576_s9, %s11576_s9, %s11575_s8  }
 0x19e   : > { %p11586_p6 = scmp.ne.s32.totalorder %s11549_s0, 0 }
 0x19f   : > { %s10360_s27 = sand.u32 (!%p11586_p6), 1, %s9726_s5   ;;  %p11587_p12 = scmp.ne.s32.totalorder (!%p11586_p6), %s11562_s1, 0 }
 0x1a0   : > { %948 = sbr.rel (%p11586_p6) target bundleno = 4891 (0x131b), region = 132  ;;  %s10363_s29 = sshll.u32 (!%p11586_p6), %s10360_s27, 3 }
 0x1a1   : > { %s951_s19 = scalar_lea.sflag (!%p11586_p6), [#allocation3], %s10360_s27  ;;  %s954_s11 = scalar_lea.vmem (!%p11586_p6), [#allocation2], %s10363_s29 }
 0x1a7   : > { %9685 = dma.done.wait (%p11587_p12), %s951_s19, 128  }
 0x1a8   : > { %9687 = vsyncadd (%p11587_p12), %s951_s19, 4294967168  ;;  %s959_s0 = sand.u32 1, %s9932_s10   ;;  %s963_s8 = scalar_lea.vmem [#allocation5], %s10363_s29 }
 0x1a9   : > { %s960_s3 = scalar_lea.sflag [#allocation6], %s959_s0 }
 0x1aa   : > { %9689 = dma.done.wait (%p11587_p12), %s960_s3, 384  }
 0x1ab   : > { %9691 = vsyncadd (%p11587_p12), %s960_s3, 4294966912  ;;  %s7928_s9 = sshll.u32 %s10360_s27, 4  ;;  %s978_s6 = scalar_lea.sflag [#allocation9], %s959_s0 }
 0x1ac   : > { %s10378_s13 = scalar_lea.vmem [#allocation7], %s7928_s9  ;;  %s10380_s2 = scalar_lea.vmem [#allocation8], %s7928_s9 }
 0x1ad   : > { %9693 = dma.done.wait (%p11587_p12), %s978_s6, 256  }
 0x1ae   : > { %9695 = vsyncadd (%p11587_p12), %s978_s6, 4294967040  ;;  %p11588_p5 = scmp.eq.s32.totalorder %s9932_s10, 0 }
 0x1b0   : > { %9697 = dma.done.wait (%p11588_p5), [#allocation9], 4096   ;;  %p11589_p8 = pmov %p11588_p5 }
 0x1b1   : > { %p11590_p11 = pmov %p11588_p5 }
 0x1b2   : > { %9699 = vsyncadd (%p11589_p8), [#allocation9], 4294963200 }
 0x1b3   : > { %9701 = dma.done.wait (%p11590_p11), [#allocation12], 4096   ;;  %p11591_p3 = pmov %p11588_p5 }
 0x1b5   : > { %9703 = vsyncadd (%p11591_p3), [#allocation12], 4294963200  ;;  %p11592_p7 = pmov %p11591_p3 }
 0x1b6   : > { %p11593_p10 = pmov %p11591_p3 }
 0x1b7   : > { %9705 = dma.done.wait (%p11592_p7), [#allocation15], 4096  }
 0x1b8   : > { %9707 = vsyncadd (%p11593_p10), [#allocation15], 4294963200  ;;  %p11594_p9 = pmov %p11591_p3 }
 0x1b9   : > { %p11595_p4 = pmov %p11591_p3 }
 0x1ba   : > { %9709 = dma.done.wait (%p11594_p9), [#allocation18], 4096  }
 0x1bb   : > { %9711 = vsyncadd (%p11595_p4), [#allocation18], 4294963200  ;;  %p11596_p13 = pmov %p11591_p3 }
 0x1bc   : > { %p11597_p1 = pmov %p11591_p3 }
 0x1bd   : > { %9713 = dma.done.wait (%p11596_p13), [#allocation21], 8192  }
 0x1be   : > { %9715 = vsyncadd (%p11597_p1), [#allocation21], 4294959104  ;;  %v9753_v0 = vmov 0.0   ;;  %v9754_v1 = vmov 0.0|0.0   ;;  %vm9755_vm0 = vmmov 0   ;;  %v1113_v2 = vld [vmem:[#allocation10 + $0x8] sm:$0xff] }
 0x1bf   : > { %1220 = vmatprep.mubr.f32.mxu0 %v9753_v0  ;;  %8748 = vmatprep.subr.bf16.mxu1 %v9754_v1  ;;  %v1115_v3 = vld [vmem:[#allocation10 + $0x18] sm:$0xff]  ;;  %v1112_v4 = vld [vmem:[#allocation10] sm:$0xff]  ;;  %v1114_v6 = vld [vmem:[#allocation10 + $0x10] sm:$0xff]  ;;  %s11598_s17 = sld [smem:[#allocation44_spill]]  ;;  %s9756_s18 = smov 96   ;;  %vm2202_vm1 = vcmask 130048  }
 0x1c0   : > { %8346 = vmatprep.mubr.msk.f32.mxu1 %vm9755_vm0, %v9753_v0  ;;  %v8716_v5 = vpack.c.bf16 %v1115_v3, %v1113_v2  ;;  %v1117_v7 = vld [vmem:[#allocation10 + $0x28] sm:$0xff]  ;;  %v1119_v8 = vld [vmem:[#allocation10 + $0x38] sm:$0xff]  ;;  %v8718_v9 = vpack.c.bf16 %v1114_v6, %v1112_v4  ;;  %v1116_v11 = vld [vmem:[#allocation10 + $0x20] sm:$0xff]  ;;  %s9757_s15 = smov 112   ;;  %s9758_s22 = smov 64   ;;  %vm2811_vm2 = vcmask 64512  }
 0x1c1   : > { %v8720_v10 = vpack.c.bf16 %v1119_v8, %v1117_v7  ;;  %v1118_v12 = vld [vmem:[#allocation10 + $0x30] sm:$0xff]  ;;  %v1121_v13 = vld [vmem:[#allocation10 + $0x48] sm:$0xff]  ;;  %v1123_v14 = vld [vmem:[#allocation10 + $0x58] sm:$0xff]  ;;  %s9759_s23 = smov 80   ;;  %s9760_s12 = smov 48   ;;  %vm3785_vm3 = vcmask 261120  }
 0x1c2   : > { %8717 = vmatprep.subr.bf16.mxu0 %v8716_v5  ;;  %v8722_v15 = vpack.c.bf16 %v1118_v12, %v1116_v11  ;;  %v8724_v16 = vpack.c.bf16 %v1123_v14, %v1121_v13  ;;  %v1120_v17 = vld [vmem:[#allocation10 + $0x40] sm:$0xff]  ;;  %v1122_v18 = vld [vmem:[#allocation10 + $0x50] sm:$0xff]  ;;  %v1125_v19 = vld [vmem:[#allocation10 + $0x68] sm:$0xff]  ;;  %s9761_s26 = smov 32   ;;  %s9762_s28 = smov 16   ;;  %vm3787_vm4 = vcmask 392192  }
 0x1c3   : > { %8719 = vmatpush1.bf16.msra.mxu0 %v8718_v9  ;;  %v1127_v20 = vld [vmem:[#allocation10 + $0x78] sm:$0xff]  ;;  %v8726_v21 = vpack.c.bf16 %v1122_v18, %v1120_v17  ;;  %v1124_v23 = vld [vmem:[#allocation10 + $0x60] sm:$0xff]  ;;  %v1126_v24 = vld [vmem:[#allocation10 + $0x70] sm:$0xff]  ;;  %s11599_s0 = sld [smem:[#allocation46_spill]]  ;;  %vm3789_vm5 = vcmask 523264   ;;  %vm3791_vm6 = vcmask 654336  }
 0x1c4   : > { %8721 = vmatprep.subr.bf16.mxu0 %v8720_v10  ;;  %v8728_v22 = vpack.c.bf16 %v1127_v20, %v1125_v19  ;;  %v1129_v25 = vld [vmem:[#allocation10 + $0x88] sm:$0xff]  ;;  %v1131_v26 = vld [vmem:[#allocation10 + $0x98] sm:$0xff]  ;;  %v1227_v27 = vld [vmem:[#allocation11] sm:$0xff]  ;;  %v8730_v29 = vpack.c.bf16 %v1126_v24, %v1124_v23  ;;  %vm3793_vm7 = vcmask 785408   ;;  %vm3795_vm8 = vcmask 916480   ;;  %s11600_s6 = sld [smem:[#allocation48_spill]] }
 0x1c5   : > { %v1228_v28 = vld [vmem:[#allocation11 + $0x8] sm:$0xff]  ;;  %v1229_v31 = vld [vmem:[#allocation11 + $0x10] sm:$0xff]  ;;  %v1230_v32 = vld [vmem:[#allocation11 + $0x18] sm:$0xff]  ;;  %v8732_v33 = vpack.c.bf16 %v1131_v26, %v1129_v25  ;;  %s11606_s9 = sld [smem:[#allocation50_spill]]  ;;  %s11610_s1 = sld [smem:[#allocation62_spill]] }
 0x1c6   : > { %v8749_v30 = vpack.c.bf16 %v1228_v28, %v1227_v27  ;;  %v1128_v34 = vld [vmem:[#allocation10 + $0x80] sm:$0xff]  ;;  %v1130_v35 = vld [vmem:[#allocation10 + $0x90] sm:$0xff]  ;;  %v1133_v36 = vld [vmem:[#allocation10 + $0xa8] sm:$0xff]  ;;  %v8752_v38 = vpack.c.bf16 %v1230_v32, %v1229_v31  ;;  %v9764_v32 = vmov 1934713408   ;;  %s11611_s25 = sld [smem:[#allocation57_spill]] }
 0x1c7   : > { %8723 = vmatpush1.bf16.msra.mxu0 %v8722_v15  ;;  %v1135_v37 = vld [vmem:[#allocation10 + $0xb8] sm:$0xff]  ;;  %v1231_v39 = vld [vmem:[#allocation11 + $0x20] sm:$0xff]  ;;  %v1232_v40 = vld [vmem:[#allocation11 + $0x28] sm:$0xff]  ;;  %v8734_v41 = vpack.c.bf16 %v1130_v35, %v1128_v34  ;;  %v1146_v15 = vlaneseq  ;;  %s11613_s3 = sld [smem:[#allocation37_spill]]  ;;  %s7669_s14 = scalar_lea.sflag [#allocation4], %s10360_s27 }
 0x1c8   : > { %8725 = vmatprep.subr.bf16.mxu0 %v8724_v16  ;;  %8750 = vmatpush3.bf16.msra.mxu1 %v8749_v30  ;;  %v8736_v42 = vpack.c.bf16 %v1135_v37, %v1133_v36  ;;  %v1132_v43 = vld [vmem:[#allocation10 + $0xa0] sm:$0xff]  ;;  %v1134_v44 = vld [vmem:[#allocation10 + $0xb0] sm:$0xff]  ;;  %v1137_v45 = vld [vmem:[#allocation10 + $0xc8] sm:$0xff]  ;;  %v8755_v47 = vpack.c.bf16 %v1232_v40, %v1231_v39  ;;  %v9763_v30 = vmov 1983009808  }
 0x1c9   : > { %8751 = vmatprep.subr.bf16.mxu1 %v9754_v1  ;;  %v1139_v46 = vld [vmem:[#allocation10 + $0xd8] sm:$0xff]  ;;  %v1233_v48 = vld [vmem:[#allocation11 + $0x30] sm:$0xff]  ;;  %v8738_v50 = vpack.c.bf16 %v1134_v44, %v1132_v43  ;;  %v1136_v52 = vld [vmem:[#allocation10 + $0xc0] sm:$0xff]  ;;  %v10427_v16 = vshrl.u32 %v1146_v15, 7  ;;  %v1345_v31 = vunpack.c.l.s4 %v9763_v30 }
 0x1ca   : > { %v1234_v49 = vld [vmem:[#allocation11 + $0x38] sm:$0xff]  ;;  %v8740_v51 = vpack.c.bf16 %v1139_v46, %v1137_v45  ;;  %v1138_v53 = vld [vmem:[#allocation10 + $0xd0] sm:$0xff]  ;;  %v1141_v54 = vld [vmem:[#allocation10 + $0xe8] sm:$0xff] }
 0x1cb   : > { %8727 = vmatpush1.bf16.msra.mxu0 %v8726_v21  ;;  %v1143_v55 = vld [vmem:[#allocation10 + $0xf8] sm:$0xff]  ;;  %v8758_v56 = vpack.c.bf16 %v1234_v49, %v1233_v48  ;;  %v1235_v57 = vld [vmem:[#allocation11 + $0x40] sm:$0xff]  ;;  %v1236_v58 = vld [vmem:[#allocation11 + $0x48] sm:$0xff]  ;;  %v8742_v59 = vpack.c.bf16 %v1138_v53, %v1136_v52  ;;  %v1148_v17 = vsub.s32 0, %v10427_v16  ;;  %v1346_v34 = vunpack.c.0.s8 %v1345_v31 }
 0x1cc   : > { %8729 = vmatprep.subr.bf16.mxu0 %v8728_v22  ;;  %8753 = vmatpush3.bf16.msra.mxu1 %v8752_v38  ;;  %v8744_v60 = vpack.c.bf16 %v1143_v55, %v1141_v54  ;;  %v1140_v61 = vld [vmem:[#allocation10 + $0xe0] sm:$0xff]  ;;  %v1142_v62 = vld [vmem:[#allocation10 + $0xf0] sm:$0xff]  ;;  %v8761_v63 = vpack.c.bf16 %v1236_v58, %v1235_v57  ;;  %v1238_v3 = vld [vmem:[#allocation11 + $0x58] sm:$0xff]  ;;  %v1152_v22 = vsub.s32 1, %v10427_v16 }
 0x1cd   : > { %8754 = vmatprep.subr.bf16.mxu1 %v9754_v1  ;;  %v1237_v2 = vld [vmem:[#allocation11 + $0x50] sm:$0xff]  ;;  %v8746_v4 = vpack.c.bf16 %v1142_v62, %v1140_v61  ;;  %v1105_v5 = vld [vmem:[%s954_s11] sm:$0xff]  ;;  %v1242_v13 = vld [vmem:[#allocation11 + $0x78] sm:$0xff]  ;;  %v10473_v38 = vsub.s32 %v1346_v34, %v10427_v16  ;;  %p11617_p2 = scmp.ne.s32.totalorder %s11613_s3, 0 }
 0x1ce   : > { %v1106_v6 = vld [vmem:[%s963_s8] sm:$0xff]  ;;  %v8764_v7 = vpack.c.bf16 %v1238_v3, %v1237_v2  ;;  %v1239_v9 = vld [vmem:[#allocation11 + $0x60] sm:$0xff]  ;;  %v1240_v10 = vld [vmem:[#allocation11 + $0x68] sm:$0xff] }
 0x1cf   : > { %8731 = vmatpush1.bf16.msra.mxu0 %v8730_v29  ;;  %v1111_v8 = vadd.f32 %v1106_v6, %v1105_v5  ;;  %v8767_v11 = vpack.c.bf16 %v1240_v10, %v1239_v9  ;;  %v1241_v12 = vld [vmem:[#allocation11 + $0x70] sm:$0xff]  ;;  %v1144_v18 = vld [vmem:[%s11598_s17] sm:$0x3]  ;;  %s11602_s17 = sld [smem:[#allocation59_spill]]  ;;  %vm10914_vm9 = vmpackc.low %vm2202_vm1, %vm2202_vm1 }
 0x1d0   : > { %8733 = vmatprep.subr.bf16.mxu0 %v8732_v33  ;;  %8756 = vmatpush3.bf16.msra.mxu1 %v8755_v47  ;;  %v8770_v14 = vpack.c.bf16 %v1242_v13, %v1241_v12  ;;  %v1149_v19 = vrot.slane %v1144_v18, %v1148_v17  ;;  %v1153_v24 = vrot.slane %v1144_v18, %v1152_v22  ;;  %v7940_v26 = vld [vmem:[%s11599_s0] ss:$0 sm:$0xff]  ;;  %v1409_v33 = vunpack.c.l.s4 %v9764_v32  ;;  %s11603_s0 = sld [smem:[#allocation60_spill]] }
 0x1d1   : > { %8757 = vmatprep.subr.bf16.mxu1 %v9754_v1 }
 0x1d2   : > { %v1410_v37 = vunpack.c.0.s8 %v1409_v33 }
 0x1d3   : > { %8735 = vmatpush1.bf16.msra.mxu0 %v8734_v41 }
 0x1d4   : > { %8737 = vmatprep.subr.bf16.mxu0 %v8736_v42  ;;  %8759 = vmatpush3.bf16.msra.mxu1 %v8758_v56  ;;  %v10478_v45 = vsub.s32 %v1410_v37, %v10427_v16 }
 0x1d5   : > { %8760 = vmatprep.subr.bf16.mxu1 %v9754_v1 }
 0x1d7   : > { %8739 = vmatpush1.bf16.msra.mxu0 %v8738_v50 }
 0x1d8   : > { %8741 = vmatprep.subr.bf16.mxu0 %v8740_v51  ;;  %8762 = vmatpush3.bf16.msra.mxu1 %v8761_v63 }
 0x1d9   : > { %8763 = vmatprep.subr.bf16.mxu1 %v9754_v1 }
 0x1db   : > { %8743 = vmatpush1.bf16.msra.mxu0 %v8742_v59 }
 0x1dc   : > { %8745 = vmatprep.subr.bf16.mxu0 %v8744_v60  ;;  %8765 = vmatpush3.bf16.msra.mxu1 %v8764_v7 }
 0x1dd   : > { %8766 = vmatprep.subr.bf16.mxu1 %v9754_v1 }
 0x1df   : > { %8747 = vmatpush1.bf16.msra.mxu0 %v8746_v4 }
 0x1e0   : > { %8349 = vmatprep.subr.mxu0 %v9753_v0  ;;  %8768 = vmatpush3.bf16.msra.mxu1 %v8767_v11 }
 0x1e1   : > { %8769 = vmatprep.subr.bf16.mxu1 %v9754_v1 }
 0x1e2   : > { %1221 = vmatmul.mubr.f32.vlgmr.msra.gmra.mrb[0].mxu0 %v1111_v8 }
 0x1e3   : > { %8351 = vmatprep.mubr.msk.f32.mxu0 %vm9755_vm0, %v9753_v0 }
 0x1e4   : > { %8771 = vmatpush3.bf16.msra.mxu1 %v8770_v14 }
 0x1e5   : > { %8354 = vmatprep.subr.mxu1 %v9753_v0 }
 0x1e7   : > { %8347 = vmatmul.mubr.f32.vlgmr.msra.gmra.mrb[0].mxu1 %v1105_v5 }
 0x1e8   : > { %8356 = vmatprep.mubr.msk.f32.mxu1 %vm9755_vm0, %v9753_v0 }
 0x2b5   : > { %v1222_v20 = vpop.f32.mrb[0].mxu0 }
 0x2b6   : > { %v1223_v21 = vadd.f32 %v1222_v20, %v1149_v19  ;;  %v1224_v23 = vpop.f32.mrb[1].mxu0 }
 0x2b7   : > { %v10442_v25 = vadd.f32 %v1224_v23, %v1153_v24 }
 0x2b8   : > { %1324 = vrot.lane.b32.xlu0 %v1223_v21, %s9756_s18  ;;  %1321 = vrot.lane.b32.xlu1 %v1223_v21, %s9757_s15 }
 0x2ba   : > { %v1316_v27 = vpop.f32.mrb[0].mxu1 }
 0x2bb   : > { %v10464_v28 = vadd.f32 %v7940_v26, %v1316_v27  ;;  %v8348_v29 = vpop.f32.mrb[1].mxu1 }
 0x2bc   : > { %1330 = vrot.lane.b32.xlu0 %v1223_v21, %s9758_s22  ;;  %1327 = vrot.lane.b32.xlu1 %v1223_v21, %s9759_s23 }
 0x2c0   : > { %1615 = vrot.lane.b32.xlu0 %v10442_v25, %s9757_s15  ;;  %1333 = vrot.lane.b32.xlu1 %v1223_v21, %s9760_s12 }
 0x2c4   : > { %1618 = vrot.lane.b32.xlu0 %v10442_v25, %s9756_s18  ;;  %1621 = vrot.lane.b32.xlu1 %v10442_v25, %s9759_s23 }
 0x2c8   : > { %1624 = vrot.lane.b32.xlu0 %v10442_v25, %s9758_s22  ;;  %1627 = vrot.lane.b32.xlu1 %v10442_v25, %s9760_s12 }
 0x2cc   : > { %1630 = vrot.lane.b32.xlu0 %v10442_v25, %s9761_s26  ;;  %1633 = vrot.lane.b32.xlu1 %v10442_v25, %s9762_s28 }
 0x2d0   : > { %1336 = vrot.lane.b32.xlu0 %v1223_v21, %s9761_s26  ;;  %1339 = vrot.lane.b32.xlu1 %v1223_v21, %s9762_s28 }
 0x2d4   : > { %1909 = vrot.lane.b32.xlu1 %v10464_v28, %s9757_s15  ;;  %1912 = vrot.lane.b32.xlu0 %v10464_v28, %s9756_s18 }
 0x2d8   : > { %1915 = vrot.lane.b32.xlu1 %v10464_v28, %s9759_s23 }
 0x32a   : > { %v1325_v35 = vpop.permute.xlu0 %1324  ;;  %v1322_v36 = vpop.permute.xlu1 %1321 }
 0x32b   : > { %v1342_v39 = vcombine.low %v1223_v21, %v1325_v35  ;;  %v1343_v40 = vcombine.high %v1223_v21, %v1325_v35 }
 0x32d   : > { %v1350_v46 = vrot.slane %v1342_v39, %v10473_v38  ;;  %v1357_v47 = vrot.slane %v1343_v40, %v10473_v38 }
 0x32e   : > { %v10475_v41 = vpop.permute.xlu0 %1330  ;;  %v1328_v42 = vpop.permute.xlu1 %1327 }
 0x32f   : > { %v1358_v43 = vcombine.low %v1322_v36, %v1328_v42  ;;  %v1359_v44 = vcombine.high %v1322_v36, %v1328_v42 }
 0x331   : > { %v1366_v48 = vrot.slane %v1358_v43, %v10473_v38  ;;  %v1373_v49 = vrot.slane %v1359_v44, %v10473_v38 }
 0x332   : > { %v1616_v50 = vpop.permute.xlu0 %1615  ;;  %v10484_v51 = vpop.permute.xlu1 %1333 }
 0x333   : > { %v1406_v52 = vcombine.low %v1350_v46, %v1366_v48  ;;  %v1407_v53 = vcombine.high %v1350_v46, %v1366_v48  ;;  %v1422_v54 = vcombine.low %v1357_v47, %v1373_v49  ;;  %v1423_v55 = vcombine.high %v1357_v47, %v1373_v49 }
 0x335   : > { %v1414_v56 = vrot.slane %v1406_v52, %v10478_v45  ;;  %v1421_v57 = vrot.slane %v1407_v53, %v10478_v45  ;;  %v1430_v58 = vrot.slane %v1422_v54, %v10478_v45  ;;  %v1437_v59 = vrot.slane %v1423_v55, %v10478_v45 }
 0x336   : > { %v1619_v60 = vpop.permute.xlu0 %1618  ;;  %v1622_v61 = vpop.permute.xlu1 %1621 }
 0x337   : > { %v7941_v62 = vcombine.low %v1414_v56, %v1421_v57  ;;  %v7943_v63 = vcombine.high %v1414_v56, %v1421_v57  ;;  %v7945_v2 = vcombine.low %v1430_v58, %v1437_v59  ;;  %v7947_v3 = vcombine.high %v1430_v58, %v1437_v59 }
 0x338   : > { %v1636_v4 = vcombine.low %v10442_v25, %v1619_v60  ;;  %v1637_v5 = vcombine.high %v10442_v25, %v1619_v60  ;;  %v1652_v6 = vcombine.low %v1616_v50, %v1622_v61  ;;  %v1653_v7 = vcombine.high %v1616_v50, %v1622_v61 }
 0x339   : > { %v10493_v8 = vrot.slane %v7941_v62, %v10473_v38  ;;  %v10496_v9 = vrot.slane %v7943_v63, %v10473_v38  ;;  %v10499_v10 = vrot.slane %v7945_v2, %v10473_v38  ;;  %v10502_v11 = vrot.slane %v7947_v3, %v10473_v38 }
 0x33a   : > { %v1644_v12 = vrot.slane %v1636_v4, %v10473_v38  ;;  %v1651_v13 = vrot.slane %v1637_v5, %v10473_v38  ;;  %v1660_v14 = vrot.slane %v1652_v6, %v10473_v38  ;;  %v1667_v15 = vrot.slane %v1653_v7, %v10473_v38  ;;  %v1625_v18 = vpop.permute.xlu0 %1624  ;;  %v1628_v19 = vpop.permute.xlu1 %1627 }
 0x33b   : > { %v1542_v25 = vcombine.low %v10493_v8, %v10496_v9  ;;  %v1543_v26 = vcombine.high %v10493_v8, %v10496_v9  ;;  %v1574_v27 = vcombine.low %v10499_v10, %v10502_v11  ;;  %v1575_v61 = vcombine.high %v10499_v10, %v10502_v11 }
 0x33c   : > { %v1700_v20 = vcombine.low %v1644_v12, %v1660_v14  ;;  %v1701_v21 = vcombine.high %v1644_v12, %v1660_v14  ;;  %v1716_v23 = vcombine.low %v1651_v13, %v1667_v15  ;;  %v1717_v24 = vcombine.high %v1651_v13, %v1667_v15 }
 0x33d   : > { %v10529_v2 = vrot.slane %v1542_v25, %v10478_v45 }
 0x33e   : > { %v1708_v29 = vrot.slane %v1700_v20, %v10478_v45  ;;  %v1715_v30 = vrot.slane %v1701_v21, %v10478_v45  ;;  %v1724_v31 = vrot.slane %v1716_v23, %v10478_v45  ;;  %v1731_v32 = vrot.slane %v1717_v24, %v10478_v45  ;;  %v1631_v33 = vpop.permute.xlu0 %1630  ;;  %v1634_v34 = vpop.permute.xlu1 %1633 }
 0x33f   : > { %v1668_v35 = vcombine.low %v1625_v18, %v1631_v33  ;;  %v1669_v36 = vcombine.high %v1625_v18, %v1631_v33  ;;  %v1684_v37 = vcombine.low %v1628_v19, %v1634_v34  ;;  %v1685_v39 = vcombine.high %v1628_v19, %v1634_v34 }
 0x340   : > { %v7949_v40 = vcombine.low %v1708_v29, %v1715_v30  ;;  %v7951_v42 = vcombine.high %v1708_v29, %v1715_v30  ;;  %v7953_v43 = vcombine.low %v1724_v31, %v1731_v32  ;;  %v7955_v44 = vcombine.high %v1724_v31, %v1731_v32 }
 0x341   : > { %v1676_v46 = vrot.slane %v1668_v35, %v10473_v38  ;;  %v1683_v47 = vrot.slane %v1669_v36, %v10473_v38  ;;  %v1692_v48 = vrot.slane %v1684_v37, %v10473_v38  ;;  %v1699_v49 = vrot.slane %v1685_v39, %v10473_v38 }
 0x342   : > { %v1780_v50 = vrot.slane %v7949_v40, %v10473_v38  ;;  %v1796_v52 = vrot.slane %v7951_v42, %v10473_v38  ;;  %v1812_v53 = vrot.slane %v7953_v43, %v10473_v38  ;;  %v1828_v54 = vrot.slane %v7955_v44, %v10473_v38  ;;  %v1337_v59 = vpop.permute.xlu0 %1336  ;;  %v1340_v60 = vpop.permute.xlu1 %1339 }
 0x343   : > { %v1732_v55 = vcombine.low %v1676_v46, %v1692_v48  ;;  %v1733_v56 = vcombine.high %v1676_v46, %v1692_v48  ;;  %v1748_v57 = vcombine.low %v1683_v47, %v1699_v49  ;;  %v1749_v58 = vcombine.high %v1683_v47, %v1699_v49 }
 0x344   : > { %v1836_v62 = vcombine.low %v1780_v50, %v1796_v52  ;;  %v1868_v63 = vcombine.low %v1812_v53, %v1828_v54  ;;  %v1374_v7 = vcombine.low %v10475_v41, %v1337_v59  ;;  %v1375_v8 = vcombine.high %v10475_v41, %v1337_v59 }
 0x345   : > { %v1740_v3 = vrot.slane %v1732_v55, %v10478_v45  ;;  %v1747_v4 = vrot.slane %v1733_v56, %v10478_v45  ;;  %v1756_v5 = vrot.slane %v1748_v57, %v10478_v45  ;;  %v1763_v6 = vrot.slane %v1749_v58, %v10478_v45 }
 0x346   : > { %v1390_v9 = vcombine.low %v10484_v51, %v1340_v60  ;;  %v1391_v10 = vcombine.high %v10484_v51, %v1340_v60  ;;  %v1382_v15 = vrot.slane %v1374_v7, %v10473_v38  ;;  %v1389_v18 = vrot.slane %v1375_v8, %v10473_v38 }
 0x347   : > { %v7950_v11 = vcombine.low %v1740_v3, %v1747_v4  ;;  %v7952_v12 = vcombine.high %v1740_v3, %v1747_v4  ;;  %v7954_v13 = vcombine.low %v1756_v5, %v1763_v6  ;;  %v7956_v14 = vcombine.high %v1756_v5, %v1763_v6 }
 0x348   : > { %v1398_v19 = vrot.slane %v1390_v9, %v10473_v38  ;;  %v1405_v20 = vrot.slane %v1391_v10, %v10473_v38  ;;  %v1837_v31 = vcombine.high %v1780_v50, %v1796_v52  ;;  %v1869_v32 = vcombine.high %v1812_v53, %v1828_v54 }
 0x349   : > { %v10544_v21 = vrot.slane %v7950_v11, %v10473_v38  ;;  %v10547_v41 = vrot.slane %v7952_v12, %v10473_v38  ;;  %v10550_v51 = vrot.slane %v7954_v13, %v10473_v38  ;;  %v10553_v23 = vrot.slane %v7956_v14, %v10473_v38  ;;  %v1910_v12 = vpop.permute.xlu1 %1909  ;;  %v1913_v13 = vpop.permute.xlu0 %1912 }
 0x34a   : > { %v1438_v24 = vcombine.low %v1382_v15, %v1398_v19  ;;  %v1439_v25 = vcombine.high %v1382_v15, %v1398_v19  ;;  %v1454_v29 = vcombine.low %v1389_v18, %v1405_v20  ;;  %v1455_v30 = vcombine.high %v1389_v18, %v1405_v20 }
 0x34b   : > { %v1582_v33 = vrot.slane %v1574_v27, %v10478_v45  ;;  %v1557_v34 = vrot.slane %v1543_v26, %v10478_v45  ;;  %v1852_v40 = vcombine.low %v10544_v21, %v10547_v41  ;;  %v1884_v42 = vcombine.low %v10550_v51, %v10553_v23 }
 0x34c   : > { %v1446_v35 = vrot.slane %v1438_v24, %v10478_v45  ;;  %v1453_v36 = vrot.slane %v1439_v25, %v10478_v45  ;;  %v1462_v37 = vrot.slane %v1454_v29, %v10478_v45  ;;  %v1469_v39 = vrot.slane %v1455_v30, %v10478_v45 }
 0x34d   : > { %v1844_v43 = vrot.slane %v1836_v62, %v10478_v45  ;;  %v1876_v27 = vrot.slane %v1868_v63, %v10478_v45  ;;  %v1851_v50 = vrot.slane %v1837_v31, %v10478_v45  ;;  %v1883_v52 = vrot.slane %v1869_v32, %v10478_v45  ;;  %v1916_v29 = vpop.permute.xlu1 %1915 }
 0x34e   : > { %v7942_v44 = vcombine.low %v1446_v35, %v1453_v36  ;;  %v7944_v26 = vcombine.high %v1446_v35, %v1453_v36  ;;  %v7946_v46 = vcombine.low %v1462_v37, %v1469_v39  ;;  %v7948_v47 = vcombine.high %v1462_v37, %v1469_v39 }
 0x34f   : > { %v1900_v48 = vcombine.low %v1844_v43, %v1876_v27  ;;  %v1901_v49 = vcombine.high %v1844_v43, %v1876_v27  ;;  %v1853_v57 = vcombine.high %v10544_v21, %v10547_v41  ;;  %v1885_v58 = vcombine.high %v10550_v51, %v10553_v23 }
 0x350   : > { %v1493_v53 = vrot.slane %v7942_v44, %v10473_v38  ;;  %v1509_v54 = vrot.slane %v7944_v26, %v10473_v38  ;;  %v1525_v55 = vrot.slane %v7946_v46, %v10473_v38  ;;  %v1541_v56 = vrot.slane %v7948_v47, %v10473_v38 }
 0x351   : > { %8350 = vmatpush3.xpose.msk.msra.mxu0 %vm2202_vm1, %v1900_v48  ;;  %8355 = vmatpush3.xpose.msk.msra.mxu1 %vm2202_vm1, %v1901_v49  ;;  %v1589_v59 = vrot.slane %v1575_v61, %v10478_v45  ;;  %v1606_v63 = vcombine.low %v10529_v2, %v1582_v33  ;;  %v1607_v3 = vcombine.high %v10529_v2, %v1582_v33 }
 0x352   : > { %v1558_v60 = vcombine.low %v1493_v53, %v1509_v54  ;;  %v1590_v62 = vcombine.low %v1525_v55, %v1541_v56  ;;  %8359 = vmatprep.subr.mxu0 %v9753_v0  ;;  %8364 = vmatprep.subr.mxu1 %v9753_v0  ;;  %v1902_v4 = vcombine.low %v1851_v50, %v1883_v52 }
 0x353   : > { %v1903_v5 = vcombine.high %v1851_v50, %v1883_v52  ;;  %v1860_v6 = vrot.slane %v1852_v40, %v10478_v45  ;;  %v1892_v7 = vrot.slane %v1884_v42, %v10478_v45  ;;  %v1559_v8 = vcombine.high %v1493_v53, %v1509_v54 }
 0x354   : > { %8352 = vmatmul.mubr.msk.f32.vlgmr.msra.gmra.mrb[2].mxu0 %vm2202_vm1, %v1606_v63  ;;  %8357 = vmatmul.mubr.msk.f32.vlgmr.msra.gmra.mrb[2].mxu1 %vm2202_vm1, %v1607_v3  ;;  %v1566_v61 = vrot.slane %v1558_v60, %v10478_v45  ;;  %v1598_v9 = vrot.slane %v1590_v62, %v10478_v45  ;;  %v1591_v2 = vcombine.high %v1525_v55, %v1541_v56 }
 0x355   : > { %8360 = vmatpush3.xpose.msk.msra.mxu0 %vm2202_vm1, %v1902_v4  ;;  %8365 = vmatpush3.xpose.msk.msra.mxu1 %vm2202_vm1, %v1903_v5  ;;  %v1904_v10 = vcombine.low %v1860_v6, %v1892_v7  ;;  %v1905_v11 = vcombine.high %v1860_v6, %v1892_v7  ;;  %v1608_v14 = vcombine.low %v1557_v34, %v1589_v59 }
 0x356   : > { %8361 = vmatprep.mubr.msk.f32.mxu0 %vm9755_vm0, %v9753_v0  ;;  %8366 = vmatprep.mubr.msk.f32.mxu1 %vm9755_vm0, %v9753_v0  ;;  %v1609_v15 = vcombine.high %v1557_v34, %v1589_v59  ;;  %v1867_v18 = vrot.slane %v1853_v57, %v10478_v45  ;;  %v1899_v19 = vrot.slane %v1885_v58, %v10478_v45 }
 0x357   : > { %8369 = vmatprep.subr.mxu0 %v9753_v0  ;;  %8374 = vmatprep.subr.mxu1 %v9753_v0  ;;  %v1930_v20 = vcombine.low %v10464_v28, %v1913_v13  ;;  %v1610_v21 = vcombine.low %v1566_v61, %v1598_v9  ;;  %v1611_v41 = vcombine.high %v1566_v61, %v1598_v9 }
 0x358   : > { %8362 = vmatmul.mubr.msk.f32.vlgmr.msra.gmra.mrb[4].mxu0 %vm2202_vm1, %v1608_v14  ;;  %8367 = vmatmul.mubr.msk.f32.vlgmr.msra.gmra.mrb[4].mxu1 %vm2202_vm1, %v1609_v15  ;;  %v1931_v51 = vcombine.high %v10464_v28, %v1913_v13  ;;  %v1573_v23 = vrot.slane %v1559_v8, %v10478_v45  ;;  %v1605_v24 = vrot.slane %v1591_v2, %v10478_v45 }
 0x359   : > { %8370 = vmatpush3.xpose.msk.msra.mxu0 %vm2202_vm1, %v1904_v10  ;;  %8375 = vmatpush3.xpose.msk.msra.mxu1 %vm2202_vm1, %v1905_v11  ;;  %v1938_v25 = vrot.slane %v1930_v20, %v10473_v38  ;;  %v1946_v31 = vcombine.low %v1910_v12, %v1916_v29  ;;  %v1947_v32 = vcombine.high %v1910_v12, %v1916_v29 }
 0x35a   : > { %8371 = vmatprep.mubr.msk.f32.mxu0 %vm9755_vm0, %v9753_v0  ;;  %8376 = vmatprep.mubr.msk.f32.mxu1 %vm9755_vm0, %v9753_v0  ;;  %v1945_v30 = vrot.slane %v1931_v51, %v10473_v38  ;;  %v1906_v33 = vcombine.low %v1867_v18, %v1899_v19  ;;  %v1907_v34 = vcombine.high %v1867_v18, %v1899_v19 }
 0x35b   : > { %8379 = vmatprep.subr.mxu0 %v9753_v0  ;;  %8384 = vmatprep.subr.mxu1 %v9753_v0  ;;  %v1954_v35 = vrot.slane %v1946_v31, %v10473_v38  ;;  %v1961_v36 = vrot.slane %v1947_v32, %v10473_v38  ;;  %v1612_v37 = vcombine.low %v1573_v23, %v1605_v24 }
 0x35c   : > { %8372 = vmatmul.mubr.msk.f32.vlgmr.msra.gmra.mrb[6].mxu0 %vm2202_vm1, %v1610_v21  ;;  %8377 = vmatmul.mubr.msk.f32.vlgmr.msra.gmra.mrb[6].mxu1 %vm2202_vm1, %v1611_v41  ;;  %v1613_v39 = vcombine.high %v1573_v23, %v1605_v24 }
 0x35d   : > { %8380 = vmatpush3.xpose.msk.msra.mxu0 %vm2202_vm1, %v1906_v33  ;;  %8385 = vmatpush3.xpose.msk.msra.mxu1 %vm2202_vm1, %v1907_v34  ;;  %v1994_v40 = vcombine.low %v1938_v25, %v1954_v35  ;;  %v1995_v42 = vcombine.high %v1938_v25, %v1954_v35  ;;  %v2010_v43 = vcombine.low %v1945_v30, %v1961_v36 }
 0x35e   : > { %8381 = vmatprep.mubr.msk.f32.mxu0 %vm9755_vm0, %v9753_v0  ;;  %8386 = vmatprep.mubr.msk.f32.mxu1 %vm9755_vm0, %v9753_v0  ;;  %v2011_v27 = vcombine.high %v1945_v30, %v1961_v36 }
 0x35f   : > { %8389 = vmatprep.subr.mxu0 %v9753_v0  ;;  %8394 = vmatprep.subr.mxu1 %v9753_v0  ;;  %v2002_v44 = vrot.slane %v1994_v40, %v10478_v45  ;;  %v2009_v26 = vrot.slane %v1995_v42, %v10478_v45  ;;  %v2018_v46 = vrot.slane %v2010_v43, %v10478_v45 }
 0x360   : > { %8382 = vmatmul.mubr.msk.f32.vlgmr.msra.gmra.mrb[8].mxu0 %vm2202_vm1, %v1612_v37  ;;  %8387 = vmatmul.mubr.msk.f32.vlgmr.msra.gmra.mrb[8].mxu1 %vm2202_vm1, %v1613_v39  ;;  %v2025_v47 = vrot.slane %v2011_v27, %v10478_v45 }
 0x361   : > { %8391 = vmatprep.mubr.msk.f32.mxu0 %vm9755_vm0, %v9753_v0  ;;  %8396 = vmatprep.mubr.msk.f32.mxu1 %vm9755_vm0, %v9753_v0  ;;  %v7957_v48 = vcombine.low %v2002_v44, %v2009_v26  ;;  %v7959_v49 = vcombine.high %v2002_v44, %v2009_v26 }
 0x362   : > { %v7961_v50 = vcombine.low %v2018_v46, %v2025_v47  ;;  %v7963_v52 = vcombine.high %v2018_v46, %v2025_v47 }
 0x363   : > { %v2074_v53 = vrot.slane %v7957_v48, %v10473_v38  ;;  %v2090_v54 = vrot.slane %v7959_v49, %v10473_v38 }
 0x364   : > { %v2106_v55 = vrot.slane %v7961_v50, %v10473_v38  ;;  %v2122_v56 = vrot.slane %v7963_v52, %v10473_v38 }
 0x365   : > { %v2130_v57 = vcombine.low %v2074_v53, %v2090_v54  ;;  %v2131_v3 = vcombine.high %v2074_v53, %v2090_v54 }
 0x366   : > { %v2162_v58 = vcombine.low %v2106_v55, %v2122_v56  ;;  %v2163_v4 = vcombine.high %v2106_v55, %v2122_v56 }
 0x367   : > { %v2138_v59 = vrot.slane %v2130_v57, %v10478_v45  ;;  %v10647_v5 = vrot.slane %v2131_v3, %v10478_v45 }
 0x368   : > { %v2170_v60 = vrot.slane %v2162_v58, %v10478_v45  ;;  %v10650_v6 = vrot.slane %v2163_v4, %v10478_v45 }
 0x36a   : > { %v2194_v62 = vcombine.low %v2138_v59, %v2170_v60  ;;  %v2195_v63 = vcombine.high %v2138_v59, %v2170_v60  ;;  %v2196_v7 = vcombine.low %v10647_v5, %v10650_v6  ;;  %v2197_v8 = vcombine.high %v10647_v5, %v10650_v6 }
 0x36c   : > { %8390 = vmatpush3.msra.mxu0 %v2194_v62  ;;  %8395 = vmatpush3.msra.mxu1 %v2195_v63 }
 0x36d   : > { %8399 = vmatprep.subr.mxu0 %v9753_v0  ;;  %8404 = vmatprep.subr.mxu1 %v9753_v0 }
 0x427   : > { %v2275_v61 = vpop.f32.mrb[2].mxu0  ;;  %v2351_v9 = vpop.f32.mrb[2].mxu1 }
 0x428   : > { %v8353_v2 = vpop.f32.mrb[3].mxu0  ;;  %v8358_v10 = vpop.f32.mrb[3].mxu1  ;;  %v2815_v11 = vsel %vm2811_vm2, %v2351_v9, -inf  ;;  %v2812_v12 = vsel %vm2811_vm2, %v2275_v61, -inf }
 0x429   : > { %2816 = vmax.xlane.f32.xlu1 %v2815_v11  ;;  %2813 = vmax.xlane.f32.xlu0 %v2812_v12 }
 0x42b   : > { %v2427_v13 = vpop.f32.mrb[4].mxu0  ;;  %v2503_v14 = vpop.f32.mrb[4].mxu1 }
 0x42c   : > { %v8363_v15 = vpop.f32.mrb[5].mxu0  ;;  %v8368_v18 = vpop.f32.mrb[5].mxu1  ;;  %v2818_v19 = vsel %vm2811_vm2, %v2427_v13, -inf  ;;  %v2821_v41 = vsel %vm2811_vm2, %v2503_v14, -inf }
 0x42d   : > { %2819 = vmax.xlane.f32.xlu0 %v2818_v19 }
 0x42f   : > { %v2579_v20 = vpop.f32.mrb[6].mxu0  ;;  %v2655_v21 = vpop.f32.mrb[6].mxu1 }
 0x430   : > { %v8373_v51 = vpop.f32.mrb[7].mxu0  ;;  %v8378_v23 = vpop.f32.mrb[7].mxu1  ;;  %v2824_v24 = vsel %vm2811_vm2, %v2579_v20, -inf  ;;  %v2827_v30 = vsel %vm2811_vm2, %v2655_v21, -inf }
 0x431   : > { %2822 = vmax.xlane.f32.xlu0 %v2821_v41  ;;  %2825 = vmax.xlane.f32.xlu1 %v2824_v24 }
 0x433   : > { %v2731_v25 = vpop.f32.mrb[8].mxu0  ;;  %v2807_v29 = vpop.f32.mrb[8].mxu1 }
 0x434   : > { %v8383_v31 = vpop.f32.mrb[9].mxu0  ;;  %v8388_v32 = vpop.f32.mrb[9].mxu1  ;;  %v2830_v33 = vsel %vm2811_vm2, %v2731_v25, -inf  ;;  %v2833_v34 = vsel %vm2811_vm2, %v2807_v29, -inf }
 0x435   : > { %2828 = vmax.xlane.f32.xlu0 %v2827_v30  ;;  %2831 = vmax.xlane.f32.xlu1 %v2830_v33 }
 0x439   : > { %2834 = vmax.xlane.f32.xlu0 %v2833_v34 }
 0x446   : > { %1921 = vrot.lane.b32.xlu1 %v10464_v28, %s9760_s12 }
 0x44f   : > { %1918 = vrot.lane.b32.xlu0 %v10464_v28, %s9758_s22 }
 0x4b6   : > { %v2814_v35 = vpop.xlane.xlu0 %2813  ;;  %v2817_v36 = vpop.xlane.xlu1 %2816 }
 0x4b7   : > { %v2836_v37 = vsub.f32 %v2275_v61, %v2814_v35  ;;  %v2837_v39 = vsub.f32 %v2351_v9, %v2817_v36 }
 0x4b9   : > { %v2844_v40 = vmul.f32 1.442695, %v2836_v37  ;;  %v2846_v42 = vmul.f32 1.442695, %v2837_v39 }
 0x4ba   : > { %v2820_v43 = vpop.xlane.xlu0 %2819 }
 0x4bb   : > { %9196 = vpow2.f32 %v2844_v40  ;;  %v2838_v27 = vsub.f32 %v2427_v13, %v2820_v43 }
 0x4bc   : > { %9198 = vpow2.f32 %v2846_v42 }
 0x4bd   : > { %v2848_v44 = vmul.f32 1.442695, %v2838_v27 }
 0x4be   : > { %v2823_v26 = vpop.xlane.xlu0 %2822  ;;  %v2826_v46 = vpop.xlane.xlu1 %2825 }
 0x4bf   : > { %9200 = vpow2.f32 %v2848_v44  ;;  %v2839_v47 = vsub.f32 %v2503_v14, %v2823_v26  ;;  %v2840_v48 = vsub.f32 %v2579_v20, %v2826_v46 }
 0x4c1   : > { %v2850_v49 = vmul.f32 1.442695, %v2839_v47  ;;  %v2852_v50 = vmul.f32 1.442695, %v2840_v48 }
 0x4c2   : > { %v2829_v52 = vpop.xlane.xlu0 %2828  ;;  %v2832_v53 = vpop.xlane.xlu1 %2831 }
 0x4c3   : > { %9202 = vpow2.f32 %v2850_v49  ;;  %v2841_v54 = vsub.f32 %v2655_v21, %v2829_v52  ;;  %v2842_v55 = vsub.f32 %v2731_v25, %v2832_v53 }
 0x4c4   : > { %9204 = vpow2.f32 %v2852_v50 }
 0x4c5   : > { %v9197_v56 = vpop.eup %9196  ;;  %v2854_v57 = vmul.f32 1.442695, %v2841_v54  ;;  %v2856_v58 = vmul.f32 1.442695, %v2842_v55 }
 0x4c6   : > { %v9199_v59 = vpop.eup %9198  ;;  %v2835_v60 = vpop.xlane.xlu0 %2834  ;;  %v2860_v62 = vsel %vm2811_vm2, %v9197_v56, 0.0 }
 0x4c7   : > { %9206 = vpow2.f32 %v2854_v57  ;;  %v2843_v63 = vsub.f32 %v2807_v29, %v2835_v60  ;;  %2861 = vadd.xlane.f32.xlu1 %v2860_v62  ;;  %v2863_v3 = vsel %vm2811_vm2, %v9199_v59, 0.0  ;;  %v1922_v21 = vpop.permute.xlu1 %1921 }
 0x4c8   : > { %2864 = vadd.xlane.f32.xlu0 %v2863_v3  ;;  %9208 = vpow2.f32 %v2856_v58 }
 0x4c9   : > { %v9201_v4 = vpop.eup %9200  ;;  %v2858_v61 = vmul.f32 1.442695, %v2843_v63 }
 0x4ca   : > { %v2866_v9 = vsel %vm2811_vm2, %v9201_v4, 0.0  ;;  %v1919_v41 = vpop.permute.xlu0 %1918 }
 0x4cb   : > { %9210 = vpow2.f32 %v2858_v61  ;;  %2867 = vadd.xlane.f32.xlu1 %v2866_v9 }
 0x4cd   : > { %v9203_v2 = vpop.eup %9202 }
 0x4ce   : > { %v10671_v10 = vpop.eup %9204  ;;  %v2869_v11 = vsel %vm2811_vm2, %v9203_v2, 0.0 }
 0x4cf   : > { %2870 = vadd.xlane.f32.xlu0 %v2869_v11  ;;  %v2872_v12 = vsel %vm2811_vm2, %v10671_v10, 0.0 }
 0x4d0   : > { %2873 = vadd.xlane.f32.xlu1 %v2872_v12 }
 0x4d1   : > { %v10676_v13 = vpop.eup %9206 }
 0x4d2   : > { %v2875_v14 = vsel %vm2811_vm2, %v10676_v13, 0.0  ;;  %v10680_v15 = vpop.eup %9208 }
 0x4d3   : > { %2876 = vadd.xlane.f32.xlu0 %v2875_v14  ;;  %v2878_v20 = vsel %vm2811_vm2, %v10680_v15, 0.0 }
 0x4d5   : > { %v10682_v18 = vpop.eup %9210 }
 0x4d6   : > { %v2881_v19 = vsel %vm2811_vm2, %v10682_v18, 0.0 }
 0x4d7   : > { %2882 = vadd.xlane.f32.xlu1 %v2881_v19  ;;  %2879 = vadd.xlane.f32.xlu0 %v2878_v20 }
 0x4e8   : > { %1924 = vrot.lane.b32.xlu1 %v10464_v28, %s9761_s26 }
 0x4ed   : > { %1927 = vrot.lane.b32.xlu0 %v10464_v28, %s9762_s28 }
 0x554   : > { %v2862_v51 = vpop.xlane.xlu1 %2861 }
 0x555   : > { %v2865_v23 = vpop.xlane.xlu0 %2864  ;;  %9212 = vrcp.f32 %v2862_v51 }
 0x556   : > { %9214 = vrcp.f32 %v2865_v23 }
 0x558   : > { %v2868_v24 = vpop.xlane.xlu1 %2867 }
 0x559   : > { %9216 = vrcp.f32 %v2868_v24 }
 0x55c   : > { %v2871_v25 = vpop.xlane.xlu0 %2870 }
 0x55d   : > { %9218 = vrcp.f32 %v2871_v25  ;;  %v2874_v32 = vpop.xlane.xlu1 %2873 }
 0x55e   : > { %9220 = vrcp.f32 %v2874_v32 }
 0x55f   : > { %v9213_v29 = vpop.eup %9212 }
 0x560   : > { %v9215_v30 = vpop.eup %9214  ;;  %v2892_v31 = vmul.f32 %v9213_v29, %v9197_v56  ;;  %v2877_v33 = vpop.xlane.xlu0 %2876 }
 0x561   : > { %v2893_v34 = vmul.f32 %v9215_v30, %v9199_v59  ;;  %9222 = vrcp.f32 %v2877_v33 }
 0x562   : > { %8392 = vmatmul.mubr.msk.f32.vlgmr.msra.gmra.mrb[10].mxu0 %vm2811_vm2, %v2892_v31 }
 0x563   : > { %v9217_v35 = vpop.eup %9216  ;;  %8397 = vmatmul.mubr.msk.f32.vlgmr.msra.gmra.mrb[10].mxu1 %vm2811_vm2, %v2893_v34  ;;  %8400 = vmatpush3.msra.mxu0 %v2196_v7 }
 0x564   : > { %v2894_v28 = vmul.f32 %v9217_v35, %v9201_v4  ;;  %8405 = vmatpush3.msra.mxu1 %v2197_v8  ;;  %v2880_v36 = vpop.xlane.xlu0 %2879  ;;  %v2883_v37 = vpop.xlane.xlu1 %2882  ;;  %8401 = vmatprep.mubr.msk.f32.mxu0 %vm9755_vm0, %v9753_v0 }
 0x565   : > { %8406 = vmatprep.mubr.msk.f32.mxu1 %vm9755_vm0, %v9753_v0  ;;  %8409 = vmatprep.subr.mxu0 %v9753_v0  ;;  %9224 = vrcp.f32 %v2880_v36 }
 0x566   : > { %8402 = vmatmul.mubr.msk.f32.vlgmr.msra.gmra.mrb[12].mxu0 %vm2811_vm2, %v2894_v28  ;;  %8414 = vmatprep.subr.mxu1 %v9753_v0  ;;  %9226 = vrcp.f32 %v2883_v37 }
 0x567   : > { %v9219_v7 = vpop.eup %9218  ;;  %8411 = vmatprep.mubr.msk.f32.mxu0 %vm9755_vm0, %v9753_v0 }
 0x568   : > { %v2895_v5 = vmul.f32 %v9219_v7, %v9203_v2  ;;  %v1928_v6 = vpop.permute.xlu0 %1927  ;;  %v1925_v8 = vpop.permute.xlu1 %1924 }
 0x569   : > { %v1978_v39 = vcombine.low %v1922_v21, %v1928_v6  ;;  %v1979_v40 = vcombine.high %v1922_v21, %v1928_v6  ;;  %v1962_v42 = vcombine.low %v1919_v41, %v1925_v8  ;;  %v1963_v43 = vcombine.high %v1919_v41, %v1925_v8  ;;  %v9221_v11 = vpop.eup %9220 }
 0x56a   : > { %8407 = vmatmul.mubr.msk.f32.vlgmr.msra.gmra.mrb[12].mxu1 %vm2811_vm2, %v2895_v5  ;;  %v2896_v24 = vmul.f32 %v9221_v11, %v10671_v10  ;;  %v3797_v10 = vld [vmem:[#allocation13] sm:$0xff]  ;;  %v3804_v11 = vld [vmem:[#allocation13 + $0x38] sm:$0xff] }
 0x56b   : > { %v1986_v27 = vrot.slane %v1978_v39, %v10473_v38  ;;  %v1993_v44 = vrot.slane %v1979_v40, %v10473_v38  ;;  %v1970_v26 = vrot.slane %v1962_v42, %v10473_v38  ;;  %8416 = vmatprep.mubr.msk.f32.mxu1 %vm9755_vm0, %v9753_v0  ;;  %v1977_v46 = vrot.slane %v1963_v43, %v10473_v38  ;;  %v9223_v14 = vpop.eup %9222 }
 0x56c   : > { %v2897_v25 = vmul.f32 %v9223_v14, %v10676_v13  ;;  %v3798_v13 = vld [vmem:[#allocation13 + $0x8] sm:$0xff] }
 0x56d   : > { %v2026_v47 = vcombine.low %v1970_v26, %v1986_v27  ;;  %v2027_v48 = vcombine.high %v1970_v26, %v1986_v27  ;;  %v2042_v49 = vcombine.low %v1977_v46, %v1993_v44  ;;  %v2043_v50 = vcombine.high %v1977_v46, %v1993_v44 }
 0x56f   : > { %v2034_v52 = vrot.slane %v2026_v47, %v10478_v45  ;;  %v2041_v53 = vrot.slane %v2027_v48, %v10478_v45  ;;  %v2050_v54 = vrot.slane %v2042_v49, %v10478_v45  ;;  %v2057_v55 = vrot.slane %v2043_v50, %v10478_v45  ;;  %v9225_v23 = vpop.eup %9224  ;;  %v3799_v49 = vld [vmem:[#allocation13 + $0x10] sm:$0xff]  ;;  %v3800_v50 = vld [vmem:[#allocation13 + $0x18] sm:$0xff] }
 0x570   : > { %v9227_v29 = vpop.eup %9226  ;;  %v2898_v32 = vmul.f32 %v9225_v23, %v10680_v15  ;;  %v8773_v15 = vpack.c.bf16 %v3798_v13, %v3797_v10 }
 0x571   : > { %v7958_v56 = vcombine.low %v2034_v52, %v2041_v53  ;;  %v7960_v57 = vcombine.high %v2034_v52, %v2041_v53  ;;  %v7962_v58 = vcombine.low %v2050_v54, %v2057_v55  ;;  %v7964_v59 = vcombine.high %v2050_v54, %v2057_v55 }
 0x572   : > { %v2899_v33 = vmul.f32 %v9227_v29, %v10682_v18  ;;  %v3805_v29 = vld [vmem:[#allocation13 + $0x40] sm:$0xff] }
 0x573   : > { %v2081_v60 = vrot.slane %v7958_v56, %v10473_v38  ;;  %v2097_v62 = vrot.slane %v7960_v57, %v10473_v38  ;;  %v2113_v63 = vrot.slane %v7962_v58, %v10473_v38  ;;  %v2129_v3 = vrot.slane %v7964_v59, %v10473_v38 }
 0x574   : > { %v8776_v56 = vpack.c.bf16 %v3800_v50, %v3799_v49 }
 0x575   : > { %v2146_v4 = vcombine.low %v2081_v60, %v2097_v62  ;;  %v2147_v61 = vcombine.high %v2081_v60, %v2097_v62  ;;  %v2178_v9 = vcombine.low %v2113_v63, %v2129_v3  ;;  %v2179_v2 = vcombine.high %v2113_v63, %v2129_v3  ;;  %v3801_v62 = vld [vmem:[#allocation13 + $0x20] sm:$0xff]  ;;  %v3802_v63 = vld [vmem:[#allocation13 + $0x28] sm:$0xff] }
 0x577   : > { %v2154_v12 = vrot.slane %v2146_v4, %v10478_v45  ;;  %v2186_v19 = vrot.slane %v2178_v9, %v10478_v45  ;;  %v2161_v20 = vrot.slane %v2147_v61, %v10478_v45  ;;  %v2193_v21 = vrot.slane %v2179_v2, %v10478_v45  ;;  %v3803_v2 = vld [vmem:[#allocation13 + $0x30] sm:$0xff] }
 0x579   : > { %v2198_v41 = vcombine.low %v2154_v12, %v2186_v19  ;;  %v2199_v51 = vcombine.high %v2154_v12, %v2186_v19  ;;  %v2200_v30 = vcombine.low %v2161_v20, %v2193_v21  ;;  %v2201_v31 = vcombine.high %v2161_v20, %v2193_v21 }
 0x57a   : > { %v8779_v12 = vpack.c.bf16 %v3802_v63, %v3801_v62 }
 0x57b   : > { %8410 = vmatpush3.msra.mxu0 %v2198_v41  ;;  %8415 = vmatpush3.msra.mxu1 %v2199_v51  ;;  %v8782_v41 = vpack.c.bf16 %v3804_v11, %v3803_v2 }
 0x57c   : > { %8412 = vmatmul.mubr.msk.f32.vlgmr.msra.gmra.mrb[14].mxu0 %vm2811_vm2, %v2896_v24  ;;  %8417 = vmatmul.mubr.msk.f32.vlgmr.msra.gmra.mrb[14].mxu1 %vm2811_vm2, %v2897_v25 }
 0x57d   : > { %8419 = vmatprep.subr.mxu0 %v9753_v0  ;;  %8424 = vmatprep.subr.mxu1 %v9753_v0 }
 0x57e   : > { %8420 = vmatpush3.msra.mxu0 %v2200_v30  ;;  %8425 = vmatpush3.msra.mxu1 %v2201_v31  ;;  %v3806_v30 = vld [vmem:[#allocation13 + $0x48] sm:$0xff] }
 0x57f   : > { %8421 = vmatprep.mubr.msk.f32.mxu0 %vm9755_vm0, %v9753_v0  ;;  %8426 = vmatprep.mubr.msk.f32.mxu1 %vm9755_vm0, %v9753_v0  ;;  %v8785_v13 = vpack.c.bf16 %v3806_v30, %v3805_v29 }
 0x580   : > { %8422 = vmatmul.mubr.msk.f32.vlgmr.msra.gmra.mrb[16].mxu0 %vm2811_vm2, %v2898_v32  ;;  %8427 = vmatmul.mubr.msk.f32.vlgmr.msra.gmra.mrb[16].mxu1 %vm2811_vm2, %v2899_v33 }
 0x581   : > { %8772 = vmatprep.subr.bf16.mxu0 %v9754_v1  ;;  %8461 = vmatprep.mubr.msk.f32.mxu0 %vm9755_vm0, %v9753_v0 }
 0x582   : > { %8796 = vmatprep.subr.bf16.mxu1 %v9754_v1  ;;  %8496 = vmatprep.mubr.msk.f32.mxu1 %vm9755_vm0, %v9753_v0 }
 0x583   : > { %8774 = vmatpush3.bf16.msra.mxu0 %v8773_v15 }
 0x584   : > { %8775 = vmatprep.subr.bf16.mxu0 %v9754_v1 }
 0x587   : > { %8777 = vmatpush3.bf16.msra.mxu0 %v8776_v56 }
 0x588   : > { %8778 = vmatprep.subr.bf16.mxu0 %v9754_v1 }
 0x58b   : > { %8780 = vmatpush3.bf16.msra.mxu0 %v8779_v12 }
 0x58c   : > { %8781 = vmatprep.subr.bf16.mxu0 %v9754_v1 }
 0x58f   : > { %8783 = vmatpush3.bf16.msra.mxu0 %v8782_v41 }
 0x590   : > { %8784 = vmatprep.subr.bf16.mxu0 %v9754_v1 }
 0x593   : > { %8786 = vmatpush3.bf16.msra.mxu0 %v8785_v13 }
 0x594   : > { %8787 = vmatprep.subr.bf16.mxu0 %v9754_v1 }
 0x635   : > { %v2969_v18 = vpop.f32.mrb[10].mxu0 }
 0x636   : > { %v3042_v34 = vpop.f32.mrb[10].mxu1  ;;  %v8393_v35 = vpop.f32.mrb[11].mxu0 }
 0x637   : > { %v8398_v28 = vpop.f32.mrb[11].mxu1  ;;  %v3808_v35 = vld [vmem:[#allocation13 + $0x58] sm:$0xff] }
 0x639   : > { %v3115_v36 = vpop.f32.mrb[12].mxu0 }
 0x63a   : > { %v3484_v37 = vcombine.low %v2969_v18, %v3115_v36  ;;  %v3485_v7 = vcombine.high %v2969_v18, %v3115_v36  ;;  %v8403_v5 = vpop.f32.mrb[13].mxu0 }
 0x63b   : > { %v3810_v5 = vld [vmem:[#allocation13 + $0x68] sm:$0xff] }
 0x63c   : > { %v3492_v42 = vrot.slane %v3484_v37, %v10473_v38  ;;  %v3499_v43 = vrot.slane %v3485_v7, %v10473_v38  ;;  %v3809_v7 = vld [vmem:[#allocation13 + $0x60] sm:$0xff] }
 0x63d   : > { %v3188_v6 = vpop.f32.mrb[12].mxu1 }
 0x63e   : > { %v3500_v8 = vcombine.low %v3042_v34, %v3188_v6  ;;  %v3501_v39 = vcombine.high %v3042_v34, %v3188_v6  ;;  %v8408_v40 = vpop.f32.mrb[13].mxu1  ;;  %v3807_v34 = vld [vmem:[#allocation13 + $0x50] sm:$0xff] }
 0x63f   : > { %v8788_v37 = vpack.c.bf16 %v3808_v35, %v3807_v34 }
 0x640   : > { %v3508_v27 = vrot.slane %v3500_v8, %v10473_v38  ;;  %v3515_v44 = vrot.slane %v3501_v39, %v10473_v38 }
 0x641   : > { %8789 = vmatpush3.bf16.msra.mxu0 %v8788_v37 }
 0x642   : > { %v3548_v26 = vcombine.low %v3492_v42, %v3508_v27  ;;  %v3549_v46 = vcombine.high %v3492_v42, %v3508_v27  ;;  %v3564_v47 = vcombine.low %v3499_v43, %v3515_v44  ;;  %v3565_v48 = vcombine.high %v3499_v43, %v3515_v44  ;;  %8790 = vmatprep.subr.bf16.mxu0 %v9754_v1 }
 0x644   : > { %v3556_v52 = vrot.slane %v3548_v26, %v10478_v45  ;;  %v3563_v53 = vrot.slane %v3549_v46, %v10478_v45  ;;  %v3572_v54 = vrot.slane %v3564_v47, %v10478_v45  ;;  %v3579_v55 = vrot.slane %v3565_v48, %v10478_v45 }
 0x645   : > { %v8791_v26 = vpack.c.bf16 %v3810_v5, %v3809_v7 }
 0x646   : > { %v7989_v57 = vcombine.low %v3556_v52, %v3563_v53  ;;  %v7991_v58 = vcombine.high %v3556_v52, %v3563_v53  ;;  %v7993_v59 = vcombine.low %v3572_v54, %v3579_v55  ;;  %v7995_v60 = vcombine.high %v3572_v54, %v3579_v55 }
 0x647   : > { %8792 = vmatpush3.bf16.msra.mxu0 %v8791_v26  ;;  %v4016_v26 = vld [vmem:[#allocation16 + $0x8] sm:$0xff] }
 0x648   : > { %v3628_v3 = vrot.slane %v7989_v57, %v10473_v38  ;;  %v3644_v4 = vrot.slane %v7991_v58, %v10473_v38  ;;  %v3660_v61 = vrot.slane %v7993_v59, %v10473_v38  ;;  %v3676_v9 = vrot.slane %v7995_v60, %v10473_v38  ;;  %v3811_v59 = vld [vmem:[#allocation13 + $0x70] sm:$0xff]  ;;  %v3812_v60 = vld [vmem:[#allocation13 + $0x78] sm:$0xff]  ;;  %8793 = vmatprep.subr.bf16.mxu0 %v9754_v1 }
 0x649   : > { %v8794_v62 = vpack.c.bf16 %v3812_v60, %v3811_v59  ;;  %v4024_v59 = vld [vmem:[#allocation16 + $0x48] sm:$0xff]  ;;  %v1109_v60 = vld [vmem:[%s10380_s2] sm:$0xff] }
 0x64a   : > { %v3685_v14 = vcombine.high %v3628_v3, %v3644_v4  ;;  %v3717_v19 = vcombine.high %v3660_v61, %v3676_v9  ;;  %v3684_v20 = vcombine.low %v3628_v3, %v3644_v4  ;;  %v3716_v21 = vcombine.low %v3660_v61, %v3676_v9 }
 0x64b   : > { %8795 = vmatpush3.bf16.msra.mxu0 %v8794_v62 }
 0x64c   : > { %v3699_v51 = vrot.slane %v3685_v14, %v10478_v45  ;;  %v3731_v23 = vrot.slane %v3717_v19, %v10478_v45  ;;  %v10765_v24 = vrot.slane %v3684_v20, %v10478_v45  ;;  %v10768_v25 = vrot.slane %v3716_v21, %v10478_v45 }
 0x64e   : > { %v3750_v31 = vcombine.low %v3699_v51, %v3731_v23  ;;  %v3749_v32 = vcombine.high %v10765_v24, %v10768_v25  ;;  %v3751_v33 = vcombine.high %v3699_v51, %v3731_v23  ;;  %v3748_v10 = vcombine.low %v10765_v24, %v10768_v25 }
 0x64f   : > { %v3261_v15 = vpop.f32.mrb[14].mxu0  ;;  %v3334_v18 = vpop.f32.mrb[14].mxu1 }
 0x650   : > { %3761 = vrot.lane.b32.xlu0 %v3750_v31, %s9761_s26  ;;  %3757 = vrot.lane.b32.xlu1 %v3749_v32, %s9762_s28  ;;  %v8413_v28 = vpop.f32.mrb[15].mxu0  ;;  %v8418_v36 = vpop.f32.mrb[15].mxu1 }
 0x653   : > { %v3407_v6 = vpop.f32.mrb[16].mxu0  ;;  %v3480_v8 = vpop.f32.mrb[16].mxu1 }
 0x654   : > { %3765 = vrot.lane.b32.xlu1 %v3751_v33, %s9760_s12  ;;  %v3516_v39 = vcombine.low %v3261_v15, %v3407_v6  ;;  %v3517_v40 = vcombine.high %v3261_v15, %v3407_v6  ;;  %v3532_v42 = vcombine.low %v3334_v18, %v3480_v8  ;;  %v3533_v43 = vcombine.high %v3334_v18, %v3480_v8  ;;  %v8423_v27 = vpop.f32.mrb[17].mxu0  ;;  %v8428_v44 = vpop.f32.mrb[17].mxu1  ;;  %v7997_v8 = vld [vmem:[%s11600_s6] ss:$0 sm:$0xff] }
 0x655   : > { %v4015_v44 = vld [vmem:[#allocation16] sm:$0xff] }
 0x656   : > { %v3524_v46 = vrot.slane %v3516_v39, %v10473_v38  ;;  %v3531_v47 = vrot.slane %v3517_v40, %v10473_v38  ;;  %v3540_v48 = vrot.slane %v3532_v42, %v10473_v38  ;;  %v3547_v49 = vrot.slane %v3533_v43, %v10473_v38  ;;  %v9266_v43 = vld [vmem:[%s954_s11] sm:$0xff]  ;;  %s11614_s11 = sld [smem:[#allocation63_spill]] }
 0x658   : > { %v3580_v50 = vcombine.low %v3524_v46, %v3540_v48  ;;  %v3581_v52 = vcombine.high %v3524_v46, %v3540_v48  ;;  %v3596_v53 = vcombine.low %v3531_v47, %v3547_v49  ;;  %v3597_v54 = vcombine.high %v3531_v47, %v3547_v49  ;;  %v4017_v47 = vld [vmem:[#allocation16 + $0x10] sm:$0xff]  ;;  %v4018_v48 = vld [vmem:[#allocation16 + $0x18] sm:$0xff]  ;;  %v4019_v49 = vld [vmem:[#allocation16 + $0x20] sm:$0xff] }
 0x659   : > { %v8820_v46 = vpack.c.bf16 %v4016_v26, %v4015_v44  ;;  %v4113_v44 = vld [vmem:[#allocation17] sm:$0xff]  ;;  %v4114_v26 = vld [vmem:[#allocation17 + $0x8] sm:$0xff] }
 0x65a   : > { %v3588_v55 = vrot.slane %v3580_v50, %v10478_v45  ;;  %v3595_v56 = vrot.slane %v3581_v52, %v10478_v45  ;;  %v3604_v57 = vrot.slane %v3596_v53, %v10478_v45  ;;  %v3611_v58 = vrot.slane %v3597_v54, %v10478_v45  ;;  %v4020_v52 = vld [vmem:[#allocation16 + $0x28] sm:$0xff]  ;;  %v4021_v54 = vld [vmem:[#allocation16 + $0x30] sm:$0xff] }
 0x65b   : > { %8821 = vmatprep.subr.bf16.mxu0 %v8820_v46  ;;  %v8824_v50 = vpack.c.bf16 %v4018_v48, %v4017_v47  ;;  %v8828_v53 = vpack.c.bf16 %v4020_v52, %v4019_v49  ;;  %v8852_v47 = vpack.c.bf16 %v4114_v26, %v4113_v44 }
 0x65c   : > { %v7990_v63 = vcombine.low %v3588_v55, %v3595_v56  ;;  %v7992_v3 = vcombine.high %v3588_v55, %v3595_v56  ;;  %v7994_v4 = vcombine.low %v3604_v57, %v3611_v58  ;;  %v7996_v61 = vcombine.high %v3604_v57, %v3611_v58  ;;  %v4022_v55 = vld [vmem:[#allocation16 + $0x38] sm:$0xff]  ;;  %v10821_v56 = vld [vmem:[%s10378_s13] sm:$0xff] }
 0x65d   : > { %v8832_v57 = vpack.c.bf16 %v4022_v55, %v4021_v54  ;;  %v4023_v58 = vld [vmem:[#allocation16 + $0x40] sm:$0xff]  ;;  %v4013_v62 = vadd.f32 %v1109_v60, %v10821_v56 }
 0x65e   : > { %v3635_v9 = vrot.slane %v7990_v63, %v10473_v38  ;;  %v3651_v2 = vrot.slane %v7992_v3, %v10473_v38  ;;  %v3667_v11 = vrot.slane %v7994_v4, %v10473_v38  ;;  %v3683_v12 = vrot.slane %v7996_v61, %v10473_v38  ;;  %v3920_v63 = vld [vmem:[#allocation14] sm:$0xff]  ;;  %v3921_v3 = vld [vmem:[#allocation14 + $0x8] sm:$0xff]  ;;  %v3922_v4 = vld [vmem:[#allocation14 + $0x10] sm:$0xff] }
 0x65f   : > { %v8797_v61 = vpack.c.bf16 %v3921_v3, %v3920_v63  ;;  %v4115_v3 = vld [vmem:[#allocation17 + $0x10] sm:$0xff] }
 0x660   : > { %v3700_v14 = vcombine.low %v3635_v9, %v3651_v2  ;;  %v3732_v19 = vcombine.low %v3667_v11, %v3683_v12  ;;  %v3701_v20 = vcombine.high %v3635_v9, %v3651_v2  ;;  %v3733_v21 = vcombine.high %v3667_v11, %v3683_v12  ;;  %v3923_v9 = vld [vmem:[#allocation14 + $0x18] sm:$0xff]  ;;  %v4025_v12 = vld [vmem:[#allocation16 + $0x50] sm:$0xff] }
 0x661   : > { %v8836_v2 = vpack.c.bf16 %v4024_v59, %v4023_v58  ;;  %8798 = vmatpush3.bf16.msra.mxu1 %v8797_v61  ;;  %v8800_v11 = vpack.c.bf16 %v3923_v9, %v3922_v4  ;;  %v7998_v59 = vld [vmem:[%s11602_s17] ss:$0 sm:$0xff]  ;;  %v4116_v4 = vld [vmem:[#allocation17 + $0x18] sm:$0xff] }
 0x662   : > { %v3708_v41 = vrot.slane %v3700_v14, %v10478_v45  ;;  %v3740_v51 = vrot.slane %v3732_v19, %v10478_v45  ;;  %v3715_v23 = vrot.slane %v3701_v20, %v10478_v45  ;;  %v3747_v29 = vrot.slane %v3733_v21, %v10478_v45  ;;  %v4026_v14 = vld [vmem:[#allocation16 + $0x58] sm:$0xff]  ;;  %8799 = vmatprep.subr.bf16.mxu1 %v9754_v1  ;;  %v4027_v20 = vld [vmem:[#allocation16 + $0x60] sm:$0xff]  ;;  %v4028_v21 = vld [vmem:[#allocation16 + $0x68] sm:$0xff] }
 0x663   : > { %v8840_v19 = vpack.c.bf16 %v4026_v14, %v4025_v12  ;;  %v9267_v9 = vld [vmem:[%s963_s8] sm:$0xff]  ;;  %v4117_v12 = vld [vmem:[#allocation17 + $0x20] sm:$0xff]  ;;  %v4118_v14 = vld [vmem:[#allocation17 + $0x28] sm:$0xff]  ;;  %s11612_s8 = sld [smem:[#allocation58_spill]] }
 0x664   : > { %v3753_v30 = vcombine.high %v3708_v41, %v3740_v51  ;;  %v3752_v31 = vcombine.low %v3708_v41, %v3740_v51  ;;  %v3755_v32 = vcombine.high %v3715_v23, %v3747_v29  ;;  %v3754_v33 = vcombine.low %v3715_v23, %v3747_v29  ;;  %v4029_v51 = vld [vmem:[#allocation16 + $0x70] sm:$0xff]  ;;  %v4030_v23 = vld [vmem:[#allocation16 + $0x78] sm:$0xff] }
 0x665   : > { %8801 = vmatpush3.bf16.msra.mxu1 %v8800_v11  ;;  %v8844_v41 = vpack.c.bf16 %v4028_v21, %v4027_v20  ;;  %v8848_v29 = vpack.c.bf16 %v4030_v23, %v4029_v51  ;;  %v8856_v11 = vpack.c.bf16 %v4116_v4, %v4115_v3  ;;  %v4119_v20 = vld [vmem:[#allocation17 + $0x30] sm:$0xff]  ;;  %v4120_v21 = vld [vmem:[#allocation17 + $0x38] sm:$0xff]  ;;  %v4121_v51 = vld [vmem:[#allocation17 + $0x40] sm:$0xff] }
 0x666   : > { %3773 = vrot.lane.b32.xlu1 %v3753_v30, %s9759_s23  ;;  %3769 = vrot.lane.b32.xlu0 %v3752_v31, %s9758_s22  ;;  %v10828_v30 = vld [vmem:[%s10378_s13 + $0x8] sm:$0xff]  ;;  %s11607_s13 = sld [smem:[#allocation54_spill]] }
 0x667   : > { %8802 = vmatprep.subr.bf16.mxu1 %v9754_v1  ;;  %v1110_v31 = vld [vmem:[%s10380_s2 + $0x8] sm:$0xff]  ;;  %s11601_s2 = sld [smem:[#allocation52_spill]] }
 0x668   : > { %v4122_v23 = vld [vmem:[#allocation17 + $0x48] sm:$0xff] }
 0x66a   : > { %3781 = vrot.lane.b32.xlu1 %v3755_v32, %s9757_s15  ;;  %3777 = vrot.lane.b32.xlu0 %v3754_v33, %s9756_s18  ;;  %v4014_v32 = vadd.f32 %v1110_v31, %v10828_v30  ;;  %v4123_v31 = vld [vmem:[#allocation17 + $0x50] sm:$0xff] }
 0x66d   : > { %v8001_v48 = vld [vmem:[%s11601_s2] ss:$0 sm:$0xff]  ;;  %s11616_s2 = sld [smem:[#allocation65_spill]] }
 0x6c2   : > { %v3758_v13 = vpop.permute.xlu1 %3757  ;;  %v3762_v15 = vpop.permute.xlu0 %3761 }
 0x6c3   : > { %v3784_v18 = vsel %vm2202_vm1, %v3748_v10, %v3758_v13 }
 0x6c4   : > { %v3786_v35 = vsel %vm3785_vm3, %v3784_v18, %v3762_v15 }
 0x6c6   : > { %v3766_v34 = vpop.permute.xlu1 %3765 }
 0x6c7   : > { %v3788_v28 = vsel %vm3787_vm4, %v3786_v35, %v3766_v34  ;;  %v3924_v34 = vld [vmem:[#allocation14 + $0x20] sm:$0xff]  ;;  %v3925_v35 = vld [vmem:[#allocation14 + $0x28] sm:$0xff] }
 0x6d8   : > { %v3770_v36 = vpop.permute.xlu0 %3769  ;;  %v3774_v37 = vpop.permute.xlu1 %3773 }
 0x6d9   : > { %v3790_v7 = vsel %vm3789_vm5, %v3788_v28, %v3770_v36  ;;  %v8803_v28 = vpack.c.bf16 %v3925_v35, %v3924_v34  ;;  %v3926_v36 = vld [vmem:[#allocation14 + $0x30] sm:$0xff] }
 0x6da   : > { %v3792_v24 = vsel %vm3791_vm6, %v3790_v7, %v3774_v37  ;;  %v3927_v37 = vld [vmem:[#allocation14 + $0x38] sm:$0xff] }
 0x6db   : > { %8804 = vmatpush3.bf16.msra.mxu1 %v8803_v28  ;;  %v8806_v7 = vpack.c.bf16 %v3927_v37, %v3926_v36 }
 0x6dc   : > { %v3778_v25 = vpop.permute.xlu0 %3777  ;;  %v3782_v10 = vpop.permute.xlu1 %3781  ;;  %8805 = vmatprep.subr.bf16.mxu1 %v9754_v1 }
 0x6dd   : > { %v3794_v5 = vsel %vm3793_vm7, %v3792_v24, %v3778_v25  ;;  %v3928_v24 = vld [vmem:[#allocation14 + $0x40] sm:$0xff]  ;;  %v3929_v25 = vld [vmem:[#allocation14 + $0x48] sm:$0xff] }
 0x6de   : > { %v3796_v6 = vsel %vm3795_vm8, %v3794_v5, %v3782_v10  ;;  %v8809_v10 = vpack.c.bf16 %v3929_v25, %v3928_v24  ;;  %v3930_v5 = vld [vmem:[#allocation14 + $0x50] sm:$0xff] }
 0x6df   : > { %8462 = vmatmul.mubr.f32.vlgmr.msra.gmra.mrb[18].mxu0 %v3796_v6  ;;  %8807 = vmatpush3.bf16.msra.mxu1 %v8806_v7  ;;  %v3931_v6 = vld [vmem:[#allocation14 + $0x58] sm:$0xff] }
 0x6e0   : > { %8823 = vmatpush3.bf16.msra.mxu0 %v8820_v46  ;;  %8531 = vmatprep.mubr.f32.mxu0 %v4013_v62  ;;  %v7999_v62 = vld [vmem:[%s11603_s0] ss:$0 sm:$0xff] }
 0x6e1   : > { %8825 = vmatprep.subr.bf16.mxu0 %v8824_v50  ;;  %8808 = vmatprep.subr.bf16.mxu1 %v9754_v1 }
 0x6e3   : > { %8810 = vmatpush3.bf16.msra.mxu1 %v8809_v10 }
 0x6e4   : > { %8827 = vmatpush3.bf16.msra.mxu0 %v8824_v50  ;;  %8811 = vmatprep.subr.bf16.mxu1 %v9754_v1 }
 0x6e5   : > { %8829 = vmatprep.subr.bf16.mxu0 %v8828_v53 }
 0x6e8   : > { %8831 = vmatpush3.bf16.msra.mxu0 %v8828_v53 }
 0x6e9   : > { %8833 = vmatprep.subr.bf16.mxu0 %v8832_v57 }
 0x6ec   : > { %8835 = vmatpush3.bf16.msra.mxu0 %v8832_v57 }
 0x6ed   : > { %8837 = vmatprep.subr.bf16.mxu0 %v8836_v2 }
 0x6f0   : > { %8839 = vmatpush3.bf16.msra.mxu0 %v8836_v2 }
 0x6f1   : > { %8841 = vmatprep.subr.bf16.mxu0 %v8840_v19 }
 0x6f4   : > { %8843 = vmatpush3.bf16.msra.mxu0 %v8840_v19  ;;  %v8860_v19 = vpack.c.bf16 %v4118_v14, %v4117_v12 }
 0x6f5   : > { %8845 = vmatprep.subr.bf16.mxu0 %v8844_v41 }
 0x6f8   : > { %8847 = vmatpush3.bf16.msra.mxu0 %v8844_v41  ;;  %v8864_v41 = vpack.c.bf16 %v4120_v21, %v4119_v20 }
 0x6f9   : > { %8849 = vmatprep.subr.bf16.mxu0 %v8848_v29 }
 0x6fc   : > { %8851 = vmatpush3.bf16.msra.mxu0 %v8848_v29  ;;  %v8868_v29 = vpack.c.bf16 %v4122_v23, %v4121_v51 }
 0x6fd   : > { %8900 = vmatprep.subr.bf16.mxu0 %v9754_v1 }
 0x6ff   : > { %8532 = vmatmul.mubr.f32.vlgmr.msra.gmra.mrb[20].mxu0 %v4014_v32  ;;  %v4124_v32 = vld [vmem:[#allocation17 + $0x58] sm:$0xff] }
 0x700   : > { %8601 = vmatprep.mubr.msk.f32.mxu0 %vm9755_vm0, %v9753_v0 }
 0x7b2   : > { %v3886_v39 = vpop.f32.mrb[18].mxu0 }
 0x7b3   : > { %v3887_v40 = vadd.f32 %v7997_v8, %v3886_v39  ;;  %v8463_v42 = vpop.f32.mrb[19].mxu0  ;;  %v8812_v8 = vpack.c.bf16 %v3931_v6, %v3930_v5  ;;  %v3932_v39 = vld [vmem:[#allocation14 + $0x60] sm:$0xff] }
 0x7b5   : > { %v10817_v27 = vadd.f32 %v9266_v43, %v3887_v40  ;;  %v3933_v40 = vld [vmem:[#allocation14 + $0x68] sm:$0xff]  ;;  %8813 = vmatpush3.bf16.msra.mxu1 %v8812_v8  ;;  %v3934_v43 = vld [vmem:[#allocation14 + $0x70] sm:$0xff] }
 0x7b6   : > { %v8815_v42 = vpack.c.bf16 %v3933_v40, %v3932_v39  ;;  %8814 = vmatprep.subr.bf16.mxu1 %v9754_v1 }
 0x7b7   : > { %3893 = vadd.xlane.f32.xlu0 %v10817_v27 }
 0x7b9   : > { %8816 = vmatpush3.bf16.msra.mxu1 %v8815_v42 }
 0x7ba   : > { %8817 = vmatprep.subr.bf16.mxu1 %v9754_v1 }
 0x7d2   : > { %v8533_v49 = vpop.f32.mrb[20].mxu0 }
 0x7d3   : > { %v10844_v50 = vadd.f32 %v8533_v49, %v8001_v48  ;;  %v4104_v52 = vpop.f32.mrb[21].mxu0 }
 0x7d4   : > { %v10846_v53 = vadd.f32 %v8001_v48, %v4104_v52 }
 0x7d6   : > { %4507 = vrot.lane.b32.xlu0 %v10846_v53, %s9757_s15 }
 0x7da   : > { %4513 = vrot.lane.b32.xlu0 %v10846_v53, %s9756_s18 }
 0x7de   : > { %4519 = vrot.lane.b32.xlu0 %v10846_v53, %s9759_s23 }
 0x844   : > { %v3894_v33 = vpop.xlane.xlu0 %3893 }
 0x845   : > { %v3896_v13 = vmul.f32 0.0078125, %v3894_v33  ;;  %v8872_v33 = vpack.c.bf16 %v4124_v32, %v4123_v31 }
 0x847   : > { %v3897_v15 = vsub.f32 %v10817_v27, %v3896_v13  ;;  %v3935_v27 = vld [vmem:[#allocation14 + $0x78] sm:$0xff]  ;;  %v4125_v13 = vld [vmem:[#allocation17 + $0x60] sm:$0xff] }
 0x848   : > { %v8818_v46 = vpack.c.bf16 %v3935_v27, %v3934_v43  ;;  %v4508_v34 = vpop.permute.xlu0 %4507 }
 0x849   : > { %v3898_v18 = vmul.f32 %v3897_v15, %v3897_v15 }
 0x84a   : > { %8819 = vmatpush3.bf16.msra.mxu1 %v8818_v46 }
 0x84b   : > { %3899 = vadd.xlane.f32.xlu1 %v3898_v18  ;;  %8853 = vmatprep.subr.bf16.mxu1 %v8852_v47 }
 0x84c   : > { %v4514_v37 = vpop.permute.xlu0 %4513 }
 0x84d   : > { %v4549_v7 = vcombine.low %v10846_v53, %v4514_v37  ;;  %v4550_v24 = vcombine.high %v10846_v53, %v4514_v37 }
 0x84f   : > { %v4557_v40 = vrot.slane %v4549_v7, %v10473_v38  ;;  %v4564_v42 = vrot.slane %v4550_v24, %v10473_v38 }
 0x850   : > { %v4520_v39 = vpop.permute.xlu0 %4519 }
 0x851   : > { %v4565_v43 = vcombine.low %v4508_v34, %v4520_v39  ;;  %v4566_v27 = vcombine.high %v4508_v34, %v4520_v39 }
 0x853   : > { %v4573_v46 = vrot.slane %v4565_v43, %v10473_v38 }
 0x85c   : > { %4509 = vrot.lane.b32.xlu1 %v10844_v50, %s9757_s15 }
 0x860   : > { %4515 = vrot.lane.b32.xlu1 %v10844_v50, %s9756_s18 }
 0x864   : > { %4521 = vrot.lane.b32.xlu1 %v10844_v50, %s9759_s23 }
 0x8d8   : > { %v3900_v54 = vpop.xlane.xlu1 %3899 }
 0x8d9   : > { %v3901_v55 = vmul.f32 0.0078125, %v3900_v54 }
 0x8db   : > { %v3902_v57 = vadd.f32 1e-05, %v3901_v55  ;;  %v4613_v55 = vcombine.low %v4557_v40, %v4573_v46 }
 0x8dc   : > { %v4510_v18 = vpop.permute.xlu1 %4509 }
 0x8dd   : > { %9228 = vrsqrt.f32 %v3902_v57  ;;  %v4614_v57 = vcombine.high %v4557_v40, %v4573_v46  ;;  %v4621_v4 = vrot.slane %v4613_v55, %v10478_v45 }
 0x8e0   : > { %v4516_v35 = vpop.permute.xlu1 %4515 }
 0x8e1   : > { %v4685_v28 = vcombine.low %v10844_v50, %v4516_v35  ;;  %v4686_v36 = vcombine.high %v10844_v50, %v4516_v35 }
 0x8e3   : > { %v4693_v10 = vrot.slane %v4685_v28, %v10473_v38  ;;  %v4700_v5 = vrot.slane %v4686_v36, %v10473_v38 }
 0x8e4   : > { %v4522_v25 = vpop.permute.xlu1 %4521 }
 0x8e5   : > { %v4701_v6 = vcombine.low %v4510_v18, %v4522_v25  ;;  %v4702_v8 = vcombine.high %v4510_v18, %v4522_v25 }
 0x8e7   : > { %v9229_v58 = vpop.eup %9228  ;;  %v4709_v44 = vrot.slane %v4701_v6, %v10473_v38  ;;  %v4716_v26 = vrot.slane %v4702_v8, %v10473_v38 }
 0x8e8   : > { %v3904_v60 = vmul.f32 %v9229_v58, %v3897_v15  ;;  %v4126_v15 = vld [vmem:[#allocation17 + $0x68] sm:$0xff] }
 0x8e9   : > { %v4749_v48 = vcombine.low %v4693_v10, %v4709_v44  ;;  %v4750_v49 = vcombine.high %v4693_v10, %v4709_v44  ;;  %v4765_v52 = vcombine.low %v4700_v5, %v4716_v26  ;;  %v4766_v54 = vcombine.high %v4700_v5, %v4716_v26  ;;  %v4127_v10 = vld [vmem:[#allocation17 + $0x70] sm:$0xff]  ;;  %v4128_v5 = vld [vmem:[#allocation17 + $0x78] sm:$0xff] }
 0x8ea   : > { %v3911_v63 = vmul.f32 %v7998_v59, %v3904_v60 }
 0x8eb   : > { %v4757_v60 = vrot.slane %v4749_v48, %v10478_v45  ;;  %v4780_v3 = vrot.slane %v4766_v54, %v10478_v45 }
 0x8ec   : > { %v10866_v61 = vadd.f32 %v7999_v62, %v3911_v63  ;;  %v4764_v62 = vrot.slane %v4750_v49, %v10478_v45  ;;  %v4773_v63 = vrot.slane %v4765_v52, %v10478_v45 }
 0x8ee   : > { %v3919_v2 = vadd.f32 %v9267_v9, %v10866_v61  ;;  %v4628_v9 = vrot.slane %v4614_v57, %v10478_v45  ;;  %v8019_v12 = vcombine.low %v4757_v60, %v4764_v62  ;;  %v8021_v14 = vcombine.high %v4757_v60, %v4764_v62 }
 0x8ef   : > { %v8025_v20 = vcombine.high %v4773_v63, %v4780_v3 }
 0x8f0   : > { %8497 = vmatmul.mubr.f32.vlgmr.msra.gmra.mrb[18].mxu1 %v3919_v2  ;;  %v8011_v21 = vcombine.low %v4621_v4, %v4628_v9  ;;  %v4981_v31 = vrot.slane %v8021_v14, %v10473_v38 }
 0x8f1   : > { %8855 = vmatpush3.bf16.msra.mxu1 %v8852_v47  ;;  %8566 = vmatprep.mubr.f32.mxu1 %v10821_v56  ;;  %v8876_v56 = vpack.c.bf16 %v4126_v15, %v4125_v13  ;;  %v4580_v47 = vrot.slane %v4566_v27, %v10473_v38 }
 0x8f2   : > { %8857 = vmatprep.subr.bf16.mxu1 %v8856_v11  ;;  %v4829_v13 = vrot.slane %v8011_v21, %v10473_v38 }
 0x8f3   : > { %v4629_v58 = vcombine.low %v4564_v42, %v4580_v47  ;;  %v4630_v59 = vcombine.high %v4564_v42, %v4580_v47  ;;  %v8880_v42 = vpack.c.bf16 %v4128_v5, %v4127_v10 }
 0x8f5   : > { %8859 = vmatpush3.bf16.msra.mxu1 %v8856_v11  ;;  %v4637_v2 = vrot.slane %v4629_v58, %v10478_v45  ;;  %v4644_v11 = vrot.slane %v4630_v59, %v10478_v45 }
 0x8f6   : > { %8861 = vmatprep.subr.bf16.mxu1 %v8860_v19 }
 0x8f7   : > { %v8015_v51 = vcombine.low %v4637_v2, %v4644_v11  ;;  %v8017_v23 = vcombine.high %v4637_v2, %v4644_v11  ;;  %v8002_v2 = vld [vmem:[%s11607_s13] ss:$0 sm:$0xff] }
 0x8f9   : > { %8863 = vmatpush3.bf16.msra.mxu1 %v8860_v19  ;;  %v8023_v19 = vcombine.low %v4773_v63, %v4780_v3  ;;  %v4877_v18 = vrot.slane %v8017_v23, %v10473_v38  ;;  %v8000_v63 = vld [vmem:[%s11606_s9] ss:$0 sm:$0xff] }
 0x8fa   : > { %8865 = vmatprep.subr.bf16.mxu1 %v8864_v41 }
 0x8fb   : > { %v4997_v32 = vrot.slane %v8023_v19, %v10473_v38 }
 0x8fd   : > { %8867 = vmatpush3.bf16.msra.mxu1 %v8864_v41  ;;  %v8013_v41 = vcombine.high %v4621_v4, %v4628_v9 }
 0x8fe   : > { %8869 = vmatprep.subr.bf16.mxu1 %v8868_v29 }
 0x8ff   : > { %v4845_v15 = vrot.slane %v8013_v41, %v10473_v38 }
 0x901   : > { %8871 = vmatpush3.bf16.msra.mxu1 %v8868_v29  ;;  %v4965_v29 = vrot.slane %v8019_v12, %v10473_v38  ;;  %v4885_v37 = vcombine.low %v4829_v13, %v4845_v15  ;;  %v4886_v7 = vcombine.high %v4829_v13, %v4845_v15 }
 0x902   : > { %8873 = vmatprep.subr.bf16.mxu1 %v8872_v33 }
 0x903   : > { %v5021_v34 = vcombine.low %v4965_v29, %v4981_v31  ;;  %v5022_v35 = vcombine.high %v4965_v29, %v4981_v31  ;;  %v4893_v39 = vrot.slane %v4885_v37, %v10478_v45  ;;  %v4900_v46 = vrot.slane %v4886_v7, %v10478_v45 }
 0x905   : > { %8875 = vmatpush3.bf16.msra.mxu1 %v8872_v33  ;;  %v5013_v33 = vrot.slane %v8025_v20, %v10473_v38  ;;  %v5029_v6 = vrot.slane %v5021_v34, %v10478_v45  ;;  %v5036_v44 = vrot.slane %v5022_v35, %v10478_v45 }
 0x906   : > { %8877 = vmatprep.subr.bf16.mxu1 %v8876_v56 }
 0x907   : > { %v5053_v28 = vcombine.low %v4997_v32, %v5013_v33  ;;  %v5054_v36 = vcombine.high %v4997_v32, %v5013_v33 }
 0x909   : > { %8879 = vmatpush3.bf16.msra.mxu1 %v8876_v56  ;;  %v4861_v56 = vrot.slane %v8015_v51, %v10473_v38  ;;  %v5061_v8 = vrot.slane %v5053_v28, %v10478_v45  ;;  %v5068_v26 = vrot.slane %v5054_v36, %v10478_v45 }
 0x90a   : > { %8881 = vmatprep.subr.bf16.mxu1 %v8880_v42 }
 0x90b   : > { %v4917_v24 = vcombine.low %v4861_v56, %v4877_v18  ;;  %v4918_v25 = vcombine.high %v4861_v56, %v4877_v18  ;;  %v5085_v27 = vcombine.low %v5029_v6, %v5061_v8  ;;  %v5086_v54 = vcombine.high %v5029_v6, %v5061_v8 }
 0x90c   : > { %v5087_v57 = vcombine.low %v5036_v44, %v5068_v26  ;;  %v5088_v59 = vcombine.high %v5036_v44, %v5068_v26 }
 0x90d   : > { %v4925_v40 = vrot.slane %v4917_v24, %v10478_v45  ;;  %8883 = vmatpush3.bf16.msra.mxu1 %v8880_v42  ;;  %v4932_v47 = vrot.slane %v4918_v25, %v10478_v45 }
 0x90e   : > { %8884 = vmatprep.subr.bf16.mxu1 %v9754_v1 }
 0x90f   : > { %v4949_v43 = vcombine.low %v4893_v39, %v4925_v40  ;;  %v4950_v52 = vcombine.high %v4893_v39, %v4925_v40  ;;  %v4951_v55 = vcombine.low %v4900_v46, %v4932_v47  ;;  %v4952_v58 = vcombine.high %v4900_v46, %v4932_v47 }
 0x910   : > { %8567 = vmatmul.mubr.f32.vlgmr.msra.gmra.mrb[20].mxu1 %v10828_v30 }
 0x911   : > { %8573 = vmatprep.mubr.msk.f32.mxu1 %vm9755_vm0, %v9753_v0  ;;  %v8885_v48 = vpack.c.bf16 %v5085_v27, %v4949_v43  ;;  %v10918_v60 = vpack.c.bf16 %v5086_v54, %v4950_v52  ;;  %v10920_v62 = vpack.c.bf16 %v5087_v57, %v4951_v55  ;;  %v10924_v30 = vpack.c.bf16 %v5088_v59, %v4952_v58 }
 0x916   : > { %8887 = vmatpush3.bf16.xpose.msk.msra.mxu1 %vm10914_vm9, %v8885_v48 }
 0x917   : > { %8888 = vmatprep.subr.bf16.mxu1 %v9754_v1 }
 0x9c3   : > { %v4009_v3 = vpop.f32.mrb[18].mxu1 }
 0x9c4   : > { %v4010_v4 = vadd.f32 %v8000_v63, %v4009_v3  ;;  %v8498_v9 = vpop.f32.mrb[19].mxu1 }
 0x9c6   : > { %4215 = vrot.lane.b32.xlu1 %v4010_v4, %s9756_s18  ;;  %4212 = vrot.lane.b32.xlu0 %v4010_v4, %s9757_s15 }
 0x9ca   : > { %4525 = vrot.lane.b32.xlu1 %v10846_v53, %s9758_s22  ;;  %4218 = vrot.lane.b32.xlu0 %v4010_v4, %s9759_s23 }
 0x9ce   : > { %4531 = vrot.lane.b32.xlu1 %v10846_v53, %s9760_s12  ;;  %4527 = vrot.lane.b32.xlu0 %v10844_v50, %s9758_s22 }
 0x9d2   : > { %4537 = vrot.lane.b32.xlu1 %v10846_v53, %s9761_s26  ;;  %4533 = vrot.lane.b32.xlu0 %v10844_v50, %s9760_s12 }
 0x9d6   : > { %4543 = vrot.lane.b32.xlu1 %v10846_v53, %s9762_s28  ;;  %4539 = vrot.lane.b32.xlu0 %v10844_v50, %s9761_s26 }
 0x9da   : > { %4221 = vrot.lane.b32.xlu1 %v4010_v4, %s9758_s22  ;;  %4545 = vrot.lane.b32.xlu0 %v10844_v50, %s9762_s28 }
 0x9de   : > { %4227 = vrot.lane.b32.xlu1 %v4010_v4, %s9761_s26  ;;  %4224 = vrot.lane.b32.xlu0 %v4010_v4, %s9760_s12 }
 0x9e2   : > { %4230 = vrot.lane.b32.xlu0 %v4010_v4, %s9762_s28 }
 0x9e3   : > { %v8568_v11 = vpop.f32.mrb[20].mxu1 }
 0x9e4   : > { %v10956_v53 = vadd.f32 %v8568_v11, %v8002_v2  ;;  %v4202_v12 = vpop.f32.mrb[21].mxu1 }
 0x9e5   : > { %v10958_v14 = vadd.f32 %v8002_v2, %v4202_v12 }
 0x9e7   : > { %5095 = vrot.lane.b32.xlu0 %v10958_v14, %s9757_s15 }
 0xa38   : > { %v4216_v50 = vpop.permute.xlu1 %4215  ;;  %v4213_v19 = vpop.permute.xlu0 %4212 }
 0xa39   : > { %v4233_v20 = vcombine.low %v4010_v4, %v4216_v50  ;;  %v4234_v21 = vcombine.high %v4010_v4, %v4216_v50 }
 0xa3b   : > { %v4241_v31 = vrot.slane %v4233_v20, %v10473_v38  ;;  %v4248_v32 = vrot.slane %v4234_v21, %v10473_v38 }
 0xa3c   : > { %v4526_v41 = vpop.permute.xlu1 %4525  ;;  %v4219_v51 = vpop.permute.xlu0 %4218 }
 0xa3d   : > { %v4249_v23 = vcombine.low %v4213_v19, %v4219_v51  ;;  %v4250_v29 = vcombine.high %v4213_v19, %v4219_v51 }
 0xa3f   : > { %v4257_v33 = vrot.slane %v4249_v23, %v10473_v38  ;;  %v4264_v13 = vrot.slane %v4250_v29, %v10473_v38 }
 0xa40   : > { %v4532_v15 = vpop.permute.xlu1 %4531  ;;  %v4528_v56 = vpop.permute.xlu0 %4527 }
 0xa41   : > { %v4297_v18 = vcombine.low %v4241_v31, %v4257_v33  ;;  %v4298_v34 = vcombine.high %v4241_v31, %v4257_v33  ;;  %v4313_v35 = vcombine.low %v4248_v32, %v4264_v13  ;;  %v4314_v28 = vcombine.high %v4248_v32, %v4264_v13 }
 0xa43   : > { %v4305_v36 = vrot.slane %v4297_v18, %v10478_v45  ;;  %v4312_v37 = vrot.slane %v4298_v34, %v10478_v45  ;;  %v4321_v7 = vrot.slane %v4313_v35, %v10478_v45  ;;  %v4328_v24 = vrot.slane %v4314_v28, %v10478_v45 }
 0xa44   : > { %v4538_v25 = vpop.permute.xlu1 %4537  ;;  %v4534_v10 = vpop.permute.xlu0 %4533 }
 0xa45   : > { %v8003_v5 = vcombine.low %v4305_v36, %v4312_v37  ;;  %v8005_v6 = vcombine.high %v4305_v36, %v4312_v37  ;;  %v8007_v8 = vcombine.low %v4321_v7, %v4328_v24  ;;  %v8009_v39 = vcombine.high %v4321_v7, %v4328_v24 }
 0xa46   : > { %v4581_v40 = vcombine.low %v4526_v41, %v4538_v25  ;;  %v4582_v42 = vcombine.high %v4526_v41, %v4538_v25 }
 0xa47   : > { %v10971_v43 = vrot.slane %v8003_v5, %v10473_v38  ;;  %v10974_v27 = vrot.slane %v8005_v6, %v10473_v38  ;;  %v10977_v44 = vrot.slane %v8007_v8, %v10473_v38  ;;  %v10980_v26 = vrot.slane %v8009_v39, %v10473_v38 }
 0xa48   : > { %v4544_v46 = vpop.permute.xlu1 %4543  ;;  %v4540_v47 = vpop.permute.xlu0 %4539  ;;  %v4589_v54 = vrot.slane %v4581_v40, %v10473_v38  ;;  %v4596_v59 = vrot.slane %v4582_v42, %v10473_v38 }
 0xa49   : > { %v4433_v48 = vcombine.low %v10971_v43, %v10974_v27  ;;  %v4465_v52 = vcombine.low %v10977_v44, %v10980_v26  ;;  %v4597_v55 = vcombine.low %v4532_v15, %v4544_v46  ;;  %v4598_v57 = vcombine.high %v4532_v15, %v4544_v46 }
 0xa4a   : > { %v4717_v58 = vcombine.low %v4528_v56, %v4540_v47  ;;  %v4718_v63 = vcombine.high %v4528_v56, %v4540_v47  ;;  %v4434_v9 = vcombine.high %v10971_v43, %v10974_v27  ;;  %v4466_v2 = vcombine.high %v10977_v44, %v10980_v26 }
 0xa4b   : > { %v4441_v3 = vrot.slane %v4433_v48, %v10478_v45  ;;  %v4473_v4 = vrot.slane %v4465_v52, %v10478_v45  ;;  %v4605_v11 = vrot.slane %v4597_v55, %v10473_v38  ;;  %v4612_v12 = vrot.slane %v4598_v57, %v10473_v38 }
 0xa4c   : > { %v4546_v50 = vpop.permute.xlu0 %4545  ;;  %v4725_v19 = vrot.slane %v4717_v58, %v10473_v38  ;;  %v4732_v32 = vrot.slane %v4718_v63, %v10473_v38  ;;  %v4222_v28 = vpop.permute.xlu1 %4221 }
 0xa4d   : > { %v4733_v20 = vcombine.low %v4534_v10, %v4546_v50  ;;  %v4734_v21 = vcombine.high %v4534_v10, %v4546_v50  ;;  %v4497_v41 = vcombine.low %v4441_v3, %v4473_v4  ;;  %v4645_v51 = vcombine.low %v4589_v54, %v4605_v11 }
 0xa4e   : > { %v4646_v23 = vcombine.high %v4589_v54, %v4605_v11  ;;  %v4661_v29 = vcombine.low %v4596_v59, %v4612_v12  ;;  %v4662_v31 = vcombine.high %v4596_v59, %v4612_v12  ;;  %v4498_v15 = vcombine.high %v4441_v3, %v4473_v4 }
 0xa4f   : > { %v4741_v33 = vrot.slane %v4733_v20, %v10473_v38  ;;  %v4748_v13 = vrot.slane %v4734_v21, %v10473_v38  ;;  %8574 = vmatmul.mubr.msk.f32.vlgmr.msra.gmra.mrb[22].mxu1 %vm2202_vm1, %v4497_v41  ;;  %v4653_v56 = vrot.slane %v4645_v51, %v10478_v45  ;;  %v4448_v11 = vrot.slane %v4434_v9, %v10478_v45 }
 0xa50   : > { %v4660_v18 = vrot.slane %v4646_v23, %v10478_v45  ;;  %v4669_v34 = vrot.slane %v4661_v29, %v10478_v45  ;;  %v4676_v35 = vrot.slane %v4662_v31, %v10478_v45  ;;  %8891 = vmatpush3.bf16.xpose.msk.msra.mxu1 %vm10914_vm9, %v10918_v60  ;;  %v4225_v25 = vpop.permute.xlu0 %4224  ;;  %8580 = vmatprep.mubr.msk.f32.mxu1 %vm9755_vm0, %v9753_v0  ;;  %v4228_v3 = vpop.permute.xlu1 %4227 }
 0xa51   : > { %v4781_v36 = vcombine.low %v4725_v19, %v4741_v33  ;;  %v4782_v37 = vcombine.high %v4725_v19, %v4741_v33  ;;  %v4797_v7 = vcombine.low %v4732_v32, %v4748_v13  ;;  %v4798_v24 = vcombine.high %v4732_v32, %v4748_v13  ;;  %8892 = vmatprep.subr.bf16.mxu1 %v9754_v1 }
 0xa52   : > { %v8012_v10 = vcombine.low %v4653_v56, %v4660_v18  ;;  %v8014_v5 = vcombine.high %v4653_v56, %v4660_v18  ;;  %v8016_v6 = vcombine.low %v4669_v34, %v4676_v35  ;;  %v8018_v8 = vcombine.high %v4669_v34, %v4676_v35 }
 0xa53   : > { %v4789_v39 = vrot.slane %v4781_v36, %v10478_v45  ;;  %v4796_v40 = vrot.slane %v4782_v37, %v10478_v45  ;;  %v4805_v60 = vrot.slane %v4797_v7, %v10478_v45  ;;  %v4812_v42 = vrot.slane %v4798_v24, %v10478_v45 }
 0xa54   : > { %v11016_v43 = vrot.slane %v8012_v10, %v10473_v38  ;;  %v11019_v27 = vrot.slane %v8014_v5, %v10473_v38  ;;  %v11022_v44 = vrot.slane %v8016_v6, %v10473_v38  ;;  %v11025_v26 = vrot.slane %v8018_v8, %v10473_v38  ;;  %v4231_v4 = vpop.permute.xlu0 %4230 }
 0xa55   : > { %v8020_v46 = vcombine.low %v4789_v39, %v4796_v40  ;;  %v8022_v47 = vcombine.high %v4789_v39, %v4796_v40  ;;  %v8024_v48 = vcombine.low %v4805_v60, %v4812_v42  ;;  %v8026_v52 = vcombine.high %v4805_v60, %v4812_v42 }
 0xa56   : > { %v4901_v54 = vcombine.low %v11016_v43, %v11019_v27  ;;  %v4933_v55 = vcombine.low %v11022_v44, %v11025_v26  ;;  %v4480_v12 = vrot.slane %v4466_v2, %v10478_v45  ;;  %v4265_v41 = vcombine.low %v4222_v28, %v4228_v3 }
 0xa57   : > { %v4972_v57 = vrot.slane %v8020_v46, %v10473_v38  ;;  %v4988_v58 = vrot.slane %v8022_v47, %v10473_v38  ;;  %v5004_v59 = vrot.slane %v8024_v48, %v10473_v38  ;;  %v5020_v63 = vrot.slane %v8026_v52, %v10473_v38  ;;  %8581 = vmatmul.mubr.msk.f32.vlgmr.msra.gmra.mrb[24].mxu1 %vm2202_vm1, %v4498_v15 }
 0xa58   : > { %8895 = vmatpush3.bf16.xpose.msk.msra.mxu1 %vm10914_vm9, %v10920_v62  ;;  %v4909_v50 = vrot.slane %v4901_v54, %v10478_v45  ;;  %v4941_v19 = vrot.slane %v4933_v55, %v10478_v45  ;;  %8587 = vmatprep.mubr.msk.f32.mxu1 %vm9755_vm0, %v9753_v0  ;;  %v4266_v51 = vcombine.high %v4222_v28, %v4228_v3 }
 0xa59   : > { %v5037_v20 = vcombine.low %v4972_v57, %v4988_v58  ;;  %v5069_v21 = vcombine.low %v5004_v59, %v5020_v63  ;;  %v4281_v23 = vcombine.low %v4225_v25, %v4231_v4  ;;  %v4282_v29 = vcombine.high %v4225_v25, %v4231_v4  ;;  %8896 = vmatprep.subr.bf16.mxu1 %v9754_v1 }
 0xa5a   : > { %v4273_v2 = vrot.slane %v4265_v41, %v10473_v38  ;;  %v4280_v31 = vrot.slane %v4266_v51, %v10473_v38  ;;  %v4499_v13 = vcombine.low %v4448_v11, %v4480_v12  ;;  %v4953_v15 = vcombine.low %v4909_v50, %v4941_v19 }
 0xa5b   : > { %v5045_v62 = vrot.slane %v5037_v20, %v10478_v45  ;;  %v5077_v9 = vrot.slane %v5069_v21, %v10478_v45  ;;  %v4289_v32 = vrot.slane %v4281_v23, %v10473_v38  ;;  %v4296_v33 = vrot.slane %v4282_v29, %v10473_v38 }
 0xa5c   : > { %v5038_v36 = vcombine.high %v4972_v57, %v4988_v58  ;;  %v5070_v37 = vcombine.high %v5004_v59, %v5020_v63  ;;  %v4902_v6 = vcombine.high %v11016_v43, %v11019_v27  ;;  %v4934_v8 = vcombine.high %v11022_v44, %v11025_v26 }
 0xa5d   : > { %v5089_v56 = vcombine.low %v5045_v62, %v5077_v9  ;;  %v4329_v18 = vcombine.low %v4273_v2, %v4289_v32  ;;  %v4330_v34 = vcombine.high %v4273_v2, %v4289_v32  ;;  %v4345_v35 = vcombine.low %v4280_v31, %v4296_v33 }
 0xa5e   : > { %v4346_v28 = vcombine.high %v4280_v31, %v4296_v33  ;;  %v5090_v39 = vcombine.high %v5045_v62, %v5077_v9  ;;  %v5084_v43 = vrot.slane %v5070_v37, %v10478_v45  ;;  %v4954_v27 = vcombine.high %v4909_v50, %v4941_v19 }
 0xa5f   : > { %8588 = vmatmul.mubr.msk.f32.vlgmr.msra.gmra.mrb[26].mxu1 %vm2202_vm1, %v4499_v13  ;;  %v8901_v7 = vpack.c.bf16 %v5089_v56, %v4953_v15  ;;  %v4337_v24 = vrot.slane %v4329_v18, %v10478_v45  ;;  %v4344_v25 = vrot.slane %v4330_v34, %v10478_v45  ;;  %v4353_v10 = vrot.slane %v4345_v35, %v10478_v45 }
 0xa60   : > { %v4360_v5 = vrot.slane %v4346_v28, %v10478_v45  ;;  %8899 = vmatpush3.bf16.xpose.msk.msra.mxu1 %vm10914_vm9, %v10924_v30  ;;  %8594 = vmatprep.mubr.msk.f32.mxu1 %vm9755_vm0, %v9753_v0  ;;  %v5052_v30 = vrot.slane %v5038_v36, %v10478_v45  ;;  %v4916_v52 = vrot.slane %v4902_v6, %v10478_v45 }
 0xa61   : > { %8903 = vmatpush3.bf16.xpose.msk.msra.mxu0 %vm10914_vm9, %v8901_v7  ;;  %v8004_v40 = vcombine.low %v4337_v24, %v4344_v25  ;;  %v8006_v60 = vcombine.high %v4337_v24, %v4344_v25  ;;  %8904 = vmatprep.subr.bf16.mxu1 %v9754_v1  ;;  %v4948_v54 = vrot.slane %v4934_v8, %v10478_v45 }
 0xa62   : > { %v8008_v42 = vcombine.low %v4353_v10, %v4360_v5  ;;  %v8010_v46 = vcombine.high %v4353_v10, %v4360_v5  ;;  %8908 = vmatprep.subr.bf16.mxu0 %v9754_v1  ;;  %v4500_v55 = vcombine.high %v4448_v11, %v4480_v12  ;;  %v8905_v59 = vpack.c.bf16 %v5090_v39, %v4954_v27 }
 0xa63   : > { %v4384_v44 = vrot.slane %v8004_v40, %v10473_v38  ;;  %v4400_v26 = vrot.slane %v8006_v60, %v10473_v38  ;;  %v5091_v63 = vcombine.low %v5052_v30, %v5084_v43  ;;  %v4955_v50 = vcombine.low %v4916_v52, %v4948_v54 }
 0xa64   : > { %v4416_v47 = vrot.slane %v8008_v42, %v10473_v38  ;;  %v4432_v48 = vrot.slane %v8010_v46, %v10473_v38  ;;  %v5092_v20 = vcombine.high %v5052_v30, %v5084_v43  ;;  %v4956_v41 = vcombine.high %v4916_v52, %v4948_v54 }
 0xa65   : > { %v4449_v57 = vcombine.low %v4384_v44, %v4400_v26  ;;  %v4450_v11 = vcombine.high %v4384_v44, %v4400_v26  ;;  %v8909_v21 = vpack.c.bf16 %v5091_v63, %v4955_v50  ;;  %v5096_v26 = vpop.permute.xlu0 %5095 }
 0xa66   : > { %v4481_v58 = vcombine.low %v4416_v47, %v4432_v48  ;;  %v4482_v12 = vcombine.high %v4416_v47, %v4432_v48  ;;  %v8913_v23 = vpack.c.bf16 %v5092_v20, %v4956_v41 }
 0xa67   : > { %8595 = vmatmul.mubr.msk.f32.vlgmr.msra.gmra.mrb[28].mxu1 %vm2202_vm1, %v4500_v55  ;;  %v4457_v3 = vrot.slane %v4449_v57, %v10478_v45  ;;  %v4464_v29 = vrot.slane %v4450_v11, %v10478_v45 }
 0xa68   : > { %8907 = vmatpush3.bf16.xpose.msk.msra.mxu1 %vm10914_vm9, %v8905_v59  ;;  %v4489_v4 = vrot.slane %v4481_v58, %v10478_v45  ;;  %8608 = vmatprep.mubr.msk.f32.mxu1 %vm9755_vm0, %v9753_v0  ;;  %v4496_v62 = vrot.slane %v4482_v12, %v10478_v45 }
 0xa69   : > { %8912 = vmatprep.subr.bf16.mxu1 %v9754_v1 }
 0xa6a   : > { %v4501_v19 = vcombine.low %v4457_v3, %v4489_v4  ;;  %v4502_v51 = vcombine.high %v4457_v3, %v4489_v4  ;;  %v4503_v9 = vcombine.low %v4464_v29, %v4496_v62  ;;  %v4504_v2 = vcombine.high %v4464_v29, %v4496_v62 }
 0xa6c   : > { %8602 = vmatmul.mubr.msk.f32.vlgmr.msra.gmra.mrb[22].mxu0 %vm2202_vm1, %v4501_v19 }
 0xa6d   : > { %8911 = vmatpush3.bf16.xpose.msk.msra.mxu0 %vm10914_vm9, %v8909_v21  ;;  %8615 = vmatprep.mubr.msk.f32.mxu0 %vm9755_vm0, %v9753_v0 }
 0xa6e   : > { %8916 = vmatprep.subr.bf16.mxu0 %v9754_v1 }
 0xa6f   : > { %8609 = vmatmul.mubr.msk.f32.vlgmr.msra.gmra.mrb[30].mxu1 %vm2202_vm1, %v4502_v51 }
 0xa70   : > { %8915 = vmatpush3.bf16.xpose.msk.msra.mxu1 %vm10914_vm9, %v8913_v23  ;;  %8622 = vmatprep.mubr.msk.f32.mxu1 %vm9755_vm0, %v9753_v0 }
 0xa71   : > { %8919 = vmatprep.subr.bf16.mxu1 %v9754_v1 }
 0xa74   : > { %8616 = vmatmul.mubr.msk.f32.vlgmr.msra.gmra.mrb[24].mxu0 %vm2202_vm1, %v4503_v9 }
 0xa75   : > { %8629 = vmatprep.mubr.msk.f32.mxu0 %vm9755_vm0, %v9753_v0 }
 0xa77   : > { %8623 = vmatmul.mubr.msk.f32.vlgmr.msra.gmra.mrb[32].mxu1 %vm2202_vm1, %v4504_v2 }
 0xa78   : > { %8636 = vmatprep.mubr.msk.f32.mxu1 %vm9755_vm0, %v9753_v0 }
 0xb22   : > { %v5756_v31 = vpop.f32.mrb[22].mxu1 }
 0xb23   : > { %v8575_v49 = vpop.f32.mrb[23].mxu1  ;;  %v6313_v32 = vsel %vm2202_vm1, %v5756_v31, -inf }
 0xb24   : > { %6314 = vmax.xlane.f32.xlu1 %v6313_v32 }
 0xb2a   : > { %v5835_v33 = vpop.f32.mrb[24].mxu1 }
 0xb2b   : > { %v8582_v13 = vpop.f32.mrb[25].mxu1  ;;  %v6316_v10 = vsel %vm2202_vm1, %v5835_v33, -inf }
 0xb32   : > { %v11107_v15 = vpop.f32.mrb[26].mxu1 }
 0xb33   : > { %v8589_v56 = vpop.f32.mrb[27].mxu1  ;;  %v6319_v42 = vsel %vm2202_vm1, %v11107_v15, -inf }
 0xb3a   : > { %v5993_v18 = vpop.f32.mrb[28].mxu1 }
 0xb3b   : > { %v8596_v34 = vpop.f32.mrb[29].mxu1  ;;  %v6322_v35 = vsel %vm2202_vm1, %v5993_v18, -inf }
 0xb3c   : > { %6323 = vmax.xlane.f32.xlu1 %v6322_v35 }
 0xb3f   : > { %v6072_v28 = vpop.f32.mrb[22].mxu0 }
 0xb40   : > { %v8603_v36 = vpop.f32.mrb[23].mxu0  ;;  %v6325_v37 = vsel %vm2202_vm1, %v6072_v28, -inf }
 0xb41   : > { %6326 = vmax.xlane.f32.xlu0 %v6325_v37 }
 0xb42   : > { %v6151_v7 = vpop.f32.mrb[30].mxu1 }
 0xb43   : > { %v8610_v24 = vpop.f32.mrb[31].mxu1  ;;  %v6328_v25 = vsel %vm2202_vm1, %v6151_v7, -inf }
 0xb44   : > { %6329 = vmax.xlane.f32.xlu1 %v6328_v25 }
 0xb45   : > { %6317 = vmax.xlane.f32.xlu0 %v6316_v10 }
 0xb47   : > { %v6230_v5 = vpop.f32.mrb[24].mxu0 }
 0xb48   : > { %v8617_v6 = vpop.f32.mrb[25].mxu0  ;;  %v6331_v8 = vsel %vm2202_vm1, %v6230_v5, -inf }
 0xb49   : > { %6332 = vmax.xlane.f32.xlu0 %v6331_v8 }
 0xb4a   : > { %v11114_v39 = vpop.f32.mrb[32].mxu1 }
 0xb4b   : > { %v8624_v40 = vpop.f32.mrb[33].mxu1  ;;  %v6334_v60 = vsel %vm2202_vm1, %v11114_v39, -inf }
 0xb4c   : > { %6335 = vmax.xlane.f32.xlu1 %v6334_v60 }
 0xb4d   : > { %6320 = vmax.xlane.f32.xlu0 %v6319_v42 }
 0xb5d   : > { %5097 = vrot.lane.b32.xlu1 %v10956_v53, %s9757_s15 }
 0xb61   : > { %5101 = vrot.lane.b32.xlu1 %v10958_v14, %s9756_s18 }
 0xb63   : > { %5103 = vrot.lane.b32.xlu0 %v10956_v53, %s9756_s18 }
 0xb65   : > { %5107 = vrot.lane.b32.xlu1 %v10958_v14, %s9759_s23 }
 0xb67   : > { %5109 = vrot.lane.b32.xlu0 %v10956_v53, %s9759_s23 }
 0xb69   : > { %5115 = vrot.lane.b32.xlu1 %v10956_v53, %s9758_s22 }
 0xb6b   : > { %5113 = vrot.lane.b32.xlu0 %v10958_v14, %s9758_s22 }
 0xb6d   : > { %5119 = vrot.lane.b32.xlu1 %v10958_v14, %s9760_s12 }
 0xb6f   : > { %5121 = vrot.lane.b32.xlu0 %v10956_v53, %s9760_s12 }
 0xb71   : > { %5125 = vrot.lane.b32.xlu1 %v10958_v14, %s9761_s26 }
 0xb73   : > { %5127 = vrot.lane.b32.xlu0 %v10956_v53, %s9761_s26 }
 0xb75   : > { %5131 = vrot.lane.b32.xlu1 %v10958_v14, %s9762_s28 }
 0xbb1   : > { %v6315_v46 = vpop.xlane.xlu1 %6314 }
 0xbb2   : > { %v6337_v30 = vsub.f32 %v5756_v31, %v6315_v46 }
 0xbb4   : > { %v6345_v43 = vmul.f32 1.442695, %v6337_v30 }
 0xbb6   : > { %9230 = vpow2.f32 %v6345_v43 }
 0xbc0   : > { %v11144_v27 = vpop.eup %9230 }
 0xbc1   : > { %v6361_v44 = vsel %vm2202_vm1, %v11144_v27, 0.0 }
 0xbc2   : > { %6362 = vadd.xlane.f32.xlu0 %v6361_v44 }
 0xbc9   : > { %v6324_v47 = vpop.xlane.xlu1 %6323 }
 0xbca   : > { %v6340_v48 = vsub.f32 %v5993_v18, %v6324_v47 }
 0xbcc   : > { %v6351_v55 = vmul.f32 1.442695, %v6340_v48 }
 0xbce   : > { %v6327_v52 = vpop.xlane.xlu0 %6326 }
 0xbcf   : > { %v6341_v54 = vsub.f32 %v6072_v28, %v6327_v52 }
 0xbd1   : > { %v6353_v57 = vmul.f32 1.442695, %v6341_v54  ;;  %v6330_v3 = vpop.xlane.xlu1 %6329 }
 0xbd2   : > { %v6318_v58 = vpop.xlane.xlu0 %6317  ;;  %v6342_v19 = vsub.f32 %v6151_v7, %v6330_v3 }
 0xbd3   : > { %9232 = vpow2.f32 %v6353_v57  ;;  %v6338_v59 = vsub.f32 %v5835_v33, %v6318_v58 }
 0xbd4   : > { %9234 = vpow2.f32 %v6351_v55  ;;  %v6355_v9 = vmul.f32 1.442695, %v6342_v19 }
 0xbd5   : > { %v6347_v63 = vmul.f32 1.442695, %v6338_v59 }
 0xbd6   : > { %v6333_v4 = vpop.xlane.xlu0 %6332 }
 0xbd7   : > { %9236 = vpow2.f32 %v6347_v63  ;;  %v6343_v41 = vsub.f32 %v6230_v5, %v6333_v4 }
 0xbd9   : > { %v11148_v50 = vpop.xlane.xlu1 %6335  ;;  %v6357_v33 = vmul.f32 1.442695, %v6343_v41 }
 0xbda   : > { %v6321_v11 = vpop.xlane.xlu0 %6320 }
 0xbdb   : > { %v6339_v12 = vsub.f32 %v11107_v15, %v6321_v11 }
 0xbdd   : > { %v11151_v20 = vpop.eup %9232  ;;  %v5098_v21 = vpop.permute.xlu1 %5097  ;;  %v6349_v51 = vmul.f32 1.442695, %v6339_v12 }
 0xbde   : > { %v5104_v23 = vpop.permute.xlu0 %5103  ;;  %v6373_v29 = vsel %vm2202_vm1, %v11151_v20, 0.0  ;;  %v11155_v62 = vpop.eup %9234 }
 0xbdf   : > { %6374 = vadd.xlane.f32.xlu0 %v6373_v29  ;;  %v5273_v31 = vcombine.low %v10956_v53, %v5104_v23  ;;  %v5274_v49 = vcombine.high %v10956_v53, %v5104_v23  ;;  %9238 = vpow2.f32 %v6349_v51  ;;  %v6370_v15 = vsel %vm2202_vm1, %v11155_v62, 0.0 }
 0xbe0   : > { %9240 = vpow2.f32 %v6355_v9 }
 0xbe1   : > { %v11157_v2 = vpop.eup %9236  ;;  %v5102_v32 = vpop.permute.xlu1 %5101  ;;  %v5281_v36 = vrot.slane %v5273_v31, %v10473_v38  ;;  %v5288_v37 = vrot.slane %v5274_v49, %v10473_v38  ;;  %9242 = vpow2.f32 %v6357_v33 }
 0xbe2   : > { %v5110_v13 = vpop.permute.xlu0 %5109  ;;  %v6364_v56 = vsel %vm2202_vm1, %v11157_v2, 0.0  ;;  %v5137_v35 = vcombine.low %v10958_v14, %v5102_v32  ;;  %v5138_v28 = vcombine.high %v10958_v14, %v5102_v32 }
 0xbe3   : > { %v5289_v18 = vcombine.low %v5098_v21, %v5110_v13  ;;  %v5290_v34 = vcombine.high %v5098_v21, %v5110_v13  ;;  %6371 = vadd.xlane.f32.xlu0 %v6370_v15  ;;  %6365 = vadd.xlane.f32.xlu1 %v6364_v56 }
 0xbe4   : > { %v5145_v42 = vrot.slane %v5137_v35, %v10473_v38  ;;  %v5152_v14 = vrot.slane %v5138_v28, %v10473_v38 }
 0xbe5   : > { %v5297_v7 = vrot.slane %v5289_v18, %v10473_v38  ;;  %v5304_v24 = vrot.slane %v5290_v34, %v10473_v38  ;;  %v5108_v25 = vpop.permute.xlu1 %5107 }
 0xbe6   : > { %v5153_v10 = vcombine.low %v5096_v26, %v5108_v25  ;;  %v5154_v5 = vcombine.high %v5096_v26, %v5108_v25 }
 0xbe7   : > { %v5337_v6 = vcombine.low %v5281_v36, %v5297_v7  ;;  %v5338_v8 = vcombine.high %v5281_v36, %v5297_v7  ;;  %v5353_v40 = vcombine.low %v5288_v37, %v5304_v24  ;;  %v5354_v60 = vcombine.high %v5288_v37, %v5304_v24 }
 0xbe8   : > { %v5161_v46 = vrot.slane %v5153_v10, %v10473_v38  ;;  %v5168_v30 = vrot.slane %v5154_v5, %v10473_v38 }
 0xbe9   : > { %v5345_v43 = vrot.slane %v5337_v6, %v10478_v45  ;;  %v5352_v44 = vrot.slane %v5338_v8, %v10478_v45  ;;  %v5361_v47 = vrot.slane %v5353_v40, %v10478_v45  ;;  %v5368_v26 = vrot.slane %v5354_v60, %v10478_v45  ;;  %v11179_v3 = vpop.eup %9238 }
 0xbea   : > { %v5201_v48 = vcombine.low %v5145_v42, %v5161_v46  ;;  %v5202_v52 = vcombine.high %v5145_v42, %v5161_v46  ;;  %v5217_v54 = vcombine.low %v5152_v14, %v5168_v30  ;;  %v5218_v55 = vcombine.high %v5152_v14, %v5168_v30  ;;  %v11189_v29 = vpop.eup %9240 }
 0xbeb   : > { %v8035_v57 = vcombine.low %v5345_v43, %v5352_v44  ;;  %v8037_v58 = vcombine.high %v5345_v43, %v5352_v44  ;;  %v8039_v59 = vcombine.low %v5361_v47, %v5368_v26  ;;  %v8041_v63 = vcombine.high %v5361_v47, %v5368_v26  ;;  %v11193_v15 = vpop.eup %9242 }
 0xbec   : > { %v5209_v4 = vrot.slane %v5201_v48, %v10478_v45  ;;  %v5216_v11 = vrot.slane %v5202_v52, %v10478_v45  ;;  %v5225_v12 = vrot.slane %v5217_v54, %v10478_v45  ;;  %v5232_v19 = vrot.slane %v5218_v55, %v10478_v45 }
 0xbed   : > { %v5553_v21 = vrot.slane %v8035_v57, %v10473_v38  ;;  %v5569_v41 = vrot.slane %v8037_v58, %v10473_v38  ;;  %v5585_v51 = vrot.slane %v8039_v59, %v10473_v38  ;;  %v5601_v23 = vrot.slane %v8041_v63, %v10473_v38 }
 0xbee   : > { %v8027_v9 = vcombine.low %v5209_v4, %v5216_v11  ;;  %v8029_v31 = vcombine.high %v5209_v4, %v5216_v11  ;;  %v8031_v49 = vcombine.low %v5225_v12, %v5232_v19  ;;  %v8033_v32 = vcombine.high %v5225_v12, %v5232_v19 }
 0xbef   : > { %v6367_v33 = vsel %vm2202_vm1, %v11179_v3, 0.0  ;;  %v5609_v13 = vcombine.low %v5553_v21, %v5569_v41  ;;  %v5641_v28 = vcombine.low %v5585_v51, %v5601_v23  ;;  %v6376_v24 = vsel %vm2202_vm1, %v11189_v29, 0.0 }
 0xbf0   : > { %v5417_v56 = vrot.slane %v8027_v9, %v10473_v38  ;;  %v5433_v18 = vrot.slane %v8029_v31, %v10473_v38  ;;  %v5449_v34 = vrot.slane %v8031_v49, %v10473_v38  ;;  %v5465_v35 = vrot.slane %v8033_v32, %v10473_v38  ;;  %6368 = vadd.xlane.f32.xlu1 %v6367_v33 }
 0xbf1   : > { %v5617_v7 = vrot.slane %v5609_v13, %v10478_v45  ;;  %v5649_v25 = vrot.slane %v5641_v28, %v10478_v45  ;;  %v6379_v40 = vsel %vm2202_vm1, %v11193_v15, 0.0  ;;  %v5610_v47 = vcombine.high %v5553_v21, %v5569_v41  ;;  %v5114_v21 = vpop.permute.xlu0 %5113 }
 0xbf2   : > { %v5473_v36 = vcombine.low %v5417_v56, %v5433_v18  ;;  %v5505_v37 = vcombine.low %v5449_v34, %v5465_v35  ;;  %v5474_v10 = vcombine.high %v5417_v56, %v5433_v18  ;;  %v5506_v5 = vcombine.high %v5449_v34, %v5465_v35 }
 0xbf3   : > { %v5673_v46 = vcombine.low %v5617_v7, %v5649_v25  ;;  %v5674_v43 = vcombine.high %v5617_v7, %v5649_v25  ;;  %v5642_v26 = vcombine.high %v5585_v51, %v5601_v23  ;;  %v5624_v55 = vrot.slane %v5610_v47, %v10478_v45  ;;  %v5116_v23 = vpop.permute.xlu1 %5115 }
 0xbf4   : > { %6377 = vadd.xlane.f32.xlu1 %v6376_v24  ;;  %v5481_v6 = vrot.slane %v5473_v36, %v10478_v45  ;;  %v5513_v8 = vrot.slane %v5505_v37, %v10478_v45  ;;  %v5488_v60 = vrot.slane %v5474_v10, %v10478_v45  ;;  %v5520_v42 = vrot.slane %v5506_v5, %v10478_v45 }
 0xbf5   : > { %v5656_v57 = vrot.slane %v5642_v26, %v10478_v45  ;;  %v6344_v11 = vsub.f32 %v11114_v39, %v11148_v50  ;;  %v5122_v41 = vpop.permute.xlu0 %5121 }
 0xbf6   : > { %v5537_v14 = vcombine.low %v5481_v6, %v5513_v8  ;;  %v5538_v30 = vcombine.high %v5481_v6, %v5513_v8  ;;  %v5539_v44 = vcombine.low %v5488_v60, %v5520_v42  ;;  %v5540_v48 = vcombine.high %v5488_v60, %v5520_v42 }
 0xbf7   : > { %v5675_v58 = vcombine.low %v5624_v55, %v5656_v57  ;;  %v5676_v59 = vcombine.high %v5624_v55, %v5656_v57  ;;  %v6359_v12 = vmul.f32 1.442695, %v6344_v11  ;;  %v5120_v31 = vpop.permute.xlu1 %5119 }
 0xbf8   : > { %6380 = vadd.xlane.f32.xlu1 %v6379_v40  ;;  %v8917_v52 = vpack.c.bf16 %v5673_v46, %v5537_v14  ;;  %v8920_v54 = vpack.c.bf16 %v5674_v43, %v5538_v30 }
 0xbf9   : > { %5133 = vrot.lane.b32.xlu0 %v10956_v53, %s9762_s28  ;;  %v8923_v63 = vpack.c.bf16 %v5675_v58, %v5539_v44  ;;  %v11215_v4 = vpack.c.bf16 %v5676_v59, %v5540_v48  ;;  %9244 = vpow2.f32 %v6359_v12  ;;  %v5128_v51 = vpop.permute.xlu0 %5127 }
 0xbfa   : > { %8918 = vmatpush3.bf16.msra.mxu0 %v8917_v52  ;;  %8921 = vmatpush3.bf16.msra.mxu1 %v8920_v54  ;;  %v5305_v42 = vcombine.low %v5116_v23, %v5128_v51  ;;  %v5306_v14 = vcombine.high %v5116_v23, %v5128_v51 }
 0xbfb   : > { %8922 = vmatprep.subr.bf16.mxu0 %v9754_v1  ;;  %8925 = vmatprep.subr.bf16.mxu1 %v9754_v1  ;;  %v5126_v32 = vpop.permute.xlu1 %5125 }
 0xbfc   : > { %v5169_v56 = vcombine.low %v5114_v21, %v5126_v32  ;;  %v5170_v18 = vcombine.high %v5114_v21, %v5126_v32  ;;  %v5313_v52 = vrot.slane %v5305_v42, %v10473_v38  ;;  %v5320_v54 = vrot.slane %v5306_v14, %v10473_v38 }
 0xbfe   : > { %v5177_v28 = vrot.slane %v5169_v56, %v10473_v38 }
 0xbff   : > { %v5132_v39 = vpop.permute.xlu1 %5131 }
 0xc00   : > { %v5185_v50 = vcombine.low %v5120_v31, %v5132_v39  ;;  %v5186_v13 = vcombine.high %v5120_v31, %v5132_v39 }
 0xc02   : > { %v5193_v34 = vrot.slane %v5185_v50, %v10473_v38  ;;  %v5200_v35 = vrot.slane %v5186_v13, %v10473_v38 }
 0xc03   : > { %v11219_v53 = vpop.eup %9244 }
 0xc04   : > { %v6382_v19 = vsel %vm2202_vm1, %v11219_v53, 0.0  ;;  %v5233_v36 = vcombine.low %v5177_v28, %v5193_v34  ;;  %v5234_v37 = vcombine.high %v5177_v28, %v5193_v34 }
 0xc06   : > { %v5241_v10 = vrot.slane %v5233_v36, %v10478_v45  ;;  %v5248_v5 = vrot.slane %v5234_v37, %v10478_v45 }
 0xc08   : > { %v8028_v46 = vcombine.low %v5241_v10, %v5248_v5  ;;  %v8030_v30 = vcombine.high %v5241_v10, %v5248_v5 }
 0xc0a   : > { %v5424_v58 = vrot.slane %v8028_v46, %v10473_v38  ;;  %v5440_v59 = vrot.slane %v8030_v30, %v10473_v38 }
 0xc18   : > { %6383 = vadd.xlane.f32.xlu0 %v6382_v19 }
 0xc4f   : > { %v6363_v9 = vpop.xlane.xlu0 %6362 }
 0xc50   : > { %9246 = vrcp.f32 %v6363_v9 }
 0xc5a   : > { %v9247_v49 = vpop.eup %9246 }
 0xc5b   : > { %v6393_v33 = vmul.f32 %v9247_v49, %v11144_v27  ;;  %v5184_v27 = vrot.slane %v5170_v18, %v10473_v38 }
 0xc5d   : > { %8630 = vmatmul.mubr.msk.f32.vlgmr.msra.gmra.mrb[26].mxu0 %vm2202_vm1, %v6393_v33  ;;  %v5249_v7 = vcombine.low %v5184_v27, %v5200_v35  ;;  %v5250_v24 = vcombine.high %v5184_v27, %v5200_v35  ;;  %v5489_v33 = vcombine.low %v5424_v58, %v5440_v59 }
 0xc5e   : > { %8924 = vmatpush3.bf16.msra.mxu0 %v8923_v63  ;;  %8643 = vmatprep.mubr.msk.f32.mxu0 %vm9755_vm0, %v9753_v0 }
 0xc5f   : > { %8928 = vmatprep.subr.bf16.mxu0 %v9754_v1  ;;  %v5257_v6 = vrot.slane %v5249_v7, %v10478_v45  ;;  %v5264_v8 = vrot.slane %v5250_v24, %v10478_v45  ;;  %v5497_v24 = vrot.slane %v5489_v33, %v10478_v45 }
 0xc61   : > { %v8032_v43 = vcombine.low %v5257_v6, %v5264_v8  ;;  %v8034_v44 = vcombine.high %v5257_v6, %v5264_v8 }
 0xc63   : > { %v5456_v63 = vrot.slane %v8032_v43, %v10473_v38  ;;  %v5472_v11 = vrot.slane %v8034_v44, %v10473_v38 }
 0xc65   : > { %v5521_v34 = vcombine.low %v5456_v63, %v5472_v11 }
 0xc67   : > { %v5529_v10 = vrot.slane %v5521_v34, %v10478_v45 }
 0xc69   : > { %v5541_v14 = vcombine.low %v5497_v24, %v5529_v10  ;;  %v5542_v46 = vcombine.high %v5497_v24, %v5529_v10 }
 0xc6c   : > { %v6375_v25 = vpop.xlane.xlu0 %6374 }
 0xc70   : > { %v6366_v40 = vpop.xlane.xlu1 %6365  ;;  %v6372_v60 = vpop.xlane.xlu0 %6371 }
 0xc71   : > { %9248 = vrcp.f32 %v6366_v40  ;;  %v5490_v40 = vcombine.high %v5424_v58, %v5440_v59 }
 0xc72   : > { %9250 = vrcp.f32 %v6372_v60  ;;  %v5522_v60 = vcombine.high %v5456_v63, %v5472_v11 }
 0xc74   : > { %v5134_v47 = vpop.permute.xlu0 %5133 }
 0xc75   : > { %v5321_v26 = vcombine.low %v5122_v41, %v5134_v47  ;;  %v5322_v48 = vcombine.high %v5122_v41, %v5134_v47 }
 0xc77   : > { %v5329_v55 = vrot.slane %v5321_v26, %v10473_v38  ;;  %v5336_v57 = vrot.slane %v5322_v48, %v10473_v38 }
 0xc79   : > { %v5369_v12 = vcombine.low %v5313_v52, %v5329_v55  ;;  %v5370_v19 = vcombine.high %v5313_v52, %v5329_v55  ;;  %v5385_v21 = vcombine.low %v5320_v54, %v5336_v57  ;;  %v5386_v41 = vcombine.high %v5320_v54, %v5336_v57 }
 0xc7a   : > { %v5504_v54 = vrot.slane %v5490_v40, %v10478_v45  ;;  %v5536_v55 = vrot.slane %v5522_v60, %v10478_v45 }
 0xc7b   : > { %v9249_v51 = vpop.eup %9248  ;;  %v5377_v23 = vrot.slane %v5369_v12, %v10478_v45  ;;  %v5384_v9 = vrot.slane %v5370_v19, %v10478_v45  ;;  %v5393_v31 = vrot.slane %v5385_v21, %v10478_v45  ;;  %v5400_v49 = vrot.slane %v5386_v41, %v10478_v45 }
 0xc7c   : > { %v6394_v32 = vmul.f32 %v9249_v51, %v11157_v2  ;;  %v9251_v39 = vpop.eup %9250  ;;  %v5543_v12 = vcombine.low %v5504_v54, %v5536_v55  ;;  %v5544_v19 = vcombine.high %v5504_v54, %v5536_v55 }
 0xc7d   : > { %v8036_v50 = vcombine.low %v5377_v23, %v5384_v9  ;;  %v8038_v13 = vcombine.high %v5377_v23, %v5384_v9  ;;  %v8040_v56 = vcombine.low %v5393_v31, %v5400_v49  ;;  %v6369_v18 = vpop.xlane.xlu1 %6368  ;;  %v8042_v35 = vcombine.high %v5393_v31, %v5400_v49 }
 0xc7e   : > { %9252 = vrcp.f32 %v6369_v18  ;;  %8637 = vmatmul.mubr.msk.f32.vlgmr.msra.gmra.mrb[34].mxu1 %vm2202_vm1, %v6394_v32  ;;  %v6396_v2 = vmul.f32 %v9251_v39, %v11155_v62 }
 0xc7f   : > { %v5560_v28 = vrot.slane %v8036_v50, %v10473_v38  ;;  %v5576_v27 = vrot.slane %v8038_v13, %v10473_v38  ;;  %v5592_v36 = vrot.slane %v8040_v56, %v10473_v38  ;;  %8927 = vmatpush3.bf16.msra.mxu1 %v11215_v4  ;;  %8650 = vmatprep.mubr.msk.f32.mxu1 %vm9755_vm0, %v9753_v0  ;;  %9254 = vrcp.f32 %v6375_v25 }
 0xc80   : > { %v5608_v37 = vrot.slane %v8042_v35, %v10473_v38  ;;  %8931 = vmatprep.subr.bf16.mxu1 %v9754_v1 }
 0xc81   : > { %v6378_v7 = vpop.xlane.xlu1 %6377  ;;  %v5625_v5 = vcombine.low %v5560_v28, %v5576_v27  ;;  %v5626_v6 = vcombine.high %v5560_v28, %v5576_v27 }
 0xc82   : > { %9256 = vrcp.f32 %v6378_v7  ;;  %8651 = vmatmul.mubr.msk.f32.vlgmr.msra.gmra.mrb[36].mxu1 %vm2202_vm1, %v6396_v2  ;;  %v5657_v4 = vcombine.low %v5592_v36, %v5608_v37  ;;  %v5658_v8 = vcombine.high %v5592_v36, %v5608_v37 }
 0xc83   : > { %v5633_v25 = vrot.slane %v5625_v5, %v10478_v45  ;;  %8664 = vmatprep.mubr.msk.f32.mxu1 %vm9755_vm0, %v9753_v0  ;;  %v5640_v30 = vrot.slane %v5626_v6, %v10478_v45 }
 0xc84   : > { %v5665_v62 = vrot.slane %v5657_v4, %v10478_v45  ;;  %v5672_v47 = vrot.slane %v5658_v8, %v10478_v45 }
 0xc85   : > { %v6381_v42 = vpop.xlane.xlu1 %6380 }
 0xc86   : > { %9258 = vrcp.f32 %v6381_v42  ;;  %v5677_v43 = vcombine.low %v5633_v25, %v5665_v62  ;;  %v5678_v44 = vcombine.high %v5633_v25, %v5665_v62  ;;  %v5679_v59 = vcombine.low %v5640_v30, %v5672_v47 }
 0xc87   : > { %v5680_v63 = vcombine.high %v5640_v30, %v5672_v47 }
 0xc88   : > { %v9253_v26 = vpop.eup %9252  ;;  %v8929_v48 = vpack.c.bf16 %v5677_v43, %v5541_v14  ;;  %v8932_v52 = vpack.c.bf16 %v5678_v44, %v5542_v46 }
 0xc89   : > { %v6395_v57 = vmul.f32 %v9253_v26, %v11179_v3  ;;  %v9255_v58 = vpop.eup %9254  ;;  %v8935_v3 = vpack.c.bf16 %v5679_v59, %v5543_v12  ;;  %v8938_v51 = vpack.c.bf16 %v5680_v63, %v5544_v19  ;;  %v7292_v26 = vld [vmem:[#allocation19] sm:$0xff]  ;;  %v7295_v59 = vld [vmem:[#allocation19 + $0x18] sm:$0xff] }
 0xc8a   : > { %8933 = vmatpush3.bf16.msra.mxu1 %v8932_v52  ;;  %v6397_v21 = vmul.f32 %v9255_v58, %v11151_v20  ;;  %v7294_v58 = vld [vmem:[#allocation19 + $0x10] sm:$0xff] }
 0xc8b   : > { %8644 = vmatmul.mubr.msk.f32.vlgmr.msra.gmra.mrb[28].mxu0 %vm2202_vm1, %v6395_v57  ;;  %8937 = vmatprep.subr.bf16.mxu1 %v9754_v1 }
 0xc8c   : > { %v9257_v11 = vpop.eup %9256  ;;  %8930 = vmatpush3.bf16.msra.mxu0 %v8929_v48  ;;  %8657 = vmatprep.mubr.msk.f32.mxu0 %vm9755_vm0, %v9753_v0  ;;  %v7293_v48 = vld [vmem:[#allocation19 + $0x8] sm:$0xff] }
 0xc8d   : > { %v6398_v41 = vmul.f32 %v9257_v11, %v11189_v29  ;;  %8934 = vmatprep.subr.bf16.mxu0 %v9754_v1  ;;  %v8941_v63 = vpack.c.bf16 %v7293_v48, %v7292_v26 }
 0xc8f   : > { %8658 = vmatmul.mubr.msk.f32.vlgmr.msra.gmra.mrb[30].mxu0 %vm2202_vm1, %v6397_v21  ;;  %8665 = vmatmul.mubr.msk.f32.vlgmr.msra.gmra.mrb[38].mxu1 %vm2202_vm1, %v6398_v41  ;;  %v8944_v41 = vpack.c.bf16 %v7295_v59, %v7294_v58 }
 0xc90   : > { %v9259_v23 = vpop.eup %9258  ;;  %8936 = vmatpush3.bf16.msra.mxu0 %v8935_v3  ;;  %8939 = vmatpush3.bf16.msra.mxu1 %v8938_v51 }
 0xc91   : > { %v6399_v9 = vmul.f32 %v9259_v23, %v11193_v15  ;;  %8671 = vmatprep.mubr.msk.f32.mxu0 %vm9755_vm0, %v9753_v0  ;;  %8678 = vmatprep.mubr.msk.f32.mxu1 %vm9755_vm0, %v9753_v0 }
 0xc92   : > { %8940 = vmatprep.subr.bf16.mxu0 %v9754_v1 }
 0xc93   : > { %8672 = vmatmul.mubr.msk.f32.vlgmr.msra.gmra.mrb[32].mxu0 %vm2202_vm1, %v6399_v9 }
 0xc94   : > { %8713 = vmatprep.mubr.msk.f32.mxu0 %vm9755_vm0, %v9753_v0  ;;  %8942 = vmatpush3.bf16.msra.mxu0 %v8941_v63 }
 0xc95   : > { %8943 = vmatprep.subr.bf16.mxu0 %v9754_v1 }
 0xc98   : > { %8945 = vmatpush3.bf16.msra.mxu0 %v8944_v41 }
 0xc99   : > { %8946 = vmatprep.subr.bf16.mxu0 %v9754_v1 }
 0xca5   : > { %v6384_v20 = vpop.xlane.xlu0 %6383 }
 0xca6   : > { %9260 = vrcp.f32 %v6384_v20  ;;  %v7296_v20 = vld [vmem:[#allocation19 + $0x20] sm:$0xff] }
 0xcb0   : > { %v9261_v29 = vpop.eup %9260 }
 0xcb1   : > { %v6400_v31 = vmul.f32 %v9261_v29, %v11219_v53  ;;  %v7297_v29 = vld [vmem:[#allocation19 + $0x28] sm:$0xff] }
 0xcb3   : > { %8679 = vmatmul.mubr.msk.f32.vlgmr.msra.gmra.mrb[40].mxu1 %vm2202_vm1, %v6400_v31 }
 0xcb4   : > { %7521 = vmatprep.mubr.f32.mxu1 %v9753_v0 }
 0xd30   : > { %v6470_v15 = vpop.f32.mrb[26].mxu0 }
 0xd31   : > { %v8631_v49 = vpop.f32.mrb[27].mxu0 }
 0xd51   : > { %v6543_v32 = vpop.f32.mrb[34].mxu1 }
 0xd52   : > { %v8638_v33 = vpop.f32.mrb[35].mxu1 }
 0xd53   : > { %v8947_v33 = vpack.c.bf16 %v7297_v29, %v7296_v20 }
 0xd55   : > { %v6689_v39 = vpop.f32.mrb[36].mxu1  ;;  %8948 = vmatpush3.bf16.msra.mxu0 %v8947_v33 }
 0xd56   : > { %v7001_v50 = vcombine.low %v6543_v32, %v6689_v39  ;;  %v7002_v13 = vcombine.high %v6543_v32, %v6689_v39  ;;  %v8652_v56 = vpop.f32.mrb[37].mxu1  ;;  %v7298_v39 = vld [vmem:[#allocation19 + $0x30] sm:$0xff]  ;;  %8949 = vmatprep.subr.bf16.mxu0 %v9754_v1 }
 0xd57   : > { %v7300_v56 = vld [vmem:[#allocation19 + $0x40] sm:$0xff] }
 0xd58   : > { %v7009_v27 = vrot.slane %v7001_v50, %v10473_v38  ;;  %v7016_v53 = vrot.slane %v7002_v13, %v10473_v38  ;;  %v7299_v50 = vld [vmem:[#allocation19 + $0x38] sm:$0xff] }
 0xd59   : > { %v8950_v13 = vpack.c.bf16 %v7299_v50, %v7298_v39 }
 0xd5b   : > { %8951 = vmatpush3.bf16.msra.mxu0 %v8950_v13 }
 0xd5c   : > { %8952 = vmatprep.subr.bf16.mxu0 %v9754_v1 }
 0xd5e   : > { %v6616_v18 = vpop.f32.mrb[28].mxu0 }
 0xd5f   : > { %v6985_v34 = vcombine.low %v6470_v15, %v6616_v18  ;;  %v6986_v35 = vcombine.high %v6470_v15, %v6616_v18  ;;  %v8645_v28 = vpop.f32.mrb[29].mxu0  ;;  %v7301_v18 = vld [vmem:[#allocation19 + $0x48] sm:$0xff] }
 0xd60   : > { %v7303_v28 = vld [vmem:[#allocation19 + $0x58] sm:$0xff] }
 0xd61   : > { %v6993_v36 = vrot.slane %v6985_v34, %v10473_v38  ;;  %v7000_v0 = vrot.slane %v6986_v35, %v10473_v38  ;;  %v8953_v34 = vpack.c.bf16 %v7301_v18, %v7300_v56  ;;  %v7302_v35 = vld [vmem:[#allocation19 + $0x50] sm:$0xff] }
 0xd62   : > { %v11296_v2 = vpop.f32.mrb[30].mxu0  ;;  %v11298_v37 = vpop.f32.mrb[38].mxu1 }
 0xd63   : > { %v7049_v7 = vcombine.low %v6993_v36, %v7009_v27  ;;  %v7050_v24 = vcombine.high %v6993_v36, %v7009_v27  ;;  %v7065_v10 = vcombine.low %v7000_v0, %v7016_v53  ;;  %v7066_v5 = vcombine.high %v7000_v0, %v7016_v53  ;;  %v8659_v6 = vpop.f32.mrb[31].mxu0  ;;  %v8666_v4 = vpop.f32.mrb[39].mxu1  ;;  %8954 = vmatpush3.bf16.msra.mxu0 %v8953_v34  ;;  %v7304_v53 = vld [vmem:[#allocation19 + $0x60] sm:$0xff]  ;;  %v7305_v36 = vld [vmem:[#allocation19 + $0x68] sm:$0xff] }
 0xd64   : > { %v8956_v27 = vpack.c.bf16 %v7303_v28, %v7302_v35  ;;  %8955 = vmatprep.subr.bf16.mxu0 %v9754_v1  ;;  %v8959_v0 = vpack.c.bf16 %v7305_v36, %v7304_v53  ;;  %v7414_v36 = vld [vmem:[#allocation20 + $0x8] sm:$0xff] }
 0xd65   : > { %v7057_v8 = vrot.slane %v7049_v7, %v10478_v45  ;;  %v7064_v25 = vrot.slane %v7050_v24, %v10478_v45  ;;  %v7073_v62 = vrot.slane %v7065_v10, %v10478_v45  ;;  %v7080_v40 = vrot.slane %v7066_v5, %v10478_v45 }
 0xd66   : > { %v11304_v60 = vpop.f32.mrb[32].mxu0 }
 0xd67   : > { %v8075_v42 = vcombine.low %v7057_v8, %v7064_v25  ;;  %v8077_v14 = vcombine.high %v7057_v8, %v7064_v25  ;;  %v8079_v46 = vcombine.low %v7073_v62, %v7080_v40  ;;  %v8081_v30 = vcombine.high %v7073_v62, %v7080_v40  ;;  %v8673_v43 = vpop.f32.mrb[33].mxu0  ;;  %8957 = vmatpush3.bf16.msra.mxu0 %v8956_v27 }
 0xd68   : > { %v7017_v44 = vcombine.low %v11296_v2, %v11304_v60  ;;  %v7018_v47 = vcombine.high %v11296_v2, %v11304_v60  ;;  %8958 = vmatprep.subr.bf16.mxu0 %v9754_v1 }
 0xd69   : > { %v7129_v52 = vrot.slane %v8075_v42, %v10473_v38  ;;  %v7145_v54 = vrot.slane %v8077_v14, %v10473_v38  ;;  %v7161_v55 = vrot.slane %v8079_v46, %v10473_v38  ;;  %v7177_v57 = vrot.slane %v8081_v30, %v10473_v38  ;;  %v7306_v42 = vld [vmem:[#allocation19 + $0x70] sm:$0xff] }
 0xd6a   : > { %v7025_v5 = vrot.slane %v7017_v44, %v10473_v38  ;;  %v7032_v6 = vrot.slane %v7018_v47, %v10473_v38 }
 0xd6b   : > { %v7186_v11 = vcombine.high %v7129_v52, %v7145_v54  ;;  %v7218_v12 = vcombine.high %v7161_v55, %v7177_v57  ;;  %v7185_v19 = vcombine.low %v7129_v52, %v7145_v54  ;;  %v7217_v21 = vcombine.low %v7161_v55, %v7177_v57  ;;  %8960 = vmatpush3.bf16.msra.mxu0 %v8959_v0  ;;  %v7416_v0 = vld [vmem:[#allocation20 + $0x18] sm:$0xff] }
 0xd6c   : > { %8961 = vmatprep.subr.bf16.mxu0 %v9754_v1  ;;  %v7307_v1 = vld [vmem:[#allocation19 + $0x78] sm:$0xff] }
 0xd6d   : > { %v7200_v3 = vrot.slane %v7186_v11, %v10478_v45  ;;  %v7232_v51 = vrot.slane %v7218_v12, %v10478_v45  ;;  %v11317_v23 = vrot.slane %v7185_v19, %v10478_v45  ;;  %v11320_v9 = vrot.slane %v7217_v21, %v10478_v45 }
 0xd6e   : > { %v8962_v43 = vpack.c.bf16 %v7307_v1, %v7306_v42  ;;  %v7423_v1 = vld [vmem:[#allocation20 + $0x50] sm:$0xff] }
 0xd6f   : > { %v7251_v31 = vcombine.low %v7200_v3, %v7232_v51  ;;  %v7250_v15 = vcombine.high %v11317_v23, %v11320_v9  ;;  %v7252_v49 = vcombine.high %v7200_v3, %v7232_v51  ;;  %v7249_v32 = vcombine.low %v11317_v23, %v11320_v9 }
 0xd70   : > { %8963 = vmatpush3.bf16.msra.mxu0 %v8962_v43 }
 0xd71   : > { %7262 = vrot.lane.b32.xlu1 %v7251_v31, %s9761_s26  ;;  %7258 = vrot.lane.b32.xlu0 %v7250_v15, %s9762_s28  ;;  %s11609_s26 = sld [smem:[#allocation61_spill]] }
 0xd75   : > { %7266 = vrot.lane.b32.xlu1 %v7252_v49, %s9760_s12 }
 0xd86   : > { %v6981_v2 = vpop.f32.mrb[40].mxu1 }
 0xd87   : > { %v7033_v7 = vcombine.low %v11298_v37, %v6981_v2  ;;  %v7034_v24 = vcombine.high %v11298_v37, %v6981_v2  ;;  %v8680_v10 = vpop.f32.mrb[41].mxu1  ;;  %v7413_v2 = vld [vmem:[#allocation20] sm:$0xff] }
 0xd88   : > { %v7418_v10 = vld [vmem:[#allocation20 + $0x28] sm:$0xff] }
 0xd89   : > { %v7041_v4 = vrot.slane %v7033_v7, %v10473_v38  ;;  %v7048_v8 = vrot.slane %v7034_v24, %v10473_v38  ;;  %v8964_v7 = vpack.c.bf16 %v7416_v0, %v7414_v36  ;;  %v7415_v24 = vld [vmem:[#allocation20 + $0x10] sm:$0xff]  ;;  %v7533_v0 = vld [vmem:[#allocation22 + $0x18] sm:$0xff] }
 0xd8a   : > { %v7532_v36 = vld [vmem:[#allocation22 + $0x10] sm:$0xff] }
 0xd8b   : > { %v7081_v25 = vcombine.low %v7025_v5, %v7041_v4  ;;  %v7082_v62 = vcombine.high %v7025_v5, %v7041_v4  ;;  %v7097_v40 = vcombine.low %v7032_v6, %v7048_v8  ;;  %v7098_v60 = vcombine.high %v7032_v6, %v7048_v8  ;;  %v7420_v5 = vld [vmem:[#allocation20 + $0x38] sm:$0xff]  ;;  %v7417_v8 = vld [vmem:[#allocation20 + $0x20] sm:$0xff]  ;;  %8965 = vmatprep.subr.bf16.mxu1 %v8964_v7  ;;  %v7551_v7 = vld [vmem:[#allocation22 + $0xa8] sm:$0xff] }
 0xd8c   : > { %v8966_v6 = vpack.c.bf16 %v7415_v24, %v7413_v2  ;;  %v8968_v4 = vpack.c.bf16 %v7420_v5, %v7418_v10  ;;  %v7550_v2 = vld [vmem:[#allocation22 + $0xa0] sm:$0xff]  ;;  %v9002_v24 = vpack.c.bf16 %v7533_v0, %v7532_v36 }
 0xd8d   : > { %v7089_v14 = vrot.slane %v7081_v25, %v10478_v45  ;;  %v7096_v46 = vrot.slane %v7082_v62, %v10478_v45  ;;  %v7105_v37 = vrot.slane %v7097_v40, %v10478_v45  ;;  %v7112_v30 = vrot.slane %v7098_v60, %v10478_v45  ;;  %v7419_v25 = vld [vmem:[#allocation20 + $0x30] sm:$0xff]  ;;  %v7422_v62 = vld [vmem:[#allocation20 + $0x48] sm:$0xff]  ;;  %v7424_v40 = vld [vmem:[#allocation20 + $0x58] sm:$0xff] }
 0xd8e   : > { %8967 = vmatpush1.bf16.msra.mxu1 %v8966_v6  ;;  %v8970_v60 = vpack.c.bf16 %v7419_v25, %v7417_v8  ;;  %v8972_v42 = vpack.c.bf16 %v7424_v40, %v7422_v62  ;;  %v9004_v10 = vpack.c.bf16 %v7551_v7, %v7550_v2  ;;  %v7534_v5 = vld [vmem:[#allocation22 + $0x20] sm:$0xff]  ;;  %v7535_v6 = vld [vmem:[#allocation22 + $0x28] sm:$0xff]  ;;  %v7553_v8 = vld [vmem:[#allocation22 + $0xb8] sm:$0xff] }
 0xd8f   : > { %v8076_v44 = vcombine.low %v7089_v14, %v7096_v46  ;;  %v8078_v47 = vcombine.high %v7089_v14, %v7096_v46  ;;  %v8080_v26 = vcombine.low %v7105_v37, %v7112_v30  ;;  %v8082_v48 = vcombine.high %v7105_v37, %v7112_v30  ;;  %8969 = vmatprep.subr.bf16.mxu1 %v8968_v4  ;;  %v7552_v4 = vld [vmem:[#allocation22 + $0xb0] sm:$0xff] }
 0xd90   : > { %v9006_v25 = vpack.c.bf16 %v7535_v6, %v7534_v5  ;;  %v9008_v62 = vpack.c.bf16 %v7553_v8, %v7552_v4  ;;  %v7536_v40 = vld [vmem:[#allocation22 + $0x30] sm:$0xff]  ;;  %v8087_v6 = vld [vmem:[%s11614_s11] ss:$0 sm:$0xff] }
 0xd91   : > { %v7136_v52 = vrot.slane %v8076_v44, %v10473_v38  ;;  %v7152_v54 = vrot.slane %v8078_v47, %v10473_v38  ;;  %v7168_v55 = vrot.slane %v8080_v26, %v10473_v38  ;;  %v7184_v57 = vrot.slane %v8082_v48, %v10473_v38  ;;  %v7426_v44 = vld [vmem:[#allocation20 + $0x68] sm:$0xff]  ;;  %v7428_v47 = vld [vmem:[#allocation20 + $0x78] sm:$0xff]  ;;  %v7425_v26 = vld [vmem:[#allocation20 + $0x60] sm:$0xff] }
 0xd92   : > { %8971 = vmatpush1.bf16.msra.mxu1 %v8970_v60  ;;  %v8976_v48 = vpack.c.bf16 %v7428_v47, %v7426_v44  ;;  %v7537_v60 = vld [vmem:[#allocation22 + $0x38] sm:$0xff] }
 0xd93   : > { %v7201_v58 = vcombine.low %v7136_v52, %v7152_v54  ;;  %v7233_v59 = vcombine.low %v7168_v55, %v7184_v57  ;;  %v7202_v63 = vcombine.high %v7136_v52, %v7152_v54  ;;  %v7234_v11 = vcombine.high %v7168_v55, %v7184_v57  ;;  %8973 = vmatprep.subr.bf16.mxu1 %v8972_v42  ;;  %v7427_v52 = vld [vmem:[#allocation20 + $0x70] sm:$0xff]  ;;  %v7430_v54 = vld [vmem:[#allocation20 + $0x88] sm:$0xff]  ;;  %v7432_v55 = vld [vmem:[#allocation20 + $0x98] sm:$0xff] }
 0xd94   : > { %v8978_v57 = vpack.c.bf16 %v7427_v52, %v7425_v26  ;;  %v7554_v42 = vld [vmem:[#allocation22 + $0xc0] sm:$0xff]  ;;  %v7557_v44 = vld [vmem:[#allocation22 + $0xd8] sm:$0xff] }
 0xd95   : > { %v7209_v12 = vrot.slane %v7201_v58, %v10478_v45  ;;  %v7241_v19 = vrot.slane %v7233_v59, %v10478_v45  ;;  %v7216_v21 = vrot.slane %v7202_v63, %v10478_v45  ;;  %v7248_v41 = vrot.slane %v7234_v11, %v10478_v45  ;;  %v7429_v59 = vld [vmem:[#allocation20 + $0x80] sm:$0xff]  ;;  %v7431_v63 = vld [vmem:[#allocation20 + $0x90] sm:$0xff]  ;;  %v7434_v11 = vld [vmem:[#allocation20 + $0xa8] sm:$0xff] }
 0xd96   : > { %v8980_v58 = vpack.c.bf16 %v7432_v55, %v7430_v54  ;;  %v7541_v52 = vld [vmem:[#allocation22 + $0x58] sm:$0xff]  ;;  %v7558_v54 = vld [vmem:[#allocation22 + $0xe0] sm:$0xff]  ;;  %v7559_v55 = vld [vmem:[#allocation22 + $0xe8] sm:$0xff] }
 0xd97   : > { %v7254_v3 = vcombine.high %v7209_v12, %v7241_v19  ;;  %v7253_v51 = vcombine.low %v7209_v12, %v7241_v19  ;;  %v7256_v20 = vcombine.high %v7216_v21, %v7248_v41  ;;  %v7255_v29 = vcombine.low %v7216_v21, %v7248_v41  ;;  %v7436_v12 = vld [vmem:[#allocation20 + $0xb8] sm:$0xff]  ;;  %v7433_v41 = vld [vmem:[#allocation20 + $0xa0] sm:$0xff] }
 0xd98   : > { %v8982_v19 = vpack.c.bf16 %v7431_v63, %v7429_v59  ;;  %v8984_v21 = vpack.c.bf16 %v7436_v12, %v7434_v11 }
 0xd99   : > { %7274 = vrot.lane.b32.xlu1 %v7254_v3, %s9759_s23  ;;  %7270 = vrot.lane.b32.xlu0 %v7253_v51, %s9758_s22  ;;  %s11608_s22 = sld [smem:[#allocation55_spill]]  ;;  %v7435_v3 = vld [vmem:[#allocation20 + $0xb0] sm:$0xff]  ;;  %v7438_v51 = vld [vmem:[#allocation20 + $0xc8] sm:$0xff]  ;;  %s1104_s23 = scalar_lea.vmem [#allocation23], %s10363_s29 }
 0xd9a   : > { %s7682_s12 = sshll.u32 %s1104_s23, 4  ;;  %s11406_s12 = int_to_ptr.vmem [resolvable:$true] %s7682_s12 }
 0xd9b   : > { %s9640_s17 = scalar_lea.vmem %s11406_s12, 128 }
 0xd9c   : > { %p9641_p0 = scmp.ne.s32.totalorder %s11406_s12, %s9640_s17 }
 0xd9d   : > { %7282 = vrot.lane.b32.xlu1 %v7256_v20, %s9757_s15  ;;  %7278 = vrot.lane.b32.xlu0 %v7255_v29, %s9756_s18  ;;  %v7440_v20 = vld [vmem:[#allocation20 + $0xd8] sm:$0xff]  ;;  %v8986_v29 = vpack.c.bf16 %v7435_v3, %v7433_v41  ;;  %v8085_v41 = vld [vmem:[%s11610_s1] ss:$0 sm:$0xff]  ;;  %s11615_s15 = sld [smem:[#allocation64_spill]] }
 0xd9e   : > { %p9642_p6 = pnand %p9641_p0, %p11617_p2 }
 0xd9f   : > { %v8083_v23 = vld [vmem:[%s11608_s22] ss:$0 sm:$0xff]  ;;  %s8090_s22 = sshll.u32 %s9932_s10, 7  ;;  %s9765_s10 = smov [#allocation23]  }
 0xda0   : > { %s11404_s1 = scalar_lea.hbm %s11616_s2, %s8090_s22  ;;  %p9643_p12 = pneg %p9642_p6 }
 0xda1   : > { %s9644_s29 = sshll.u32 %s9765_s10, 4  ;;  %s9645_s29 = int_to_ptr.vmem [resolvable:$false] %s9644_s29 }
 0xda2   : > { %p9647_p5 = scmp.lt.s32.totalorder %s11406_s12, %s9645_s29 }
 0xda3   : > { %v8088_v8 = vld [vmem:[%s11615_s15] ss:$0 sm:$0xff] }
 0xde3   : > { %v7263_v38 = vpop.permute.xlu1 %7262  ;;  %v7259_v31 = vpop.permute.xlu0 %7258 }
 0xde4   : > { %v7285_v15 = vsel %vm2202_vm1, %v7249_v32, %v7259_v31  ;;  %v7437_v31 = vld [vmem:[#allocation20 + $0xc0] sm:$0xff] }
 0xde5   : > { %v7286_v49 = vsel %vm3785_vm3, %v7285_v15, %v7263_v38  ;;  %v8988_v38 = vpack.c.bf16 %v7440_v20, %v7438_v51  ;;  %v7439_v15 = vld [vmem:[#allocation20 + $0xd0] sm:$0xff]  ;;  %v7542_v20 = vld [vmem:[#allocation22 + $0x60] sm:$0xff] }
 0xde7   : > { %v7267_v45 = vpop.permute.xlu1 %7266 }
 0xde8   : > { %v7287_v33 = vsel %vm3787_vm4, %v7286_v49, %v7267_v45  ;;  %v7442_v45 = vld [vmem:[#allocation20 + $0xe8] sm:$0xff]  ;;  %v7444_v49 = vld [vmem:[#allocation20 + $0xf8] sm:$0xff] }
 0xe0b   : > { %v7275_v39 = vpop.permute.xlu1 %7274  ;;  %v7271_v50 = vpop.permute.xlu0 %7270 }
 0xe0c   : > { %v7288_v13 = vsel %vm3789_vm5, %v7287_v33, %v7271_v50  ;;  %v8990_v33 = vpack.c.bf16 %v7439_v15, %v7437_v31  ;;  %v7441_v50 = vld [vmem:[#allocation20 + $0xe0] sm:$0xff]  ;;  %v7560_v31 = vld [vmem:[#allocation22 + $0xf0] sm:$0xff]  ;;  %v7561_v15 = vld [vmem:[#allocation22 + $0xf8] sm:$0xff] }
 0xe0d   : > { %v7289_v18 = vsel %vm3791_vm6, %v7288_v13, %v7275_v39  ;;  %v8992_v39 = vpack.c.bf16 %v7444_v49, %v7442_v45  ;;  %v7443_v13 = vld [vmem:[#allocation20 + $0xf0] sm:$0xff]  ;;  %v9024_v49 = vpack.c.bf16 %v7561_v15, %v7560_v31 }
 0xe0e   : > { %v7544_v45 = vld [vmem:[#allocation22 + $0x70] sm:$0xff] }
 0xe0f   : > { %v7283_v56 = vpop.permute.xlu1 %7282  ;;  %v7279_v34 = vpop.permute.xlu0 %7278 }
 0xe10   : > { %v7290_v35 = vsel %vm3793_vm7, %v7289_v18, %v7279_v34  ;;  %v7546_v18 = vld [vmem:[#allocation22 + $0x80] sm:$0xff]  ;;  %v7547_v34 = vld [vmem:[#allocation22 + $0x88] sm:$0xff] }
 0xe11   : > { %v7291_v28 = vsel %vm3795_vm8, %v7290_v35, %v7283_v56  ;;  %v8994_v56 = vpack.c.bf16 %v7443_v13, %v7441_v50  ;;  %v7530_v35 = vld [vmem:[#allocation22] sm:$0xff] }
 0xe12   : > { %8714 = vmatmul.mubr.f32.vlgmr.msra.gmra.mrb[34].mxu0 %v7291_v28  ;;  %v8996_v28 = vpack.c.bf16 %v7547_v34, %v7546_v18 }
 0xe14   : > { %8997 = vmatprep.subr.bf16.mxu0 %v8996_v28 }
 0xee5   : > { %v7381_v9 = vpop.f32.mrb[34].mxu0 }
 0xee6   : > { %v7382_v32 = vadd.f32 %v8083_v23, %v7381_v9  ;;  %v8715_v27 = vpop.f32.mrb[35].mxu0  ;;  %v7531_v23 = vld [vmem:[#allocation22 + $0x8] sm:$0xff]  ;;  %v7548_v9 = vld [vmem:[#allocation22 + $0x90] sm:$0xff] }
 0xee7   : > { %v8998_v27 = vpack.c.bf16 %v7531_v23, %v7530_v35 }
 0xee8   : > { %v7385_v53 = vadd.f32 %v7382_v32, %v10866_v61  ;;  %v7421_v61 = vld [vmem:[#allocation20 + $0x40] sm:$0xff]  ;;  %v7549_v32 = vld [vmem:[#allocation22 + $0x98] sm:$0xff] }
 0xee9   : > { %v8974_v14 = vpack.c.bf16 %v7423_v1, %v7421_v61  ;;  %8999 = vmatpush3.bf16.msra.mxu0 %v8998_v27  ;;  %v7555_v61 = vld [vmem:[#allocation22 + $0xc8] sm:$0xff]  ;;  %v9010_v1 = vpack.c.bf16 %v7537_v60, %v7536_v40 }
 0xeea   : > { %7388 = vadd.xlane.f32.xlu0 %v7385_v53 }
 0xeeb   : > { %8975 = vmatpush1.bf16.msra.mxu1 %v8974_v14  ;;  %v9012_v14 = vpack.c.bf16 %v7555_v61, %v7554_v42 }
 0xeec   : > { %8977 = vmatprep.subr.bf16.mxu1 %v8976_v48  ;;  %v7540_v48 = vld [vmem:[#allocation22 + $0x50] sm:$0xff] }
 0xeef   : > { %8979 = vmatpush1.bf16.msra.mxu1 %v8978_v57  ;;  %v9018_v57 = vpack.c.bf16 %v7541_v52, %v7540_v48 }
 0xef0   : > { %8981 = vmatprep.subr.bf16.mxu1 %v8980_v58  ;;  %v9020_v58 = vpack.c.bf16 %v7559_v55, %v7558_v54 }
 0xef3   : > { %8983 = vmatpush1.bf16.msra.mxu1 %v8982_v19  ;;  %v8084_v19 = vld [vmem:[%s11609_s26] ss:$0 sm:$0xff] }
 0xef4   : > { %8985 = vmatprep.subr.bf16.mxu1 %v8984_v21 }
 0xef7   : > { %8987 = vmatpush1.bf16.msra.mxu1 %v8986_v29  ;;  %v7543_v29 = vld [vmem:[#allocation22 + $0x68] sm:$0xff] }
 0xef8   : > { %8989 = vmatprep.subr.bf16.mxu1 %v8988_v38  ;;  %v9022_v38 = vpack.c.bf16 %v7543_v29, %v7542_v20 }
 0xefb   : > { %8991 = vmatpush1.bf16.msra.mxu1 %v8990_v33  ;;  %v7545_v33 = vld [vmem:[#allocation22 + $0x78] sm:$0xff] }
 0xefc   : > { %8993 = vmatprep.subr.bf16.mxu1 %v8992_v39  ;;  %v9026_v39 = vpack.c.bf16 %v7545_v33, %v7544_v45 }
 0xeff   : > { %8995 = vmatpush1.bf16.msra.mxu1 %v8994_v56 }
 0xf77   : > { %v7389_v46 = vpop.xlane.xlu0 %7388 }
 0xf78   : > { %v7390_v37 = vmul.f32 0.0078125, %v7389_v46  ;;  %v7538_v46 = vld [vmem:[#allocation22 + $0x40] sm:$0xff] }
 0xf7a   : > { %v11372_v30 = vsub.f32 %v7385_v53, %v7390_v37  ;;  %v9000_v53 = vpack.c.bf16 %v7549_v32, %v7548_v9  ;;  %v7539_v37 = vld [vmem:[#allocation22 + $0x48] sm:$0xff]  ;;  %v8086_v32 = vld [vmem:[%s11612_s8] ss:$0 sm:$0xff] }
 0xf7b   : > { %v9014_v47 = vpack.c.bf16 %v7539_v37, %v7538_v46 }
 0xf7c   : > { %v7392_v43 = vmul.f32 %v11372_v30, %v11372_v30  ;;  %9001 = vmatprep.subr.bf16.mxu0 %v9000_v53 }
 0xf7d   : > { %9003 = vmatpush3.bf16.msra.mxu0 %v9002_v24 }
 0xf7e   : > { %7393 = vadd.xlane.f32.xlu1 %v7392_v43  ;;  %9005 = vmatprep.subr.bf16.mxu0 %v9004_v10  ;;  %v7556_v43 = vld [vmem:[#allocation22 + $0xd0] sm:$0xff] }
 0xf7f   : > { %v9016_v26 = vpack.c.bf16 %v7557_v44, %v7556_v43 }
 0xf81   : > { %9007 = vmatpush3.bf16.msra.mxu0 %v9006_v25 }
 0xf82   : > { %9009 = vmatprep.subr.bf16.mxu0 %v9008_v62 }
 0xf85   : > { %9011 = vmatpush3.bf16.msra.mxu0 %v9010_v1 }
 0xf86   : > { %9013 = vmatprep.subr.bf16.mxu0 %v9012_v14 }
 0xf89   : > { %9015 = vmatpush3.bf16.msra.mxu0 %v9014_v47 }
 0xf8a   : > { %9017 = vmatprep.subr.bf16.mxu0 %v9016_v26 }
 0xf8d   : > { %9019 = vmatpush3.bf16.msra.mxu0 %v9018_v57 }
 0xf8e   : > { %9021 = vmatprep.subr.bf16.mxu0 %v9020_v58 }
 0xf91   : > { %9023 = vmatpush3.bf16.msra.mxu0 %v9022_v38 }
 0xf92   : > { %9025 = vmatprep.subr.bf16.mxu0 %v9024_v49 }
 0xf95   : > { %9027 = vmatpush3.bf16.msra.mxu0 %v9026_v39 }
0x100b   : > { %v7394_v59 = vpop.xlane.xlu1 %7393 }
0x100c   : > { %v7395_v63 = vmul.f32 0.0078125, %v7394_v59 }
0x100e   : > { %v7396_v11 = vadd.f32 1e-05, %v7395_v63 }
0x1010   : > { %9262 = vrsqrt.f32 %v7396_v11 }
0x101a   : > { %v9263_v12 = vpop.eup %9262 }
0x101b   : > { %v7398_v21 = vmul.f32 %v9263_v12, %v11372_v30  ;;  %v7445_v30 = vld [vmem:[%s11611_s25] sm:$0x3]  ;;  %s9646_s25 = scalar_lea.vmem %s9645_s29, 256 }
0x101c   : > { %v7450_v50 = vrot.slane %v7445_v30, %v1148_v17  ;;  %v7454_v13 = vrot.slane %v7445_v30, %v1152_v22  ;;  %p9648_p8 = scmp.lt.s32.totalorder %s9646_s25, %s9640_s17 }
0x101d   : > { %v7405_v3 = vmul.f32 %v8084_v19, %v7398_v21 }
0x101e   : > { %p9649_p11 = por %p9648_p8, %p9647_p5 }
0x101f   : > { %v7412_v51 = vadd.f32 %v8085_v41, %v7405_v3 }
0x1020   : > { %p9650_p3 = pnand %p9649_p11, %p9643_p12 }
0x1021   : > { %7522 = vmatmul.mubr.f32.vlgmr.msra.gmra.mrb[42].mxu1 %v7412_v51 }
0x10f4   : > { %v7523_v56 = vpop.f32.mrb[42].mxu1 }
0x10f5   : > { %v7524_v18 = vadd.f32 %v7523_v56, %v7450_v50  ;;  %v7525_v34 = vpop.f32.mrb[43].mxu1 }
0x10f6   : > { %v7526_v35 = vadd.f32 %v7525_v34, %v7454_v13 }
0x10f7   : > { %v7528_v23 = vmax.f32 %v7524_v18, 0.0 }
0x10f8   : > { %v7529_v28 = vmax.f32 %v7526_v35, 0.0 }
0x10fa   : > { %7633 = vmatprep.mubr.f32.mxu0 %v7529_v28 }
0x10fb   : > { %7634 = vmatmul.mubr.f32.vlgmr.msra.gmra.mrb[36].mxu0 %v7528_v23 }
0x11ce   : > { %v8311_v9 = vpop.f32.mrb[36].mxu0 }
0x11cf   : > { %v8312_v27 = vpop.f32.mrb[37].mxu0 }
0x11d0   : > { %v8313_v53 = vadd.f32 %v8312_v27, %v8311_v9 }
0x11d2   : > { %v7636_v36 = vadd.f32 %v8313_v53, %v8086_v32 }
0x11d4   : > { %v7639_v17 = vadd.f32 %v7636_v36, %v7412_v51 }
0x11d6   : > { %7642 = vadd.xlane.f32.xlu0 %v7639_v17 }
0x1263   : > { %v7643_v16 = vpop.xlane.xlu0 %7642 }
0x1264   : > { %v7644_v22 = vmul.f32 0.0078125, %v7643_v16 }
0x1266   : > { %v7645_v0 = vsub.f32 %v7639_v17, %v7644_v22 }
0x1268   : > { %v7646_v2 = vmul.f32 %v7645_v0, %v7645_v0 }
0x126a   : > { %7647 = vadd.xlane.f32.xlu0 %v7646_v2 }
0x12f7   : > { %v7648_v7 = vpop.xlane.xlu0 %7647 }
0x12f8   : > { %v7649_v24 = vmul.f32 0.0078125, %v7648_v7 }
0x12fa   : > { %v7650_v10 = vadd.f32 1e-05, %v7649_v24 }
0x12fc   : > { %9264 = vrsqrt.f32 %v7650_v10 }
0x1306   : > { %v9265_v5 = vpop.eup %9264 }
0x1307   : > { %v7652_v4 = vmul.f32 %v9265_v5, %v7645_v0 }
0x1309   : > { %v7659_v25 = vmul.f32 %v8087_v6, %v7652_v4 }
0x130b   : > { %v7666_v62 = vadd.f32 %v8088_v8, %v7659_v25 }
0x130d   : > { %7667 = vst [vmem:[%s1104_s23] sm:$0xff] %v7666_v62 }
0x130e   : > { %9653 = shalt.err (!%p9650_p3)
}
0x130f   : > { %s9654_s27 = scalar_lea.hbm %s11404_s1, 128  ;;  %s9658_s8 = scalar_lea.hbm %s11616_s2, 256 }
0x1310   : > { %p9655_p7 = scmp.ne.s32.totalorder %s11404_s1, %s9654_s27  ;;  %p9659_p4 = scmp.lt.u32.totalorder %s11404_s1, %s11616_s2 }
0x1311   : > { %p9660_p13 = scmp.lt.u32.totalorder %s9658_s8, %s9654_s27  ;;  %p9662_p0 = scmp.lt.u32.totalorder %s9654_s27, %s11404_s1 }
0x1312   : > { %p9656_p10 = pnand %p9655_p7, %p11617_p2 }
0x1313   : > { %p9661_p1 = por %p9660_p13, %p9659_p4 }
0x1314   : > { %p9657_p9 = pneg %p9656_p10 }
0x1315   : > { %p9663_p6 = por %p9662_p0, %p9661_p1 }
0x1317   : > { %p9664_p12 = pnand %p9663_p6, %p9657_p9 }
0x1319   : > { %9667 = shalt.err (!%p9664_p12)
}
0x131a   : > { %9072 = dma.vmem_to_hbm [thread:$0]  (%p11617_p2), %s11406_s12, 128, %s11404_s1, %s7669_s14  }
0x131b PF: > { %s11618_s11 = sld [smem:[#allocation33_spill]]  ;;  %s11619_s13 = sld [smem:[#allocation38_spill]] }
0x131c   : > { %p11621_p8 = scmp.ge.s32.totalorder %s9734_s30, 2 }
0x1321   : > { %s7694_s18 = sand.u32 1, %s11618_s11   ;;  %p11620_p5 = scmp.ne.s32.totalorder %s11619_s13, 0 }
0x1322   : > { %s7695_s15 = scalar_lea.sflag [#allocation4], %s7694_s18 }
0x1323   : > { %p9116_p11 = pnand %p11621_p8, %p11620_p5 }
0x1325   : > { %9717 = dma.done.wait (!%p9116_p11), %s7695_s15, 128  }
0x1326   : > { %9719 = vsyncadd (!%p9116_p11), %s7695_s15, 4294967168  ;;  %s11622_s30 = sld [smem:[#allocation35_spill]]  ;;  %s11623_s22 = sld [smem:[#allocation34_spill]] }
0x1327   : > { %s11624_s9 = sld [smem:[#allocation36_spill]]  ;;  %s11625_s8 = smov %s9726_s5 }
0x132c   : > { %p51_p3 = scmp.ge.s32.totalorder %s11622_s30, 4   ;;  %s11626_s5 = smov %s11623_s22 }
0x132e   :  { %53 = sbr.rel (!%p51_p3) target bundleno = 41 (0x29), region = 250 }
0x1335   :  { %7700 = vsyncpa [#allocation3], 1 }
0x1336   :  { %7702 = vsyncpa [#allocation3 + $0x1], 1 }
0x1337   :  { %7703 = vsyncpa [#allocation6], 1 }
0x1338   :  { %7705 = vsyncpa [#allocation6 + $0x1], 1 }
0x1339   :  { %7706 = vsyncpa [#allocation9], 1 }
0x133a   :  { %7708 = vsyncpa [#allocation9 + $0x1], 1 }
0x133b   :  { %7709 = vsyncpa [#allocation12], 1 }
0x133c   :  { %7710 = vsyncpa [#allocation15], 1 }
0x133d   :  { %7711 = vsyncpa [#allocation18], 1 }
0x133e   :  { %7712 = vsyncpa [#allocation21], 1 }
0x133f   :  { %7713 = vsyncpa [#allocation4], 1 }
0x1340   :  { %7715 = vsyncpa [#allocation4 + $0x1], 1 }

</bundles_post_ra>
